<compile_context>
chip_gen: v7x
topology: tpu7x:2x2x1
jax: 0.10.0
libtpu: 0.0.40
codegen_flags: <defaults>
</compile_context>

<pallas_src>
import functools

import jax
import jax.numpy as jnp
from jax.experimental import pallas as pl
from jax.experimental.pallas import tpu as pltpu


# --------------------------------- kernel ------------------------------------

def resblock_kernel(x_ref, w1i_ref, w2_ref, w3_ref, lnp_ref, o_ref, *,
                    seq_len, k_size, pad, cout, inv_n):
    x = x_ref[...]                                    # (Cin_pad, N) f32, N = Bt*L
    n = x.shape[1]
    bt = n // seq_len

    # ---- per-invocation constants (hoisted once, amortized over the block) ----
    # lane index within its batch segment; conv-shift validity masks (also stop
    # rolls leaking across the batch segments packed along the lane axis)
    lane = jax.lax.broadcasted_iota(jnp.int32, (1, n), 1) % seq_len
    masks = {}
    for dk in range(k_size):
        off = dk - pad
        if off != 0 and off not in masks:
            masks[off] = (lane + off >= 0) & (lane + off < seq_len)
    ones_row = jnp.ones((1, n), jnp.float32)          # folded-bias row

    # factorized per-segment reduce (R) / broadcast (R^T) operators (replaces the
    # old O(N^2) segment matrix); built from iotas, no constant input needed.
    li = jax.lax.broadcasted_iota(jnp.int32, (n, bt), 0)
    sj = jax.lax.broadcasted_iota(jnp.int32, (n, bt), 1) * seq_len
    r_mat = ((li >= sj) & (li < sj + seq_len)).astype(jnp.float32)       # (N, Bt)
    si = jax.lax.broadcasted_iota(jnp.int32, (bt, n), 0) * seq_len
    lj = jax.lax.broadcasted_iota(jnp.int32, (bt, n), 1)
    r_mat_t = ((lj >= si) & (lj < si + seq_len)).astype(jnp.float32)     # (Bt, N)

    # tiling matrix T[l, i] = 1 iff (i mod L) == l : tiles (rows, L) -> (rows, N)
    t_mat = (jax.lax.broadcasted_iota(jnp.int32, (seq_len, n), 0)
             == lane).astype(jnp.float32)                                # (L, N)

    # LN affine params: packed (8*Cout, L) slab tiled across the Bt segments with
    # a single exact 0/1 matmul, then sliced per layer.  (f32 throughout.)
    lnp = jnp.dot(lnp_ref[...], t_mat, preferred_element_type=jnp.float32)
    g1, be1 = lnp[0 * cout:1 * cout], lnp[1 * cout:2 * cout]
    g2, be2 = lnp[2 * cout:3 * cout], lnp[3 * cout:4 * cout]
    g3, be3 = lnp[4 * cout:5 * cout], lnp[5 * cout:6 * cout]
    gi, bei = lnp[6 * cout:7 * cout], lnp[7 * cout:8 * cout]

    def pad_rows(h, rows):
        # zero-pad the channel (sublane) dim; no-op at the demo sizes
        if h.shape[0] == rows:
            return h
        return jnp.concatenate(
            [h, jnp.zeros((rows - h.shape[0], h.shape[1]), h.dtype)], axis=0)

    def conv(h, w_ref):
        # K taps + bias row fused into one bf16 MXU contraction (f32 accumulate).
        c_pad = (w_ref.shape[1] - 1) // k_size
        h = pad_rows(h, c_pad)
        parts = []
        for dk in range(k_size):
            off = dk - pad
            if off == 0:
                parts.append(h)                       # center tap: no roll/mask
            else:
                rolled = pltpu.roll(h, shift=(-off) % n, axis=1)
                parts.append(jnp.where(masks[off], rolled, 0.0))
        parts.append(ones_row)                        # folded conv bias
        xs = jnp.concatenate(parts, axis=0).astype(jnp.bfloat16)
        return jnp.dot(w_ref[...], xs, preferred_element_type=jnp.float32)

    def seg_mean(v):
        # per-batch-segment lane reduction + broadcast back; stats stay f32
        per_seg = jnp.dot(v, r_mat, preferred_element_type=jnp.float32)
        return jnp.dot(per_seg, r_mat_t, preferred_element_type=jnp.float32) * inv_n

    def ln(y, g, be, relu, eps=1e-5):
        # two-pass LayerNorm over (C, L) per batch segment (no E[y^2]-E[y]^2)
        mean = seg_mean(jnp.sum(y, axis=0, keepdims=True))
        d = y - mean
        var = seg_mean(jnp.sum(d * d, axis=0, keepdims=True))
        out = d * jax.lax.rsqrt(var + eps) * g + be
        return jnp.maximum(out, 0.0) if relu else out  # ReLU fused in epilogue

    # conv1 and the identity 1x1 conv fused into a single MXU push (shared x)
    y = conv(x, w1i_ref)                              # (2*Cout, N)
    h, ident = y[:cout], y[cout:]

    h = ln(h, g1, be1, relu=True)
    h = ln(conv(h, w2_ref), g2, be2, relu=True)
    h = ln(conv(h, w3_ref), g3, be3, relu=True)
    ident = ln(ident, gi, bei, relu=False)

    o_ref[...] = jnp.maximum(ident + h, 0.0)


# --------------------------------- wrapper -----------------------------------

def resblock_mae(x, kp, *, k_size, pad, block_batch=None):
    """x: (B, Cin, L) f32.  kp: kernel-layout params from to_kernel_params()."""
    B, Cin, L = x.shape
    cout = kp["lnp"].shape[0] // 8
    cin_pad = (kp["w1i"].shape[1] - 1) // k_size

    if block_batch is None:
        # target >= 512 lanes per grid step (review: 128-lane blocks too small)
        bt = min(B, max(1, -(-512 // L)))
        while B % bt != 0:
            bt -= 1
        block_batch = bt
    Bt = block_batch
    assert B % Bt == 0, "batch must be divisible by the batch block"
    N = Bt * L
    n_steps = B // Bt

    # pack batch on the lane axis: (B, Cin, L) -> (Cin_pad, B*L)
    x_packed = jnp.transpose(x, (1, 0, 2)).reshape(Cin, B * L)
    if cin_pad > Cin:
        x_packed = jnp.pad(x_packed, ((0, cin_pad - Cin), (0, 0)))

    consts = [kp["w1i"], kp["w2"], kp["w3"], kp["lnp"]]
    const_bytes = sum(int(c.size) * c.dtype.itemsize for c in consts)

    # generation-aware VMEM budget: derive from actual block / constant sizes,
    # stay well inside v7x's 64 MiB physical VMEM (v5e/v6e have 128 MiB).
    try:
        vmem_cap = int(pltpu.get_tpu_info().vmem_capacity_bytes)
    except Exception:
        vmem_cap = 64 * 1024 * 1024
    blk_io = 4 * N * (cin_pad + cout)                         # x/out blocks (f32)
    work = 4 * N * (k_size * max(cin_pad, cout) + 1 + 10 * cout)
    need = 2 * blk_io + 2 * work + 2 * const_bytes + (2 << 20)
    vmem_limit = int(min(max(need, 32 << 20), int(0.75 * vmem_cap)))

    # advisory cost hint
    mm_flops = 2 * N * (2 * cout * kp["w1i"].shape[1]
                        + cout * kp["w2"].shape[1] + cout * kp["w3"].shape[1])
    ln_flops = 4 * (8 * N * Bt + 8 * cout * N) + 2 * kp["lnp"].shape[0] * L * N
    cost = pl.CostEstimate(
        flops=int(n_steps * (mm_flops + ln_flops)),
        transcendentals=int(n_steps * 4 * N),
        bytes_accessed=int(4 * (int(x_packed.size) + B * cout * L) + const_bytes))

    kern = functools.partial(resblock_kernel, seq_len=L, k_size=k_size, pad=pad,
                             cout=cout, inv_n=1.0 / float(cout * L))
    out_shape = jax.ShapeDtypeStruct((cout, B * L), jnp.float32)
    cparams = pltpu.CompilerParams(dimension_semantics=("parallel",),
                                   vmem_limit_bytes=vmem_limit)

    def call(const_mode):
        def const_spec(c):
            idx = lambda b, _nd=c.ndim: (0,) * _nd
            if const_mode is None:
                return pl.BlockSpec(c.shape, idx)
            return pl.BlockSpec(c.shape, idx, pipeline_mode=const_mode)
        in_specs = ([pl.BlockSpec((cin_pad, N), lambda b: (0, b))]
                    + [const_spec(c) for c in consts])
        return pl.pallas_call(
            kern, out_shape=out_shape, grid=(n_steps,),
            in_specs=in_specs,
            out_specs=pl.BlockSpec((cout, N), lambda b: (0, b)),
            compiler_params=cparams, cost_estimate=cost,
        )(x_packed, *consts)

    try:
        # grid-invariant inputs: single-buffer (no double-buffering of constants)
        out_packed = call(pl.Buffered(1))
    except Exception:
        out_packed = call(None)        # fallback: default pipelining

    # (Cout, B*L) -> (B, Cout, L)
    return jnp.transpose(out_packed.reshape(cout, B, L), (1, 0, 2))


# ---------------------------- parameter creation -----------------------------

def init_raw_params(key, cin, cout, k, seq_len):
    """PyTorch-shaped params (Conv1d weight (Cout,Cin,K), bias (Cout,),
    LayerNorm weight/bias (Cout, L)), deterministic uniform init."""
    keys = jax.random.split(key, 8)

    def conv_init(kw, kb, co, ci, ks):
        bound = 1.0 / jnp.sqrt(ci * ks)
        w = jax.random.uniform(kw, (co, ci, ks), jnp.float32, -bound, bound)
        b = jax.random.uniform(kb, (co,), jnp.float32, -bound, bound)
        return w, b

    raw = {}
    raw["w1"], raw["b1"] = conv_init(keys[0], keys[1], cout, cin, k)
    raw["w2"], raw["b2"] = conv_init(keys[2], keys[3], cout, cout, k)
    raw["w3"], raw["b3"] = conv_init(keys[4], keys[5], cout, cout, k)
    raw["wi"], raw["bi"] = conv_init(keys[6], keys[7], cout, cin, 1)
    for name in ("g1", "g2", "g3", "gi"):
        raw[name] = jnp.ones((cout, seq_len), jnp.float32)
    for name in ("be1", "be2", "be3", "bei"):
        raw[name] = jnp.zeros((cout, seq_len), jnp.float32)
    return raw


def to_kernel_params(raw, *, k_size, pad, sublane=8):
    """Fold PyTorch-layout params into the fused kernel layout:
       - conv weights: in-channel dim zero-padded to a multiple of `sublane`,
         K taps stacked on the contraction axis, bias folded as the last column,
         cast to bf16 (MXU operand dtype);
       - conv1 and the identity 1x1 conv stacked on the output-row axis;
       - all LN affine params packed into one (8*Cout, L) f32 slab."""
    def stack_w(w, b):
        co, ci, k = w.shape
        ci_p = ((ci + sublane - 1) // sublane) * sublane
        w = jnp.pad(w, ((0, 0), (0, ci_p - ci), (0, 0)))
        w = jnp.transpose(w, (0, 2, 1)).reshape(co, k * ci_p)
        return jnp.concatenate([w, b[:, None]], axis=1)     # bias column

    cout, cin, _ = raw["w1"].shape
    cin_p = ((cin + sublane - 1) // sublane) * sublane

    w1 = stack_w(raw["w1"], raw["b1"])                      # (Cout, K*Cin_p + 1)
    # identity 1x1 conv placed in the center-tap columns of the same layout
    wi = jnp.zeros((cout, k_size * cin_p + 1), jnp.float32)
    wi = wi.at[:, pad * cin_p:pad * cin_p + cin].set(raw["wi"][:, :, 0])
    wi = wi.at[:, -1].set(raw["bi"])

    return {
        "w1i": jnp.concatenate([w1, wi], axis=0).astype(jnp.bfloat16),
        "w2": stack_w(raw["w2"], raw["b2"]).astype(jnp.bfloat16),
        "w3": stack_w(raw["w3"], raw["b3"]).astype(jnp.bfloat16),
        "lnp": jnp.concatenate([raw["g1"], raw["be1"], raw["g2"], raw["be2"],
                                raw["g3"], raw["be3"], raw["gi"], raw["bei"]],
                               axis=0),
    }


# ------------------------------ pure-JAX reference ---------------------------

def ref_forward(x, raw, pad):
    def conv(x, w, b, p):
        y = jax.lax.conv_general_dilated(
            x, w, window_strides=(1,), padding=[(p, p)],
            dimension_numbers=("NCH", "OIH", "NCH"))
        return y + b[None, :, None]

    def ln(y, g, bb, eps=1e-5):
        m = y.mean(axis=(1, 2), keepdims=True)
        v = ((y - m) ** 2).mean(axis=(1, 2), keepdims=True)
        return (y - m) / jnp.sqrt(v + eps) * g[None] + bb[None]

    h = jax.nn.relu(ln(conv(x, raw["w1"], raw["b1"], pad), raw["g1"], raw["be1"]))
    h = jax.nn.relu(ln(conv(h, raw["w2"], raw["b2"], pad), raw["g2"], raw["be2"]))
    h = jax.nn.relu(ln(conv(h, raw["w3"], raw["b3"], pad), raw["g3"], raw["be3"]))
    ident = ln(conv(x, raw["wi"], raw["bi"], 0), raw["gi"], raw["bei"])
    return jax.nn.relu(ident + h)


# ----------------------------------- main ------------------------------------

if __name__ == "__main__":
    # Bt=32 -> 512-lane blocks (lane-dense, grid overhead amortized); n_steps=2
    # stays even so both v7x TensorCores get work under ("parallel",).
    B, C_IN, C_OUT, L, K, PAD = 64, 4, 8, 16, 3, 1
    BT = 32

    key = jax.random.PRNGKey(0)
    kx, kp_key = jax.random.split(key)
    x = jax.random.normal(kx, (B, C_IN, L), jnp.float32)

    raw = init_raw_params(kp_key, C_IN, C_OUT, K, L)
    kp = to_kernel_params(raw, k_size=K, pad=PAD)

    out = resblock_mae(x, kp, k_size=K, pad=PAD, block_batch=BT)
    out = jax.block_until_ready(out)

    ref = jax.block_until_ready(ref_forward(x, raw, PAD))
    assert out.shape == (B, C_OUT, L)
    # bf16 MXU operands vs pure-f32 reference -> mixed-precision tolerance
    assert jnp.allclose(out, ref, atol=3e-2, rtol=3e-2), "mismatch vs reference"

    print("KERNEL_OK")
</pallas_src>

<mosaic_0001>
module attributes {stable_mosaic.version = 11 : i64} {
  func.func @resblock_kernel(%arg0: i32, %arg1: memref<8x512xf32, #tpu.memory_space<vmem>>, %arg2: memref<16x25xbf16, #tpu.memory_space<vmem>>, %arg3: memref<8x25xbf16, #tpu.memory_space<vmem>>, %arg4: memref<8x25xbf16, #tpu.memory_space<vmem>>, %arg5: memref<64x16xf32, #tpu.memory_space<vmem>>, %arg6: memref<8x512xf32, #tpu.memory_space<vmem>>) attributes {dimension_semantics = [#tpu.dimension_semantics<parallel>], iteration_bounds = array<i64: 2>, scalar_prefetch = 0 : i64, scratch_operands = 0 : i64, tpu.core_type = #tpu.core_type<tc>, window_params = [{transform_indices = @transform_0, window_bounds = array<i64: 8, 512>}, {pipeline_mode = #tpu.pipeline_mode<synchronous>, transform_indices = @transform_1, window_bounds = array<i64: 16, 25>}, {pipeline_mode = #tpu.pipeline_mode<synchronous>, transform_indices = @transform_2, window_bounds = array<i64: 8, 25>}, {pipeline_mode = #tpu.pipeline_mode<synchronous>, transform_indices = @transform_3, window_bounds = array<i64: 8, 25>}, {pipeline_mode = #tpu.pipeline_mode<synchronous>, transform_indices = @transform_4, window_bounds = array<i64: 64, 16>}, {transform_indices = @transform_5, window_bounds = array<i64: 8, 512>}]} {
    %c0 = arith.constant 0 : index
    %c0_0 = arith.constant 0 : index
    %0 = vector.load %arg1[%c0, %c0_0] : memref<8x512xf32, #tpu.memory_space<vmem>>, vector<8x512xf32>
    %1 = tpu.iota {dimensions = array<i32: 1>} : vector<1x512xi32>
    %c16_i32 = arith.constant 16 : i32
    %c0_i32 = arith.constant 0 : i32
    %2 = arith.cmpi eq, %c16_i32, %c0_i32 : i32
    %c1_i32 = arith.constant 1 : i32
    %3 = arith.select %2, %c1_i32, %c16_i32 : i32
    %4 = vector.broadcast %3 : i32 to vector<1x512xi32>
    %5 = arith.remsi %1, %4 : vector<1x512xi32>
    %c0_i32_1 = arith.constant 0 : i32
    %6 = vector.broadcast %c0_i32_1 : i32 to vector<1x512xi32>
    %7 = arith.cmpi ne, %5, %6 : vector<1x512xi32>
    %c0_i32_2 = arith.constant 0 : i32
    %8 = vector.broadcast %c0_i32_2 : i32 to vector<1x512xi32>
    %9 = arith.cmpi slt, %5, %8 : vector<1x512xi32>
    %c0_i32_3 = arith.constant 0 : i32
    %10 = arith.cmpi slt, %3, %c0_i32_3 : i32
    %11 = vector.broadcast %10 : i1 to vector<1x512xi1>
    %12 = vector.broadcast %11 : vector<1x512xi1> to vector<1x512xi1>
    %13 = arith.xori %9, %12 : vector<1x512xi1>
    %14 = arith.andi %13, %7 : vector<1x512xi1>
    %15 = vector.broadcast %3 : i32 to vector<1x512xi32>
    %16 = arith.addi %5, %15 : vector<1x512xi32>
    %17 = arith.select %14, %16, %5 : vector<1x512xi1>, vector<1x512xi32>
    %c-1_i32 = arith.constant -1 : i32
    %18 = vector.broadcast %c-1_i32 : i32 to vector<1x512xi32>
    %19 = arith.addi %17, %18 : vector<1x512xi32>
    %c0_i32_4 = arith.constant 0 : i32
    %20 = vector.broadcast %c0_i32_4 : i32 to vector<1x512xi32>
    %21 = arith.cmpi sge, %19, %20 : vector<1x512xi32>
    %c-1_i32_5 = arith.constant -1 : i32
    %22 = vector.broadcast %c-1_i32_5 : i32 to vector<1x512xi32>
    %23 = arith.addi %17, %22 : vector<1x512xi32>
    %c16_i32_6 = arith.constant 16 : i32
    %24 = vector.broadcast %c16_i32_6 : i32 to vector<1x512xi32>
    %25 = arith.cmpi slt, %23, %24 : vector<1x512xi32>
    %26 = arith.andi %21, %25 : vector<1x512xi1>
    %c1_i32_7 = arith.constant 1 : i32
    %27 = vector.broadcast %c1_i32_7 : i32 to vector<1x512xi32>
    %28 = arith.addi %17, %27 : vector<1x512xi32>
    %c0_i32_8 = arith.constant 0 : i32
    %29 = vector.broadcast %c0_i32_8 : i32 to vector<1x512xi32>
    %30 = arith.cmpi sge, %28, %29 : vector<1x512xi32>
    %c1_i32_9 = arith.constant 1 : i32
    %31 = vector.broadcast %c1_i32_9 : i32 to vector<1x512xi32>
    %32 = arith.addi %17, %31 : vector<1x512xi32>
    %c16_i32_10 = arith.constant 16 : i32
    %33 = vector.broadcast %c16_i32_10 : i32 to vector<1x512xi32>
    %34 = arith.cmpi slt, %32, %33 : vector<1x512xi32>
    %35 = arith.andi %30, %34 : vector<1x512xi1>
    %cst = arith.constant 1.000000e+00 : f32
    %36 = vector.broadcast %cst : f32 to vector<1x512xf32>
    %37 = tpu.iota {dimensions = array<i32: 0>} : vector<512x32xi32>
    %38 = tpu.iota {dimensions = array<i32: 1>} : vector<512x32xi32>
    %c16_i32_11 = arith.constant 16 : i32
    %39 = vector.broadcast %c16_i32_11 : i32 to vector<512x32xi32>
    %40 = arith.muli %38, %39 : vector<512x32xi32>
    %41 = arith.cmpi sge, %37, %40 : vector<512x32xi32>
    %c16_i32_12 = arith.constant 16 : i32
    %42 = vector.broadcast %c16_i32_12 : i32 to vector<512x32xi32>
    %43 = arith.addi %40, %42 : vector<512x32xi32>
    %44 = arith.cmpi slt, %37, %43 : vector<512x32xi32>
    %45 = arith.andi %41, %44 : vector<512x32xi1>
    %46 = arith.extui %45 : vector<512x32xi1> to vector<512x32xi32>
    %47 = arith.sitofp %46 : vector<512x32xi32> to vector<512x32xf32>
    %48 = tpu.iota {dimensions = array<i32: 0>} : vector<32x512xi32>
    %c16_i32_13 = arith.constant 16 : i32
    %49 = vector.broadcast %c16_i32_13 : i32 to vector<32x512xi32>
    %50 = arith.muli %48, %49 : vector<32x512xi32>
    %51 = tpu.iota {dimensions = array<i32: 1>} : vector<32x512xi32>
    %52 = arith.cmpi sge, %51, %50 : vector<32x512xi32>
    %c16_i32_14 = arith.constant 16 : i32
    %53 = vector.broadcast %c16_i32_14 : i32 to vector<32x512xi32>
    %54 = arith.addi %50, %53 : vector<32x512xi32>
    %55 = arith.cmpi slt, %51, %54 : vector<32x512xi32>
    %56 = arith.andi %52, %55 : vector<32x512xi1>
    %57 = arith.extui %56 : vector<32x512xi1> to vector<32x512xi32>
    %58 = arith.sitofp %57 : vector<32x512xi32> to vector<32x512xf32>
    %59 = tpu.iota {dimensions = array<i32: 0>} : vector<16x512xi32>
    %60 = vector.broadcast %17 : vector<1x512xi32> to vector<16x512xi32>
    %61 = arith.cmpi eq, %59, %60 : vector<16x512xi32>
    %62 = arith.extui %61 : vector<16x512xi1> to vector<16x512xi32>
    %63 = arith.sitofp %62 : vector<16x512xi32> to vector<16x512xf32>
    %c0_15 = arith.constant 0 : index
    %c0_16 = arith.constant 0 : index
    %64 = vector.load %arg5[%c0_15, %c0_16] : memref<64x16xf32, #tpu.memory_space<vmem>>, vector<64x16xf32>
    %cst_17 = arith.constant dense<0.000000e+00> : vector<64x512xf32>
    %65 = tpu.matmul %64, %63, %cst_17 {dimension_numbers = #tpu.dot_dimension_numbers<[1], [0], [0], [1], [0, 0, 1, 1], [], []>} : vector<64x16xf32>, vector<16x512xf32>, vector<64x512xf32> -> vector<64x512xf32>
    %66 = vector.extract_strided_slice %65 {offsets = [0, 0], sizes = [8, 512], strides = [1, 1]} : vector<64x512xf32> to vector<8x512xf32>
    %67 = vector.extract_strided_slice %65 {offsets = [8, 0], sizes = [8, 512], strides = [1, 1]} : vector<64x512xf32> to vector<8x512xf32>
    %68 = vector.extract_strided_slice %65 {offsets = [16, 0], sizes = [8, 512], strides = [1, 1]} : vector<64x512xf32> to vector<8x512xf32>
    %69 = vector.extract_strided_slice %65 {offsets = [24, 0], sizes = [8, 512], strides = [1, 1]} : vector<64x512xf32> to vector<8x512xf32>
    %70 = vector.extract_strided_slice %65 {offsets = [32, 0], sizes = [8, 512], strides = [1, 1]} : vector<64x512xf32> to vector<8x512xf32>
    %71 = vector.extract_strided_slice %65 {offsets = [40, 0], sizes = [8, 512], strides = [1, 1]} : vector<64x512xf32> to vector<8x512xf32>
    %72 = vector.extract_strided_slice %65 {offsets = [48, 0], sizes = [8, 512], strides = [1, 1]} : vector<64x512xf32> to vector<8x512xf32>
    %73 = vector.extract_strided_slice %65 {offsets = [56, 0], sizes = [8, 512], strides = [1, 1]} : vector<64x512xf32> to vector<8x512xf32>
    %c1_i32_18 = arith.constant 1 : i32
    %74 = tpu.dynamic_rotate %0 by %c1_i32_18 dim 1 : vector<8x512xf32>, i32 -> vector<8x512xf32>
    %cst_19 = arith.constant 0.000000e+00 : f32
    %75 = vector.shape_cast %26 : vector<1x512xi1> to vector<1x512xi1>
    %76 = vector.broadcast %75 : vector<1x512xi1> to vector<8x512xi1>
    %77 = vector.broadcast %cst_19 : f32 to vector<8x512xf32>
    %78 = arith.select %76, %74, %77 : vector<8x512xi1>, vector<8x512xf32>
    %c511_i32 = arith.constant 511 : i32
    %79 = tpu.dynamic_rotate %0 by %c511_i32 dim 1 : vector<8x512xf32>, i32 -> vector<8x512xf32>
    %cst_20 = arith.constant 0.000000e+00 : f32
    %80 = vector.shape_cast %35 : vector<1x512xi1> to vector<1x512xi1>
    %81 = vector.broadcast %80 : vector<1x512xi1> to vector<8x512xi1>
    %82 = vector.broadcast %cst_20 : f32 to vector<8x512xf32>
    %83 = arith.select %81, %79, %82 : vector<8x512xi1>, vector<8x512xf32>
    %84 = tpu.concatenate %78, %0, %83, %36 in 0 : vector<8x512xf32>, vector<8x512xf32>, vector<8x512xf32>, vector<1x512xf32> -> vector<25x512xf32>
    %85 = arith.truncf %84 : vector<25x512xf32> to vector<25x512xbf16>
    %c0_21 = arith.constant 0 : index
    %c0_22 = arith.constant 0 : index
    %86 = vector.load %arg2[%c0_21, %c0_22] : memref<16x25xbf16, #tpu.memory_space<vmem>>, vector<16x25xbf16>
    %cst_23 = arith.constant dense<0.000000e+00> : vector<16x512xf32>
    %87 = tpu.matmul %86, %85, %cst_23 {dimension_numbers = #tpu.dot_dimension_numbers<[1], [0], [0], [1], [0, 0, 1, 1], [], []>} : vector<16x25xbf16>, vector<25x512xbf16>, vector<16x512xf32> -> vector<16x512xf32>
    %88 = vector.extract_strided_slice %87 {offsets = [0, 0], sizes = [8, 512], strides = [1, 1]} : vector<16x512xf32> to vector<8x512xf32>
    %89 = vector.extract_strided_slice %87 {offsets = [8, 0], sizes = [8, 512], strides = [1, 1]} : vector<16x512xf32> to vector<8x512xf32>
    %cst_24 = arith.constant dense<0.000000e+00> : vector<512xf32>
    %90 = vector.multi_reduction <add>, %88, %cst_24 [0] : vector<8x512xf32> to vector<512xf32>
    %91 = vector.shape_cast %90 : vector<512xf32> to vector<1x512xf32>
    %cst_25 = arith.constant dense<0.000000e+00> : vector<1x32xf32>
    %92 = tpu.matmul %91, %47, %cst_25 {dimension_numbers = #tpu.dot_dimension_numbers<[1], [0], [0], [1], [0, 0, 1, 1], [], []>} : vector<1x512xf32>, vector<512x32xf32>, vector<1x32xf32> -> vector<1x32xf32>
    %cst_26 = arith.constant dense<0.000000e+00> : vector<1x512xf32>
    %93 = tpu.matmul %92, %58, %cst_26 {dimension_numbers = #tpu.dot_dimension_numbers<[1], [0], [0], [1], [0, 0, 1, 1], [], []>} : vector<1x32xf32>, vector<32x512xf32>, vector<1x512xf32> -> vector<1x512xf32>
    %cst_27 = arith.constant 7.812500e-03 : f32
    %94 = vector.broadcast %cst_27 : f32 to vector<1x512xf32>
    %95 = arith.mulf %93, %94 : vector<1x512xf32>
    %96 = vector.broadcast %95 : vector<1x512xf32> to vector<8x512xf32>
    %97 = arith.subf %88, %96 : vector<8x512xf32>
    %98 = arith.mulf %97, %97 : vector<8x512xf32>
    %cst_28 = arith.constant dense<0.000000e+00> : vector<512xf32>
    %99 = vector.multi_reduction <add>, %98, %cst_28 [0] : vector<8x512xf32> to vector<512xf32>
    %100 = vector.shape_cast %99 : vector<512xf32> to vector<1x512xf32>
    %cst_29 = arith.constant dense<0.000000e+00> : vector<1x32xf32>
    %101 = tpu.matmul %100, %47, %cst_29 {dimension_numbers = #tpu.dot_dimension_numbers<[1], [0], [0], [1], [0, 0, 1, 1], [], []>} : vector<1x512xf32>, vector<512x32xf32>, vector<1x32xf32> -> vector<1x32xf32>
    %cst_30 = arith.constant dense<0.000000e+00> : vector<1x512xf32>
    %102 = tpu.matmul %101, %58, %cst_30 {dimension_numbers = #tpu.dot_dimension_numbers<[1], [0], [0], [1], [0, 0, 1, 1], [], []>} : vector<1x32xf32>, vector<32x512xf32>, vector<1x512xf32> -> vector<1x512xf32>
    %cst_31 = arith.constant 7.812500e-03 : f32
    %103 = vector.broadcast %cst_31 : f32 to vector<1x512xf32>
    %104 = arith.mulf %102, %103 : vector<1x512xf32>
    %cst_32 = arith.constant 9.99999974E-6 : f32
    %105 = vector.broadcast %cst_32 : f32 to vector<1x512xf32>
    %106 = arith.addf %104, %105 : vector<1x512xf32>
    %107 = math.rsqrt %106 : vector<1x512xf32>
    %108 = vector.broadcast %107 : vector<1x512xf32> to vector<8x512xf32>
    %109 = arith.mulf %97, %108 : vector<8x512xf32>
    %110 = arith.mulf %109, %66 : vector<8x512xf32>
    %111 = arith.addf %110, %67 : vector<8x512xf32>
    %cst_33 = arith.constant 0.000000e+00 : f32
    %112 = vector.broadcast %cst_33 : f32 to vector<8x512xf32>
    %113 = arith.maximumf %111, %112 : vector<8x512xf32>
    %c1_i32_34 = arith.constant 1 : i32
    %114 = tpu.dynamic_rotate %113 by %c1_i32_34 dim 1 : vector<8x512xf32>, i32 -> vector<8x512xf32>
    %cst_35 = arith.constant 0.000000e+00 : f32
    %115 = vector.shape_cast %26 : vector<1x512xi1> to vector<1x512xi1>
    %116 = vector.broadcast %115 : vector<1x512xi1> to vector<8x512xi1>
    %117 = vector.broadcast %cst_35 : f32 to vector<8x512xf32>
    %118 = arith.select %116, %114, %117 : vector<8x512xi1>, vector<8x512xf32>
    %c511_i32_36 = arith.constant 511 : i32
    %119 = tpu.dynamic_rotate %113 by %c511_i32_36 dim 1 : vector<8x512xf32>, i32 -> vector<8x512xf32>
    %cst_37 = arith.constant 0.000000e+00 : f32
    %120 = vector.shape_cast %35 : vector<1x512xi1> to vector<1x512xi1>
    %121 = vector.broadcast %120 : vector<1x512xi1> to vector<8x512xi1>
    %122 = vector.broadcast %cst_37 : f32 to vector<8x512xf32>
    %123 = arith.select %121, %119, %122 : vector<8x512xi1>, vector<8x512xf32>
    %124 = tpu.concatenate %118, %113, %123, %36 in 0 : vector<8x512xf32>, vector<8x512xf32>, vector<8x512xf32>, vector<1x512xf32> -> vector<25x512xf32>
    %125 = arith.truncf %124 : vector<25x512xf32> to vector<25x512xbf16>
    %c0_38 = arith.constant 0 : index
    %c0_39 = arith.constant 0 : index
    %126 = vector.load %arg3[%c0_38, %c0_39] : memref<8x25xbf16, #tpu.memory_space<vmem>>, vector<8x25xbf16>
    %cst_40 = arith.constant dense<0.000000e+00> : vector<8x512xf32>
    %127 = tpu.matmul %126, %125, %cst_40 {dimension_numbers = #tpu.dot_dimension_numbers<[1], [0], [0], [1], [0, 0, 1, 1], [], []>} : vector<8x25xbf16>, vector<25x512xbf16>, vector<8x512xf32> -> vector<8x512xf32>
    %cst_41 = arith.constant dense<0.000000e+00> : vector<512xf32>
    %128 = vector.multi_reduction <add>, %127, %cst_41 [0] : vector<8x512xf32> to vector<512xf32>
    %129 = vector.shape_cast %128 : vector<512xf32> to vector<1x512xf32>
    %cst_42 = arith.constant dense<0.000000e+00> : vector<1x32xf32>
    %130 = tpu.matmul %129, %47, %cst_42 {dimension_numbers = #tpu.dot_dimension_numbers<[1], [0], [0], [1], [0, 0, 1, 1], [], []>} : vector<1x512xf32>, vector<512x32xf32>, vector<1x32xf32> -> vector<1x32xf32>
    %cst_43 = arith.constant dense<0.000000e+00> : vector<1x512xf32>
    %131 = tpu.matmul %130, %58, %cst_43 {dimension_numbers = #tpu.dot_dimension_numbers<[1], [0], [0], [1], [0, 0, 1, 1], [], []>} : vector<1x32xf32>, vector<32x512xf32>, vector<1x512xf32> -> vector<1x512xf32>
    %cst_44 = arith.constant 7.812500e-03 : f32
    %132 = vector.broadcast %cst_44 : f32 to vector<1x512xf32>
    %133 = arith.mulf %131, %132 : vector<1x512xf32>
    %134 = vector.broadcast %133 : vector<1x512xf32> to vector<8x512xf32>
    %135 = arith.subf %127, %134 : vector<8x512xf32>
    %136 = arith.mulf %135, %135 : vector<8x512xf32>
    %cst_45 = arith.constant dense<0.000000e+00> : vector<512xf32>
    %137 = vector.multi_reduction <add>, %136, %cst_45 [0] : vector<8x512xf32> to vector<512xf32>
    %138 = vector.shape_cast %137 : vector<512xf32> to vector<1x512xf32>
    %cst_46 = arith.constant dense<0.000000e+00> : vector<1x32xf32>
    %139 = tpu.matmul %138, %47, %cst_46 {dimension_numbers = #tpu.dot_dimension_numbers<[1], [0], [0], [1], [0, 0, 1, 1], [], []>} : vector<1x512xf32>, vector<512x32xf32>, vector<1x32xf32> -> vector<1x32xf32>
    %cst_47 = arith.constant dense<0.000000e+00> : vector<1x512xf32>
    %140 = tpu.matmul %139, %58, %cst_47 {dimension_numbers = #tpu.dot_dimension_numbers<[1], [0], [0], [1], [0, 0, 1, 1], [], []>} : vector<1x32xf32>, vector<32x512xf32>, vector<1x512xf32> -> vector<1x512xf32>
    %cst_48 = arith.constant 7.812500e-03 : f32
    %141 = vector.broadcast %cst_48 : f32 to vector<1x512xf32>
    %142 = arith.mulf %140, %141 : vector<1x512xf32>
    %cst_49 = arith.constant 9.99999974E-6 : f32
    %143 = vector.broadcast %cst_49 : f32 to vector<1x512xf32>
    %144 = arith.addf %142, %143 : vector<1x512xf32>
    %145 = math.rsqrt %144 : vector<1x512xf32>
    %146 = vector.broadcast %145 : vector<1x512xf32> to vector<8x512xf32>
    %147 = arith.mulf %135, %146 : vector<8x512xf32>
    %148 = arith.mulf %147, %68 : vector<8x512xf32>
    %149 = arith.addf %148, %69 : vector<8x512xf32>
    %cst_50 = arith.constant 0.000000e+00 : f32
    %150 = vector.broadcast %cst_50 : f32 to vector<8x512xf32>
    %151 = arith.maximumf %149, %150 : vector<8x512xf32>
    %c1_i32_51 = arith.constant 1 : i32
    %152 = tpu.dynamic_rotate %151 by %c1_i32_51 dim 1 : vector<8x512xf32>, i32 -> vector<8x512xf32>
    %cst_52 = arith.constant 0.000000e+00 : f32
    %153 = vector.shape_cast %26 : vector<1x512xi1> to vector<1x512xi1>
    %154 = vector.broadcast %153 : vector<1x512xi1> to vector<8x512xi1>
    %155 = vector.broadcast %cst_52 : f32 to vector<8x512xf32>
    %156 = arith.select %154, %152, %155 : vector<8x512xi1>, vector<8x512xf32>
    %c511_i32_53 = arith.constant 511 : i32
    %157 = tpu.dynamic_rotate %151 by %c511_i32_53 dim 1 : vector<8x512xf32>, i32 -> vector<8x512xf32>
    %cst_54 = arith.constant 0.000000e+00 : f32
    %158 = vector.shape_cast %35 : vector<1x512xi1> to vector<1x512xi1>
    %159 = vector.broadcast %158 : vector<1x512xi1> to vector<8x512xi1>
    %160 = vector.broadcast %cst_54 : f32 to vector<8x512xf32>
    %161 = arith.select %159, %157, %160 : vector<8x512xi1>, vector<8x512xf32>
    %162 = tpu.concatenate %156, %151, %161, %36 in 0 : vector<8x512xf32>, vector<8x512xf32>, vector<8x512xf32>, vector<1x512xf32> -> vector<25x512xf32>
    %163 = arith.truncf %162 : vector<25x512xf32> to vector<25x512xbf16>
    %c0_55 = arith.constant 0 : index
    %c0_56 = arith.constant 0 : index
    %164 = vector.load %arg4[%c0_55, %c0_56] : memref<8x25xbf16, #tpu.memory_space<vmem>>, vector<8x25xbf16>
    %cst_57 = arith.constant dense<0.000000e+00> : vector<8x512xf32>
    %165 = tpu.matmul %164, %163, %cst_57 {dimension_numbers = #tpu.dot_dimension_numbers<[1], [0], [0], [1], [0, 0, 1, 1], [], []>} : vector<8x25xbf16>, vector<25x512xbf16>, vector<8x512xf32> -> vector<8x512xf32>
    %cst_58 = arith.constant dense<0.000000e+00> : vector<512xf32>
    %166 = vector.multi_reduction <add>, %165, %cst_58 [0] : vector<8x512xf32> to vector<512xf32>
    %167 = vector.shape_cast %166 : vector<512xf32> to vector<1x512xf32>
    %cst_59 = arith.constant dense<0.000000e+00> : vector<1x32xf32>
    %168 = tpu.matmul %167, %47, %cst_59 {dimension_numbers = #tpu.dot_dimension_numbers<[1], [0], [0], [1], [0, 0, 1, 1], [], []>} : vector<1x512xf32>, vector<512x32xf32>, vector<1x32xf32> -> vector<1x32xf32>
    %cst_60 = arith.constant dense<0.000000e+00> : vector<1x512xf32>
    %169 = tpu.matmul %168, %58, %cst_60 {dimension_numbers = #tpu.dot_dimension_numbers<[1], [0], [0], [1], [0, 0, 1, 1], [], []>} : vector<1x32xf32>, vector<32x512xf32>, vector<1x512xf32> -> vector<1x512xf32>
    %cst_61 = arith.constant 7.812500e-03 : f32
    %170 = vector.broadcast %cst_61 : f32 to vector<1x512xf32>
    %171 = arith.mulf %169, %170 : vector<1x512xf32>
    %172 = vector.broadcast %171 : vector<1x512xf32> to vector<8x512xf32>
    %173 = arith.subf %165, %172 : vector<8x512xf32>
    %174 = arith.mulf %173, %173 : vector<8x512xf32>
    %cst_62 = arith.constant dense<0.000000e+00> : vector<512xf32>
    %175 = vector.multi_reduction <add>, %174, %cst_62 [0] : vector<8x512xf32> to vector<512xf32>
    %176 = vector.shape_cast %175 : vector<512xf32> to vector<1x512xf32>
    %cst_63 = arith.constant dense<0.000000e+00> : vector<1x32xf32>
    %177 = tpu.matmul %176, %47, %cst_63 {dimension_numbers = #tpu.dot_dimension_numbers<[1], [0], [0], [1], [0, 0, 1, 1], [], []>} : vector<1x512xf32>, vector<512x32xf32>, vector<1x32xf32> -> vector<1x32xf32>
    %cst_64 = arith.constant dense<0.000000e+00> : vector<1x512xf32>
    %178 = tpu.matmul %177, %58, %cst_64 {dimension_numbers = #tpu.dot_dimension_numbers<[1], [0], [0], [1], [0, 0, 1, 1], [], []>} : vector<1x32xf32>, vector<32x512xf32>, vector<1x512xf32> -> vector<1x512xf32>
    %cst_65 = arith.constant 7.812500e-03 : f32
    %179 = vector.broadcast %cst_65 : f32 to vector<1x512xf32>
    %180 = arith.mulf %178, %179 : vector<1x512xf32>
    %cst_66 = arith.constant 9.99999974E-6 : f32
    %181 = vector.broadcast %cst_66 : f32 to vector<1x512xf32>
    %182 = arith.addf %180, %181 : vector<1x512xf32>
    %183 = math.rsqrt %182 : vector<1x512xf32>
    %184 = vector.broadcast %183 : vector<1x512xf32> to vector<8x512xf32>
    %185 = arith.mulf %173, %184 : vector<8x512xf32>
    %186 = arith.mulf %185, %70 : vector<8x512xf32>
    %187 = arith.addf %186, %71 : vector<8x512xf32>
    %cst_67 = arith.constant 0.000000e+00 : f32
    %188 = vector.broadcast %cst_67 : f32 to vector<8x512xf32>
    %189 = arith.maximumf %187, %188 : vector<8x512xf32>
    %cst_68 = arith.constant dense<0.000000e+00> : vector<512xf32>
    %190 = vector.multi_reduction <add>, %89, %cst_68 [0] : vector<8x512xf32> to vector<512xf32>
    %191 = vector.shape_cast %190 : vector<512xf32> to vector<1x512xf32>
    %cst_69 = arith.constant dense<0.000000e+00> : vector<1x32xf32>
    %192 = tpu.matmul %191, %47, %cst_69 {dimension_numbers = #tpu.dot_dimension_numbers<[1], [0], [0], [1], [0, 0, 1, 1], [], []>} : vector<1x512xf32>, vector<512x32xf32>, vector<1x32xf32> -> vector<1x32xf32>
    %cst_70 = arith.constant dense<0.000000e+00> : vector<1x512xf32>
    %193 = tpu.matmul %192, %58, %cst_70 {dimension_numbers = #tpu.dot_dimension_numbers<[1], [0], [0], [1], [0, 0, 1, 1], [], []>} : vector<1x32xf32>, vector<32x512xf32>, vector<1x512xf32> -> vector<1x512xf32>
    %cst_71 = arith.constant 7.812500e-03 : f32
    %194 = vector.broadcast %cst_71 : f32 to vector<1x512xf32>
    %195 = arith.mulf %193, %194 : vector<1x512xf32>
    %196 = vector.broadcast %195 : vector<1x512xf32> to vector<8x512xf32>
    %197 = arith.subf %89, %196 : vector<8x512xf32>
    %198 = arith.mulf %197, %197 : vector<8x512xf32>
    %cst_72 = arith.constant dense<0.000000e+00> : vector<512xf32>
    %199 = vector.multi_reduction <add>, %198, %cst_72 [0] : vector<8x512xf32> to vector<512xf32>
    %200 = vector.shape_cast %199 : vector<512xf32> to vector<1x512xf32>
    %cst_73 = arith.constant dense<0.000000e+00> : vector<1x32xf32>
    %201 = tpu.matmul %200, %47, %cst_73 {dimension_numbers = #tpu.dot_dimension_numbers<[1], [0], [0], [1], [0, 0, 1, 1], [], []>} : vector<1x512xf32>, vector<512x32xf32>, vector<1x32xf32> -> vector<1x32xf32>
    %cst_74 = arith.constant dense<0.000000e+00> : vector<1x512xf32>
    %202 = tpu.matmul %201, %58, %cst_74 {dimension_numbers = #tpu.dot_dimension_numbers<[1], [0], [0], [1], [0, 0, 1, 1], [], []>} : vector<1x32xf32>, vector<32x512xf32>, vector<1x512xf32> -> vector<1x512xf32>
    %cst_75 = arith.constant 7.812500e-03 : f32
    %203 = vector.broadcast %cst_75 : f32 to vector<1x512xf32>
    %204 = arith.mulf %202, %203 : vector<1x512xf32>
    %cst_76 = arith.constant 9.99999974E-6 : f32
    %205 = vector.broadcast %cst_76 : f32 to vector<1x512xf32>
    %206 = arith.addf %204, %205 : vector<1x512xf32>
    %207 = math.rsqrt %206 : vector<1x512xf32>
    %208 = vector.broadcast %207 : vector<1x512xf32> to vector<8x512xf32>
    %209 = arith.mulf %197, %208 : vector<8x512xf32>
    %210 = arith.mulf %209, %72 : vector<8x512xf32>
    %211 = arith.addf %210, %73 : vector<8x512xf32>
    %212 = arith.addf %211, %189 : vector<8x512xf32>
    %cst_77 = arith.constant 0.000000e+00 : f32
    %213 = vector.broadcast %cst_77 : f32 to vector<8x512xf32>
    %214 = arith.maximumf %212, %213 : vector<8x512xf32>
    %c0_78 = arith.constant 0 : index
    %c0_79 = arith.constant 0 : index
    %215 = vector.load %arg6[%c0_78, %c0_79] : memref<8x512xf32, #tpu.memory_space<vmem>>, vector<8x512xf32>
    tpu.vector_store %arg6[%c0_78, %c0_79], %214 {strides = array<i32>} : memref<8x512xf32, #tpu.memory_space<vmem>>, vector<8x512xf32>,
    return
  }
  func.func @transform_0(%arg0: i32) -> (i32, i32) {
    %c0_i32 = arith.constant 0 : i32
    %c0_i32_0 = arith.constant 0 : i32
    return %c0_i32, %arg0 : i32, i32
  }
  func.func @transform_1(%arg0: i32) -> (i32, i32) {
    %c0_i32 = arith.constant 0 : i32
    %c0_i32_0 = arith.constant 0 : i32
    %c0_i32_1 = arith.constant 0 : i32
    return %c0_i32, %c0_i32_0 : i32, i32
  }
  func.func @transform_2(%arg0: i32) -> (i32, i32) {
    %c0_i32 = arith.constant 0 : i32
    %c0_i32_0 = arith.constant 0 : i32
    %c0_i32_1 = arith.constant 0 : i32
    return %c0_i32, %c0_i32_0 : i32, i32
  }
  func.func @transform_3(%arg0: i32) -> (i32, i32) {
    %c0_i32 = arith.constant 0 : i32
    %c0_i32_0 = arith.constant 0 : i32
    %c0_i32_1 = arith.constant 0 : i32
    return %c0_i32, %c0_i32_0 : i32, i32
  }
  func.func @transform_4(%arg0: i32) -> (i32, i32) {
    %c0_i32 = arith.constant 0 : i32
    %c0_i32_0 = arith.constant 0 : i32
    %c0_i32_1 = arith.constant 0 : i32
    return %c0_i32, %c0_i32_0 : i32, i32
  }
  func.func @transform_5(%arg0: i32) -> (i32, i32) {
    %c0_i32 = arith.constant 0 : i32
    %c0_i32_0 = arith.constant 0 : i32
    return %c0_i32, %arg0 : i32, i32
  }
}

module attributes {stable_mosaic.version = 11 : i64} {
  func.func @resblock_kernel(%arg0: i32, %arg1: memref<8x512xf32, #tpu.memory_space<vmem>>, %arg2: memref<16x25xbf16, #tpu.memory_space<vmem>>, %arg3: memref<8x25xbf16, #tpu.memory_space<vmem>>, %arg4: memref<8x25xbf16, #tpu.memory_space<vmem>>, %arg5: memref<64x16xf32, #tpu.memory_space<vmem>>, %arg6: memref<8x512xf32, #tpu.memory_space<vmem>>) attributes {dimension_semantics = [#tpu.dimension_semantics<parallel>], iteration_bounds = array<i64: 2>, scalar_prefetch = 0 : i64, scratch_operands = 0 : i64, tpu.core_type = #tpu.core_type<tc>, window_params = [{transform_indices = @transform_0, window_bounds = array<i64: 8, 512>}, {pipeline_mode = #tpu.pipeline_mode<synchronous>, transform_indices = @transform_1, window_bounds = array<i64: 16, 25>}, {pipeline_mode = #tpu.pipeline_mode<synchronous>, transform_indices = @transform_2, window_bounds = array<i64: 8, 25>}, {pipeline_mode = #tpu.pipeline_mode<synchronous>, transform_indices = @transform_3, window_bounds = array<i64: 8, 25>}, {pipeline_mode = #tpu.pipeline_mode<synchronous>, transform_indices = @transform_4, window_bounds = array<i64: 64, 16>}, {transform_indices = @transform_5, window_bounds = array<i64: 8, 512>}]} {
    %c0 = arith.constant 0 : index
    %c0_0 = arith.constant 0 : index
    %0 = vector.load %arg1[%c0, %c0_0] : memref<8x512xf32, #tpu.memory_space<vmem>>, vector<8x512xf32>
    %1 = tpu.iota {dimensions = array<i32: 1>} : vector<1x512xi32>
    %c16_i32 = arith.constant 16 : i32
    %c0_i32 = arith.constant 0 : i32
    %2 = arith.cmpi eq, %c16_i32, %c0_i32 : i32
    %c1_i32 = arith.constant 1 : i32
    %3 = arith.select %2, %c1_i32, %c16_i32 : i32
    %4 = vector.broadcast %3 : i32 to vector<1x512xi32>
    %5 = arith.remsi %1, %4 : vector<1x512xi32>
    %c0_i32_1 = arith.constant 0 : i32
    %6 = vector.broadcast %c0_i32_1 : i32 to vector<1x512xi32>
    %7 = arith.cmpi ne, %5, %6 : vector<1x512xi32>
    %c0_i32_2 = arith.constant 0 : i32
    %8 = vector.broadcast %c0_i32_2 : i32 to vector<1x512xi32>
    %9 = arith.cmpi slt, %5, %8 : vector<1x512xi32>
    %c0_i32_3 = arith.constant 0 : i32
    %10 = arith.cmpi slt, %3, %c0_i32_3 : i32
    %11 = vector.broadcast %10 : i1 to vector<1x512xi1>
    %12 = vector.broadcast %11 : vector<1x512xi1> to vector<1x512xi1>
    %13 = arith.xori %9, %12 : vector<1x512xi1>
    %14 = arith.andi %13, %7 : vector<1x512xi1>
    %15 = vector.broadcast %3 : i32 to vector<1x512xi32>
    %16 = arith.addi %5, %15 : vector<1x512xi32>
    %17 = arith.select %14, %16, %5 : vector<1x512xi1>, vector<1x512xi32>
    %c-1_i32 = arith.constant -1 : i32
    %18 = vector.broadcast %c-1_i32 : i32 to vector<1x512xi32>
    %19 = arith.addi %17, %18 : vector<1x512xi32>
    %c0_i32_4 = arith.constant 0 : i32
    %20 = vector.broadcast %c0_i32_4 : i32 to vector<1x512xi32>
    %21 = arith.cmpi sge, %19, %20 : vector<1x512xi32>
    %c-1_i32_5 = arith.constant -1 : i32
    %22 = vector.broadcast %c-1_i32_5 : i32 to vector<1x512xi32>
    %23 = arith.addi %17, %22 : vector<1x512xi32>
    %c16_i32_6 = arith.constant 16 : i32
    %24 = vector.broadcast %c16_i32_6 : i32 to vector<1x512xi32>
    %25 = arith.cmpi slt, %23, %24 : vector<1x512xi32>
    %26 = arith.andi %21, %25 : vector<1x512xi1>
    %c1_i32_7 = arith.constant 1 : i32
    %27 = vector.broadcast %c1_i32_7 : i32 to vector<1x512xi32>
    %28 = arith.addi %17, %27 : vector<1x512xi32>
    %c0_i32_8 = arith.constant 0 : i32
    %29 = vector.broadcast %c0_i32_8 : i32 to vector<1x512xi32>
    %30 = arith.cmpi sge, %28, %29 : vector<1x512xi32>
    %c1_i32_9 = arith.constant 1 : i32
    %31 = vector.broadcast %c1_i32_9 : i32 to vector<1x512xi32>
    %32 = arith.addi %17, %31 : vector<1x512xi32>
    %c16_i32_10 = arith.constant 16 : i32
    %33 = vector.broadcast %c16_i32_10 : i32 to vector<1x512xi32>
    %34 = arith.cmpi slt, %32, %33 : vector<1x512xi32>
    %35 = arith.andi %30, %34 : vector<1x512xi1>
    %cst = arith.constant 1.000000e+00 : f32
    %36 = vector.broadcast %cst : f32 to vector<1x512xf32>
    %37 = tpu.iota {dimensions = array<i32: 0>} : vector<512x32xi32>
    %38 = tpu.iota {dimensions = array<i32: 1>} : vector<512x32xi32>
    %c16_i32_11 = arith.constant 16 : i32
    %39 = vector.broadcast %c16_i32_11 : i32 to vector<512x32xi32>
    %40 = arith.muli %38, %39 : vector<512x32xi32>
    %41 = arith.cmpi sge, %37, %40 : vector<512x32xi32>
    %c16_i32_12 = arith.constant 16 : i32
    %42 = vector.broadcast %c16_i32_12 : i32 to vector<512x32xi32>
    %43 = arith.addi %40, %42 : vector<512x32xi32>
    %44 = arith.cmpi slt, %37, %43 : vector<512x32xi32>
    %45 = arith.andi %41, %44 : vector<512x32xi1>
    %46 = arith.extui %45 : vector<512x32xi1> to vector<512x32xi32>
    %47 = arith.sitofp %46 : vector<512x32xi32> to vector<512x32xf32>
    %48 = tpu.iota {dimensions = array<i32: 0>} : vector<32x512xi32>
    %c16_i32_13 = arith.constant 16 : i32
    %49 = vector.broadcast %c16_i32_13 : i32 to vector<32x512xi32>
    %50 = arith.muli %48, %49 : vector<32x512xi32>
    %51 = tpu.iota {dimensions = array<i32: 1>} : vector<32x512xi32>
    %52 = arith.cmpi sge, %51, %50 : vector<32x512xi32>
    %c16_i32_14 = arith.constant 16 : i32
    %53 = vector.broadcast %c16_i32_14 : i32 to vector<32x512xi32>
    %54 = arith.addi %50, %53 : vector<32x512xi32>
    %55 = arith.cmpi slt, %51, %54 : vector<32x512xi32>
    %56 = arith.andi %52, %55 : vector<32x512xi1>
    %57 = arith.extui %56 : vector<32x512xi1> to vector<32x512xi32>
    %58 = arith.sitofp %57 : vector<32x512xi32> to vector<32x512xf32>
    %59 = tpu.iota {dimensions = array<i32: 0>} : vector<16x512xi32>
    %60 = vector.broadcast %17 : vector<1x512xi32> to vector<16x512xi32>
    %61 = arith.cmpi eq, %59, %60 : vector<16x512xi32>
    %62 = arith.extui %61 : vector<16x512xi1> to vector<16x512xi32>
    %63 = arith.sitofp %62 : vector<16x512xi32> to vector<16x512xf32>
    %c0_15 = arith.constant 0 : index
    %c0_16 = arith.constant 0 : index
    %64 = vector.load %arg5[%c0_15, %c0_16] : memref<64x16xf32, #tpu.memory_space<vmem>>, vector<64x16xf32>
    %cst_17 = arith.constant dense<0.000000e+00> : vector<64x512xf32>
    %65 = tpu.matmul %64, %63, %cst_17 {dimension_numbers = #tpu.dot_dimension_numbers<[1], [0], [0], [1], [0, 0, 1, 1], [], []>} : vector<64x16xf32>, vector<16x512xf32>, vector<64x512xf32> -> vector<64x512xf32>
    %66 = vector.extract_strided_slice %65 {offsets = [0, 0], sizes = [8, 512], strides = [1, 1]} : vector<64x512xf32> to vector<8x512xf32>
    %67 = vector.extract_strided_slice %65 {offsets = [8, 0], sizes = [8, 512], strides = [1, 1]} : vector<64x512xf32> to vector<8x512xf32>
    %68 = vector.extract_strided_slice %65 {offsets = [16, 0], sizes = [8, 512], strides = [1, 1]} : vector<64x512xf32> to vector<8x512xf32>
    %69 = vector.extract_strided_slice %65 {offsets = [24, 0], sizes = [8, 512], strides = [1, 1]} : vector<64x512xf32> to vector<8x512xf32>
    %70 = vector.extract_strided_slice %65 {offsets = [32, 0], sizes = [8, 512], strides = [1, 1]} : vector<64x512xf32> to vector<8x512xf32>
    %71 = vector.extract_strided_slice %65 {offsets = [40, 0], sizes = [8, 512], strides = [1, 1]} : vector<64x512xf32> to vector<8x512xf32>
    %72 = vector.extract_strided_slice %65 {offsets = [48, 0], sizes = [8, 512], strides = [1, 1]} : vector<64x512xf32> to vector<8x512xf32>
    %73 = vector.extract_strided_slice %65 {offsets = [56, 0], sizes = [8, 512], strides = [1, 1]} : vector<64x512xf32> to vector<8x512xf32>
    %c1_i32_18 = arith.constant 1 : i32
    %74 = tpu.dynamic_rotate %0 by %c1_i32_18 dim 1 : vector<8x512xf32>, i32 -> vector<8x512xf32>
    %cst_19 = arith.constant 0.000000e+00 : f32
    %75 = vector.shape_cast %26 : vector<1x512xi1> to vector<1x512xi1>
    %76 = vector.broadcast %75 : vector<1x512xi1> to vector<8x512xi1>
    %77 = vector.broadcast %cst_19 : f32 to vector<8x512xf32>
    %78 = arith.select %76, %74, %77 : vector<8x512xi1>, vector<8x512xf32>
    %c511_i32 = arith.constant 511 : i32
    %79 = tpu.dynamic_rotate %0 by %c511_i32 dim 1 : vector<8x512xf32>, i32 -> vector<8x512xf32>
    %cst_20 = arith.constant 0.000000e+00 : f32
    %80 = vector.shape_cast %35 : vector<1x512xi1> to vector<1x512xi1>
    %81 = vector.broadcast %80 : vector<1x512xi1> to vector<8x512xi1>
    %82 = vector.broadcast %cst_20 : f32 to vector<8x512xf32>
    %83 = arith.select %81, %79, %82 : vector<8x512xi1>, vector<8x512xf32>
    %84 = tpu.concatenate %78, %0, %83, %36 in 0 : vector<8x512xf32>, vector<8x512xf32>, vector<8x512xf32>, vector<1x512xf32> -> vector<25x512xf32>
    %85 = arith.truncf %84 : vector<25x512xf32> to vector<25x512xbf16>
    %c0_21 = arith.constant 0 : index
    %c0_22 = arith.constant 0 : index
    %86 = vector.load %arg2[%c0_21, %c0_22] : memref<16x25xbf16, #tpu.memory_space<vmem>>, vector<16x25xbf16>
    %cst_23 = arith.constant dense<0.000000e+00> : vector<16x512xf32>
    %87 = tpu.matmul %86, %85, %cst_23 {dimension_numbers = #tpu.dot_dimension_numbers<[1], [0], [0], [1], [0, 0, 1, 1], [], []>} : vector<16x25xbf16>, vector<25x512xbf16>, vector<16x512xf32> -> vector<16x512xf32>
    %88 = vector.extract_strided_slice %87 {offsets = [0, 0], sizes = [8, 512], strides = [1, 1]} : vector<16x512xf32> to vector<8x512xf32>
    %89 = vector.extract_strided_slice %87 {offsets = [8, 0], sizes = [8, 512], strides = [1, 1]} : vector<16x512xf32> to vector<8x512xf32>
    %cst_24 = arith.constant dense<0.000000e+00> : vector<512xf32>
    %90 = vector.multi_reduction <add>, %88, %cst_24 [0] : vector<8x512xf32> to vector<512xf32>
    %91 = vector.shape_cast %90 : vector<512xf32> to vector<1x512xf32>
    %cst_25 = arith.constant dense<0.000000e+00> : vector<1x32xf32>
    %92 = tpu.matmul %91, %47, %cst_25 {dimension_numbers = #tpu.dot_dimension_numbers<[1], [0], [0], [1], [0, 0, 1, 1], [], []>} : vector<1x512xf32>, vector<512x32xf32>, vector<1x32xf32> -> vector<1x32xf32>
    %cst_26 = arith.constant dense<0.000000e+00> : vector<1x512xf32>
    %93 = tpu.matmul %92, %58, %cst_26 {dimension_numbers = #tpu.dot_dimension_numbers<[1], [0], [0], [1], [0, 0, 1, 1], [], []>} : vector<1x32xf32>, vector<32x512xf32>, vector<1x512xf32> -> vector<1x512xf32>
    %cst_27 = arith.constant 7.812500e-03 : f32
    %94 = vector.broadcast %cst_27 : f32 to vector<1x512xf32>
    %95 = arith.mulf %93, %94 : vector<1x512xf32>
    %96 = vector.broadcast %95 : vector<1x512xf32> to vector<8x512xf32>
    %97 = arith.subf %88, %96 : vector<8x512xf32>
    %98 = arith.mulf %97, %97 : vector<8x512xf32>
    %cst_28 = arith.constant dense<0.000000e+00> : vector<512xf32>
    %99 = vector.multi_reduction <add>, %98, %cst_28 [0] : vector<8x512xf32> to vector<512xf32>
    %100 = vector.shape_cast %99 : vector<512xf32> to vector<1x512xf32>
    %cst_29 = arith.constant dense<0.000000e+00> : vector<1x32xf32>
    %101 = tpu.matmul %100, %47, %cst_29 {dimension_numbers = #tpu.dot_dimension_numbers<[1], [0], [0], [1], [0, 0, 1, 1], [], []>} : vector<1x512xf32>, vector<512x32xf32>, vector<1x32xf32> -> vector<1x32xf32>
    %cst_30 = arith.constant dense<0.000000e+00> : vector<1x512xf32>
    %102 = tpu.matmul %101, %58, %cst_30 {dimension_numbers = #tpu.dot_dimension_numbers<[1], [0], [0], [1], [0, 0, 1, 1], [], []>} : vector<1x32xf32>, vector<32x512xf32>, vector<1x512xf32> -> vector<1x512xf32>
    %cst_31 = arith.constant 7.812500e-03 : f32
    %103 = vector.broadcast %cst_31 : f32 to vector<1x512xf32>
    %104 = arith.mulf %102, %103 : vector<1x512xf32>
    %cst_32 = arith.constant 9.99999974E-6 : f32
    %105 = vector.broadcast %cst_32 : f32 to vector<1x512xf32>
    %106 = arith.addf %104, %105 : vector<1x512xf32>
    %107 = math.rsqrt %106 : vector<1x512xf32>
    %108 = vector.broadcast %107 : vector<1x512xf32> to vector<8x512xf32>
    %109 = arith.mulf %97, %108 : vector<8x512xf32>
    %110 = arith.mulf %109, %66 : vector<8x512xf32>
    %111 = arith.addf %110, %67 : vector<8x512xf32>
    %cst_33 = arith.constant 0.000000e+00 : f32
    %112 = vector.broadcast %cst_33 : f32 to vector<8x512xf32>
    %113 = arith.maximumf %111, %112 : vector<8x512xf32>
    %c1_i32_34 = arith.constant 1 : i32
    %114 = tpu.dynamic_rotate %113 by %c1_i32_34 dim 1 : vector<8x512xf32>, i32 -> vector<8x512xf32>
    %cst_35 = arith.constant 0.000000e+00 : f32
    %115 = vector.shape_cast %26 : vector<1x512xi1> to vector<1x512xi1>
    %116 = vector.broadcast %115 : vector<1x512xi1> to vector<8x512xi1>
    %117 = vector.broadcast %cst_35 : f32 to vector<8x512xf32>
    %118 = arith.select %116, %114, %117 : vector<8x512xi1>, vector<8x512xf32>
    %c511_i32_36 = arith.constant 511 : i32
    %119 = tpu.dynamic_rotate %113 by %c511_i32_36 dim 1 : vector<8x512xf32>, i32 -> vector<8x512xf32>
    %cst_37 = arith.constant 0.000000e+00 : f32
    %120 = vector.shape_cast %35 : vector<1x512xi1> to vector<1x512xi1>
    %121 = vector.broadcast %120 : vector<1x512xi1> to vector<8x512xi1>
    %122 = vector.broadcast %cst_37 : f32 to vector<8x512xf32>
    %123 = arith.select %121, %119, %122 : vector<8x512xi1>, vector<8x512xf32>
    %124 = tpu.concatenate %118, %113, %123, %36 in 0 : vector<8x512xf32>, vector<8x512xf32>, vector<8x512xf32>, vector<1x512xf32> -> vector<25x512xf32>
    %125 = arith.truncf %124 : vector<25x512xf32> to vector<25x512xbf16>
    %c0_38 = arith.constant 0 : index
    %c0_39 = arith.constant 0 : index
    %126 = vector.load %arg3[%c0_38, %c0_39] : memref<8x25xbf16, #tpu.memory_space<vmem>>, vector<8x25xbf16>
    %cst_40 = arith.constant dense<0.000000e+00> : vector<8x512xf32>
    %127 = tpu.matmul %126, %125, %cst_40 {dimension_numbers = #tpu.dot_dimension_numbers<[1], [0], [0], [1], [0, 0, 1, 1], [], []>} : vector<8x25xbf16>, vector<25x512xbf16>, vector<8x512xf32> -> vector<8x512xf32>
    %cst_41 = arith.constant dense<0.000000e+00> : vector<512xf32>
    %128 = vector.multi_reduction <add>, %127, %cst_41 [0] : vector<8x512xf32> to vector<512xf32>
    %129 = vector.shape_cast %128 : vector<512xf32> to vector<1x512xf32>
    %cst_42 = arith.constant dense<0.000000e+00> : vector<1x32xf32>
    %130 = tpu.matmul %129, %47, %cst_42 {dimension_numbers = #tpu.dot_dimension_numbers<[1], [0], [0], [1], [0, 0, 1, 1], [], []>} : vector<1x512xf32>, vector<512x32xf32>, vector<1x32xf32> -> vector<1x32xf32>
    %cst_43 = arith.constant dense<0.000000e+00> : vector<1x512xf32>
    %131 = tpu.matmul %130, %58, %cst_43 {dimension_numbers = #tpu.dot_dimension_numbers<[1], [0], [0], [1], [0, 0, 1, 1], [], []>} : vector<1x32xf32>, vector<32x512xf32>, vector<1x512xf32> -> vector<1x512xf32>
    %cst_44 = arith.constant 7.812500e-03 : f32
    %132 = vector.broadcast %cst_44 : f32 to vector<1x512xf32>
    %133 = arith.mulf %131, %132 : vector<1x512xf32>
    %134 = vector.broadcast %133 : vector<1x512xf32> to vector<8x512xf32>
    %135 = arith.subf %127, %134 : vector<8x512xf32>
    %136 = arith.mulf %135, %135 : vector<8x512xf32>
    %cst_45 = arith.constant dense<0.000000e+00> : vector<512xf32>
    %137 = vector.multi_reduction <add>, %136, %cst_45 [0] : vector<8x512xf32> to vector<512xf32>
    %138 = vector.shape_cast %137 : vector<512xf32> to vector<1x512xf32>
    %cst_46 = arith.constant dense<0.000000e+00> : vector<1x32xf32>
    %139 = tpu.matmul %138, %47, %cst_46 {dimension_numbers = #tpu.dot_dimension_numbers<[1], [0], [0], [1], [0, 0, 1, 1], [], []>} : vector<1x512xf32>, vector<512x32xf32>, vector<1x32xf32> -> vector<1x32xf32>
    %cst_47 = arith.constant dense<0.000000e+00> : vector<1x512xf32>
    %140 = tpu.matmul %139, %58, %cst_47 {dimension_numbers = #tpu.dot_dimension_numbers<[1], [0], [0], [1], [0, 0, 1, 1], [], []>} : vector<1x32xf32>, vector<32x512xf32>, vector<1x512xf32> -> vector<1x512xf32>
    %cst_48 = arith.constant 7.812500e-03 : f32
    %141 = vector.broadcast %cst_48 : f32 to vector<1x512xf32>
    %142 = arith.mulf %140, %141 : vector<1x512xf32>
    %cst_49 = arith.constant 9.99999974E-6 : f32
    %143 = vector.broadcast %cst_49 : f32 to vector<1x512xf32>
    %144 = arith.addf %142, %143 : vector<1x512xf32>
    %145 = math.rsqrt %144 : vector<1x512xf32>
    %146 = vector.broadcast %145 : vector<1x512xf32> to vector<8x512xf32>
    %147 = arith.mulf %135, %146 : vector<8x512xf32>
    %148 = arith.mulf %147, %68 : vector<8x512xf32>
    %149 = arith.addf %148, %69 : vector<8x512xf32>
    %cst_50 = arith.constant 0.000000e+00 : f32
    %150 = vector.broadcast %cst_50 : f32 to vector<8x512xf32>
    %151 = arith.maximumf %149, %150 : vector<8x512xf32>
    %c1_i32_51 = arith.constant 1 : i32
    %152 = tpu.dynamic_rotate %151 by %c1_i32_51 dim 1 : vector<8x512xf32>, i32 -> vector<8x512xf32>
    %cst_52 = arith.constant 0.000000e+00 : f32
    %153 = vector.shape_cast %26 : vector<1x512xi1> to vector<1x512xi1>
    %154 = vector.broadcast %153 : vector<1x512xi1> to vector<8x512xi1>
    %155 = vector.broadcast %cst_52 : f32 to vector<8x512xf32>
    %156 = arith.select %154, %152, %155 : vector<8x512xi1>, vector<8x512xf32>
    %c511_i32_53 = arith.constant 511 : i32
    %157 = tpu.dynamic_rotate %151 by %c511_i32_53 dim 1 : vector<8x512xf32>, i32 -> vector<8x512xf32>
    %cst_54 = arith.constant 0.000000e+00 : f32
    %158 = vector.shape_cast %35 : vector<1x512xi1> to vector<1x512xi1>
    %159 = vector.broadcast %158 : vector<1x512xi1> to vector<8x512xi1>
    %160 = vector.broadcast %cst_54 : f32 to vector<8x512xf32>
    %161 = arith.select %159, %157, %160 : vector<8x512xi1>, vector<8x512xf32>
    %162 = tpu.concatenate %156, %151, %161, %36 in 0 : vector<8x512xf32>, vector<8x512xf32>, vector<8x512xf32>, vector<1x512xf32> -> vector<25x512xf32>
    %163 = arith.truncf %162 : vector<25x512xf32> to vector<25x512xbf16>
    %c0_55 = arith.constant 0 : index
    %c0_56 = arith.constant 0 : index
    %164 = vector.load %arg4[%c0_55, %c0_56] : memref<8x25xbf16, #tpu.memory_space<vmem>>, vector<8x25xbf16>
    %cst_57 = arith.constant dense<0.000000e+00> : vector<8x512xf32>
    %165 = tpu.matmul %164, %163, %cst_57 {dimension_numbers = #tpu.dot_dimension_numbers<[1], [0], [0], [1], [0, 0, 1, 1], [], []>} : vector<8x25xbf16>, vector<25x512xbf16>, vector<8x512xf32> -> vector<8x512xf32>
    %cst_58 = arith.constant dense<0.000000e+00> : vector<512xf32>
    %166 = vector.multi_reduction <add>, %165, %cst_58 [0] : vector<8x512xf32> to vector<512xf32>
    %167 = vector.shape_cast %166 : vector<512xf32> to vector<1x512xf32>
    %cst_59 = arith.constant dense<0.000000e+00> : vector<1x32xf32>
    %168 = tpu.matmul %167, %47, %cst_59 {dimension_numbers = #tpu.dot_dimension_numbers<[1], [0], [0], [1], [0, 0, 1, 1], [], []>} : vector<1x512xf32>, vector<512x32xf32>, vector<1x32xf32> -> vector<1x32xf32>
    %cst_60 = arith.constant dense<0.000000e+00> : vector<1x512xf32>
    %169 = tpu.matmul %168, %58, %cst_60 {dimension_numbers = #tpu.dot_dimension_numbers<[1], [0], [0], [1], [0, 0, 1, 1], [], []>} : vector<1x32xf32>, vector<32x512xf32>, vector<1x512xf32> -> vector<1x512xf32>
    %cst_61 = arith.constant 7.812500e-03 : f32
    %170 = vector.broadcast %cst_61 : f32 to vector<1x512xf32>
    %171 = arith.mulf %169, %170 : vector<1x512xf32>
    %172 = vector.broadcast %171 : vector<1x512xf32> to vector<8x512xf32>
    %173 = arith.subf %165, %172 : vector<8x512xf32>
    %174 = arith.mulf %173, %173 : vector<8x512xf32>
    %cst_62 = arith.constant dense<0.000000e+00> : vector<512xf32>
    %175 = vector.multi_reduction <add>, %174, %cst_62 [0] : vector<8x512xf32> to vector<512xf32>
    %176 = vector.shape_cast %175 : vector<512xf32> to vector<1x512xf32>
    %cst_63 = arith.constant dense<0.000000e+00> : vector<1x32xf32>
    %177 = tpu.matmul %176, %47, %cst_63 {dimension_numbers = #tpu.dot_dimension_numbers<[1], [0], [0], [1], [0, 0, 1, 1], [], []>} : vector<1x512xf32>, vector<512x32xf32>, vector<1x32xf32> -> vector<1x32xf32>
    %cst_64 = arith.constant dense<0.000000e+00> : vector<1x512xf32>
    %178 = tpu.matmul %177, %58, %cst_64 {dimension_numbers = #tpu.dot_dimension_numbers<[1], [0], [0], [1], [0, 0, 1, 1], [], []>} : vector<1x32xf32>, vector<32x512xf32>, vector<1x512xf32> -> vector<1x512xf32>
    %cst_65 = arith.constant 7.812500e-03 : f32
    %179 = vector.broadcast %cst_65 : f32 to vector<1x512xf32>
    %180 = arith.mulf %178, %179 : vector<1x512xf32>
    %cst_66 = arith.constant 9.99999974E-6 : f32
    %181 = vector.broadcast %cst_66 : f32 to vector<1x512xf32>
    %182 = arith.addf %180, %181 : vector<1x512xf32>
    %183 = math.rsqrt %182 : vector<1x512xf32>
    %184 = vector.broadcast %183 : vector<1x512xf32> to vector<8x512xf32>
    %185 = arith.mulf %173, %184 : vector<8x512xf32>
    %186 = arith.mulf %185, %70 : vector<8x512xf32>
    %187 = arith.addf %186, %71 : vector<8x512xf32>
    %cst_67 = arith.constant 0.000000e+00 : f32
    %188 = vector.broadcast %cst_67 : f32 to vector<8x512xf32>
    %189 = arith.maximumf %187, %188 : vector<8x512xf32>
    %cst_68 = arith.constant dense<0.000000e+00> : vector<512xf32>
    %190 = vector.multi_reduction <add>, %89, %cst_68 [0] : vector<8x512xf32> to vector<512xf32>
    %191 = vector.shape_cast %190 : vector<512xf32> to vector<1x512xf32>
    %cst_69 = arith.constant dense<0.000000e+00> : vector<1x32xf32>
    %192 = tpu.matmul %191, %47, %cst_69 {dimension_numbers = #tpu.dot_dimension_numbers<[1], [0], [0], [1], [0, 0, 1, 1], [], []>} : vector<1x512xf32>, vector<512x32xf32>, vector<1x32xf32> -> vector<1x32xf32>
    %cst_70 = arith.constant dense<0.000000e+00> : vector<1x512xf32>
    %193 = tpu.matmul %192, %58, %cst_70 {dimension_numbers = #tpu.dot_dimension_numbers<[1], [0], [0], [1], [0, 0, 1, 1], [], []>} : vector<1x32xf32>, vector<32x512xf32>, vector<1x512xf32> -> vector<1x512xf32>
    %cst_71 = arith.constant 7.812500e-03 : f32
    %194 = vector.broadcast %cst_71 : f32 to vector<1x512xf32>
    %195 = arith.mulf %193, %194 : vector<1x512xf32>
    %196 = vector.broadcast %195 : vector<1x512xf32> to vector<8x512xf32>
    %197 = arith.subf %89, %196 : vector<8x512xf32>
    %198 = arith.mulf %197, %197 : vector<8x512xf32>
    %cst_72 = arith.constant dense<0.000000e+00> : vector<512xf32>
    %199 = vector.multi_reduction <add>, %198, %cst_72 [0] : vector<8x512xf32> to vector<512xf32>
    %200 = vector.shape_cast %199 : vector<512xf32> to vector<1x512xf32>
    %cst_73 = arith.constant dense<0.000000e+00> : vector<1x32xf32>
    %201 = tpu.matmul %200, %47, %cst_73 {dimension_numbers = #tpu.dot_dimension_numbers<[1], [0], [0], [1], [0, 0, 1, 1], [], []>} : vector<1x512xf32>, vector<512x32xf32>, vector<1x32xf32> -> vector<1x32xf32>
    %cst_74 = arith.constant dense<0.000000e+00> : vector<1x512xf32>
    %202 = tpu.matmul %201, %58, %cst_74 {dimension_numbers = #tpu.dot_dimension_numbers<[1], [0], [0], [1], [0, 0, 1, 1], [], []>} : vector<1x32xf32>, vector<32x512xf32>, vector<1x512xf32> -> vector<1x512xf32>
    %cst_75 = arith.constant 7.812500e-03 : f32
    %203 = vector.broadcast %cst_75 : f32 to vector<1x512xf32>
    %204 = arith.mulf %202, %203 : vector<1x512xf32>
    %cst_76 = arith.constant 9.99999974E-6 : f32
    %205 = vector.broadcast %cst_76 : f32 to vector<1x512xf32>
    %206 = arith.addf %204, %205 : vector<1x512xf32>
    %207 = math.rsqrt %206 : vector<1x512xf32>
    %208 = vector.broadcast %207 : vector<1x512xf32> to vector<8x512xf32>
    %209 = arith.mulf %197, %208 : vector<8x512xf32>
    %210 = arith.mulf %209, %72 : vector<8x512xf32>
    %211 = arith.addf %210, %73 : vector<8x512xf32>
    %212 = arith.addf %211, %189 : vector<8x512xf32>
    %cst_77 = arith.constant 0.000000e+00 : f32
    %213 = vector.broadcast %cst_77 : f32 to vector<8x512xf32>
    %214 = arith.maximumf %212, %213 : vector<8x512xf32>
    %c0_78 = arith.constant 0 : index
    %c0_79 = arith.constant 0 : index
    %215 = vector.load %arg6[%c0_78, %c0_79] : memref<8x512xf32, #tpu.memory_space<vmem>>, vector<8x512xf32>
    tpu.vector_store %arg6[%c0_78, %c0_79], %214 {strides = array<i32>} : memref<8x512xf32, #tpu.memory_space<vmem>>, vector<8x512xf32>,
    return
  }
  func.func @transform_0(%arg0: i32) -> (i32, i32) {
    %c0_i32 = arith.constant 0 : i32
    %c0_i32_0 = arith.constant 0 : i32
    return %c0_i32, %arg0 : i32, i32
  }
  func.func @transform_1(%arg0: i32) -> (i32, i32) {
    %c0_i32 = arith.constant 0 : i32
    %c0_i32_0 = arith.constant 0 : i32
    %c0_i32_1 = arith.constant 0 : i32
    return %c0_i32, %c0_i32_0 : i32, i32
  }
  func.func @transform_2(%arg0: i32) -> (i32, i32) {
    %c0_i32 = arith.constant 0 : i32
    %c0_i32_0 = arith.constant 0 : i32
    %c0_i32_1 = arith.constant 0 : i32
    return %c0_i32, %c0_i32_0 : i32, i32
  }
  func.func @transform_3(%arg0: i32) -> (i32, i32) {
    %c0_i32 = arith.constant 0 : i32
    %c0_i32_0 = arith.constant 0 : i32
    %c0_i32_1 = arith.constant 0 : i32
    return %c0_i32, %c0_i32_0 : i32, i32
  }
  func.func @transform_4(%arg0: i32) -> (i32, i32) {
    %c0_i32 = arith.constant 0 : i32
    %c0_i32_0 = arith.constant 0 : i32
    %c0_i32_1 = arith.constant 0 : i32
    return %c0_i32, %c0_i32_0 : i32, i32
  }
  func.func @transform_5(%arg0: i32) -> (i32, i32) {
    %c0_i32 = arith.constant 0 : i32
    %c0_i32_0 = arith.constant 0 : i32
    return %c0_i32, %arg0 : i32, i32
  }
}

</mosaic_0001>

<bundles_post_ra>
// kernel: tpu_custom_call.1
= control target key start
LH: loop header
LB: loop body
LE: loop exit
PB: predicated region body
PF: predicated region fallthrough
CT: control target
= control target key end

     0   :  { %10 = vsyncpa [#allocation3], 0  ;;  %s9194_s0 = inlined_call_operand.vmem [shape: f32[8,1024], index: 0, kind: input, shape index: {}]   ;;  %s9195_s1 = inlined_call_operand.vmem [shape: bf16[16,25], index: 1, kind: input, shape index: {}]   ;;  %s9196_s2 = inlined_call_operand.vmem [shape: bf16[8,25], index: 2, kind: input, shape index: {}]   ;;  %s9197_s3 = inlined_call_operand.vmem [shape: bf16[8,25], index: 3, kind: input, shape index: {}]   ;;  %s9198_s4 = inlined_call_operand.vmem [shape: f32[64,16], index: 4, kind: input, shape index: {}]   ;;  %s9199_s5 = inlined_call_operand.hbm [shape: f32[8,1024], index: 5, kind: output, shape index: {}]  }
   0x1   :  { %12 = vsyncpa [#allocation3 + $0x1], 0  ;;  %s6639_s18 = smov 0   ;;  %s6641_s19 = smov 0  }
   0x2   :  { %s6643_s20 = smov 0   ;;  %s6645_s21 = smov 0  }
   0x3 LB: > { %s6660_s22 = sadd.s32 4294967295, %s6598_s21   ;;  %s4364_s23 = sadd.s32 4294967294, %s6598_s21   ;;  %s6598_s21 = sphi %s6645_s21, %s10085_s21   ;;  %s6594_s20 = sphi %s6643_s20, %s10084_s20   ;;  %s6590_s19 = sphi %s6641_s19, %s10083_s19   ;;  %s6586_s18 = sphi %s6639_s18, %s10082_s18  }
   0x4   : > { %s6664_s24 = sadd.s32 1, %s6598_s21   ;;  %s135_s25 = sadd.s32 1, %s6594_s20 }
   0x5   : > { %s132_s26 = ssub.s32 %s6598_s21, %s6664_s24  ;;  %p145_p0 = scmp.ne.s32.totalorder %s6594_s20, %s6590_s19 }
   0x6   : > { %p133_p1 = scmp.eq.s32.totalorder %s132_s26, 0  ;;  %p146_p2 = scmp.eq.s32.totalorder %s6660_s22, 1 }
   0x7   : > { %p151_p3 = scmp.ne.s32.totalorder %s6590_s19, %s6586_s18  ;;  %p152_p4 = scmp.eq.s32.totalorder %s4364_s23, 1 }
   0x8   : > { %s6675_s27 = scalar_select %p133_p1, %s6594_s20, %s135_s25  }
   0x9   : > { %p6677_p5 = por %p146_p2, %p145_p0  ;;  %p6681_p6 = por %p152_p4, %p151_p3 }
   0xa   : > { %p4367_p7 = scmp.ge.s32.totalorder %s6598_s21, 1  ;;  %p191_p8 = scmp.lt.s32.totalorder %s6598_s21, 3 }
   0xc   : > { %p192_p9 = pnand %p4367_p7, %p191_p8 }
   0xe   : > { %195 = sbr.rel (%p192_p9) target bundleno = 4570 (0x11da), region = 40 }
  0x15   : > { %s4369_s30 = sshll.u32 %s6660_s22, 2  ;;  %v231_v0 = vlaneseq  ;;  %v9209_v1 = vmov 0.0   ;;  %s6601_s10 = smov 1   ;;  %v9241_v19 = vmov 1.0|1.0   ;;  %v815_v20 = vld [vmem:[%s9198_s4] sm:$0xff] }
  0x16   : > { %p220_p10 = scmp.lt.s32.totalorder %s4369_s30, 7  ;;  %912 = vmatprep.mubr.f32.mxu0 %v9209_v1  ;;  %1025 = vmatprep.mubr.f32.mxu1 %v9209_v1  ;;  %s6602_s11 = smov 127   ;;  %vm823_vm12 = vcmask 130048   ;;  %v816_v21 = vld [vmem:[%s9198_s4 + $0x8] sm:$0xff]  ;;  %v817_v22 = vld [vmem:[%s9198_s4 + $0x10] sm:$0xff]  ;;  %v818_v23 = vld [vmem:[%s9198_s4 + $0x18] sm:$0xff] }
  0x17   : > { %v6690_v2 = vand.u32 127, %v231_v0  ;;  %v6692_v3 = vshrl.u32 %v231_v0, 7  ;;  %v819_v24 = vld [vmem:[%s9198_s4 + $0x20] sm:$0xff]  ;;  %v820_v25 = vld [vmem:[%s9198_s4 + $0x28] sm:$0xff]  ;;  %v821_v26 = vld [vmem:[%s9198_s4 + $0x30] sm:$0xff]  ;;  %v9203_v28 = vmov 0  }
  0x18   : > { %s10087_s30 = smov (!%p220_p10, %s4369_s30), 7  ;;  %v822_v27 = vld [vmem:[%s9198_s4 + $0x38] sm:$0xff]  ;;  %vm1143_vm13 = vcmask 1043456   ;;  %vm1144_vm14 = vcmask 1044480   ;;  %v6605_v31 = vmov 65535   ;;  %v9405_v58 = vmov 0 }
  0x19   : > { %9396 = vst [vmem:[#allocation5_spill] sm:$0xff] %v6690_v2  ;;  %9397 = vst [vmem:[#allocation6_spill] sm:$0xff] %v6692_v3  ;;  %v6695_v4 = vadd.s32 128, %v6690_v2  ;;  %v6698_v5 = vadd.s32 8, %v6692_v3  ;;  %v6701_v6 = vadd.s32 384, %v6690_v2  ;;  %s4370_s6 = sshll.u32 %s10087_s30, 3 }
  0x1a   : > { %v6704_v7 = vand.u32 15, %v6690_v2  ;;  %v6707_v8 = vadd.s32 256, %v6690_v2  ;;  %s223_s9 = scalar_lea.vmem %s9194_s0, %s4370_s6  ;;  %v6820_v29 = vmul.u32 16, %v6690_v2  ;;  %v1145_v32 = vsel %vm1143_vm13, 4294967295, %v6605_v31  ;;  %s216_s23 = sand.u32 1, %s6590_s19  }
  0x1b   : > { %v6713_v9 = vand.u32 15, %v6695_v4  ;;  %v6716_v10 = vand.u32 15, %v6701_v6  ;;  %v6718_v11 = vld [vmem:[%s223_s9] sm:$0xff]  ;;  %v6720_v12 = vld [vmem:[%s223_s9 + $0x8] sm:$0xff]  ;;  %v6722_v13 = vld [vmem:[%s223_s9 + $0x10] sm:$0xff]  ;;  %v333_v33 = vadd.s32 128, %v6692_v3 }
  0x1c   : > { %vm791_vm0 = vcmp.eq.s32.totalorder %v6692_v3, %v6704_v7  ;;  %vm795_vm1 = vcmp.eq.s32.totalorder %v6698_v5, %v6704_v7  ;;  %v6729_v14 = vand.u32 15, %v6707_v8  ;;  %v6443_v15 = vpack.i.bf16 %v6720_v12, %v6718_v11  ;;  %v6733_v16 = vld [vmem:[%s223_s9 + $0x18] sm:$0xff]  ;;  %s4368_s25 = sshll.u32 %s216_s23, 5  ;;  %s5187_s26 = sshll.u32 %s6660_s22, 9 }
  0x1d   : > { %vm792_vm2 = vcmp.eq.s32.totalorder %v6692_v3, %v6713_v9  ;;  %vm796_vm3 = vcmp.eq.s32.totalorder %v6698_v5, %v6713_v9  ;;  %vm6739_vm4 = vmpackc.low %vm795_vm1, %vm791_vm0  ;;  %v6448_v18 = vpack.i.bf16 %v6733_v16, %v6722_v13  ;;  %vm794_vm6 = vcmp.eq.s32.totalorder %v6692_v3, %v6716_v10  ;;  %s218_s30 = scalar_lea.vmem [#allocation2], %s4368_s25  ;;  %s9150_s9 = scalar_lea.hbm %s9199_s5, %s5187_s26 }
  0x1e   : > { %vm5748_vm5 = vmpackc.low %vm796_vm3, %vm792_vm2  ;;  %vm798_vm7 = vcmp.eq.s32.totalorder %v6698_v5, %v6716_v10  ;;  %6444 = vrot.lane.b32.xlu0 %v6443_v15, %s6601_s10  ;;  %6454 = vrot.lane.b32.xlu1 %v6443_v15, %s6602_s11  ;;  %vm793_vm9 = vcmp.eq.s32.totalorder %v6692_v3, %v6729_v14  ;;  %vm797_vm10 = vcmp.eq.s32.totalorder %v6698_v5, %v6729_v14  ;;  %v285_v30 = vadd.s32 4294967295, %v6713_v9  ;;  %s4305_s6 = sshll.u32 %s218_s30, 4  ;;  %s4291_s22 = scalar_lea.sflag [#allocation3], %s216_s23  ;;  %s9152_s6 = int_to_ptr.vmem [resolvable:$true] %s4305_s6 }
  0x1f   : > { %vm5752_vm8 = vmpackc.low %vm798_vm7, %vm794_vm6  ;;  %5749 = vmatprep.subr.msk.bf16.mxu0 %vm5748_vm5, %v9241_v19  ;;  %v334_v34 = vadd.s32 136, %v6692_v3  ;;  %v6826_v35 = vadd.s32 1, %v6704_v7  ;;  %v6829_v36 = vadd.s32 16, %v6820_v29  ;;  %v365_v37 = vadd.s32 384, %v6692_v3  ;;  %s6536_s12 = scalar_lea.vmem %s9152_s6, 512  ;;  %s6608_s13 = smov [#allocation2]  }
  0x20   : > { %5753 = vmatprep.subr.msk.bf16.mxu1 %vm5752_vm8, %v9241_v19  ;;  %vm5754_vm11 = vmpackc.low %vm797_vm10, %vm793_vm9  ;;  %5751 = vmatpush1.bf16.msk.msra.mxu0 %vm6739_vm4, %v9241_v19  ;;  %v366_v38 = vadd.s32 392, %v6692_v3  ;;  %v6834_v39 = vadd.s32 1, %v6729_v14  ;;  %v6837_v40 = vadd.s32 4294967295, %v6704_v7  ;;  %v6840_v41 = vadd.s32 4294967295, %v6716_v10  ;;  %p6537_p11 = scmp.ne.s32.totalorder %s9152_s6, %s6536_s12  ;;  %s6540_s14 = sshll.u32 %s6608_s13, 4  ;;  %s6541_s14 = int_to_ptr.vmem [resolvable:$false] %s6540_s14 }
  0x21   : > { %5755 = vmatpush1.bf16.msk.msra.mxu1 %vm5754_vm11, %v9241_v19  ;;  %9400 = vst [vmem:[#allocation7_spill] sm:$0xff] %v6826_v35  ;;  %v6843_v42 = vadd.s32 4294967295, %v6729_v14  ;;  %vm289_vm15 = vcmp.ge.s32.totalorder %v285_v30, 0  ;;  %v6846_v43 = vadd.s32 1, %v6713_v9  ;;  %v6848_v44 = vsel %vm1144_vm14, %v1145_v32, 0  ;;  %s6542_s15 = scalar_lea.vmem %s6541_s14, 1024  ;;  %p6543_p0 = scmp.lt.s32.totalorder %s9152_s6, %s6541_s14 }
  0x22   : > { %6449 = vrot.lane.b32.xlu0 %v6448_v18, %s6601_s10  ;;  %6459 = vrot.lane.b32.xlu1 %v6448_v18, %s6602_s11  ;;  %9401 = vst [vmem:[#allocation8_spill] sm:$0xff] %v6834_v39  ;;  %9403 = vst [vmem:[#allocation10_spill] sm:$0xff] %v6848_v44  ;;  %v6851_v45 = vadd.s32 1, %v6716_v10  ;;  %vm398_vm0 = vcmp.ge.s32.totalorder %v333_v33, %v6820_v29  ;;  %vm399_vm1 = vcmp.ge.s32.totalorder %v334_v34, %v6820_v29  ;;  %v9423_v14 = vmov 0  ;;  %p6538_p12 = pnand %p6537_p11, %p6677_p5  ;;  %p6544_p1 = scmp.lt.s32.totalorder %s6542_s15, %s6536_s12 }
  0x23   : > { %4463 = vmatmul.mubr.msk.f32.vlgmr.msra.gmra.mrb[0].mxu0 %vm823_vm12, %v815_v20  ;;  %9402 = vst [vmem:[#allocation9_spill] sm:$0xff] %v6846_v43  ;;  %v349_v46 = vadd.s32 256, %v6692_v3  ;;  %v350_v47 = vadd.s32 264, %v6692_v3  ;;  %vm463_vm2 = vcmp.lt.s32.totalorder %v333_v33, %v6829_v36  ;;  %vm464_vm3 = vcmp.lt.s32.totalorder %v334_v34, %v6829_v36 }
  0x24   : > { %4475 = vmatmul.mubr.msk.f32.vlgmr.msra.gmra.mrb[0].mxu1 %vm823_vm12, %v815_v20  ;;  %918 = vmatprep.mubr.f32.mxu0 %v9209_v1  ;;  %9404 = vst [vmem:[#allocation11_spill] sm:$0xff] %v6851_v45  ;;  %vm430_vm4 = vcmp.ge.s32.totalorder %v365_v37, %v6820_v29  ;;  %vm495_vm8 = vcmp.lt.s32.totalorder %v365_v37, %v6829_v36  ;;  %v335_v48 = vadd.s32 144, %v6692_v3  ;;  %v336_v49 = vadd.s32 152, %v6692_v3  ;;  %vm6929_vm11 = vmand %vm398_vm0, %vm463_vm2  ;;  %p6539_p13 = pneg %p6538_p12  ;;  %p6545_p2 = por %p6544_p1, %p6543_p0 }
  0x25   : > { %1031 = vmatprep.mubr.f32.mxu1 %v9209_v1  ;;  %vm496_vm9 = vcmp.lt.s32.totalorder %v366_v38, %v6829_v36  ;;  %v6873_v50 = vadd.s32 400, %v6692_v3  ;;  %v6876_v51 = vadd.s32 408, %v6692_v3  ;;  %v6887_v52 = vadd.s32 16, %v6692_v3  ;;  %vm6937_vm5 = vmand %vm399_vm1, %vm464_vm3 }
  0x26   : > { %v6890_v53 = vadd.s32 24, %v6692_v3  ;;  %v6903_v54 = vadd.s32 272, %v6692_v3  ;;  %v6906_v55 = vadd.s32 280, %v6692_v3  ;;  %v6913_v56 = vadd.s32 160, %v6692_v3  ;;  %p6546_p3 = pnand %p6545_p2, %p6539_p13 }
  0x27   : > { %4464 = vmatmul.mubr.msk.f32.gmra.mrb[2].mxu0 %vm823_vm12, %v816_v21  ;;  %v6916_v57 = vadd.s32 168, %v6692_v3  ;;  %v6954_v62 = vadd.s32 416, %v6692_v3  ;;  %v6957_v63 = vadd.s32 424, %v6692_v3  ;;  %vm9414_vm1 = vcmp.ge.s32.totalorder %v366_v38, %v6820_v29 }
  0x28   : > { %4476 = vmatmul.mubr.msk.f32.gmra.mrb[2].mxu1 %vm823_vm12, %v816_v21  ;;  %924 = vmatprep.mubr.f32.mxu0 %v9209_v1  ;;  %vm6963_vm3 = vmand %vm9414_vm1, %vm496_vm9  ;;  %v6972_v7 = vadd.s32 32, %v6692_v3  ;;  %v6975_v9 = vadd.s32 40, %v6692_v3  ;;  %vm9417_vm2 = vcmp.lt.s32.totalorder %v349_v46, %v6829_v36  ;;  %vm9418_vm0 = vcmp.ge.s32.totalorder %v349_v46, %v6820_v29 }
  0x29   : > { %1037 = vmatprep.mubr.f32.mxu1 %v9209_v1  ;;  %vm6981_vm9 = vmand %vm9418_vm0, %vm9417_vm2  ;;  %vm9421_vm0 = vcmp.lt.s32.totalorder %v6692_v3, %v6829_v36  ;;  %vm9422_vm2 = vcmp.ge.s32.totalorder %v6692_v3, %v6820_v29  ;;  %vm9426_vm13 = vcmp.ge.s32.totalorder %v6698_v5, %v6820_v29  ;;  %v9427_v15 = vmov 0 }
  0x2a   : > { %vm7001_vm1 = vmand %vm9422_vm2, %vm9421_vm0  ;;  %vm9429_vm14 = vcmp.lt.s32.totalorder %v350_v47, %v6829_v36  ;;  %vm9430_vm6 = vcmp.ge.s32.totalorder %v350_v47, %v6820_v29  ;;  %v9431_v17 = vmov 0  ;;  %v7030_v18 = vadd.s32 288, %v6692_v3 }
  0x2b   : > { %4465 = vmatmul.mubr.msk.f32.gmra.mrb[4].mxu0 %vm823_vm12, %v817_v22  ;;  %v9424_v14 = vsel %vm7001_vm1, 4294967295, %v9423_v14  ;;  %vm7019_vm7 = vmand %vm9430_vm6, %vm9429_vm14  ;;  %v9434_v20 = vmov 0  ;;  %vm9437_vm6 = vcmp.ge.s32.totalorder %v6840_v41, 0  ;;  %v9438_v21 = vmov 0 }
  0x2c   : > { %4477 = vmatmul.mubr.msk.f32.gmra.mrb[4].mxu1 %vm823_vm12, %v817_v22  ;;  %930 = vmatprep.mubr.f32.mxu0 %v9209_v1  ;;  %v9432_v17 = vsel %vm7019_vm7, 4294967295, %v9431_v17  ;;  %vm9441_vm0 = vcmp.lt.s32.totalorder %v335_v48, %v6829_v36  ;;  %v9443_v22 = vmov 0  ;;  %vm9454_vm2 = vcmp.ge.s32.totalorder %v6873_v50, %v6820_v29 }
  0x2d   : > { %1043 = vmatprep.mubr.f32.mxu1 %v9209_v1  ;;  %v7134_v41 = vadd.s32 176, %v6692_v3  ;;  %v9512_v10 = vmov 0  ;;  %v375_v38 = vadd.s32 464, %v6692_v3 }
  0x2f   : > { %4466 = vmatmul.mubr.msk.f32.gmra.mrb[6].mxu0 %vm823_vm12, %v818_v23 }
  0x30   : > { %4478 = vmatmul.mubr.msk.f32.gmra.mrb[6].mxu1 %vm823_vm12, %v818_v23  ;;  %936 = vmatprep.mubr.f32.mxu0 %v9209_v1  ;;  %v9447_v23 = vmov 0 }
  0x31   : > { %1049 = vmatprep.mubr.f32.mxu1 %v9209_v1 }
  0x33   : > { %4467 = vmatmul.mubr.msk.f32.gmra.mrb[8].mxu0 %vm823_vm12, %v819_v24 }
  0x34   : > { %4479 = vmatmul.mubr.msk.f32.gmra.mrb[8].mxu1 %vm823_vm12, %v819_v24  ;;  %942 = vmatprep.mubr.f32.mxu0 %v9209_v1  ;;  %v7070_v24 = vadd.s32 296, %v6692_v3 }
  0x35   : > { %1055 = vmatprep.mubr.f32.mxu1 %v9209_v1 }
  0x37   : > { %4468 = vmatmul.mubr.msk.f32.gmra.mrb[10].mxu0 %vm823_vm12, %v820_v25 }
  0x38   : > { %4480 = vmatmul.mubr.msk.f32.gmra.mrb[10].mxu1 %vm823_vm12, %v820_v25  ;;  %948 = vmatprep.mubr.f32.mxu0 %v9209_v1 }
  0x39   : > { %1061 = vmatprep.mubr.f32.mxu1 %v9209_v1 }
  0x3b   : > { %4469 = vmatmul.mubr.msk.f32.gmra.mrb[12].mxu0 %vm823_vm12, %v821_v26 }
  0x3c   : > { %4481 = vmatmul.mubr.msk.f32.gmra.mrb[12].mxu1 %vm823_vm12, %v821_v26  ;;  %954 = vmatprep.mubr.f32.mxu0 %v9209_v1 }
  0x3d   : > { %1067 = vmatprep.mubr.f32.mxu1 %v9209_v1 }
  0x3f   : > { %4470 = vmatmul.mubr.msk.f32.gmra.mrb[14].mxu0 %vm823_vm12, %v822_v27 }
  0x40   : > { %4482 = vmatmul.mubr.msk.f32.gmra.mrb[14].mxu1 %vm823_vm12, %v822_v27  ;;  %1191 = vmatprep.mubr.bf16.mxu0 %v9203_v28  ;;  %vm6606_vm12 = vmmov 1   ;;  %v9450_v27 = vmov 0 }
  0x41   : > { %1234 = vmatprep.mubr.bf16.mxu1 %v9203_v28  ;;  %vm6921_vm10 = vmpackc.low %vm6606_vm12, %vm289_vm15  ;;  %v9614_v28 = vmov 0 }
  0x42   : > { %v9406_v58 = vsel %vm6921_vm10, 4294967295, %v9405_v58  ;;  %vm6945_vm15 = vmand %vm430_vm4, %vm495_vm8  ;;  %vm9425_vm8 = vcmp.lt.s32.totalorder %v6698_v5, %v6829_v36 }
  0x43   : > { %9407 = vst [vmem:[#allocation12_spill] sm:$0xff] %v9406_v58  ;;  %vm7011_vm4 = vmand %vm9426_vm13, %vm9425_vm8  ;;  %vm9433_vm8 = vcmp.ge.s32.totalorder %v6837_v40, 0  ;;  %vm9442_vm13 = vcmp.ge.s32.totalorder %v335_v48, %v6820_v29  ;;  %v9467_v40 = vmov 0 }
  0x44   : > { %v9428_v15 = vsel %vm7011_vm4, 4294967295, %v9427_v15  ;;  %vm7035_vm4 = vmpackc.low %vm6606_vm12, %vm9433_vm8  ;;  %vm9445_vm8 = vcmp.lt.s32.totalorder %v336_v49, %v6829_v36 }
  0x45   : > { %v9435_v20 = vsel %vm7035_vm4, 4294967295, %v9434_v20  ;;  %vm7042_vm14 = vmpackc.low %vm6606_vm12, %vm9437_vm6  ;;  %vm9446_vm4 = vcmp.ge.s32.totalorder %v336_v49, %v6820_v29 }
  0x46   : > { %9436 = vst [vmem:[#allocation13_spill] sm:$0xff] %v9435_v20  ;;  %v9439_v21 = vsel %vm7042_vm14, 4294967295, %v9438_v21  ;;  %vm7051_vm1 = vmand %vm9442_vm13, %vm9441_vm0  ;;  %vm9449_vm13 = vcmp.ge.s32.totalorder %v6843_v42, 0  ;;  %vm9485_vm14 = vcmp.lt.s32.totalorder %v6826_v35, 16 }
  0x47   : > { %9440 = vst [vmem:[#allocation14_spill] sm:$0xff] %v9439_v21  ;;  %v9444_v22 = vsel %vm7051_vm1, 4294967295, %v9443_v22  ;;  %vm7059_vm7 = vmand %vm9446_vm4, %vm9445_vm8  ;;  %vm9453_vm8 = vcmp.lt.s32.totalorder %v6873_v50, %v6829_v36  ;;  %vm9466_vm1 = vcmp.ge.s32.totalorder %v6890_v53, %v6820_v29 }
  0x48   : > { %v9448_v23 = vsel %vm7059_vm7, 4294967295, %v9447_v23  ;;  %vm7075_vm4 = vmpackc.low %vm6606_vm12, %vm9449_vm13  ;;  %vm9461_vm12 = vcmp.lt.s32.totalorder %v6887_v52, %v6829_v36  ;;  %vm9462_vm13 = vcmp.ge.s32.totalorder %v6887_v52, %v6820_v29 }
  0x49   : > { %v9451_v27 = vsel %vm7075_vm4, 4294967295, %v9450_v27  ;;  %vm7085_vm6 = vmand %vm9454_vm2, %vm9453_vm8  ;;  %vm9457_vm2 = vcmp.lt.s32.totalorder %v6876_v51, %v6829_v36  ;;  %vm9458_vm8 = vcmp.ge.s32.totalorder %v6876_v51, %v6820_v29  ;;  %vm9465_vm4 = vcmp.lt.s32.totalorder %v6890_v53, %v6829_v36 }
  0x4a   : > { %9452 = vst [vmem:[#allocation15_spill] sm:$0xff] %v9451_v27  ;;  %vm7103_vm0 = vmand %vm9458_vm8, %vm9457_vm2  ;;  %vm9472_vm8 = vcmp.ge.s32.totalorder %v6903_v54, %v6820_v29  ;;  %v9543_v51 = vmov 0 }
  0x4b   : > { %vm7113_vm7 = vmand %vm9462_vm13, %vm9461_vm12  ;;  %vm9469_vm13 = vcmp.lt.s32.totalorder %v6690_v2, 1  ;;  %vm9482_vm12 = vcmp.ge.s32.totalorder %v6913_v56, %v6820_v29 }
  0x4c   : > { %vm7123_vm2 = vmand %vm9466_vm1, %vm9465_vm4  ;;  %vm9470_vm1 = vcmp.lt.s32.totalorder %v6690_v2, 127  ;;  %vm9471_vm4 = vcmp.lt.s32.totalorder %v6903_v54, %v6829_v36  ;;  %v7168_v54 = vadd.s32 184, %v6692_v3 }
  0x4d   : > { %v9468_v40 = vsel %vm7123_vm2, 4294967295, %v9467_v40  ;;  %vm7146_vm2 = vmand %vm9472_vm8, %vm9471_vm4 }
  0x90   : > { %v6445_v25 = vpop.permute.xlu0 %6444  ;;  %v6455_v26 = vpop.permute.xlu1 %6454 }
  0x91   : > { %v6447_v31 = vunpack.i.h.bf16 %v6445_v25  ;;  %v6446_v32 = vunpack.i.l.bf16 %v6445_v25  ;;  %v6457_v33 = vunpack.i.h.bf16 %v6455_v26  ;;  %v6456_v34 = vunpack.i.l.bf16 %v6455_v26 }
  0x93   : > { %v1085_v42 = vsel %vm9469_vm13, %v6446_v32, %v6447_v31  ;;  %v1110_v46 = vsel %vm9470_vm1, %v6456_v34, %v6457_v33  ;;  %vm9475_vm13 = vcmp.lt.s32.totalorder %v6906_v55, %v6829_v36  ;;  %vm9476_vm1 = vcmp.ge.s32.totalorder %v6906_v55, %v6820_v29 }
  0x94   : > { %v4485_v48 = vpack.c.bf16 %v6720_v12, %v1085_v42  ;;  %v6450_v49 = vpop.permute.xlu0 %6449  ;;  %v6460_v50 = vpop.permute.xlu1 %6459  ;;  %vm7161_vm8 = vmand %vm9476_vm1, %vm9475_vm13  ;;  %v7171_v12 = vadd.s32 432, %v6692_v3  ;;  %v9479_v55 = vmov 0  ;;  %vm9481_vm1 = vcmp.lt.s32.totalorder %v6913_v56, %v6829_v36 }
  0x95   : > { %v6452_v25 = vunpack.i.h.bf16 %v6450_v49  ;;  %v6451_v26 = vunpack.i.l.bf16 %v6450_v49  ;;  %v6462_v42 = vunpack.i.h.bf16 %v6460_v50  ;;  %vm7177_vm13 = vmpackc.low %vm6963_vm3, %vm6945_vm15  ;;  %v7192_v49 = vadd.s32 440, %v6692_v3 }
  0x96   : > { %v9480_v55 = vsel %vm7177_vm13, 4294967295, %v9479_v55  ;;  %vm7187_vm4 = vmand %vm9482_vm12, %vm9481_vm1  ;;  %v1120_v61 = vsel %vm9485_vm14, %v1110_v46, 0.0  ;;  %v6461_v0 = vunpack.i.l.bf16 %v6460_v50  ;;  %4486 = vmatprep.subr.msk.bf16.mxu0 %vm6921_vm10, %v4485_v48  ;;  %v9486_v56 = vmov 0 }
  0x97   : > { %vm7202_vm15 = vmpackc.low %vm6937_vm5, %vm6929_vm11  ;;  %vm9488_vm3 = vcmp.lt.s32.totalorder %v6916_v57, %v6829_v36  ;;  %vm9489_vm12 = vcmp.ge.s32.totalorder %v6916_v57, %v6820_v29  ;;  %v9490_v46 = vmov 0  ;;  %vm9492_vm5 = vcmp.lt.s32.totalorder %v6690_v2, 1 }
  0x98   : > { %v9487_v56 = vsel %vm7202_vm15, 4294967295, %v9486_v56  ;;  %vm7212_vm1 = vmand %vm9489_vm12, %vm9488_vm3  ;;  %v1083_v59 = vsel %vm9492_vm5, %v6451_v26, %v6452_v25  ;;  %vm9495_vm3 = vcmp.lt.s32.totalorder %v6690_v2, 127  ;;  %vm9496_vm12 = vcmp.lt.s32.totalorder %v6954_v62, %v6829_v36 }
  0x99   : > { %v9491_v46 = vsel %vm7212_vm1, 4294967295, %v9490_v46  ;;  %vm9493_vm11 = vmmov %vm9492_vm5  ;;  %v1111_v57 = vsel %vm9495_vm3, %v6462_v42, %v6456_v34  ;;  %vm9497_vm14 = vcmp.ge.s32.totalorder %v6954_v62, %v6820_v29  ;;  %v9502_v34 = vmov 0 }
  0x9a   : > { %v1084_v60 = vsel %vm9493_vm11, %v6447_v31, %v6451_v26  ;;  %vm9494_vm15 = vmmov %vm9492_vm5  ;;  %v4492_v31 = vpack.c.bf16 %v6733_v16, %v1083_v59  ;;  %vm9501_vm5 = vnez %v9432_v17  ;;  %vm9508_vm10 = vcmp.lt.s32.totalorder %v6834_v39, 16  ;;  %v6503_v59 = vld [vmem:[%s9195_s1] sm:$0xff]  }
  0x9b   : > { %v1086_v48 = vsel %vm9494_vm15, %v6452_v25, %v6446_v32  ;;  %vm7234_vm13 = vmand %vm9497_vm14, %vm9496_vm12  ;;  %v4495_v26 = vpack.c.bf16 %v6722_v13, %v1084_v60  ;;  %vm9504_vm14 = vcmp.lt.s32.totalorder %v6957_v63, %v6829_v36  ;;  %v9239_v17 = vmov 1.0  }
  0x9c   : > { %v4488_v1 = vpack.c.bf16 %v6718_v11, %v1086_v48  ;;  %vm9500_vm15 = vmmov %vm9495_vm3  ;;  %vm9505_vm3 = vcmp.ge.s32.totalorder %v6957_v63, %v6820_v29  ;;  %v9514_v63 = vmov 0  ;;  %v1128_v30 = vpack.c.bf16 %v9239_v17, %v1120_v61 }
  0x9d   : > { %v1108_v32 = vsel %vm9500_vm15, %v6461_v0, %v6462_v42  ;;  %vm7247_vm11 = vmpackc.low %vm9501_vm5, %vm6981_vm9  ;;  %v1109_v13 = vsel %vm9500_vm15, %v6457_v33, %v6461_v0  ;;  %vm9509_vm9 = vcmp.lt.s32.totalorder %v6851_v45, 16  ;;  %vm9510_vm5 = vnez %v9424_v14 }
  0x9e   : > { %v9503_v34 = vsel %vm7247_vm11, 4294967295, %v9502_v34  ;;  %vm7257_vm12 = vmand %vm9505_vm3, %vm9504_vm14  ;;  %v1122_v16 = vsel %vm9508_vm10, %v1108_v32, 0.0  ;;  %v1123_v62 = vsel %vm9509_vm9, %v1111_v57, 0.0  ;;  %vm9511_vm11 = vnez %v9428_v15 }
  0x9f   : > { %vm7271_vm1 = vmpackc.low %vm9511_vm11, %vm9510_vm5  ;;  %vm9516_vm10 = vcmp.lt.s32.totalorder %v6972_v7, %v6829_v36  ;;  %vm9517_vm3 = vcmp.ge.s32.totalorder %v6972_v7, %v6820_v29  ;;  %v323_v15 = vadd.s32 48, %v6692_v3  ;;  %v1130_v33 = vpack.c.bf16 %v9239_v17, %v1122_v16 }
  0xa0   : > { %v9513_v10 = vsel %vm7271_vm1, 4294967295, %v9512_v10  ;;  %vm7279_vm14 = vmpackc.low %vm7103_vm0, %vm7085_vm6  ;;  %vm9520_vm6 = vnez %v9435_v20  ;;  %vm9521_vm0 = vnez %v9439_v21  ;;  %vm9522_vm11 = vcmp.lt.s32.totalorder %v6846_v43, 16 }
  0xa1   : > { %v9515_v63 = vsel %vm7279_vm14, 4294967295, %v9514_v63  ;;  %vm7289_vm15 = vmand %vm9517_vm3, %vm9516_vm10  ;;  %4489 = vmatpush1.bf16.msk.msra.mxu0 %vm9520_vm6, %v4488_v1  ;;  %4493 = vmatprep.subr.msk.bf16.mxu1 %vm9521_vm0, %v4492_v31  ;;  %v1121_v7 = vsel %vm9522_vm11, %v1109_v13, 0.0  ;;  %v1131_v37 = vpack.c.bf16 %v9239_v17, %v1123_v62  ;;  %vm9523_vm9 = vnez %v9444_v22 }
  0xa2   : > { %vm9524_vm5 = vnez %v9448_v23  ;;  %v9525_v25 = vmov 0  ;;  %vm9527_vm3 = vcmp.lt.s32.totalorder %v6975_v9, %v6829_v36  ;;  %vm9528_vm6 = vcmp.ge.s32.totalorder %v6975_v9, %v6820_v29 }
  0xa3   : > { %vm7307_vm10 = vmpackc.low %vm9524_vm5, %vm9523_vm9  ;;  %vm9531_vm11 = vnez %v9451_v27  ;;  %v1129_v22 = vpack.c.bf16 %v9239_v17, %v1121_v7  ;;  %vm9532_vm9 = vcmp.lt.s32.totalorder %v7030_v18, %v6829_v36  ;;  %vm9533_vm5 = vcmp.ge.s32.totalorder %v7030_v18, %v6820_v29 }
  0xa4   : > { %v9526_v25 = vsel %vm7307_vm10, 4294967295, %v9525_v25  ;;  %vm7317_vm0 = vmand %vm9528_vm6, %vm9527_vm3  ;;  %4496 = vmatpush1.bf16.msk.msra.mxu1 %vm9531_vm11, %v4495_v26  ;;  %v324_v9 = vadd.s32 56, %v6692_v3  ;;  %v1157_v42 = vand.u32 %v6848_v44, %v1131_v37  ;;  %v1154_v61 = vand.u32 %v6848_v44, %v1130_v33 }
  0xa5   : > { %vm7330_vm10 = vmand %vm9533_vm5, %vm9532_vm9  ;;  %v9536_v18 = vmov 0  ;;  %vm9538_vm5 = vcmp.lt.s32.totalorder %v7070_v24, %v6829_v36  ;;  %vm9539_vm6 = vcmp.ge.s32.totalorder %v7070_v24, %v6820_v29  ;;  %v1151_v47 = vand.u32 %v6848_v44, %v1129_v22 }
  0xa6   : > { %vm7345_vm9 = vmpackc.low %vm7161_vm8, %vm7146_vm2  ;;  %vm9542_vm2 = vnez %v9468_v40  ;;  %v9545_v24 = vmov 0  ;;  %vm9548_vm11 = vcmp.ge.s32.totalorder %v7134_v41, %v6820_v29  ;;  %1204 = vmatprep.subr.bf16.mxu1 %v1157_v42  ;;  %v1148_v40 = vand.u32 %v6848_v44, %v1128_v30 }
  0xa7   : > { %v9537_v18 = vsel %vm7345_vm9, 4294967295, %v9536_v18  ;;  %vm7355_vm3 = vmand %vm9539_vm6, %vm9538_vm5  ;;  %vm9547_vm5 = vcmp.lt.s32.totalorder %v7134_v41, %v6829_v36  ;;  %v9552_v41 = vmov 0  ;;  %1161 = vmatprep.subr.bf16.mxu0 %v1151_v47  ;;  %v356_v48 = vadd.s32 312, %v6692_v3 }
  0xa8   : > { %vm7368_vm8 = vmpackc.low %vm9542_vm2, %vm7113_vm7  ;;  %1205 = vmatpush1.bf16.msra.mxu1 %v1154_v61  ;;  %1162 = vmatpush1.bf16.msra.mxu0 %v1148_v40  ;;  %v9570_v57 = vmov 0  ;;  %v341_v50 = vadd.s32 192, %v6692_v3  ;;  %v373_v26 = vadd.s32 448, %v6692_v3  ;;  %v9581_v32 = vmov 0 }
  0xa9   : > { %v9544_v51 = vsel %vm7368_vm8, 4294967295, %v9543_v51  ;;  %vm7376_vm6 = vmpackc.low %vm7257_vm12, %vm7234_vm13  ;;  %vm9551_vm13 = vnez %v9491_v46  ;;  %v374_v11 = vadd.s32 456, %v6692_v3  ;;  %v9584_v13 = vmov 0 }
  0xaa   : > { %v9546_v24 = vsel %vm7376_vm6, 4294967295, %v9545_v24  ;;  %vm7386_vm14 = vmand %vm9548_vm11, %vm9547_vm5  ;;  %vm9554_vm11 = vcmp.lt.s32.totalorder %v7168_v54, %v6829_v36  ;;  %vm9555_vm5 = vcmp.ge.s32.totalorder %v7168_v54, %v6820_v29  ;;  %v355_v54 = vadd.s32 304, %v6692_v3 }
  0xab   : > { %vm7402_vm12 = vmpackc.low %vm9551_vm13, %vm7187_vm4  ;;  %vm9558_vm13 = vcmp.lt.s32.totalorder %v7171_v12, %v6829_v36  ;;  %vm9562_vm4 = vnez %v9480_v55  ;;  %v342_v16 = vadd.s32 200, %v6692_v3  ;;  %v9587_v62 = vmov 0 }
  0xac   : > { %v9553_v41 = vsel %vm7402_vm12, 4294967295, %v9552_v41  ;;  %vm7412_vm7 = vmand %vm9555_vm5, %vm9554_vm11  ;;  %vm9559_vm12 = vcmp.ge.s32.totalorder %v7171_v12, %v6820_v29  ;;  %vm389_vm11 = vcmp.ge.s32.totalorder %v324_v9, %v6820_v29  ;;  %vm454_vm5 = vcmp.lt.s32.totalorder %v324_v9, %v6829_v36  ;;  %5789 = vmatprep.subr.msk.bf16.mxu1 %vm9562_vm4, %v9241_v19 }
  0xad   : > { %vm7424_vm8 = vmand %vm9559_vm12, %vm9558_vm13  ;;  %v9563_v12 = vmov 0  ;;  %vm9565_vm12 = vcmp.lt.s32.totalorder %v7192_v49, %v6829_v36  ;;  %vm9566_vm13 = vcmp.ge.s32.totalorder %v7192_v49, %v6820_v29  ;;  %vm9569_vm4 = vnez %v9487_v56 }
  0xae   : > { %vm7438_vm2 = vmpackc.low %vm7355_vm3, %vm7330_vm10  ;;  %5757 = vmatprep.subr.msk.bf16.mxu0 %vm9569_vm4, %v9241_v19  ;;  %vm9572_vm3 = vcmp.lt.s32.totalorder %v323_v15, %v6829_v36  ;;  %v9589_v14 = vmov 0  ;;  %v9600_v30 = vmov 0  ;;  %v9603_v33 = vmov 0 }
  0xaf   : > { %v9564_v12 = vsel %vm7438_vm2, 4294967295, %v9563_v12  ;;  %vm7448_vm6 = vmand %vm9566_vm13, %vm9565_vm12  ;;  %vm9573_vm12 = vcmp.ge.s32.totalorder %v323_v15, %v6820_v29  ;;  %vm9576_vm2 = vcmask 203776   ;;  %v9591_v15 = vmov 0 }
  0xb0   : > { %vm7460_vm10 = vmpackc.low %vm7317_vm0, %vm7289_vm15  ;;  %4497 = vmatmul.mubr.msk.bf16.vlgmr.msra.gmra.mrb[16].mxu1 %vm9576_vm2, %v6503_v59  ;;  %vm9580_vm0 = vnez %v9503_v34  ;;  %v9605_v7 = vmov 0  ;;  %v325_v37 = vadd.s32 64, %v6692_v3  ;;  %v326_v1 = vadd.s32 72, %v6692_v3 }
  0xb1   : > { %v9571_v57 = vsel %vm7460_vm10, 4294967295, %v9570_v57  ;;  %vm7468_vm13 = vmand %vm9573_vm12, %vm9572_vm3  ;;  %5791 = vmatpush3.bf16.msk.msra.mxu1 %vm9580_vm0, %v9241_v19  ;;  %vm486_vm12 = vcmp.lt.s32.totalorder %v356_v48, %v6829_v36  ;;  %v357_v22 = vadd.s32 320, %v6692_v3  ;;  %v358_v23 = vadd.s32 328, %v6692_v3 }
  0xb2   : > { %vm7474_vm4 = vmand %vm389_vm11, %vm454_vm5  ;;  %vm485_vm11 = vcmp.lt.s32.totalorder %v355_v54, %v6829_v36  ;;  %vm9583_vm5 = vnez %v9515_v63  ;;  %v343_v9 = vadd.s32 208, %v6692_v3  ;;  %v344_v42 = vadd.s32 216, %v6692_v3 }
  0xb3   : > { %vm9579_vm15 = vmmov %vm9576_vm2  ;;  %vm420_vm2 = vcmp.ge.s32.totalorder %v355_v54, %v6820_v29  ;;  %5793 = vmatprep.subr.msk.bf16.mxu1 %vm9583_vm5, %v9241_v19  ;;  %v9610_v47 = vmov 0  ;;  %v376_v60 = vadd.s32 472, %v6692_v3  ;;  %v327_v54 = vadd.s32 80, %v6692_v3 }
  0xb4   : > { %4490 = vmatmul.mubr.msk.bf16.vlgmr.msra.gmra.mrb[16].mxu0 %vm9579_vm15, %v6503_v59  ;;  %vm7487_vm3 = vmpackc.low %vm7412_vm7, %vm7386_vm14  ;;  %vm421_vm7 = vcmp.ge.s32.totalorder %v356_v48, %v6820_v29  ;;  %vm9586_vm15 = vnez %v9526_v25  ;;  %v328_v49 = vadd.s32 88, %v6692_v3  ;;  %v9635_v17 = vmov 0 }
  0xb5   : > { %v9582_v32 = vsel %vm7487_vm3, 4294967295, %v9581_v32  ;;  %5759 = vmatpush3.bf16.msk.msra.mxu0 %vm7271_vm1, %v9241_v19  ;;  %vm7504_vm14 = vmpackc.low %vm7448_vm6, %vm7424_vm8  ;;  %vm406_vm8 = vcmp.ge.s32.totalorder %v341_v50, %v6820_v29  ;;  %vm471_vm6 = vcmp.lt.s32.totalorder %v341_v50, %v6829_v36  ;;  %vm438_vm1 = vcmp.ge.s32.totalorder %v373_v26, %v6820_v29  ;;  %5795 = vmatpush3.bf16.msk.msra.mxu1 %vm7345_vm9, %v9241_v19 }
  0xb6   : > { %v9585_v13 = vsel %vm7504_vm14, 4294967295, %v9584_v13  ;;  %5761 = vmatprep.subr.msk.bf16.mxu0 %vm9586_vm15, %v9241_v19  ;;  %vm7518_vm5 = vmpackc.low %vm7474_vm4, %vm7468_vm13  ;;  %vm503_vm15 = vcmp.lt.s32.totalorder %v373_v26, %v6829_v36  ;;  %vm439_vm13 = vcmp.ge.s32.totalorder %v374_v11, %v6820_v29  ;;  %vm407_vm3 = vcmp.ge.s32.totalorder %v342_v16, %v6820_v29 }
  0xb7   : > { %v9588_v62 = vsel %vm7518_vm5, 4294967295, %v9587_v62  ;;  %vm7524_vm0 = vmand %vm420_vm2, %vm485_vm11  ;;  %vm504_vm5 = vcmp.lt.s32.totalorder %v374_v11, %v6829_v36  ;;  %vm9593_vm2 = vnez %v9544_v51  ;;  %vm9594_vm11 = vnez %v9546_v24 }
  0xb8   : > { %v9590_v14 = vsel %vm7524_vm0, 4294967295, %v9589_v14  ;;  %vm7533_vm4 = vmand %vm421_vm7, %vm486_vm12  ;;  %5797 = vmatprep.subr.msk.bf16.mxu1 %vm9594_vm11, %v9241_v19  ;;  %vm472_vm9 = vcmp.lt.s32.totalorder %v342_v16, %v6829_v36  ;;  %vm9595_vm12 = vnez %v9553_v41  ;;  %vm9596_vm14 = vnez %v9564_v12 }
  0xb9   : > { %v9592_v15 = vsel %vm7533_vm4, 4294967295, %v9591_v15  ;;  %5763 = vmatpush3.bf16.msk.msra.mxu0 %vm9593_vm2, %v9241_v19  ;;  %vm535_vm7 = vmand %vm406_vm8, %vm471_vm6  ;;  %5799 = vmatpush3.bf16.msk.msra.mxu1 %vm9596_vm14, %v9241_v19  ;;  %vm9597_vm11 = vnez %v9585_v13  ;;  %vm9598_vm8 = vnez %v9590_v14  ;;  %v9620_v26 = vmov 0 }
  0xba   : > { %5765 = vmatprep.subr.msk.bf16.mxu0 %vm9595_vm12, %v9241_v19  ;;  %vm567_vm4 = vmand %vm438_vm1, %vm503_vm15  ;;  %5801 = vmatprep.subr.msk.bf16.mxu1 %vm9597_vm11, %v9241_v19  ;;  %vm9599_vm6 = vnez %v9592_v15  ;;  %vm9602_vm1 = vnez %v9582_v32  ;;  %vm391_vm15 = vcmp.ge.s32.totalorder %v326_v1, %v6820_v29  ;;  %v359_v11 = vadd.s32 336, %v6692_v3 }
  0xbb   : > { %vm568_vm0 = vmand %vm439_vm13, %vm504_vm5  ;;  %vm9607_vm5 = vnez %v9588_v62  ;;  %vm456_vm13 = vcmp.lt.s32.totalorder %v326_v1, %v6829_v36  ;;  %v360_v16 = vadd.s32 344, %v6692_v3  ;;  %v363_v44 = vadd.s32 368, %v6692_v3 }
  0xbc   : > { %vm536_vm2 = vmand %vm407_vm3, %vm472_vm9 }
  0xbd   : > { %5767 = vmatpush3.bf16.msk.msra.mxu0 %vm7460_vm10, %v9241_v19  ;;  %vm7563_vm12 = vmpackc.low %vm9599_vm6, %vm9598_vm8  ;;  %vm487_vm8 = vcmp.lt.s32.totalorder %v357_v22, %v6829_v36 }
  0xbe   : > { %v9601_v30 = vsel %vm7563_vm12, 4294967295, %v9600_v30  ;;  %5769 = vmatprep.subr.msk.bf16.mxu0 %vm9602_vm1, %v9241_v19  ;;  %vm7570_vm9 = vmpackc.low %vm568_vm0, %vm567_vm4  ;;  %5803 = vmatpush3.bf16.msk.msra.mxu1 %vm7563_vm12, %v9241_v19  ;;  %vm390_vm0 = vcmp.ge.s32.totalorder %v325_v37, %v6820_v29  ;;  %vm455_vm4 = vcmp.lt.s32.totalorder %v325_v37, %v6829_v36 }
  0xbf   : > { %v9604_v33 = vsel %vm7570_vm9, 4294967295, %v9603_v33  ;;  %vm7574_vm3 = vmpackc.low %vm536_vm2, %vm535_vm7  ;;  %5805 = vmatprep.subr.msk.bf16.mxu1 %vm7570_vm9, %v9241_v19  ;;  %vm422_vm7 = vcmp.ge.s32.totalorder %v357_v22, %v6820_v29  ;;  %vm423_vm9 = vcmp.ge.s32.totalorder %v358_v23, %v6820_v29  ;;  %v9626_v22 = vmov 0 }
  0xc0   : > { %v9606_v7 = vsel %vm7574_vm3, 4294967295, %v9605_v7  ;;  %vm519_vm2 = vmand %vm390_vm0, %vm455_vm4  ;;  %vm473_vm4 = vcmp.lt.s32.totalorder %v343_v9, %v6829_v36 }
  0xc1   : > { %5771 = vmatpush3.bf16.msk.msra.mxu0 %vm9607_vm5, %v9241_v19  ;;  %vm520_vm6 = vmand %vm391_vm15, %vm456_vm13  ;;  %vm408_vm15 = vcmp.ge.s32.totalorder %v343_v9, %v6820_v29  ;;  %v346_v9 = vadd.s32 232, %v6692_v3 }
  0xc2   : > { %5773 = vmatprep.subr.msk.bf16.mxu0 %vm7574_vm3, %v9241_v19  ;;  %vm488_vm3 = vcmp.lt.s32.totalorder %v358_v23, %v6829_v36  ;;  %vm7608_vm12 = vmpackc.low %vm520_vm6, %vm519_vm2  ;;  %vm409_vm2 = vcmp.ge.s32.totalorder %v344_v42, %v6820_v29  ;;  %vm474_vm6 = vcmp.lt.s32.totalorder %v344_v42, %v6829_v36  ;;  %v345_v23 = vadd.s32 224, %v6692_v3 }
  0xc3   : > { %v9611_v47 = vsel %vm7608_vm12, 4294967295, %v9610_v47  ;;  %vm551_vm0 = vmand %vm422_vm7, %vm487_vm8 }
  0xc4   : > { %vm552_vm13 = vmand %vm423_vm9, %vm488_vm3  ;;  %vm440_vm9 = vcmp.ge.s32.totalorder %v375_v38, %v6820_v29  ;;  %vm505_vm3 = vcmp.lt.s32.totalorder %v375_v38, %v6829_v36 }
  0xc5   : > { %5775 = vmatpush3.bf16.msk.msra.mxu0 %vm7608_vm12, %v9241_v19  ;;  %vm7627_vm5 = vmpackc.low %vm552_vm13, %vm551_vm0  ;;  %vm441_vm0 = vcmp.ge.s32.totalorder %v376_v60, %v6820_v29  ;;  %vm506_vm13 = vcmp.lt.s32.totalorder %v376_v60, %v6829_v36  ;;  %v9630_v60 = vmov 0 }
  0xc6   : > { %v9615_v28 = vsel %vm7627_vm5, 4294967295, %v9614_v28  ;;  %5807 = vmatpush3.bf16.msk.msra.mxu1 %vm7627_vm5, %v9241_v19  ;;  %vm537_vm7 = vmand %vm408_vm15, %vm473_vm4  ;;  %vm392_vm4 = vcmp.ge.s32.totalorder %v327_v54, %v6820_v29  ;;  %vm457_vm5 = vcmp.lt.s32.totalorder %v327_v54, %v6829_v36  ;;  %v377_v54 = vadd.s32 480, %v6692_v3 }
  0xc7   : > { %vm538_vm8 = vmand %vm409_vm2, %vm474_vm6  ;;  %vm393_vm6 = vcmp.ge.s32.totalorder %v328_v49, %v6820_v29 }
  0xc8   : > { %vm7648_vm12 = vmpackc.low %vm538_vm8, %vm537_vm7  ;;  %vm458_vm7 = vcmp.lt.s32.totalorder %v328_v49, %v6829_v36  ;;  %vm424_vm8 = vcmp.ge.s32.totalorder %v359_v11, %v6820_v29 }
  0xc9   : > { %v9621_v26 = vsel %vm7648_vm12, 4294967295, %v9620_v26  ;;  %5777 = vmatprep.subr.msk.bf16.mxu0 %vm7648_vm12, %v9241_v19  ;;  %vm569_vm15 = vmand %vm440_vm9, %vm505_vm3  ;;  %vm425_vm12 = vcmp.ge.s32.totalorder %v360_v16, %v6820_v29 }
  0xca   : > { %vm570_vm2 = vmand %vm441_vm0, %vm506_vm13  ;;  %vm489_vm0 = vcmp.lt.s32.totalorder %v359_v11, %v6829_v36 }
  0xcb   : > { %vm7669_vm9 = vmpackc.low %vm570_vm2, %vm569_vm15  ;;  %vm490_vm15 = vcmp.lt.s32.totalorder %v360_v16, %v6829_v36  ;;  %v378_v16 = vadd.s32 488, %v6692_v3 }
  0xcc   : > { %v9627_v22 = vsel %vm7669_vm9, 4294967295, %v9626_v22  ;;  %5809 = vmatprep.subr.msk.bf16.mxu1 %vm7669_vm9, %v9241_v19  ;;  %vm521_vm3 = vmand %vm392_vm4, %vm457_vm5  ;;  %vm410_vm4 = vcmp.ge.s32.totalorder %v345_v23, %v6820_v29 }
  0xcd   : > { %vm522_vm13 = vmand %vm393_vm6, %vm458_vm7  ;;  %vm475_vm6 = vcmp.lt.s32.totalorder %v345_v23, %v6829_v36  ;;  %v330_v23 = vadd.s32 104, %v6692_v3 }
  0xce   : > { %vm7686_vm2 = vmpackc.low %vm522_vm13, %vm521_vm3  ;;  %vm411_vm3 = vcmp.ge.s32.totalorder %v346_v9, %v6820_v29  ;;  %vm476_vm13 = vcmp.lt.s32.totalorder %v346_v9, %v6829_v36 }
  0xcf   : > { %v9631_v60 = vsel %vm7686_vm2, 4294967295, %v9630_v60  ;;  %5779 = vmatpush3.bf16.msk.msra.mxu0 %vm7686_vm2, %v9241_v19  ;;  %vm553_vm5 = vmand %vm424_vm8, %vm489_vm0  ;;  %vm507_vm0 = vcmp.lt.s32.totalorder %v377_v54, %v6829_v36 }
  0xd0   : > { %9632 = vst [vmem:[#allocation30_spill] sm:$0xff] %v9631_v60  ;;  %vm554_vm7 = vmand %vm425_vm12, %vm490_vm15  ;;  %vm442_vm12 = vcmp.ge.s32.totalorder %v377_v54, %v6820_v29  ;;  %v362_v54 = vadd.s32 360, %v6692_v3 }
  0xd1   : > { %vm7703_vm9 = vmpackc.low %vm554_vm7, %vm553_vm5  ;;  %vm443_vm5 = vcmp.ge.s32.totalorder %v378_v16, %v6820_v29  ;;  %vm508_vm7 = vcmp.lt.s32.totalorder %v378_v16, %v6829_v36 }
  0xd2   : > { %v9636_v17 = vsel %vm7703_vm9, 4294967295, %v9635_v17  ;;  %vm539_vm8 = vmand %vm410_vm4, %vm475_vm6 }
  0xd3   : > { %9637 = vst [vmem:[#allocation33_spill] sm:$0xff] %v9636_v17  ;;  %vm540_vm15 = vmand %vm411_vm3, %vm476_vm13  ;;  %vm395_vm13 = vcmp.ge.s32.totalorder %v330_v23, %v6820_v29 }
  0xd4   : > { %vm7724_vm2 = vmpackc.low %vm540_vm15, %vm539_vm8  ;;  %vm460_vm8 = vcmp.lt.s32.totalorder %v330_v23, %v6829_v36  ;;  %v348_v23 = vadd.s32 248, %v6692_v3 }
  0xd5   : > { %vm571_vm4 = vmand %vm442_vm12, %vm507_vm0 }
  0xd6   : > { %vm572_vm3 = vmand %vm443_vm5, %vm508_vm7 }
  0xd7   : > { %vm7745_vm12 = vmpackc.low %vm572_vm3, %vm571_vm4  ;;  %vm492_vm4 = vcmp.lt.s32.totalorder %v362_v54, %v6829_v36 }
  0xd8   : > { %vm524_vm7 = vmand %vm395_vm13, %vm460_vm8 }
  0xf6   : > { %v7604_v61 = vpop.f32.mrb[0].mxu0 }
  0xf7   : > { %9608 = vst [vmem:[#allocation16_spill] sm:$0xff] %v7604_v61  ;;  %v7606_v0 = vpop.f32.mrb[0].mxu1  ;;  %v7613_v40 = vpop.f32.mrb[1].mxu0 }
  0xf8   : > { %9609 = vst [vmem:[#allocation17_spill] sm:$0xff] %v7606_v0  ;;  %9612 = vst [vmem:[#allocation18_spill] sm:$0xff] %v7613_v40  ;;  %v7615_v59 = vpop.f32.mrb[1].mxu1 }
  0xf9   : > { %9613 = vst [vmem:[#allocation19_spill] sm:$0xff] %v7615_v59 }
  0xfa   : > { %v7632_v46 = vpop.f32.mrb[2].mxu0 }
  0xfb   : > { %9616 = vst [vmem:[#allocation20_spill] sm:$0xff] %v7632_v46  ;;  %v7634_v48 = vpop.f32.mrb[2].mxu1  ;;  %v7642_v50 = vpop.f32.mrb[3].mxu0 }
  0xfc   : > { %9617 = vst [vmem:[#allocation21_spill] sm:$0xff] %v7634_v48  ;;  %9618 = vst [vmem:[#allocation22_spill] sm:$0xff] %v7642_v50  ;;  %v7644_v31 = vpop.f32.mrb[3].mxu1 }
  0xfd   : > { %9619 = vst [vmem:[#allocation23_spill] sm:$0xff] %v7644_v31 }
  0xfe   : > { %v7659_v14 = vpop.f32.mrb[4].mxu0 }
  0xff   : > { %9622 = vst [vmem:[#allocation24_spill] sm:$0xff] %v7659_v14  ;;  %v7661_v15 = vpop.f32.mrb[4].mxu1  ;;  %v7665_v37 = vpop.f32.mrb[5].mxu0 }
 0x100   : > { %9623 = vst [vmem:[#allocation25_spill] sm:$0xff] %v7661_v15  ;;  %9624 = vst [vmem:[#allocation26_spill] sm:$0xff] %v7665_v37  ;;  %v7667_v1 = vpop.f32.mrb[5].mxu1  ;;  %v9650_v37 = vmov 0 }
 0x101   : > { %9625 = vst [vmem:[#allocation27_spill] sm:$0xff] %v7667_v1  ;;  %v9651_v37 = vsel %vm7745_vm12, 4294967295, %v9650_v37 }
 0x102   : > { %v7682_v42 = vpop.f32.mrb[6].mxu0  ;;  %9652 = vst [vmem:[#allocation43_spill] sm:$0xff] %v9651_v37 }
 0x103   : > { %9628 = vst [vmem:[#allocation28_spill] sm:$0xff] %v7682_v42  ;;  %v7684_v38 = vpop.f32.mrb[6].mxu1  ;;  %v7691_v49 = vpop.f32.mrb[7].mxu0 }
 0x104   : > { %9629 = vst [vmem:[#allocation29_spill] sm:$0xff] %v7684_v38  ;;  %9633 = vst [vmem:[#allocation31_spill] sm:$0xff] %v7691_v49  ;;  %v7693_v11 = vpop.f32.mrb[7].mxu1  ;;  %v9640_v38 = vmov 1.0|1.0  }
 0x105   : > { %9634 = vst [vmem:[#allocation32_spill] sm:$0xff] %v7693_v11  ;;  %v329_v11 = vadd.s32 96, %v6692_v3  ;;  %5811 = vmatpush3.bf16.msk.msra.mxu1 %vm7703_vm9, %v9640_v38  ;;  %5781 = vmatprep.subr.msk.bf16.mxu0 %vm7724_vm2, %v9640_v38 }
 0x106   : > { %v7708_v49 = vpop.f32.mrb[8].mxu0  ;;  %5813 = vmatprep.subr.msk.bf16.mxu1 %vm7745_vm12, %v9640_v38 }
 0x107   : > { %9638 = vst [vmem:[#allocation34_spill] sm:$0xff] %v7708_v49  ;;  %v7710_v19 = vpop.f32.mrb[8].mxu1  ;;  %v7718_v9 = vpop.f32.mrb[9].mxu0  ;;  %v361_v49 = vadd.s32 352, %v6692_v3  ;;  %vm394_vm6 = vcmp.ge.s32.totalorder %v329_v11, %v6820_v29  ;;  %vm459_vm9 = vcmp.lt.s32.totalorder %v329_v11, %v6829_v36  ;;  %v347_v11 = vadd.s32 240, %v6692_v3 }
 0x108   : > { %9639 = vst [vmem:[#allocation35_spill] sm:$0xff] %v7710_v19  ;;  %9641 = vst [vmem:[#allocation36_spill] sm:$0xff] %v7718_v9  ;;  %v7720_v1 = vpop.f32.mrb[9].mxu1  ;;  %v9643_v19 = vmov 0 }
 0x109   : > { %9642 = vst [vmem:[#allocation37_spill] sm:$0xff] %v7720_v1  ;;  %v9644_v19 = vsel %vm7724_vm2, 4294967295, %v9643_v19  ;;  %vm523_vm0 = vmand %vm394_vm6, %vm459_vm9  ;;  %vm426_vm15 = vcmp.ge.s32.totalorder %v361_v49, %v6820_v29  ;;  %vm491_vm5 = vcmp.lt.s32.totalorder %v361_v49, %v6829_v36  ;;  %vm427_vm2 = vcmp.ge.s32.totalorder %v362_v54, %v6820_v29 }
 0x10a   : > { %9645 = vst [vmem:[#allocation38_spill] sm:$0xff] %v9644_v19  ;;  %v7735_v1 = vpop.f32.mrb[10].mxu0  ;;  %vm7762_vm3 = vmpackc.low %vm524_vm7, %vm523_vm0  ;;  %vm412_vm6 = vcmp.ge.s32.totalorder %v347_v11, %v6820_v29  ;;  %vm477_vm13 = vcmp.lt.s32.totalorder %v347_v11, %v6829_v36  ;;  %v380_v54 = vadd.s32 504, %v6692_v3  ;;  %vm413_vm0 = vcmp.ge.s32.totalorder %v348_v23, %v6820_v29 }
 0x10b   : > { %9646 = vst [vmem:[#allocation39_spill] sm:$0xff] %v7735_v1  ;;  %v7737_v16 = vpop.f32.mrb[10].mxu1  ;;  %v7741_v9 = vpop.f32.mrb[11].mxu0  ;;  %v379_v1 = vadd.s32 496, %v6692_v3  ;;  %5783 = vmatpush3.bf16.msk.msra.mxu0 %vm7762_vm3, %v9640_v38  ;;  %vm555_vm9 = vmand %vm426_vm15, %vm491_vm5  ;;  %vm478_vm7 = vcmp.lt.s32.totalorder %v348_v23, %v6829_v36  ;;  %v332_v11 = vadd.s32 120, %v6692_v3 }
 0x10c   : > { %9647 = vst [vmem:[#allocation40_spill] sm:$0xff] %v7737_v16  ;;  %9648 = vst [vmem:[#allocation41_spill] sm:$0xff] %v7741_v9  ;;  %v7743_v42 = vpop.f32.mrb[11].mxu1  ;;  %v9655_v16 = vmov 0 }
 0x10d   : > { %9649 = vst [vmem:[#allocation42_spill] sm:$0xff] %v7743_v42  ;;  %v9656_v16 = vsel %vm7762_vm3, 4294967295, %v9655_v16  ;;  %vm556_vm8 = vmand %vm427_vm2, %vm492_vm4  ;;  %vm444_vm2 = vcmp.ge.s32.totalorder %v379_v1, %v6820_v29  ;;  %vm509_vm5 = vcmp.lt.s32.totalorder %v379_v1, %v6829_v36  ;;  %v704_v1 = vmul.u32 16, %v6698_v5 }
 0x10e   : > { %v7758_v42 = vpop.f32.mrb[12].mxu0  ;;  %9657 = vst [vmem:[#allocation46_spill] sm:$0xff] %v9656_v16  ;;  %vm7779_vm12 = vmpackc.low %vm556_vm8, %vm555_vm9  ;;  %vm445_vm9 = vcmp.ge.s32.totalorder %v380_v54, %v6820_v29  ;;  %vm510_vm8 = vcmp.lt.s32.totalorder %v380_v54, %v6829_v36  ;;  %v364_v54 = vadd.s32 376, %v6692_v3 }
 0x10f   : > { %9653 = vst [vmem:[#allocation44_spill] sm:$0xff] %v7758_v42  ;;  %v7760_v9 = vpop.f32.mrb[12].mxu1  ;;  %v7767_v15 = vpop.f32.mrb[13].mxu0  ;;  %5815 = vmatpush3.bf16.msk.msra.mxu1 %vm7779_vm12, %v9640_v38  ;;  %vm541_vm15 = vmand %vm412_vm6, %vm477_vm13 }
 0x110   : > { %9654 = vst [vmem:[#allocation45_spill] sm:$0xff] %v7760_v9  ;;  %9658 = vst [vmem:[#allocation47_spill] sm:$0xff] %v7767_v15  ;;  %v7769_v49 = vpop.f32.mrb[13].mxu1  ;;  %v9660_v15 = vmov 0  ;;  %vm494_vm11 = vcmp.lt.s32.totalorder %v364_v54, %v6829_v36 }
 0x111   : > { %9659 = vst [vmem:[#allocation48_spill] sm:$0xff] %v7769_v49  ;;  %v9661_v15 = vsel %vm7779_vm12, 4294967295, %v9660_v15  ;;  %v331_v49 = vadd.s32 112, %v6692_v3  ;;  %vm542_vm4 = vmand %vm413_vm0, %vm478_vm7 }
 0x112   : > { %9662 = vst [vmem:[#allocation49_spill] sm:$0xff] %v9661_v15  ;;  %v7784_v9 = vpop.f32.mrb[14].mxu0  ;;  %vm7801_vm3 = vmpackc.low %vm542_vm4, %vm541_vm15  ;;  %vm397_vm15 = vcmp.ge.s32.totalorder %v332_v11, %v6820_v29  ;;  %vm462_vm4 = vcmp.lt.s32.totalorder %v332_v11, %v6829_v36  ;;  %v9673_v11 = vmov 0 }
 0x113   : > { %9663 = vst [vmem:[#allocation50_spill] sm:$0xff] %v7784_v9  ;;  %v7786_v42 = vpop.f32.mrb[14].mxu1  ;;  %v7794_v23 = vpop.f32.mrb[15].mxu0  ;;  %v9667_v9 = vmov 0  ;;  %5785 = vmatprep.subr.msk.bf16.mxu0 %vm7801_vm3, %v9640_v38  ;;  %vm573_vm6 = vmand %vm444_vm2, %vm509_vm5  ;;  %vm396_vm13 = vcmp.ge.s32.totalorder %v331_v49, %v6820_v29  ;;  %vm461_vm0 = vcmp.lt.s32.totalorder %v331_v49, %v6829_v36  ;;  %vm428_vm5 = vcmp.ge.s32.totalorder %v363_v44, %v6820_v29 }
 0x114   : > { %9664 = vst [vmem:[#allocation51_spill] sm:$0xff] %v7786_v42  ;;  %9665 = vst [vmem:[#allocation52_spill] sm:$0xff] %v7794_v23  ;;  %v7796_v14 = vpop.f32.mrb[15].mxu1  ;;  %v703_v42 = vmul.u32 16, %v6692_v3  ;;  %v9668_v9 = vsel %vm7801_vm3, 4294967295, %v9667_v9  ;;  %vm493_vm3 = vcmp.lt.s32.totalorder %v363_v44, %v6829_v36  ;;  %v724_v49 = vadd.s32 16, %v704_v1 }
 0x115   : > { %9666 = vst [vmem:[#allocation53_spill] sm:$0xff] %v7796_v14  ;;  %9669 = vst [vmem:[#allocation54_spill] sm:$0xff] %v9668_v9  ;;  %v9670_v14 = vmov 0  ;;  %v9679_v36 = vmov 0  ;;  %v9682_v44 = vmov 0  ;;  %v9687_v23 = vmov 0 }
 0x116   : > { %vm574_vm7 = vmand %vm445_vm9, %vm510_vm8  ;;  %v723_v5 = vadd.s32 16, %v703_v42  ;;  %vm429_vm8 = vcmp.ge.s32.totalorder %v364_v54, %v6820_v29  ;;  %v9676_v29 = vmov 0  ;;  %v9685_v54 = vmov 0 }
 0x117   : > { %vm7815_vm12 = vmpackc.low %vm574_vm7, %vm573_vm6 }
 0x118   : > { %v9671_v14 = vsel %vm7815_vm12, 4294967295, %v9670_v14  ;;  %5817 = vmatprep.subr.msk.bf16.mxu1 %vm7815_vm12, %v9640_v38  ;;  %vm525_vm2 = vmand %vm396_vm13, %vm461_vm0  ;;  %vm708_vm13 = vcmp.ge.s32.totalorder %v6695_v4, %v703_v42  ;;  %vm728_vm0 = vcmp.lt.s32.totalorder %v6695_v4, %v723_v5 }
 0x119   : > { %9672 = vst [vmem:[#allocation55_spill] sm:$0xff] %v9671_v14  ;;  %vm526_vm9 = vmand %vm397_vm15, %vm462_vm4  ;;  %vm712_vm15 = vcmp.ge.s32.totalorder %v6695_v4, %v704_v1  ;;  %vm732_vm4 = vcmp.lt.s32.totalorder %v6695_v4, %v724_v49 }
 0x11a   : > { %vm7826_vm6 = vmpackc.low %vm526_vm9, %vm525_vm2 }
 0x11b   : > { %v9674_v11 = vsel %vm7826_vm6, 4294967295, %v9673_v11  ;;  %5787 = vmatpush3.bf16.msk.msra.mxu0 %vm7826_vm6, %v9640_v38  ;;  %vm557_vm7 = vmand %vm428_vm5, %vm493_vm3  ;;  %vm710_vm3 = vcmp.ge.s32.totalorder %v6701_v6, %v703_v42  ;;  %vm730_vm5 = vcmp.lt.s32.totalorder %v6701_v6, %v723_v5 }
 0x11c   : > { %9675 = vst [vmem:[#allocation56_spill] sm:$0xff] %v9674_v11  ;;  %vm558_vm12 = vmand %vm429_vm8, %vm494_vm11  ;;  %vm714_vm11 = vcmp.ge.s32.totalorder %v6701_v6, %v704_v1  ;;  %vm734_vm8 = vcmp.lt.s32.totalorder %v6701_v6, %v724_v49 }
 0x11d   : > { %vm7837_vm1 = vmpackc.low %vm558_vm12, %vm557_vm7  ;;  %vm707_vm7 = vcmp.ge.s32.totalorder %v6690_v2, %v703_v42 }
 0x11e   : > { %v9677_v29 = vsel %vm7837_vm1, 4294967295, %v9676_v29  ;;  %5819 = vmatpush3.bf16.msk.msra.mxu1 %vm7837_vm1, %v9640_v38  ;;  %vm744_vm2 = vmand %vm708_vm13, %vm728_vm0  ;;  %vm727_vm13 = vcmp.lt.s32.totalorder %v6690_v2, %v723_v5 }
 0x11f   : > { %9678 = vst [vmem:[#allocation57_spill] sm:$0xff] %v9677_v29  ;;  %vm748_vm9 = vmand %vm712_vm15, %vm732_vm4  ;;  %vm711_vm15 = vcmp.ge.s32.totalorder %v6690_v2, %v704_v1  ;;  %vm731_vm4 = vcmp.lt.s32.totalorder %v6690_v2, %v724_v49 }
 0x120   : > { %vm7848_vm6 = vmpackc.low %vm748_vm9, %vm744_vm2 }
 0x121   : > { %v9680_v36 = vsel %vm7848_vm6, 4294967295, %v9679_v36  ;;  %5821 = vmatprep.subr.msk.bf16.mxu0 %vm7848_vm6, %v9640_v38  ;;  %vm746_vm12 = vmand %vm710_vm3, %vm730_vm5  ;;  %vm709_vm3 = vcmp.ge.s32.totalorder %v6707_v8, %v703_v42  ;;  %vm729_vm5 = vcmp.lt.s32.totalorder %v6707_v8, %v723_v5 }
 0x122   : > { %9681 = vst [vmem:[#allocation58_spill] sm:$0xff] %v9680_v36  ;;  %vm750_vm0 = vmand %vm714_vm11, %vm734_vm8  ;;  %vm713_vm11 = vcmp.ge.s32.totalorder %v6707_v8, %v704_v1  ;;  %vm733_vm8 = vcmp.lt.s32.totalorder %v6707_v8, %v724_v49 }
 0x123   : > { %vm7859_vm1 = vmpackc.low %vm750_vm0, %vm746_vm12 }
 0x124   : > { %v9683_v44 = vsel %vm7859_vm1, 4294967295, %v9682_v44  ;;  %5829 = vmatprep.subr.msk.bf16.mxu1 %vm7859_vm1, %v9640_v38  ;;  %vm743_vm2 = vmand %vm707_vm7, %vm727_vm13 }
 0x125   : > { %9684 = vst [vmem:[#allocation59_spill] sm:$0xff] %v9683_v44  ;;  %vm747_vm9 = vmand %vm711_vm15, %vm731_vm4 }
 0x126   : > { %vm7870_vm6 = vmpackc.low %vm747_vm9, %vm743_vm2 }
 0x127   : > { %v9686_v54 = vsel %vm7870_vm6, 4294967295, %v9685_v54  ;;  %vm745_vm12 = vmand %vm709_vm3, %vm729_vm5 }
 0x128   : > { %vm749_vm0 = vmand %vm713_vm11, %vm733_vm8 }
 0x129   : > { %vm7874_vm14 = vmpackc.low %vm749_vm0, %vm745_vm12 }
 0x12a   : > { %v9688_v23 = vsel %vm7874_vm14, 4294967295, %v9687_v23 }
 0x183   : > { %v7878_v45 = vpop.f32.mrb[16].mxu1 }
 0x184   : > { %9689 = vst [vmem:[#allocation60_spill] sm:$0xff] %v7878_v45  ;;  %v1257_v5 = vrot.slane %v7878_v45, 4  ;;  %v7883_v43 = vpop.f32.mrb[17].mxu1 }
 0x185   : > { %v1263_v35 = vrot.slane %v7883_v43, 4  ;;  %v7889_v39 = vpop.f32.mrb[18].mxu1 }
 0x186   : > { %9691 = vst [vmem:[#allocation62_spill] sm:$0xff] %v7889_v39  ;;  %v1258_v27 = vadd.f32 %v1257_v5, %v7878_v45  ;;  %v7895_v58 = vpop.f32.mrb[19].mxu1 }
 0x187   : > { %v7880_v42 = vpop.f32.mrb[16].mxu0  ;;  %9693 = vst [vmem:[#allocation64_spill] sm:$0xff] %v7895_v58  ;;  %v1264_v50 = vadd.f32 %v1263_v35, %v7883_v43 }
 0x188   : > { %9690 = vst [vmem:[#allocation61_spill] sm:$0xff] %v7880_v42  ;;  %v1245_v1 = vrot.slane %v7880_v42, 4  ;;  %v7886_v49 = vpop.f32.mrb[17].mxu0  ;;  %v1259_v59 = vrot.slane %v1258_v27, 2 }
 0x189   : > { %v1251_v20 = vrot.slane %v7886_v49, 4  ;;  %v7893_v21 = vpop.f32.mrb[18].mxu0  ;;  %v1265_v0 = vrot.slane %v1264_v50, 2 }
 0x18a   : > { %9692 = vst [vmem:[#allocation63_spill] sm:$0xff] %v7893_v21  ;;  %v1246_v31 = vadd.f32 %v1245_v1, %v7880_v42  ;;  %v7899_v48 = vpop.f32.mrb[19].mxu0  ;;  %v1260_v39 = vadd.f32 %v1259_v59, %v1258_v27 }
 0x18b   : > { %9694 = vst [vmem:[#allocation65_spill] sm:$0xff] %v7899_v48  ;;  %v1252_v46 = vadd.f32 %v1251_v20, %v7886_v49  ;;  %v1266_v45 = vadd.f32 %v1265_v0, %v1264_v50  ;;  %v9695_v20 = vmov 0.0   ;;  %v9739_v50 = vld [vmem:[#allocation58_spill] sm:$0xff] }
 0x18c   : > { %v1247_v40 = vrot.slane %v1246_v31, 2  ;;  %v1261_v3 = vrot.slane %v1260_v39, 1 }
 0x18d   : > { %v1253_v61 = vrot.slane %v1252_v46, 2  ;;  %v1267_v36 = vrot.slane %v1266_v45, 1 }
 0x18e   : > { %v1248_v5 = vadd.f32 %v1247_v40, %v1246_v31  ;;  %v1262_v42 = vadd.f32 %v1261_v3, %v1260_v39  ;;  %v706_v3 = vmul.u32 16, %v6890_v53  ;;  %v9705_v53 = vmov 0 }
 0x18f   : > { %v1254_v44 = vadd.f32 %v1253_v61, %v1252_v46  ;;  %v1268_v29 = vadd.f32 %v1267_v36, %v1266_v45  ;;  %v705_v45 = vmul.u32 16, %v6887_v52  ;;  %v9696_v52 = vmov 0  ;;  %v9737_v46 = vld [vmem:[#allocation57_spill] sm:$0xff] }
 0x190   : > { %v1249_v21 = vrot.slane %v1248_v5, 1  ;;  %vm720_vm13 = vcmp.ge.s32.totalorder %v6695_v4, %v706_v3  ;;  %vm722_vm11 = vcmp.ge.s32.totalorder %v6701_v6, %v706_v3 }
 0x191   : > { %v1255_v58 = vrot.slane %v1254_v44, 1  ;;  %1403 = vmatprep.mubr.f32.mxu1 %v1268_v29  ;;  %v725_v39 = vadd.s32 16, %v705_v45  ;;  %vm716_vm7 = vcmp.ge.s32.totalorder %v6695_v4, %v705_v45  ;;  %vm718_vm3 = vcmp.ge.s32.totalorder %v6701_v6, %v705_v45  ;;  %v9742_v29 = vld [vmem:[#allocation6_spill] sm:$0xff] }
 0x192   : > { %v1250_v35 = vadd.f32 %v1249_v21, %v1248_v5  ;;  %1404 = vmatmul.mubr.f32.vlgmr.msra.gmra.mrb[20].mxu1 %v1262_v42  ;;  %v8061_v36 = vsub.s32 0, %v9742_v29 }
 0x193   : > { %v1256_v1 = vadd.f32 %v1255_v58, %v1254_v44  ;;  %5831 = vmatpush1.bf16.msk.msra.mxu1 %vm7874_vm14, %v9640_v38  ;;  %1548 = vmatprep.mubr.f32.mxu1 %v9695_v20  ;;  %v726_v58 = vadd.s32 16, %v706_v3  ;;  %vm736_vm15 = vcmp.lt.s32.totalorder %v6695_v4, %v725_v39  ;;  %vm738_vm5 = vcmp.lt.s32.totalorder %v6701_v6, %v725_v39 }
 0x194   : > { %vm752_vm2 = vmand %vm716_vm7, %vm736_vm15  ;;  %vm715_vm7 = vcmp.ge.s32.totalorder %v6690_v2, %v705_v45  ;;  %vm735_vm15 = vcmp.lt.s32.totalorder %v6690_v2, %v725_v39  ;;  %9743 = vst [vmem:[#allocation6_spill] sm:$0xff] %v8061_v36 }
 0x195   : > { %1333 = vmatprep.mubr.f32.mxu0 %v1256_v1  ;;  %vm740_vm4 = vcmp.lt.s32.totalorder %v6695_v4, %v726_v58  ;;  %vm742_vm8 = vcmp.lt.s32.totalorder %v6701_v6, %v726_v58  ;;  %vm754_vm0 = vmand %vm718_vm3, %vm738_vm5  ;;  %v9698_v4 = vmov 0  ;;  %vm717_vm3 = vcmp.ge.s32.totalorder %v6707_v8, %v705_v45 }
 0x196   : > { %1334 = vmatmul.mubr.f32.vlgmr.msra.gmra.mrb[20].mxu0 %v1250_v35  ;;  %vm756_vm9 = vmand %vm720_vm13, %vm740_vm4  ;;  %vm719_vm13 = vcmp.ge.s32.totalorder %v6690_v2, %v706_v3  ;;  %vm739_vm4 = vcmp.lt.s32.totalorder %v6690_v2, %v726_v58  ;;  %vm737_vm5 = vcmp.lt.s32.totalorder %v6707_v8, %v725_v39  ;;  %v9701_v6 = vmov 0 }
 0x197   : > { %5823 = vmatpush1.bf16.msk.msra.mxu0 %vm7870_vm6, %v9640_v38  ;;  %1477 = vmatprep.mubr.f32.mxu0 %v9695_v20  ;;  %vm7920_vm12 = vmpackc.low %vm756_vm9, %vm752_vm2 }
 0x198   : > { %v9697_v52 = vsel %vm7920_vm12, 4294967295, %v9696_v52  ;;  %5825 = vmatprep.subr.msk.bf16.mxu0 %vm7920_vm12, %v9640_v38  ;;  %vm758_vm14 = vmand %vm722_vm11, %vm742_vm8  ;;  %vm721_vm11 = vcmp.ge.s32.totalorder %v6707_v8, %v706_v3  ;;  %vm741_vm8 = vcmp.lt.s32.totalorder %v6707_v8, %v726_v58 }
 0x199   : > { %vm7931_vm6 = vmpackc.low %vm758_vm14, %vm754_vm0 }
 0x19a   : > { %v9699_v4 = vsel %vm7931_vm6, 4294967295, %v9698_v4  ;;  %5833 = vmatprep.subr.msk.bf16.mxu1 %vm7931_vm6, %v9640_v38  ;;  %vm751_vm2 = vmand %vm715_vm7, %vm735_vm15  ;;  %vm9704_vm7 = vnez %v9487_v56 }
 0x19b   : > { %9700 = vst [vmem:[#allocation66_spill] sm:$0xff] %v9699_v4  ;;  %vm755_vm9 = vmand %vm719_vm13, %vm739_vm4  ;;  %vm9708_vm13 = vnez %v9480_v55  ;;  %vm9301_vm4 = vcmask 261120  }
 0x19c   : > { %vm7942_vm12 = vmpackc.low %vm755_vm9, %vm751_vm2  ;;  %vm9709_vm2 = vnez %v9513_v10  ;;  %vm9712_vm9 = vnez %v9515_v63 }
 0x19d   : > { %v9702_v6 = vsel %vm7942_vm12, 4294967295, %v9701_v6  ;;  %5827 = vmatpush1.bf16.msk.msra.mxu0 %vm7942_vm12, %v9640_v38  ;;  %vm753_vm14 = vmand %vm717_vm3, %vm737_vm5  ;;  %vm9710_vm3 = vnez %v9503_v34  ;;  %vm9711_vm5 = vnez %v9526_v25 }
 0x19e   : > { %9703 = vst [vmem:[#allocation67_spill] sm:$0xff] %v9702_v6  ;;  %vm757_vm0 = vmand %vm721_vm11, %vm741_vm8  ;;  %5837 = vmatprep.subr.msk.bf16.mxu0 %vm9704_vm7, %v9640_v38  ;;  %vm9713_vm11 = vnez %v9544_v51  ;;  %vm9714_vm8 = vnez %v9537_v18 }
 0x19f   : > { %vm7952_vm15 = vmpackc.low %vm757_vm0, %vm753_vm14  ;;  %vm9715_vm14 = vnez %v9553_v41  ;;  %vm9716_vm0 = vnez %v9546_v24 }
 0x1a0   : > { %v9706_v53 = vsel %vm7952_vm15, 4294967295, %v9705_v53  ;;  %5835 = vmatpush1.bf16.msk.msra.mxu1 %vm7952_vm15, %v9640_v38 }
 0x1a1   : > { %9707 = vst [vmem:[#allocation68_spill] sm:$0xff] %v9706_v53  ;;  %5869 = vmatprep.subr.msk.bf16.mxu1 %vm9708_vm13, %v9640_v38 }
 0x265   : > { %v5255_v8 = vpop.f32.mrb[20].mxu1 }
 0x266   : > { %v5256_v27 = vpop.f32.mrb[21].mxu1 }
 0x267   : > { %v5257_v0 = vadd.f32 %v5256_v27, %v5255_v8 }
 0x269   : > { %v5220_v21 = vpop.f32.mrb[20].mxu0 }
 0x26a   : > { %v5221_v61 = vpop.f32.mrb[21].mxu0 }
 0x26b   : > { %v5222_v40 = vadd.f32 %v5221_v61, %v5220_v21  ;;  %v9744_v61 = vld [vmem:[#allocation61_spill] sm:$0xff] }
 0x26d   : > { %v1406_v59 = vadd.f32 %v5257_v0, %v5222_v40  ;;  %v9745_v40 = vld [vmem:[#allocation60_spill] sm:$0xff] }
 0x26f   : > { %4570 = vmatmul.mubr.msk.f32.vlgmr.msra.gmra.mrb[22].mxu0 %vm9301_vm4, %v1406_v59  ;;  %4579 = vmatmul.mubr.msk.f32.vlgmr.msra.gmra.mrb[22].mxu1 %vm9301_vm4, %v1406_v59  ;;  %vm9717_vm4 = vnez %v9564_v12 }
 0x270   : > { %5839 = vmatpush3.bf16.msk.msra.mxu0 %vm9709_vm2, %v9640_v38  ;;  %5871 = vmatpush3.bf16.msk.msra.mxu1 %vm9710_vm3, %v9640_v38 }
 0x271   : > { %5841 = vmatprep.subr.msk.bf16.mxu0 %vm9711_vm5, %v9640_v38  ;;  %5873 = vmatprep.subr.msk.bf16.mxu1 %vm9712_vm9, %v9640_v38 }
 0x274   : > { %5843 = vmatpush3.bf16.msk.msra.mxu0 %vm9713_vm11, %v9640_v38  ;;  %5875 = vmatpush3.bf16.msk.msra.mxu1 %vm9714_vm8, %v9640_v38  ;;  %vm9718_vm11 = vnez %v9582_v32  ;;  %vm9719_vm8 = vnez %v9585_v13 }
 0x275   : > { %5845 = vmatprep.subr.msk.bf16.mxu0 %vm9715_vm14, %v9640_v38  ;;  %5877 = vmatprep.subr.msk.bf16.mxu1 %vm9716_vm0, %v9640_v38  ;;  %vm9720_vm14 = vnez %v9588_v62  ;;  %vm9721_vm0 = vnez %v9601_v30 }
 0x278   : > { %5847 = vmatpush3.bf16.msk.msra.mxu0 %vm7460_vm10, %v9640_v38  ;;  %5879 = vmatpush3.bf16.msk.msra.mxu1 %vm9717_vm4, %v9640_v38  ;;  %vm9722_vm10 = vnez %v9606_v7  ;;  %vm9723_vm4 = vnez %v9604_v33 }
 0x279   : > { %5849 = vmatprep.subr.msk.bf16.mxu0 %vm9718_vm11, %v9640_v38  ;;  %5881 = vmatprep.subr.msk.bf16.mxu1 %vm9719_vm8, %v9640_v38  ;;  %vm9724_vm11 = vnez %v9611_v47  ;;  %vm9725_vm8 = vnez %v9615_v28 }
 0x27c   : > { %5851 = vmatpush3.bf16.msk.msra.mxu0 %vm9720_vm14, %v9640_v38  ;;  %5883 = vmatpush3.bf16.msk.msra.mxu1 %vm9721_vm0, %v9640_v38  ;;  %vm9726_vm14 = vnez %v9621_v26  ;;  %vm9727_vm0 = vnez %v9627_v22 }
 0x27d   : > { %5853 = vmatprep.subr.msk.bf16.mxu0 %vm9722_vm10, %v9640_v38  ;;  %5885 = vmatprep.subr.msk.bf16.mxu1 %vm9723_vm4, %v9640_v38  ;;  %vm9728_vm10 = vnez %v9631_v60  ;;  %vm9729_vm4 = vnez %v9636_v17 }
 0x280   : > { %5855 = vmatpush3.bf16.msk.msra.mxu0 %vm9724_vm11, %v9640_v38  ;;  %5887 = vmatpush3.bf16.msk.msra.mxu1 %vm9725_vm8, %v9640_v38  ;;  %vm9730_vm11 = vnez %v9644_v19  ;;  %vm9731_vm8 = vnez %v9651_v37 }
 0x281   : > { %5857 = vmatprep.subr.msk.bf16.mxu0 %vm9726_vm14, %v9640_v38  ;;  %5889 = vmatprep.subr.msk.bf16.mxu1 %vm9727_vm0, %v9640_v38  ;;  %vm9732_vm14 = vnez %v9656_v16  ;;  %vm9733_vm0 = vnez %v9661_v15 }
 0x284   : > { %5859 = vmatpush3.bf16.msk.msra.mxu0 %vm9728_vm10, %v9640_v38  ;;  %5891 = vmatpush3.bf16.msk.msra.mxu1 %vm9729_vm4, %v9640_v38  ;;  %vm9734_vm10 = vnez %v9668_v9  ;;  %vm9735_vm4 = vnez %v9671_v14 }
 0x285   : > { %5861 = vmatprep.subr.msk.bf16.mxu0 %vm9730_vm11, %v9640_v38  ;;  %5893 = vmatprep.subr.msk.bf16.mxu1 %vm9731_vm8, %v9640_v38  ;;  %vm9736_vm11 = vnez %v9674_v11  ;;  %vm9738_vm8 = vnez %v9737_v46 }
 0x288   : > { %5863 = vmatpush3.bf16.msk.msra.mxu0 %vm9732_vm14, %v9640_v38  ;;  %5895 = vmatpush3.bf16.msk.msra.mxu1 %vm9733_vm0, %v9640_v38  ;;  %vm9740_vm14 = vnez %v9739_v50 }
 0x289   : > { %5865 = vmatprep.subr.msk.bf16.mxu0 %vm9734_vm10, %v9640_v38  ;;  %5897 = vmatprep.subr.msk.bf16.mxu1 %vm9735_vm4, %v9640_v38 }
 0x28c   : > { %5867 = vmatpush3.bf16.msk.msra.mxu0 %vm9736_vm11, %v9640_v38  ;;  %5899 = vmatpush3.bf16.msk.msra.mxu1 %vm9738_vm8, %v9640_v38  ;;  %vm9748_vm8 = vnez %v9697_v52 }
 0x28d   : > { %5901 = vmatprep.subr.msk.bf16.mxu0 %vm9740_vm14, %v9640_v38  ;;  %5909 = vmatprep.subr.msk.bf16.mxu1 %vm7859_vm1, %v9640_v38  ;;  %vm9746_vm1 = vnez %v9686_v54  ;;  %vm9747_vm14 = vnez %v9688_v23 }
 0x342   : > { %v1479_v44 = vpop.f32.mrb[22].mxu0  ;;  %v1550_v42 = vpop.f32.mrb[22].mxu1 }
 0x343   : > { %v1555_v5 = vmul.f32 0.0078125, %v1479_v44  ;;  %v1557_v1 = vmul.f32 0.0078125, %v1550_v42  ;;  %v1481_v35 = vpop.f32.mrb[23].mxu0  ;;  %v1552_v45 = vpop.f32.mrb[23].mxu1 }
 0x344   : > { %v1556_v3 = vmul.f32 0.0078125, %v1481_v35  ;;  %v1558_v39 = vmul.f32 0.0078125, %v1552_v45 }
 0x345   : > { %v1562_v58 = vrot.slane %v1555_v5, %v8061_v36  ;;  %v1570_v8 = vrot.slane %v1557_v1, %v8061_v36 }
 0x346   : > { %v1566_v21 = vrot.slane %v1556_v3, %v8061_v36  ;;  %v1574_v27 = vrot.slane %v1558_v39, %v8061_v36 }
 0x347   : > { %v8068_v0 = vsub.f32 %v9744_v61, %v1562_v58  ;;  %v8071_v59 = vsub.f32 %v9745_v40, %v1570_v8 }
 0x348   : > { %v8074_v29 = vsub.f32 %v7886_v49, %v1566_v21  ;;  %v8077_v44 = vsub.f32 %v7883_v43, %v1574_v27 }
 0x349   : > { %v1579_v42 = vmul.f32 %v8068_v0, %v8068_v0  ;;  %v1581_v5 = vmul.f32 %v8071_v59, %v8071_v59 }
 0x34a   : > { %v1580_v1 = vmul.f32 %v8074_v29, %v8074_v29  ;;  %v1582_v35 = vmul.f32 %v8077_v44, %v8077_v44 }
 0x34b   : > { %v1583_v45 = vrot.slane %v1579_v42, 4  ;;  %v1595_v3 = vrot.slane %v1581_v5, 4 }
 0x34c   : > { %v1589_v39 = vrot.slane %v1580_v1, 4  ;;  %v1601_v49 = vrot.slane %v1582_v35, 4 }
 0x34d   : > { %v1584_v58 = vadd.f32 %v1583_v45, %v1579_v42  ;;  %v1596_v8 = vadd.f32 %v1595_v3, %v1581_v5 }
 0x34e   : > { %v1590_v43 = vadd.f32 %v1589_v39, %v1580_v1  ;;  %v1602_v21 = vadd.f32 %v1601_v49, %v1582_v35 }
 0x34f   : > { %v1585_v27 = vrot.slane %v1584_v58, 2  ;;  %v1597_v61 = vrot.slane %v1596_v8, 2 }
 0x350   : > { %v1591_v40 = vrot.slane %v1590_v43, 2  ;;  %v1603_v48 = vrot.slane %v1602_v21, 2 }
 0x351   : > { %v1586_v31 = vadd.f32 %v1585_v27, %v1584_v58  ;;  %v1598_v50 = vadd.f32 %v1597_v61, %v1596_v8 }
 0x352   : > { %v1592_v46 = vadd.f32 %v1591_v40, %v1590_v43  ;;  %v1604_v11 = vadd.f32 %v1603_v48, %v1602_v21 }
 0x353   : > { %v1587_v14 = vrot.slane %v1586_v31, 1  ;;  %v1599_v9 = vrot.slane %v1598_v50, 1 }
 0x354   : > { %v1593_v15 = vrot.slane %v1592_v46, 1  ;;  %v1605_v16 = vrot.slane %v1604_v11, 1 }
 0x355   : > { %v1588_v17 = vadd.f32 %v1587_v14, %v1586_v31  ;;  %v1600_v60 = vadd.f32 %v1599_v9, %v1598_v50  ;;  %v9751_v9 = vmov 0  }
 0x356   : > { %v1594_v37 = vadd.f32 %v1593_v15, %v1592_v46  ;;  %v1606_v19 = vadd.f32 %v1605_v16, %v1604_v11 }
 0x358   : > { %1671 = vmatprep.mubr.f32.mxu0 %v1594_v37  ;;  %1741 = vmatprep.mubr.f32.mxu1 %v1606_v19 }
 0x359   : > { %1672 = vmatmul.mubr.f32.vlgmr.msra.gmra.mrb[24].mxu0 %v1588_v17  ;;  %1742 = vmatmul.mubr.f32.vlgmr.msra.gmra.mrb[24].mxu1 %v1600_v60 }
 0x35a   : > { %5903 = vmatpush1.bf16.msk.msra.mxu0 %vm9746_vm1, %v9640_v38  ;;  %5911 = vmatpush1.bf16.msk.msra.mxu1 %vm9747_vm14, %v9640_v38 }
 0x35b   : > { %5905 = vmatprep.subr.msk.bf16.mxu0 %vm9748_vm8, %v9640_v38  ;;  %5913 = vmatprep.subr.msk.bf16.mxu1 %vm7931_vm6, %v9640_v38  ;;  %vm9749_vm6 = vcmask 261120  }
 0x35c   : > { %1814 = vmatprep.mubr.f32.mxu0 %v9695_v20  ;;  %1885 = vmatprep.mubr.f32.mxu1 %v9695_v20  ;;  %vm9750_vm8 = vmmov %vm9749_vm6 }
 0x35e   : > { %5907 = vmatpush1.bf16.msk.msra.mxu0 %vm7942_vm12, %v9640_v38  ;;  %5915 = vmatpush1.bf16.msk.msra.mxu1 %vm7952_vm15, %v9640_v38 }
 0x42c   : > { %v5290_v19 = vpop.f32.mrb[24].mxu0  ;;  %v5325_v17 = vpop.f32.mrb[24].mxu1 }
 0x42d   : > { %v5291_v48 = vpop.f32.mrb[25].mxu0  ;;  %v5326_v14 = vpop.f32.mrb[25].mxu1 }
 0x42e   : > { %v5292_v15 = vadd.f32 %v5291_v48, %v5290_v19  ;;  %v5327_v37 = vadd.f32 %v5326_v14, %v5325_v17  ;;  %v9752_v14 = vld [vmem:[#allocation16_spill] sm:$0xff] }
 0x430   : > { %v1744_v60 = vadd.f32 %v5327_v37, %v5292_v15 }
 0x432   : > { %4652 = vmatmul.mubr.msk.f32.vlgmr.msra.gmra.mrb[26].mxu0 %vm9749_vm6, %v1744_v60  ;;  %4661 = vmatmul.mubr.msk.f32.vlgmr.msra.gmra.mrb[26].mxu1 %vm9750_vm8, %v1744_v60  ;;  %v9753_v60 = vld [vmem:[#allocation17_spill] sm:$0xff]  ;;  %vm9760_vm6 = vcmp.lt.s32.totalorder %v6690_v2, 1 }
 0x433   : > { %2024 = vmatprep.mubr.bf16.mxu0 %v9751_v9  ;;  %2065 = vmatprep.mubr.bf16.mxu1 %v9751_v9  ;;  %vm9761_vm8 = vmmov %vm9760_vm6 }
 0x434   : > { %vm9762_vm15 = vmmov %vm9760_vm6 }
 0x435   : > { %vm9763_vm12 = vmmov %vm9760_vm6 }
 0x505   : > { %v1816_v16 = vpop.f32.mrb[26].mxu0  ;;  %v1887_v11 = vpop.f32.mrb[26].mxu1 }
 0x506   : > { %v1892_v46 = vmul.f32 0.0078125, %v1816_v16  ;;  %v1894_v50 = vmul.f32 0.0078125, %v1887_v11  ;;  %v1818_v31 = vpop.f32.mrb[27].mxu0  ;;  %v1889_v42 = vpop.f32.mrb[27].mxu1  ;;  %v9754_v11 = vld [vmem:[#allocation18_spill] sm:$0xff] }
 0x507   : > { %v1893_v5 = vmul.f32 0.0078125, %v1818_v31  ;;  %v1895_v1 = vmul.f32 0.0078125, %v1889_v42  ;;  %v9756_v42 = vld [vmem:[#allocation19_spill] sm:$0xff] }
 0x508   : > { %v1896_v35 = vadd.f32 1e-05, %v1892_v46  ;;  %v1898_v45 = vadd.f32 1e-05, %v1894_v50  ;;  %v9755_v50 = vld [vmem:[#allocation20_spill] sm:$0xff] }
 0x509   : > { %v1897_v3 = vadd.f32 1e-05, %v1893_v5  ;;  %v1899_v39 = vadd.f32 1e-05, %v1895_v1  ;;  %v9757_v1 = vld [vmem:[#allocation21_spill] sm:$0xff] }
 0x50a   : > { %6504 = vrsqrt.f32 %v1896_v35  ;;  %v9758_v35 = vld [vmem:[#allocation22_spill] sm:$0xff] }
 0x50b   : > { %6506 = vrsqrt.f32 %v1898_v45 }
 0x50c   : > { %6508 = vrsqrt.f32 %v1897_v3 }
 0x50d   : > { %6510 = vrsqrt.f32 %v1899_v39 }
 0x514   : > { %v6505_v49 = vpop.eup %6504 }
 0x515   : > { %v6507_v58 = vpop.eup %6506  ;;  %v1907_v8 = vrot.slane %v6505_v49, %v8061_v36 }
 0x516   : > { %v6509_v43 = vpop.eup %6508  ;;  %v1915_v21 = vrot.slane %v6507_v58, %v8061_v36 }
 0x517   : > { %v6511_v27 = vpop.eup %6510  ;;  %v1911_v61 = vrot.slane %v6509_v43, %v8061_v36  ;;  %v1920_v40 = vmul.f32 %v1907_v8, %v8068_v0 }
 0x518   : > { %v1919_v19 = vrot.slane %v6511_v27, %v8061_v36  ;;  %v1922_v17 = vmul.f32 %v1915_v21, %v8071_v59  ;;  %v9759_v59 = vld [vmem:[#allocation23_spill] sm:$0xff] }
 0x519   : > { %v1921_v48 = vmul.f32 %v1911_v61, %v8074_v29  ;;  %v1924_v15 = vmul.f32 %v1920_v40, %v9752_v14 }
 0x51a   : > { %v1923_v37 = vmul.f32 %v1919_v19, %v8077_v44  ;;  %v1926_v16 = vmul.f32 %v1922_v17, %v9753_v60 }
 0x51b   : > { %v1925_v46 = vmul.f32 %v1921_v48, %v9754_v11  ;;  %v1928_v31 = vadd.f32 %v1924_v15, %v9755_v50 }
 0x51c   : > { %v1927_v5 = vmul.f32 %v1923_v37, %v9756_v42  ;;  %v1930_v0 = vadd.f32 %v1926_v16, %v9757_v1 }
 0x51d   : > { %v1929_v45 = vadd.f32 %v1925_v46, %v9758_v35  ;;  %v1932_v3 = vmax.f32 %v1928_v31, 0.0  ;;  %v9766_v35 = vld [vmem:[#allocation14_spill] sm:$0xff] }
 0x51e   : > { %v1931_v39 = vadd.f32 %v1927_v5, %v9759_v59  ;;  %v1934_v29 = vmax.f32 %v1930_v0, 0.0  ;;  %v9764_v0 = vld [vmem:[#allocation12_spill] sm:$0xff] }
 0x51f   : > { %v1933_v49 = vmax.f32 %v1929_v45, 0.0  ;;  %v9768_v45 = vld [vmem:[#allocation13_spill] sm:$0xff] }
 0x520   : > { %v1935_v58 = vmax.f32 %v1931_v39, 0.0 }
 0x521   : > { %v6463_v8 = vpack.i.bf16 %v1933_v49, %v1932_v3 }
 0x522   : > { %v6468_v44 = vpack.i.bf16 %v1935_v58, %v1934_v29 }
 0x523   : > { %6464 = vrot.lane.b32.xlu0 %v6463_v8, %s6601_s10 }
 0x524   : > { %6469 = vrot.lane.b32.xlu1 %v6468_v44, %s6601_s10 }
 0x527   : > { %6474 = vrot.lane.b32.xlu0 %v6463_v8, %s6602_s11 }
 0x528   : > { %6479 = vrot.lane.b32.xlu1 %v6468_v44, %s6602_s11  ;;  %v9778_v44 = vld [vmem:[#allocation7_spill] sm:$0xff] }
 0x595   : > { %v6465_v43 = vpop.permute.xlu0 %6464 }
 0x596   : > { %v6470_v21 = vpop.permute.xlu1 %6469  ;;  %v6467_v27 = vunpack.i.h.bf16 %v6465_v43  ;;  %v6466_v61 = vunpack.i.l.bf16 %v6465_v43 }
 0x597   : > { %v6472_v40 = vunpack.i.h.bf16 %v6470_v21  ;;  %v6471_v19 = vunpack.i.l.bf16 %v6470_v21  ;;  %v9780_v21 = vld [vmem:[#allocation9_spill] sm:$0xff] }
 0x598   : > { %v1946_v17 = vsel %vm9760_vm6, %v6466_v61, %v6467_v27  ;;  %vm9765_vm6 = vnez %v9764_v0 }
 0x599   : > { %v1944_v48 = vsel %vm9761_vm8, %v6471_v19, %v6472_v40  ;;  %v1945_v14 = vsel %vm9762_vm15, %v6467_v27, %v6471_v19  ;;  %v1947_v15 = vsel %vm9763_vm12, %v6472_v40, %v6466_v61  ;;  %v4663_v37 = vpack.c.bf16 %v1933_v49, %v1946_v17  ;;  %v6475_v60 = vpop.permute.xlu0 %6474  ;;  %v9774_v49 = vld [vmem:[#allocation15_spill] sm:$0xff] }
 0x59a   : > { %v4670_v16 = vpack.c.bf16 %v1935_v58, %v1944_v48  ;;  %v4673_v11 = vpack.c.bf16 %v1934_v29, %v1945_v14  ;;  %v4666_v46 = vpack.c.bf16 %v1932_v3, %v1947_v15  ;;  %v6480_v50 = vpop.permute.xlu1 %6479  ;;  %v6477_v31 = vunpack.i.h.bf16 %v6475_v60  ;;  %v9776_v58 = vld [vmem:[#allocation8_spill] sm:$0xff]  ;;  %v9782_v61 = vld [vmem:[#allocation11_spill] sm:$0xff] }
 0x59b   : > { %v6482_v42 = vunpack.i.h.bf16 %v6480_v50  ;;  %v6481_v5 = vunpack.i.l.bf16 %v6480_v50  ;;  %v6476_v1 = vunpack.i.l.bf16 %v6475_v60  ;;  %4664 = vmatprep.subr.msk.bf16.mxu0 %vm9765_vm6, %v4663_v37  ;;  %vm9767_vm8 = vnez %v9766_v35  ;;  %v9785_v37 = vld [vmem:[#allocation10_spill] sm:$0xff]  ;;  %v1976_v50 = vld [vmem:[%s9196_s2] sm:$0xf] }
 0x59c   : > { %4671 = vmatprep.subr.msk.bf16.mxu1 %vm9767_vm8, %v4670_v16  ;;  %vm9769_vm15 = vnez %v9768_v45  ;;  %vm9770_vm12 = vcmp.lt.s32.totalorder %v6690_v2, 127  ;;  %vm9775_vm6 = vnez %v9774_v49  ;;  %vm9777_vm8 = vcmp.lt.s32.totalorder %v9776_v58, 16 }
 0x59d   : > { %4667 = vmatpush1.bf16.msk.msra.mxu0 %vm9769_vm15, %v4666_v46  ;;  %v1960_v59 = vsel %vm9770_vm12, %v6481_v5, %v6482_v42  ;;  %vm9771_vm14 = vmmov %vm9770_vm12  ;;  %4674 = vmatpush1.bf16.msk.msra.mxu1 %vm9775_vm6, %v4673_v11  ;;  %vm9779_vm15 = vcmp.lt.s32.totalorder %v9778_v44, 16  ;;  %v9784_v19 = vmov 1.0   ;;  %vm9794_vm6 = vnez %v9582_v32 }
 0x59e   : > { %v1961_v3 = vsel %vm9771_vm14, %v6477_v31, %v6481_v5  ;;  %vm9772_vm1 = vmmov %vm9770_vm12  ;;  %v1966_v8 = vsel %vm9777_vm8, %v1960_v59, 0.0  ;;  %vm9781_vm12 = vcmp.lt.s32.totalorder %v9780_v21, 16  ;;  %vm9783_vm14 = vcmp.lt.s32.totalorder %v9782_v61, 16  ;;  %v9808_v5 = vld [vmem:[#allocation38_spill] sm:$0xff] }
 0x59f   : > { %v1962_v39 = vsel %vm9772_vm1, %v6476_v1, %v6477_v31  ;;  %vm9773_vm11 = vmmov %vm9772_vm1  ;;  %v1965_v27 = vsel %vm9781_vm12, %v1961_v3, 0.0  ;;  %v1974_v17 = vpack.c.bf16 %v9784_v19, %v1966_v8  ;;  %vm9786_vm1 = vcmask 203776   ;;  %v9804_v31 = vld [vmem:[#allocation30_spill] sm:$0xff]  ;;  %v9814_v3 = vld [vmem:[#allocation49_spill] sm:$0xff] }
 0x5a0   : > { %v1963_v29 = vsel %vm9773_vm11, %v6482_v42, %v6476_v1  ;;  %v1964_v43 = vsel %vm9779_vm15, %v1962_v39, 0.0  ;;  %v1973_v14 = vpack.c.bf16 %v9784_v19, %v1965_v27  ;;  %vm9787_vm11 = vmmov %vm9786_vm1  ;;  %vm9788_vm8 = vnez %v9544_v51  ;;  %v9806_v42 = vld [vmem:[#allocation33_spill] sm:$0xff]  ;;  %v9810_v1 = vld [vmem:[#allocation43_spill] sm:$0xff] }
 0x5a1   : > { %v1967_v40 = vsel %vm9783_vm14, %v1963_v29, 0.0  ;;  %v1972_v48 = vpack.c.bf16 %v9784_v19, %v1964_v43  ;;  %v1987_v46 = vand.u32 %v1974_v17, %v9785_v37  ;;  %vm9789_vm15 = vnez %v9537_v18  ;;  %v9812_v59 = vld [vmem:[#allocation46_spill] sm:$0xff]  ;;  %v9816_v29 = vld [vmem:[#allocation55_spill] sm:$0xff]  ;;  %v9817_v8 = vld [vmem:[#allocation56_spill] sm:$0xff] }
 0x5a2   : > { %v1975_v15 = vpack.c.bf16 %v9784_v19, %v1967_v40  ;;  %v1984_v60 = vand.u32 %v1973_v14, %v9785_v37  ;;  %vm9790_vm12 = vnez %v9553_v41  ;;  %vm9791_vm14 = vnez %v9546_v24  ;;  %v9819_v43 = vld [vmem:[#allocation57_spill] sm:$0xff]  ;;  %v9821_v27 = vld [vmem:[#allocation58_spill] sm:$0xff]  ;;  %v9823_v40 = vld [vmem:[#allocation59_spill] sm:$0xff] }
 0x5a3   : > { %v1981_v11 = vand.u32 %v1972_v48, %v9785_v37 }
 0x5a4   : > { %v1990_v16 = vand.u32 %v1975_v15, %v9785_v37  ;;  %1994 = vmatprep.subr.bf16.mxu0 %v1984_v60 }
 0x5a5   : > { %1995 = vmatpush1.bf16.msra.mxu0 %v1981_v11 }
 0x5a6   : > { %2035 = vmatprep.subr.bf16.mxu1 %v1990_v16  ;;  %5917 = vmatprep.subr.msk.bf16.mxu0 %vm9704_vm7, %v9640_v38 }
 0x5a7   : > { %2036 = vmatpush1.bf16.msra.mxu1 %v1987_v46 }
 0x5a8   : > { %5949 = vmatprep.subr.msk.bf16.mxu1 %vm9708_vm13, %v9640_v38  ;;  %4668 = vmatmul.mubr.msk.bf16.vlgmr.msra.gmra.mrb[28].mxu0 %vm9786_vm1, %v1976_v50  ;;  %vm9792_vm1 = vnez %v9571_v57 }
 0x5a9   : > { %5919 = vmatpush3.bf16.msk.msra.mxu0 %vm9709_vm2, %v9640_v38 }
 0x5aa   : > { %4675 = vmatmul.mubr.msk.bf16.vlgmr.msra.gmra.mrb[28].mxu1 %vm9787_vm11, %v1976_v50  ;;  %5921 = vmatprep.subr.msk.bf16.mxu0 %vm9711_vm5, %v9640_v38  ;;  %vm9793_vm11 = vnez %v9564_v12 }
 0x5ab   : > { %5951 = vmatpush3.bf16.msk.msra.mxu1 %vm9710_vm3, %v9640_v38 }
 0x5ac   : > { %5953 = vmatprep.subr.msk.bf16.mxu1 %vm9712_vm9, %v9640_v38 }
 0x5ad   : > { %5923 = vmatpush3.bf16.msk.msra.mxu0 %vm9788_vm8, %v9640_v38 }
 0x5ae   : > { %5925 = vmatprep.subr.msk.bf16.mxu0 %vm9790_vm12, %v9640_v38  ;;  %vm9796_vm12 = vnez %v9588_v62 }
 0x5af   : > { %5955 = vmatpush3.bf16.msk.msra.mxu1 %vm9789_vm15, %v9640_v38  ;;  %vm9795_vm15 = vnez %v9585_v13 }
 0x5b0   : > { %5957 = vmatprep.subr.msk.bf16.mxu1 %vm9791_vm14, %v9640_v38  ;;  %vm9797_vm14 = vnez %v9601_v30 }
 0x5b1   : > { %5927 = vmatpush3.bf16.msk.msra.mxu0 %vm9792_vm1, %v9640_v38  ;;  %vm9798_vm1 = vnez %v9606_v7 }
 0x5b2   : > { %5929 = vmatprep.subr.msk.bf16.mxu0 %vm9794_vm6, %v9640_v38  ;;  %vm9800_vm6 = vnez %v9611_v47 }
 0x5b3   : > { %5959 = vmatpush3.bf16.msk.msra.mxu1 %vm9793_vm11, %v9640_v38  ;;  %vm9799_vm11 = vnez %v9604_v33 }
 0x5b4   : > { %5961 = vmatprep.subr.msk.bf16.mxu1 %vm9795_vm15, %v9640_v38  ;;  %vm9801_vm15 = vnez %v9615_v28 }
 0x5b5   : > { %5931 = vmatpush3.bf16.msk.msra.mxu0 %vm9796_vm12, %v9640_v38  ;;  %vm9802_vm12 = vnez %v9621_v26 }
 0x5b6   : > { %5933 = vmatprep.subr.msk.bf16.mxu0 %vm9798_vm1, %v9640_v38  ;;  %vm9805_vm1 = vnez %v9804_v31 }
 0x5b7   : > { %5963 = vmatpush3.bf16.msk.msra.mxu1 %vm9797_vm14, %v9640_v38  ;;  %vm9803_vm14 = vnez %v9627_v22 }
 0x5b8   : > { %5965 = vmatprep.subr.msk.bf16.mxu1 %vm9799_vm11, %v9640_v38  ;;  %vm9807_vm11 = vnez %v9806_v42 }
 0x5b9   : > { %5935 = vmatpush3.bf16.msk.msra.mxu0 %vm9800_vm6, %v9640_v38  ;;  %vm9809_vm6 = vnez %v9808_v5 }
 0x5ba   : > { %5937 = vmatprep.subr.msk.bf16.mxu0 %vm9802_vm12, %v9640_v38  ;;  %vm9813_vm12 = vnez %v9812_v59 }
 0x5bb   : > { %5967 = vmatpush3.bf16.msk.msra.mxu1 %vm9801_vm15, %v9640_v38  ;;  %vm9811_vm15 = vnez %v9810_v1 }
 0x5bc   : > { %5969 = vmatprep.subr.msk.bf16.mxu1 %vm9803_vm14, %v9640_v38 }
 0x5bd   : > { %5939 = vmatpush3.bf16.msk.msra.mxu0 %vm9805_vm1, %v9640_v38 }
 0x5be   : > { %5941 = vmatprep.subr.msk.bf16.mxu0 %vm9809_vm6, %v9640_v38  ;;  %vm9818_vm6 = vnez %v9817_v8 }
 0x5bf   : > { %5971 = vmatpush3.bf16.msk.msra.mxu1 %vm9807_vm11, %v9640_v38 }
 0x5c0   : > { %5973 = vmatprep.subr.msk.bf16.mxu1 %vm9811_vm15, %v9640_v38  ;;  %vm9820_vm15 = vnez %v9819_v43 }
 0x5c1   : > { %5943 = vmatpush3.bf16.msk.msra.mxu0 %vm9813_vm12, %v9640_v38  ;;  %vm9822_vm12 = vnez %v9821_v27 }
 0x5c2   : > { %5945 = vmatprep.subr.msk.bf16.mxu0 %vm9734_vm10, %v9640_v38 }
 0x5c3   : > { %5975 = vmatpush3.bf16.msk.msra.mxu1 %vm9733_vm0, %v9640_v38  ;;  %vm9824_vm0 = vnez %v9823_v40 }
 0x5c4   : > { %5977 = vmatprep.subr.msk.bf16.mxu1 %vm9735_vm4, %v9640_v38  ;;  %vm9830_vm4 = vnez %v9702_v6 }
 0x5c5   : > { %5947 = vmatpush3.bf16.msk.msra.mxu0 %vm9818_vm6, %v9640_v38  ;;  %vm9829_vm6 = vnez %v9699_v4 }
 0x5c6   : > { %5981 = vmatprep.subr.msk.bf16.mxu0 %vm9822_vm12, %v9640_v38  ;;  %vm9827_vm12 = vnez %v9688_v23 }
 0x5c7   : > { %5979 = vmatpush3.bf16.msk.msra.mxu1 %vm9820_vm15, %v9640_v38  ;;  %vm9828_vm15 = vnez %v9697_v52 }
 0x5c8   : > { %5989 = vmatprep.subr.msk.bf16.mxu1 %vm9824_vm0, %v9640_v38  ;;  %vm9826_vm0 = vnez %v9686_v54 }
 0x67b   : > { %v8278_v17 = vpop.f32.mrb[28].mxu0 }
 0x67c   : > { %9825 = vst [vmem:[#allocation61_spill] sm:$0xff] %v8278_v17  ;;  %v2074_v14 = vrot.slane %v8278_v17, 4  ;;  %v8284_v60 = vpop.f32.mrb[29].mxu0 }
 0x67d   : > { %v8280_v48 = vpop.f32.mrb[28].mxu1  ;;  %v2080_v11 = vrot.slane %v8284_v60, 4  ;;  %v2030_v50 = vpop.f32.mrb[30].mxu0 }
 0x67e   : > { %v2086_v15 = vrot.slane %v8280_v48, 4  ;;  %v8286_v16 = vpop.f32.mrb[29].mxu1  ;;  %v2075_v19 = vadd.f32 %v2074_v14, %v8278_v17  ;;  %v2031_v44 = vpop.f32.mrb[31].mxu0 }
 0x67f   : > { %v2092_v46 = vrot.slane %v8286_v16, 4  ;;  %v2071_v37 = vpop.f32.mrb[30].mxu1  ;;  %v2081_v58 = vadd.f32 %v2080_v11, %v8284_v60 }
 0x680   : > { %v2087_v61 = vadd.f32 %v2086_v15, %v8280_v48  ;;  %v2072_v21 = vpop.f32.mrb[31].mxu1  ;;  %v2076_v45 = vrot.slane %v2075_v19, 2 }
 0x681   : > { %v2093_v49 = vadd.f32 %v2092_v46, %v8286_v16  ;;  %v2082_v0 = vrot.slane %v2081_v58, 2 }
 0x682   : > { %v2088_v35 = vrot.slane %v2087_v61, 2  ;;  %v2077_v9 = vadd.f32 %v2076_v45, %v2075_v19  ;;  %v9858_v19 = vld [vmem:[#allocation59_spill] sm:$0xff] }
 0x683   : > { %v2094_v2 = vrot.slane %v2093_v49, 2  ;;  %v2083_v40 = vadd.f32 %v2082_v0, %v2081_v58  ;;  %v9854_v58 = vld [vmem:[#allocation57_spill] sm:$0xff] }
 0x684   : > { %v2089_v36 = vadd.f32 %v2088_v35, %v2087_v61  ;;  %v2078_v50 = vrot.slane %v2077_v9, 1  ;;  %v9856_v61 = vld [vmem:[#allocation58_spill] sm:$0xff] }
 0x685   : > { %v2095_v27 = vadd.f32 %v2094_v2, %v2093_v49  ;;  %v2084_v43 = vrot.slane %v2083_v40, 1 }
 0x686   : > { %v2090_v37 = vrot.slane %v2089_v36, 1  ;;  %v2079_v44 = vadd.f32 %v2078_v50, %v2077_v9 }
 0x687   : > { %v2096_v14 = vrot.slane %v2095_v27, 1  ;;  %v2085_v17 = vadd.f32 %v2084_v43, %v2083_v40 }
 0x688   : > { %v2091_v21 = vadd.f32 %v2090_v37, %v2089_v36 }
 0x689   : > { %v2097_v15 = vadd.f32 %v2096_v14, %v2095_v27  ;;  %2162 = vmatprep.mubr.f32.mxu0 %v2085_v17  ;;  %v9860_v14 = vld [vmem:[#allocation6_spill] sm:$0xff] }
 0x68a   : > { %2163 = vmatmul.mubr.f32.vlgmr.msra.gmra.mrb[32].mxu0 %v2079_v44 }
 0x68b   : > { %2232 = vmatprep.mubr.f32.mxu1 %v2097_v15  ;;  %5983 = vmatpush1.bf16.msk.msra.mxu0 %vm9826_vm0, %v9640_v38  ;;  %vm9831_vm0 = vnez %v9706_v53 }
 0x68c   : > { %2233 = vmatmul.mubr.f32.vlgmr.msra.gmra.mrb[32].mxu1 %v2091_v21  ;;  %5985 = vmatprep.subr.msk.bf16.mxu0 %vm9828_vm15, %v9640_v38 }
 0x68d   : > { %5991 = vmatpush1.bf16.msk.msra.mxu1 %vm9827_vm12, %v9640_v38  ;;  %2305 = vmatprep.mubr.f32.mxu0 %v9695_v20 }
 0x68e   : > { %5993 = vmatprep.subr.msk.bf16.mxu1 %vm9829_vm6, %v9640_v38  ;;  %2376 = vmatprep.mubr.f32.mxu1 %v9695_v20 }
 0x68f   : > { %5987 = vmatpush1.bf16.msk.msra.mxu0 %vm9830_vm4, %v9640_v38  ;;  %vm9832_vm4 = vcmask 261120  }
 0x690   : > { %5997 = vmatprep.subr.msk.bf16.mxu0 %vm9704_vm7, %v9640_v38  ;;  %vm9833_vm6 = vmmov %vm9832_vm4 }
 0x691   : > { %5995 = vmatpush1.bf16.msk.msra.mxu1 %vm9831_vm0, %v9640_v38 }
 0x692   : > { %6029 = vmatprep.subr.msk.bf16.mxu1 %vm9708_vm13, %v9640_v38 }
 0x75d   : > { %v5360_v2 = vpop.f32.mrb[32].mxu0 }
 0x75e   : > { %v5361_v9 = vpop.f32.mrb[33].mxu0 }
 0x75f   : > { %v5395_v36 = vpop.f32.mrb[32].mxu1  ;;  %v5362_v35 = vadd.f32 %v5361_v9, %v5360_v2 }
 0x760   : > { %v5396_v0 = vpop.f32.mrb[33].mxu1 }
 0x761   : > { %v5397_v45 = vadd.f32 %v5396_v0, %v5395_v36  ;;  %v9861_v36 = vld [vmem:[#allocation61_spill] sm:$0xff] }
 0x763   : > { %v2235_v49 = vadd.f32 %v5397_v45, %v5362_v35 }
 0x765   : > { %4748 = vmatmul.mubr.msk.f32.vlgmr.msra.gmra.mrb[34].mxu0 %vm9832_vm4, %v2235_v49  ;;  %4757 = vmatmul.mubr.msk.f32.vlgmr.msra.gmra.mrb[34].mxu1 %vm9833_vm6, %v2235_v49  ;;  %vm9834_vm4 = vnez %v9537_v18  ;;  %vm9835_vm6 = vnez %v9553_v41 }
 0x766   : > { %5999 = vmatpush3.bf16.msk.msra.mxu0 %vm9709_vm2, %v9640_v38  ;;  %6031 = vmatpush3.bf16.msk.msra.mxu1 %vm9710_vm3, %v9640_v38  ;;  %vm9836_vm3 = vnez %v9546_v24 }
 0x767   : > { %6001 = vmatprep.subr.msk.bf16.mxu0 %vm9711_vm5, %v9640_v38  ;;  %6033 = vmatprep.subr.msk.bf16.mxu1 %vm9712_vm9, %v9640_v38  ;;  %vm9837_vm5 = vnez %v9571_v57  ;;  %vm9838_vm9 = vnez %v9564_v12 }
 0x76a   : > { %6003 = vmatpush3.bf16.msk.msra.mxu0 %vm9788_vm8, %v9640_v38  ;;  %6035 = vmatpush3.bf16.msk.msra.mxu1 %vm9834_vm4, %v9640_v38  ;;  %vm9839_vm8 = vnez %v9582_v32  ;;  %vm9840_vm4 = vnez %v9585_v13 }
 0x76b   : > { %6005 = vmatprep.subr.msk.bf16.mxu0 %vm9835_vm6, %v9640_v38  ;;  %6037 = vmatprep.subr.msk.bf16.mxu1 %vm9836_vm3, %v9640_v38  ;;  %vm9841_vm6 = vnez %v9588_v62  ;;  %vm9842_vm3 = vnez %v9601_v30 }
 0x76e   : > { %6007 = vmatpush3.bf16.msk.msra.mxu0 %vm9837_vm5, %v9640_v38  ;;  %6039 = vmatpush3.bf16.msk.msra.mxu1 %vm9838_vm9, %v9640_v38  ;;  %vm9843_vm5 = vnez %v9606_v7  ;;  %vm9844_vm9 = vnez %v9604_v33 }
 0x76f   : > { %6009 = vmatprep.subr.msk.bf16.mxu0 %vm9839_vm8, %v9640_v38  ;;  %6041 = vmatprep.subr.msk.bf16.mxu1 %vm9840_vm4, %v9640_v38  ;;  %vm9845_vm8 = vnez %v9611_v47  ;;  %vm9846_vm4 = vnez %v9615_v28 }
 0x772   : > { %6011 = vmatpush3.bf16.msk.msra.mxu0 %vm9841_vm6, %v9640_v38  ;;  %6043 = vmatpush3.bf16.msk.msra.mxu1 %vm9842_vm3, %v9640_v38  ;;  %vm9847_vm6 = vnez %v9621_v26 }
 0x773   : > { %6013 = vmatprep.subr.msk.bf16.mxu0 %vm9843_vm5, %v9640_v38  ;;  %6045 = vmatprep.subr.msk.bf16.mxu1 %vm9844_vm9, %v9640_v38 }
 0x776   : > { %6015 = vmatpush3.bf16.msk.msra.mxu0 %vm9845_vm8, %v9640_v38  ;;  %6047 = vmatpush3.bf16.msk.msra.mxu1 %vm9846_vm4, %v9640_v38  ;;  %vm9848_vm8 = vnez %v9808_v5  ;;  %vm9849_vm4 = vnez %v9810_v1 }
 0x777   : > { %6017 = vmatprep.subr.msk.bf16.mxu0 %vm9847_vm6, %v9640_v38  ;;  %6049 = vmatprep.subr.msk.bf16.mxu1 %vm9803_vm14, %v9640_v38  ;;  %vm9850_vm6 = vnez %v9812_v59  ;;  %vm9851_vm14 = vnez %v9814_v3 }
 0x77a   : > { %6019 = vmatpush3.bf16.msk.msra.mxu0 %vm9805_vm1, %v9640_v38  ;;  %6051 = vmatpush3.bf16.msk.msra.mxu1 %vm9807_vm11, %v9640_v38  ;;  %vm9852_vm11 = vnez %v9816_v29 }
 0x77b   : > { %6021 = vmatprep.subr.msk.bf16.mxu0 %vm9848_vm8, %v9640_v38  ;;  %6053 = vmatprep.subr.msk.bf16.mxu1 %vm9849_vm4, %v9640_v38  ;;  %vm9853_vm8 = vnez %v9817_v8  ;;  %vm9855_vm4 = vnez %v9854_v58 }
 0x77e   : > { %6023 = vmatpush3.bf16.msk.msra.mxu0 %vm9850_vm6, %v9640_v38  ;;  %6055 = vmatpush3.bf16.msk.msra.mxu1 %vm9851_vm14, %v9640_v38  ;;  %vm9857_vm6 = vnez %v9856_v61  ;;  %vm9859_vm14 = vnez %v9858_v19 }
 0x77f   : > { %6025 = vmatprep.subr.msk.bf16.mxu0 %vm9734_vm10, %v9640_v38  ;;  %6057 = vmatprep.subr.msk.bf16.mxu1 %vm9852_vm11, %v9640_v38 }
 0x782   : > { %6027 = vmatpush3.bf16.msk.msra.mxu0 %vm9853_vm8, %v9640_v38  ;;  %6059 = vmatpush3.bf16.msk.msra.mxu1 %vm9855_vm4, %v9640_v38  ;;  %vm9864_vm4 = vnez %v9702_v6 }
 0x783   : > { %6061 = vmatprep.subr.msk.bf16.mxu0 %vm9857_vm6, %v9640_v38  ;;  %6069 = vmatprep.subr.msk.bf16.mxu1 %vm9859_vm14, %v9640_v38  ;;  %vm9862_vm14 = vnez %v9686_v54  ;;  %vm9863_vm6 = vnez %v9699_v4 }
 0x838   : > { %v2307_v43 = vpop.f32.mrb[34].mxu0  ;;  %v2378_v27 = vpop.f32.mrb[34].mxu1 }
 0x839   : > { %v2383_v40 = vmul.f32 0.0078125, %v2307_v43  ;;  %v2385_v17 = vmul.f32 0.0078125, %v2378_v27  ;;  %v2309_v11 = vpop.f32.mrb[35].mxu0  ;;  %v2380_v46 = vpop.f32.mrb[35].mxu1 }
 0x83a   : > { %v2384_v50 = vmul.f32 0.0078125, %v2309_v11  ;;  %v2386_v37 = vmul.f32 0.0078125, %v2380_v46 }
 0x83b   : > { %v2390_v15 = vrot.slane %v2383_v40, %v9860_v14  ;;  %v2398_v44 = vrot.slane %v2385_v17, %v9860_v14 }
 0x83c   : > { %v2394_v21 = vrot.slane %v2384_v50, %v9860_v14  ;;  %v2402_v2 = vrot.slane %v2386_v37, %v9860_v14 }
 0x83d   : > { %v8423_v9 = vsub.f32 %v9861_v36, %v2390_v15  ;;  %v8426_v0 = vsub.f32 %v8280_v48, %v2398_v44 }
 0x83e   : > { %v8429_v35 = vsub.f32 %v8284_v60, %v2394_v21  ;;  %v8432_v45 = vsub.f32 %v8286_v16, %v2402_v2 }
 0x83f   : > { %v2407_v49 = vmul.f32 %v8423_v9, %v8423_v9  ;;  %v2409_v43 = vmul.f32 %v8426_v0, %v8426_v0 }
 0x840   : > { %v2408_v27 = vmul.f32 %v8429_v35, %v8429_v35  ;;  %v2410_v40 = vmul.f32 %v8432_v45, %v8432_v45 }
 0x841   : > { %v2411_v48 = vrot.slane %v2407_v49, 4  ;;  %v2423_v17 = vrot.slane %v2409_v43, 4 }
 0x842   : > { %v2417_v11 = vrot.slane %v2408_v27, 4  ;;  %v2429_v60 = vrot.slane %v2410_v40, 4 }
 0x843   : > { %v2412_v46 = vadd.f32 %v2411_v48, %v2407_v49  ;;  %v2424_v50 = vadd.f32 %v2423_v17, %v2409_v43 }
 0x844   : > { %v2418_v16 = vadd.f32 %v2417_v11, %v2408_v27  ;;  %v2430_v37 = vadd.f32 %v2429_v60, %v2410_v40 }
 0x845   : > { %v2413_v15 = vrot.slane %v2412_v46, 2  ;;  %v2425_v44 = vrot.slane %v2424_v50, 2 }
 0x846   : > { %v2419_v21 = vrot.slane %v2418_v16, 2  ;;  %v2431_v2 = vrot.slane %v2430_v37, 2 }
 0x847   : > { %v2414_v36 = vadd.f32 %v2413_v15, %v2412_v46  ;;  %v2426_v19 = vadd.f32 %v2425_v44, %v2424_v50 }
 0x848   : > { %v2420_v61 = vadd.f32 %v2419_v21, %v2418_v16  ;;  %v2432_v58 = vadd.f32 %v2431_v2, %v2430_v37 }
 0x849   : > { %v2415_v8 = vrot.slane %v2414_v36, 1  ;;  %v2427_v29 = vrot.slane %v2426_v19, 1 }
 0x84a   : > { %v2421_v39 = vrot.slane %v2420_v61, 1  ;;  %v2433_v3 = vrot.slane %v2432_v58, 1 }
 0x84b   : > { %v2416_v5 = vadd.f32 %v2415_v8, %v2414_v36  ;;  %v2428_v42 = vadd.f32 %v2427_v29, %v2426_v19  ;;  %v9867_v8 = vmov 0  }
 0x84c   : > { %v2422_v59 = vadd.f32 %v2421_v39, %v2420_v61  ;;  %v2434_v1 = vadd.f32 %v2433_v3, %v2432_v58 }
 0x84e   : > { %2499 = vmatprep.mubr.f32.mxu0 %v2422_v59  ;;  %2569 = vmatprep.mubr.f32.mxu1 %v2434_v1 }
 0x84f   : > { %2500 = vmatmul.mubr.f32.vlgmr.msra.gmra.mrb[36].mxu0 %v2416_v5  ;;  %2570 = vmatmul.mubr.f32.vlgmr.msra.gmra.mrb[36].mxu1 %v2428_v42 }
 0x850   : > { %6063 = vmatpush1.bf16.msk.msra.mxu0 %vm9862_vm14, %v9640_v38  ;;  %6071 = vmatpush1.bf16.msk.msra.mxu1 %vm9827_vm12, %v9640_v38 }
 0x851   : > { %6065 = vmatprep.subr.msk.bf16.mxu0 %vm9828_vm15, %v9640_v38  ;;  %6073 = vmatprep.subr.msk.bf16.mxu1 %vm9863_vm6, %v9640_v38  ;;  %vm9865_vm6 = vcmask 261120  }
 0x852   : > { %2642 = vmatprep.mubr.f32.mxu0 %v9695_v20  ;;  %2713 = vmatprep.mubr.f32.mxu1 %v9695_v20  ;;  %vm9866_vm15 = vmmov %vm9865_vm6 }
 0x854   : > { %6067 = vmatpush1.bf16.msk.msra.mxu0 %vm9864_vm4, %v9640_v38  ;;  %6075 = vmatpush1.bf16.msk.msra.mxu1 %vm9831_vm0, %v9640_v38 }
 0x922   : > { %v5430_v42 = vpop.f32.mrb[36].mxu0  ;;  %v5465_v5 = vpop.f32.mrb[36].mxu1 }
 0x923   : > { %v5431_v1 = vpop.f32.mrb[37].mxu0  ;;  %v5466_v59 = vpop.f32.mrb[37].mxu1 }
 0x924   : > { %v5432_v3 = vadd.f32 %v5431_v1, %v5430_v42  ;;  %v5467_v39 = vadd.f32 %v5466_v59, %v5465_v5  ;;  %v9868_v59 = vld [vmem:[#allocation24_spill] sm:$0xff] }
 0x926   : > { %v2572_v29 = vadd.f32 %v5467_v39, %v5432_v3 }
 0x928   : > { %4830 = vmatmul.mubr.msk.f32.vlgmr.msra.gmra.mrb[38].mxu0 %vm9865_vm6, %v2572_v29  ;;  %4839 = vmatmul.mubr.msk.f32.vlgmr.msra.gmra.mrb[38].mxu1 %vm9866_vm15, %v2572_v29  ;;  %v9869_v29 = vld [vmem:[#allocation25_spill] sm:$0xff] }
 0x929   : > { %2852 = vmatprep.mubr.bf16.mxu0 %v9867_v8  ;;  %2893 = vmatprep.mubr.bf16.mxu1 %v9867_v8 }
 0x9fb   : > { %v2644_v58 = vpop.f32.mrb[38].mxu0  ;;  %v2715_v61 = vpop.f32.mrb[38].mxu1 }
 0x9fc   : > { %v2720_v19 = vmul.f32 0.0078125, %v2644_v58  ;;  %v2722_v49 = vmul.f32 0.0078125, %v2715_v61  ;;  %v2646_v43 = vpop.f32.mrb[39].mxu0  ;;  %v2717_v27 = vpop.f32.mrb[39].mxu1  ;;  %v9870_v58 = vld [vmem:[#allocation26_spill] sm:$0xff] }
 0x9fd   : > { %v2721_v40 = vmul.f32 0.0078125, %v2646_v43  ;;  %v2723_v48 = vmul.f32 0.0078125, %v2717_v27  ;;  %v9872_v43 = vld [vmem:[#allocation27_spill] sm:$0xff] }
 0x9fe   : > { %v2724_v17 = vadd.f32 1e-05, %v2720_v19  ;;  %v2726_v11 = vadd.f32 1e-05, %v2722_v49  ;;  %v9871_v19 = vld [vmem:[#allocation28_spill] sm:$0xff] }
 0x9ff   : > { %v2725_v60 = vadd.f32 1e-05, %v2721_v40  ;;  %v2727_v46 = vadd.f32 1e-05, %v2723_v48  ;;  %v9873_v40 = vld [vmem:[#allocation29_spill] sm:$0xff]  ;;  %v9874_v48 = vld [vmem:[#allocation31_spill] sm:$0xff] }
 0xa00   : > { %6512 = vrsqrt.f32 %v2724_v17 }
 0xa01   : > { %6514 = vrsqrt.f32 %v2726_v11 }
 0xa02   : > { %6516 = vrsqrt.f32 %v2725_v60 }
 0xa03   : > { %6518 = vrsqrt.f32 %v2727_v46 }
 0xa0a   : > { %v6513_v50 = vpop.eup %6512 }
 0xa0b   : > { %v6515_v16 = vpop.eup %6514  ;;  %v2735_v37 = vrot.slane %v6513_v50, %v9860_v14 }
 0xa0c   : > { %v6517_v15 = vpop.eup %6516  ;;  %v2743_v44 = vrot.slane %v6515_v16, %v9860_v14 }
 0xa0d   : > { %v6519_v21 = vpop.eup %6518  ;;  %v2739_v2 = vrot.slane %v6517_v15, %v9860_v14  ;;  %v2748_v36 = vmul.f32 %v2735_v37, %v8423_v9 }
 0xa0e   : > { %v2747_v42 = vrot.slane %v6519_v21, %v9860_v14  ;;  %v2750_v5 = vmul.f32 %v2743_v44, %v8426_v0  ;;  %v9875_v0 = vld [vmem:[#allocation32_spill] sm:$0xff] }
 0xa0f   : > { %v2749_v1 = vmul.f32 %v2739_v2, %v8429_v35  ;;  %v2752_v3 = vmul.f32 %v2748_v36, %v9868_v59 }
 0xa10   : > { %v2751_v39 = vmul.f32 %v2747_v42, %v8432_v45  ;;  %v2754_v8 = vmul.f32 %v2750_v5, %v9869_v29  ;;  %v9876_v42 = vld [vmem:[#allocation5_spill] sm:$0xff] }
 0xa11   : > { %v2753_v61 = vmul.f32 %v2749_v1, %v9870_v58  ;;  %v2756_v49 = vadd.f32 %v2752_v3, %v9871_v19  ;;  %vm9877_vm15 = vcmp.lt.s32.totalorder %v9876_v42, 1 }
 0xa12   : > { %v2755_v27 = vmul.f32 %v2751_v39, %v9872_v43  ;;  %v2758_v9 = vadd.f32 %v2754_v8, %v9873_v40  ;;  %vm9878_vm6 = vmmov %vm9877_vm15 }
 0xa13   : > { %v2757_v17 = vadd.f32 %v2753_v61, %v9874_v48  ;;  %v2760_v11 = vmax.f32 %v2756_v49, 0.0  ;;  %vm9879_vm0 = vmmov %vm9878_vm6  ;;  %v9883_v48 = vld [vmem:[#allocation14_spill] sm:$0xff] }
 0xa14   : > { %v2759_v60 = vadd.f32 %v2755_v27, %v9875_v0  ;;  %v2762_v35 = vmax.f32 %v2758_v9, 0.0  ;;  %vm9880_vm4 = vmmov %vm9879_vm0  ;;  %v9881_v9 = vld [vmem:[#allocation12_spill] sm:$0xff] }
 0xa15   : > { %v2761_v46 = vmax.f32 %v2757_v17, 0.0  ;;  %v9885_v17 = vld [vmem:[#allocation13_spill] sm:$0xff] }
 0xa16   : > { %v2763_v50 = vmax.f32 %v2759_v60, 0.0 }
 0xa17   : > { %v6483_v16 = vpack.i.bf16 %v2761_v46, %v2760_v11 }
 0xa18   : > { %v6488_v45 = vpack.i.bf16 %v2763_v50, %v2762_v35 }
 0xa19   : > { %6484 = vrot.lane.b32.xlu0 %v6483_v16, %s6601_s10 }
 0xa1a   : > { %6489 = vrot.lane.b32.xlu1 %v6488_v45, %s6601_s10 }
 0xa1d   : > { %6494 = vrot.lane.b32.xlu0 %v6483_v16, %s6602_s11 }
 0xa1e   : > { %6499 = vrot.lane.b32.xlu1 %v6488_v45, %s6602_s11  ;;  %v9895_v45 = vld [vmem:[#allocation9_spill] sm:$0xff] }
 0xa8b   : > { %v6485_v37 = vpop.permute.xlu0 %6484 }
 0xa8c   : > { %v6490_v15 = vpop.permute.xlu1 %6489  ;;  %v6487_v44 = vunpack.i.h.bf16 %v6485_v37  ;;  %v6486_v21 = vunpack.i.l.bf16 %v6485_v37 }
 0xa8d   : > { %v6492_v2 = vunpack.i.h.bf16 %v6490_v15  ;;  %v6491_v36 = vunpack.i.l.bf16 %v6490_v15  ;;  %v9897_v15 = vld [vmem:[#allocation7_spill] sm:$0xff] }
 0xa8e   : > { %v2774_v5 = vsel %vm9877_vm15, %v6486_v21, %v6487_v44  ;;  %vm9882_vm15 = vnez %v9881_v9 }
 0xa8f   : > { %v2772_v1 = vsel %vm9878_vm6, %v6491_v36, %v6492_v2  ;;  %v2773_v59 = vsel %vm9879_vm0, %v6487_v44, %v6491_v36  ;;  %v2775_v3 = vsel %vm9880_vm4, %v6492_v2, %v6486_v21  ;;  %v4841_v39 = vpack.c.bf16 %v2761_v46, %v2774_v5  ;;  %v6495_v29 = vpop.permute.xlu0 %6494  ;;  %v9891_v46 = vld [vmem:[#allocation15_spill] sm:$0xff] }
 0xa90   : > { %v4848_v8 = vpack.c.bf16 %v2763_v50, %v2772_v1  ;;  %v4851_v58 = vpack.c.bf16 %v2762_v35, %v2773_v59  ;;  %v4844_v61 = vpack.c.bf16 %v2760_v11, %v2775_v3  ;;  %v6500_v19 = vpop.permute.xlu1 %6499  ;;  %v6497_v49 = vunpack.i.h.bf16 %v6495_v29  ;;  %v9893_v50 = vld [vmem:[#allocation8_spill] sm:$0xff]  ;;  %v9899_v21 = vld [vmem:[#allocation11_spill] sm:$0xff]  ;;  %v9902_v3 = vld [vmem:[#allocation10_spill] sm:$0xff] }
 0xa91   : > { %v6502_v43 = vunpack.i.h.bf16 %v6500_v19  ;;  %v6501_v27 = vunpack.i.l.bf16 %v6500_v19  ;;  %v6496_v40 = vunpack.i.l.bf16 %v6495_v29  ;;  %4842 = vmatprep.subr.msk.bf16.mxu0 %vm9882_vm15, %v4841_v39  ;;  %vm9884_vm6 = vnez %v9883_v48  ;;  %v9921_v19 = vld [vmem:[#allocation33_spill] sm:$0xff]  ;;  %v9932_v48 = vld [vmem:[#allocation55_spill] sm:$0xff] }
 0xa92   : > { %4849 = vmatprep.subr.msk.bf16.mxu1 %vm9884_vm6, %v4848_v8  ;;  %vm9886_vm0 = vnez %v9885_v17  ;;  %vm9887_vm4 = vcmp.lt.s32.totalorder %v9876_v42, 127  ;;  %vm9892_vm15 = vnez %v9891_v46  ;;  %vm9894_vm6 = vcmp.lt.s32.totalorder %v9893_v50, 16  ;;  %v9933_v17 = vld [vmem:[#allocation56_spill] sm:$0xff] }
 0xa93   : > { %4845 = vmatpush1.bf16.msk.msra.mxu0 %vm9886_vm0, %v4844_v61  ;;  %v2788_v0 = vsel %vm9887_vm4, %v6501_v27, %v6502_v43  ;;  %vm9888_vm12 = vmmov %vm9887_vm4  ;;  %4852 = vmatpush1.bf16.msk.msra.mxu1 %vm9892_vm15, %v4851_v58  ;;  %vm9896_vm0 = vcmp.lt.s32.totalorder %v9895_v45, 16  ;;  %v9901_v36 = vmov 1.0   ;;  %v2804_v61 = vld [vmem:[%s9197_s3] sm:$0xf]  ;;  %vm9905_vm15 = vnez %v9503_v34 }
 0xa94   : > { %v2789_v11 = vsel %vm9888_vm12, %v6497_v49, %v6501_v27  ;;  %vm9889_vm14 = vmmov %vm9887_vm4  ;;  %v2794_v16 = vsel %vm9894_vm6, %v2788_v0, 0.0  ;;  %vm9900_vm12 = vcmp.lt.s32.totalorder %v9899_v21, 16  ;;  %vm9906_vm6 = vnez %v9526_v25  ;;  %v9927_v27 = vld [vmem:[#allocation46_spill] sm:$0xff]  ;;  %v9935_v0 = vld [vmem:[#allocation57_spill] sm:$0xff] }
 0xa95   : > { %v2790_v60 = vsel %vm9889_vm14, %v6496_v40, %v6497_v49  ;;  %vm9890_vm8 = vmmov %vm9887_vm4  ;;  %v2793_v37 = vsel %vm9896_vm0, %v2789_v11, 0.0  ;;  %vm9898_vm4 = vcmp.lt.s32.totalorder %v9897_v15, 16  ;;  %v2802_v5 = vpack.c.bf16 %v9901_v36, %v2794_v16  ;;  %v9923_v49 = vld [vmem:[#allocation38_spill] sm:$0xff] }
 0xa96   : > { %v2791_v35 = vsel %vm9890_vm8, %v6502_v43, %v6496_v40  ;;  %v2792_v44 = vsel %vm9898_vm4, %v2790_v60, 0.0  ;;  %v2801_v1 = vpack.c.bf16 %v9901_v36, %v2793_v37  ;;  %vm9903_vm8 = vcmask 203776   ;;  %v9925_v43 = vld [vmem:[#allocation43_spill] sm:$0xff]  ;;  %v9929_v40 = vld [vmem:[#allocation49_spill] sm:$0xff]  ;;  %v9937_v11 = vld [vmem:[#allocation58_spill] sm:$0xff] }
 0xa97   : > { %v2795_v2 = vsel %vm9900_vm12, %v2791_v35, 0.0  ;;  %v2800_v42 = vpack.c.bf16 %v9901_v36, %v2792_v44  ;;  %v2815_v58 = vand.u32 %v2802_v5, %v9902_v3  ;;  %vm9904_vm14 = vmmov %vm9903_vm8  ;;  %vm9907_vm0 = vnez %v9515_v63  ;;  %v9939_v60 = vld [vmem:[#allocation59_spill] sm:$0xff] }
 0xa98   : > { %v2803_v59 = vpack.c.bf16 %v9901_v36, %v2795_v2  ;;  %v2812_v39 = vand.u32 %v2801_v1, %v9902_v3  ;;  %vm9908_vm4 = vnez %v9544_v51  ;;  %vm9909_vm12 = vnez %v9537_v18 }
 0xa99   : > { %v2809_v8 = vand.u32 %v2800_v42, %v9902_v3 }
 0xa9a   : > { %v2818_v29 = vand.u32 %v2803_v59, %v9902_v3  ;;  %2822 = vmatprep.subr.bf16.mxu0 %v2812_v39 }
 0xa9b   : > { %2823 = vmatpush1.bf16.msra.mxu0 %v2809_v8 }
 0xa9c   : > { %2863 = vmatprep.subr.bf16.mxu1 %v2818_v29  ;;  %6077 = vmatprep.subr.msk.bf16.mxu0 %vm9704_vm7, %v9640_v38 }
 0xa9d   : > { %2864 = vmatpush1.bf16.msra.mxu1 %v2815_v58 }
 0xa9e   : > { %6109 = vmatprep.subr.msk.bf16.mxu1 %vm9708_vm13, %v9640_v38  ;;  %4846 = vmatmul.mubr.msk.bf16.vlgmr.msra.gmra.mrb[40].mxu0 %vm9903_vm8, %v2804_v61  ;;  %vm9910_vm8 = vnez %v9553_v41 }
 0xa9f   : > { %6079 = vmatpush3.bf16.msk.msra.mxu0 %vm9709_vm2, %v9640_v38 }
 0xaa0   : > { %4853 = vmatmul.mubr.msk.bf16.vlgmr.msra.gmra.mrb[40].mxu1 %vm9904_vm14, %v2804_v61  ;;  %6081 = vmatprep.subr.msk.bf16.mxu0 %vm9906_vm6, %v9640_v38  ;;  %vm9911_vm14 = vnez %v9546_v24  ;;  %vm9912_vm6 = vnez %v9571_v57 }
 0xaa1   : > { %6111 = vmatpush3.bf16.msk.msra.mxu1 %vm9905_vm15, %v9640_v38 }
 0xaa2   : > { %6113 = vmatprep.subr.msk.bf16.mxu1 %vm9907_vm0, %v9640_v38  ;;  %vm9913_vm0 = vnez %v9564_v12 }
 0xaa3   : > { %6083 = vmatpush3.bf16.msk.msra.mxu0 %vm9908_vm4, %v9640_v38  ;;  %vm9914_vm4 = vnez %v9582_v32 }
 0xaa4   : > { %6085 = vmatprep.subr.msk.bf16.mxu0 %vm9910_vm8, %v9640_v38  ;;  %vm9916_vm8 = vnez %v9588_v62 }
 0xaa5   : > { %6115 = vmatpush3.bf16.msk.msra.mxu1 %vm9909_vm12, %v9640_v38  ;;  %vm9915_vm12 = vnez %v9585_v13 }
 0xaa6   : > { %6117 = vmatprep.subr.msk.bf16.mxu1 %vm9911_vm14, %v9640_v38 }
 0xaa7   : > { %6087 = vmatpush3.bf16.msk.msra.mxu0 %vm9912_vm6, %v9640_v38 }
 0xaa8   : > { %6089 = vmatprep.subr.msk.bf16.mxu0 %vm9914_vm4, %v9640_v38  ;;  %vm9917_vm4 = vnez %v9611_v47 }
 0xaa9   : > { %6119 = vmatpush3.bf16.msk.msra.mxu1 %vm9913_vm0, %v9640_v38 }
 0xaaa   : > { %6121 = vmatprep.subr.msk.bf16.mxu1 %vm9915_vm12, %v9640_v38  ;;  %vm9918_vm12 = vnez %v9615_v28 }
 0xaab   : > { %6091 = vmatpush3.bf16.msk.msra.mxu0 %vm9916_vm8, %v9640_v38  ;;  %vm9919_vm8 = vnez %v9621_v26 }
 0xaac   : > { %6093 = vmatprep.subr.msk.bf16.mxu0 %vm9843_vm5, %v9640_v38 }
 0xaad   : > { %6123 = vmatpush3.bf16.msk.msra.mxu1 %vm9842_vm3, %v9640_v38  ;;  %vm9920_vm3 = vnez %v9627_v22 }
 0xaae   : > { %6125 = vmatprep.subr.msk.bf16.mxu1 %vm9844_vm9, %v9640_v38  ;;  %vm9922_vm9 = vnez %v9921_v19 }
 0xaaf   : > { %6095 = vmatpush3.bf16.msk.msra.mxu0 %vm9917_vm4, %v9640_v38  ;;  %vm9924_vm4 = vnez %v9923_v49 }
 0xab0   : > { %6097 = vmatprep.subr.msk.bf16.mxu0 %vm9919_vm8, %v9640_v38  ;;  %vm9928_vm8 = vnez %v9927_v27 }
 0xab1   : > { %6127 = vmatpush3.bf16.msk.msra.mxu1 %vm9918_vm12, %v9640_v38  ;;  %vm9926_vm12 = vnez %v9925_v43 }
 0xab2   : > { %6129 = vmatprep.subr.msk.bf16.mxu1 %vm9920_vm3, %v9640_v38  ;;  %vm9930_vm3 = vnez %v9929_v40 }
 0xab3   : > { %6099 = vmatpush3.bf16.msk.msra.mxu0 %vm9805_vm1, %v9640_v38 }
 0xab4   : > { %6101 = vmatprep.subr.msk.bf16.mxu0 %vm9924_vm4, %v9640_v38  ;;  %vm9934_vm4 = vnez %v9933_v17 }
 0xab5   : > { %6131 = vmatpush3.bf16.msk.msra.mxu1 %vm9922_vm9, %v9640_v38 }
 0xab6   : > { %6133 = vmatprep.subr.msk.bf16.mxu1 %vm9926_vm12, %v9640_v38  ;;  %vm9936_vm12 = vnez %v9935_v0 }
 0xab7   : > { %6103 = vmatpush3.bf16.msk.msra.mxu0 %vm9928_vm8, %v9640_v38  ;;  %vm9938_vm8 = vnez %v9937_v11 }
 0xab8   : > { %6105 = vmatprep.subr.msk.bf16.mxu0 %vm9734_vm10, %v9640_v38 }
 0xab9   : > { %6135 = vmatpush3.bf16.msk.msra.mxu1 %vm9930_vm3, %v9640_v38  ;;  %vm9940_vm3 = vnez %v9939_v60 }
 0xaba   : > { %6137 = vmatprep.subr.msk.bf16.mxu1 %vm9852_vm11, %v9640_v38  ;;  %vm9946_vm11 = vnez %v9702_v6 }
 0xabb   : > { %6107 = vmatpush3.bf16.msk.msra.mxu0 %vm9934_vm4, %v9640_v38  ;;  %vm9945_vm4 = vnez %v9699_v4 }
 0xabc   : > { %6141 = vmatprep.subr.msk.bf16.mxu0 %vm9938_vm8, %v9640_v38  ;;  %vm9943_vm8 = vnez %v9688_v23 }
 0xabd   : > { %6139 = vmatpush3.bf16.msk.msra.mxu1 %vm9936_vm12, %v9640_v38  ;;  %vm9944_vm12 = vnez %v9697_v52 }
 0xabe   : > { %6149 = vmatprep.subr.msk.bf16.mxu1 %vm9940_vm3, %v9640_v38  ;;  %vm9942_vm3 = vnez %v9686_v54 }
 0xb71   : > { %v8633_v35 = vpop.f32.mrb[40].mxu0 }
 0xb72   : > { %9941 = vst [vmem:[#allocation60_spill] sm:$0xff] %v8633_v35  ;;  %v2902_v50 = vrot.slane %v8633_v35, 4  ;;  %v8639_v45 = vpop.f32.mrb[41].mxu0 }
 0xb73   : > { %v8635_v46 = vpop.f32.mrb[40].mxu1  ;;  %v2908_v15 = vrot.slane %v8639_v45, 4  ;;  %v2858_v21 = vpop.f32.mrb[42].mxu0 }
 0xb74   : > { %v2914_v16 = vrot.slane %v8635_v46, 4  ;;  %v8641_v37 = vpop.f32.mrb[41].mxu1  ;;  %v2903_v36 = vadd.f32 %v2902_v50, %v8633_v35  ;;  %v2859_v42 = vpop.f32.mrb[43].mxu0 }
 0xb75   : > { %v2920_v44 = vrot.slane %v8641_v37, 4  ;;  %v2899_v2 = vpop.f32.mrb[42].mxu1  ;;  %v2909_v59 = vadd.f32 %v2908_v15, %v8639_v45 }
 0xb76   : > { %v2915_v5 = vadd.f32 %v2914_v16, %v8635_v46  ;;  %v2900_v1 = vpop.f32.mrb[43].mxu1  ;;  %v2904_v39 = vrot.slane %v2903_v36, 2 }
 0xb77   : > { %v2921_v3 = vadd.f32 %v2920_v44, %v8641_v37  ;;  %v2910_v8 = vrot.slane %v2909_v59, 2 }
 0xb78   : > { %v2916_v29 = vrot.slane %v2915_v5, 2  ;;  %v2905_v61 = vadd.f32 %v2904_v39, %v2903_v36  ;;  %v9970_v36 = vld [vmem:[#allocation57_spill] sm:$0xff] }
 0xb79   : > { %v2922_v58 = vrot.slane %v2921_v3, 2  ;;  %v2911_v60 = vadd.f32 %v2910_v8, %v2909_v59  ;;  %v9974_v59 = vld [vmem:[#allocation59_spill] sm:$0xff] }
 0xb7a   : > { %v2917_v14 = vadd.f32 %v2916_v29, %v2915_v5  ;;  %v2906_v21 = vrot.slane %v2905_v61, 1  ;;  %v9972_v5 = vld [vmem:[#allocation58_spill] sm:$0xff] }
 0xb7b   : > { %v2923_v11 = vadd.f32 %v2922_v58, %v2921_v3  ;;  %v2912_v0 = vrot.slane %v2911_v60, 1 }
 0xb7c   : > { %v2918_v2 = vrot.slane %v2917_v14, 1  ;;  %v2907_v42 = vadd.f32 %v2906_v21, %v2905_v61 }
 0xb7d   : > { %v2924_v50 = vrot.slane %v2923_v11, 1  ;;  %v2913_v35 = vadd.f32 %v2912_v0, %v2911_v60 }
 0xb7e   : > { %v2919_v1 = vadd.f32 %v2918_v2, %v2917_v14 }
 0xb7f   : > { %v2925_v16 = vadd.f32 %v2924_v50, %v2923_v11  ;;  %2990 = vmatprep.mubr.f32.mxu0 %v2913_v35  ;;  %v9976_v50 = vld [vmem:[#allocation6_spill] sm:$0xff] }
 0xb80   : > { %2991 = vmatmul.mubr.f32.vlgmr.msra.gmra.mrb[44].mxu0 %v2907_v42 }
 0xb81   : > { %3060 = vmatprep.mubr.f32.mxu1 %v2925_v16  ;;  %6143 = vmatpush1.bf16.msk.msra.mxu0 %vm9942_vm3, %v9640_v38  ;;  %vm9947_vm3 = vnez %v9706_v53 }
 0xb82   : > { %3061 = vmatmul.mubr.f32.vlgmr.msra.gmra.mrb[44].mxu1 %v2919_v1  ;;  %6145 = vmatprep.subr.msk.bf16.mxu0 %vm9944_vm12, %v9640_v38 }
 0xb83   : > { %6151 = vmatpush1.bf16.msk.msra.mxu1 %vm9943_vm8, %v9640_v38  ;;  %3133 = vmatprep.mubr.f32.mxu0 %v9695_v20 }
 0xb84   : > { %6153 = vmatprep.subr.msk.bf16.mxu1 %vm9945_vm4, %v9640_v38  ;;  %3204 = vmatprep.mubr.f32.mxu1 %v9695_v20 }
 0xb85   : > { %6147 = vmatpush1.bf16.msk.msra.mxu0 %vm9946_vm11, %v9640_v38  ;;  %vm9948_vm11 = vcmask 261120  }
 0xb86   : > { %6157 = vmatprep.subr.msk.bf16.mxu0 %vm9704_vm7, %v9640_v38  ;;  %vm9949_vm4 = vmmov %vm9948_vm11  ;;  %vm9951_vm7 = vnez %v9515_v63 }
 0xb87   : > { %6155 = vmatpush1.bf16.msk.msra.mxu1 %vm9947_vm3, %v9640_v38 }
 0xb88   : > { %6189 = vmatprep.subr.msk.bf16.mxu1 %vm9708_vm13, %v9640_v38  ;;  %vm9950_vm13 = vnez %v9526_v25 }
 0xc53   : > { %v5500_v14 = vpop.f32.mrb[44].mxu0 }
 0xc54   : > { %v5501_v11 = vpop.f32.mrb[45].mxu0 }
 0xc55   : > { %v5535_v0 = vpop.f32.mrb[44].mxu1  ;;  %v5502_v35 = vadd.f32 %v5501_v11, %v5500_v14 }
 0xc56   : > { %v5536_v60 = vpop.f32.mrb[45].mxu1 }
 0xc57   : > { %v5537_v15 = vadd.f32 %v5536_v60, %v5535_v0  ;;  %v9977_v0 = vld [vmem:[#allocation60_spill] sm:$0xff] }
 0xc59   : > { %v3063_v44 = vadd.f32 %v5537_v15, %v5502_v35 }
 0xc5b   : > { %4926 = vmatmul.mubr.msk.f32.vlgmr.msra.gmra.mrb[46].mxu0 %vm9948_vm11, %v3063_v44  ;;  %4935 = vmatmul.mubr.msk.f32.vlgmr.msra.gmra.mrb[46].mxu1 %vm9949_vm4, %v3063_v44  ;;  %vm9952_vm11 = vnez %v9544_v51  ;;  %vm9953_vm4 = vnez %v9537_v18 }
 0xc5c   : > { %6159 = vmatpush3.bf16.msk.msra.mxu0 %vm9709_vm2, %v9640_v38  ;;  %6191 = vmatpush3.bf16.msk.msra.mxu1 %vm9905_vm15, %v9640_v38  ;;  %vm9954_vm2 = vnez %v9553_v41 }
 0xc5d   : > { %6161 = vmatprep.subr.msk.bf16.mxu0 %vm9950_vm13, %v9640_v38  ;;  %6193 = vmatprep.subr.msk.bf16.mxu1 %vm9951_vm7, %v9640_v38 }
 0xc60   : > { %6163 = vmatpush3.bf16.msk.msra.mxu0 %vm9952_vm11, %v9640_v38  ;;  %6195 = vmatpush3.bf16.msk.msra.mxu1 %vm9953_vm4, %v9640_v38  ;;  %vm9955_vm11 = vnez %v9582_v32  ;;  %vm9956_vm4 = vnez %v9585_v13 }
 0xc61   : > { %6165 = vmatprep.subr.msk.bf16.mxu0 %vm9954_vm2, %v9640_v38  ;;  %6197 = vmatprep.subr.msk.bf16.mxu1 %vm9911_vm14, %v9640_v38  ;;  %vm9957_vm2 = vnez %v9588_v62  ;;  %vm9958_vm14 = vnez %v9601_v30 }
 0xc64   : > { %6167 = vmatpush3.bf16.msk.msra.mxu0 %vm9912_vm6, %v9640_v38  ;;  %6199 = vmatpush3.bf16.msk.msra.mxu1 %vm9913_vm0, %v9640_v38  ;;  %vm9959_vm0 = vnez %v9604_v33 }
 0xc65   : > { %6169 = vmatprep.subr.msk.bf16.mxu0 %vm9955_vm11, %v9640_v38  ;;  %6201 = vmatprep.subr.msk.bf16.mxu1 %vm9956_vm4, %v9640_v38  ;;  %vm9960_vm11 = vnez %v9611_v47  ;;  %vm9961_vm4 = vnez %v9615_v28 }
 0xc68   : > { %6171 = vmatpush3.bf16.msk.msra.mxu0 %vm9957_vm2, %v9640_v38  ;;  %6203 = vmatpush3.bf16.msk.msra.mxu1 %vm9958_vm14, %v9640_v38  ;;  %vm9962_vm2 = vnez %v9621_v26  ;;  %vm9963_vm14 = vnez %v9627_v22 }
 0xc69   : > { %6173 = vmatprep.subr.msk.bf16.mxu0 %vm9843_vm5, %v9640_v38  ;;  %6205 = vmatprep.subr.msk.bf16.mxu1 %vm9959_vm0, %v9640_v38 }
 0xc6c   : > { %6175 = vmatpush3.bf16.msk.msra.mxu0 %vm9960_vm11, %v9640_v38  ;;  %6207 = vmatpush3.bf16.msk.msra.mxu1 %vm9961_vm4, %v9640_v38  ;;  %vm9964_vm11 = vnez %v9923_v49  ;;  %vm9965_vm4 = vnez %v9925_v43 }
 0xc6d   : > { %6177 = vmatprep.subr.msk.bf16.mxu0 %vm9962_vm2, %v9640_v38  ;;  %6209 = vmatprep.subr.msk.bf16.mxu1 %vm9963_vm14, %v9640_v38  ;;  %vm9966_vm2 = vnez %v9927_v27  ;;  %vm9967_vm14 = vnez %v9929_v40 }
 0xc70   : > { %6179 = vmatpush3.bf16.msk.msra.mxu0 %vm9805_vm1, %v9640_v38  ;;  %6211 = vmatpush3.bf16.msk.msra.mxu1 %vm9922_vm9, %v9640_v38  ;;  %vm9968_vm9 = vnez %v9932_v48 }
 0xc71   : > { %6181 = vmatprep.subr.msk.bf16.mxu0 %vm9964_vm11, %v9640_v38  ;;  %6213 = vmatprep.subr.msk.bf16.mxu1 %vm9965_vm4, %v9640_v38  ;;  %vm9969_vm11 = vnez %v9933_v17  ;;  %vm9971_vm4 = vnez %v9970_v36 }
 0xc74   : > { %6183 = vmatpush3.bf16.msk.msra.mxu0 %vm9966_vm2, %v9640_v38  ;;  %6215 = vmatpush3.bf16.msk.msra.mxu1 %vm9967_vm14, %v9640_v38  ;;  %vm9973_vm2 = vnez %v9972_v5  ;;  %vm9975_vm14 = vnez %v9974_v59 }
 0xc75   : > { %6185 = vmatprep.subr.msk.bf16.mxu0 %vm9734_vm10, %v9640_v38  ;;  %6217 = vmatprep.subr.msk.bf16.mxu1 %vm9968_vm9, %v9640_v38 }
 0xc78   : > { %6187 = vmatpush3.bf16.msk.msra.mxu0 %vm9969_vm11, %v9640_v38  ;;  %6219 = vmatpush3.bf16.msk.msra.mxu1 %vm9971_vm4, %v9640_v38  ;;  %vm9984_vm4 = vnez %v9702_v6 }
 0xc79   : > { %6221 = vmatprep.subr.msk.bf16.mxu0 %vm9973_vm2, %v9640_v38  ;;  %6229 = vmatprep.subr.msk.bf16.mxu1 %vm9975_vm14, %v9640_v38  ;;  %vm9982_vm14 = vnez %v9686_v54  ;;  %vm9983_vm2 = vnez %v9699_v4 }
 0xd2e   : > { %v3135_v3 = vpop.f32.mrb[46].mxu0  ;;  %v3206_v39 = vpop.f32.mrb[46].mxu1 }
 0xd2f   : > { %v3211_v29 = vmul.f32 0.0078125, %v3135_v3  ;;  %v3213_v8 = vmul.f32 0.0078125, %v3206_v39  ;;  %v3137_v58 = vpop.f32.mrb[47].mxu0  ;;  %v3208_v61 = vpop.f32.mrb[47].mxu1 }
 0xd30   : > { %v3212_v21 = vmul.f32 0.0078125, %v3137_v58  ;;  %v3214_v2 = vmul.f32 0.0078125, %v3208_v61 }
 0xd31   : > { %v3218_v16 = vrot.slane %v3211_v29, %v9976_v50  ;;  %v3226_v42 = vrot.slane %v3213_v8, %v9976_v50 }
 0xd32   : > { %v3222_v1 = vrot.slane %v3212_v21, %v9976_v50  ;;  %v3230_v14 = vrot.slane %v3214_v2, %v9976_v50 }
 0xd33   : > { %v8778_v11 = vsub.f32 %v9977_v0, %v3218_v16  ;;  %v8781_v60 = vsub.f32 %v8635_v46, %v3226_v42 }
 0xd34   : > { %v8784_v35 = vsub.f32 %v8639_v45, %v3222_v1  ;;  %v8787_v15 = vsub.f32 %v8641_v37, %v3230_v14 }
 0xd35   : > { %9978 = vst [vmem:[#allocation16_spill] sm:$0xff] %v8778_v11  ;;  %9979 = vst [vmem:[#allocation17_spill] sm:$0xff] %v8781_v60  ;;  %v3235_v44 = vmul.f32 %v8778_v11, %v8778_v11  ;;  %v3237_v3 = vmul.f32 %v8781_v60, %v8781_v60 }
 0xd36   : > { %9980 = vst [vmem:[#allocation18_spill] sm:$0xff] %v8784_v35  ;;  %9981 = vst [vmem:[#allocation20_spill] sm:$0xff] %v8787_v15  ;;  %v3236_v39 = vmul.f32 %v8784_v35, %v8784_v35  ;;  %v3238_v29 = vmul.f32 %v8787_v15, %v8787_v15 }
 0xd37   : > { %v3239_v46 = vrot.slane %v3235_v44, 4  ;;  %v3251_v8 = vrot.slane %v3237_v3, 4 }
 0xd38   : > { %v3245_v58 = vrot.slane %v3236_v39, 4  ;;  %v3257_v45 = vrot.slane %v3238_v29, 4 }
 0xd39   : > { %v3240_v61 = vadd.f32 %v3239_v46, %v3235_v44  ;;  %v3252_v21 = vadd.f32 %v3251_v8, %v3237_v3 }
 0xd3a   : > { %v3246_v37 = vadd.f32 %v3245_v58, %v3236_v39  ;;  %v3258_v2 = vadd.f32 %v3257_v45, %v3238_v29 }
 0xd3b   : > { %v3241_v16 = vrot.slane %v3240_v61, 2  ;;  %v3253_v42 = vrot.slane %v3252_v21, 2 }
 0xd3c   : > { %v3247_v1 = vrot.slane %v3246_v37, 2  ;;  %v3259_v14 = vrot.slane %v3258_v2, 2 }
 0xd3d   : > { %v3242_v0 = vadd.f32 %v3241_v16, %v3240_v61  ;;  %v3254_v60 = vadd.f32 %v3253_v42, %v3252_v21  ;;  %v9998_v16 = vld [vmem:[#allocation62_spill] sm:$0xff] }
 0xd3e   : > { %v3248_v11 = vadd.f32 %v3247_v1, %v3246_v37  ;;  %v3260_v50 = vadd.f32 %v3259_v14, %v3258_v2  ;;  %v9997_v37 = vld [vmem:[#allocation63_spill] sm:$0xff]  ;;  %v3604_v42 = vrot.slane %v9998_v16, 4 }
 0xd3f   : > { %v3243_v35 = vrot.slane %v3242_v0, 1  ;;  %v3255_v59 = vrot.slane %v3254_v60, 1  ;;  %v3592_v2 = vrot.slane %v9997_v37, 4 }
 0xd40   : > { %v3249_v5 = vrot.slane %v3248_v11, 1  ;;  %v3261_v15 = vrot.slane %v3260_v50, 1  ;;  %v3605_v14 = vadd.f32 %v3604_v42, %v9998_v16 }
 0xd41   : > { %v3244_v48 = vadd.f32 %v3243_v35, %v3242_v0  ;;  %v3256_v9 = vadd.f32 %v3255_v59, %v3254_v60  ;;  %v3593_v1 = vadd.f32 %v3592_v2, %v9997_v37 }
 0xd42   : > { %v3250_v36 = vadd.f32 %v3249_v5, %v3248_v11  ;;  %v3262_v17 = vadd.f32 %v3261_v15, %v3260_v50 }
 0xd43   : > { %v3594_v0 = vrot.slane %v3593_v1, 2 }
 0xd44   : > { %3327 = vmatprep.mubr.f32.mxu0 %v3250_v36  ;;  %3397 = vmatprep.mubr.f32.mxu1 %v3262_v17  ;;  %v9988_v17 = vld [vmem:[#allocation64_spill] sm:$0xff] }
 0xd45   : > { %3328 = vmatmul.mubr.f32.vlgmr.msra.gmra.mrb[48].mxu0 %v3244_v48  ;;  %3398 = vmatmul.mubr.f32.vlgmr.msra.gmra.mrb[48].mxu1 %v3256_v9  ;;  %v9987_v9 = vld [vmem:[#allocation65_spill] sm:$0xff]  ;;  %v3610_v36 = vrot.slane %v9988_v17, 4 }
 0xd46   : > { %6223 = vmatpush1.bf16.msk.msra.mxu0 %vm9982_vm14, %v9640_v38  ;;  %6231 = vmatpush1.bf16.msk.msra.mxu1 %vm9943_vm8, %v9640_v38  ;;  %vm9985_vm8 = vnez %v9487_v56  ;;  %v3598_v48 = vrot.slane %v9987_v9, 4 }
 0xd47   : > { %6225 = vmatprep.subr.msk.bf16.mxu0 %vm9944_vm12, %v9640_v38  ;;  %6233 = vmatprep.subr.msk.bf16.mxu1 %vm9983_vm2, %v9640_v38  ;;  %vm9986_vm12 = vnez %v9480_v55  ;;  %v3611_v59 = vadd.f32 %v3610_v36, %v9988_v17  ;;  %v3595_v36 = vadd.f32 %v3594_v0, %v3593_v1 }
 0xd48   : > { %3470 = vmatprep.mubr.f32.mxu0 %v9695_v20  ;;  %3541 = vmatprep.mubr.f32.mxu1 %v9695_v20  ;;  %v3599_v5 = vadd.f32 %v3598_v48, %v9987_v9  ;;  %v3606_v48 = vrot.slane %v3605_v14, 2 }
 0xd49   : > { %v3612_v11 = vrot.slane %v3611_v59, 2 }
 0xd4a   : > { %6227 = vmatpush1.bf16.msk.msra.mxu0 %vm9984_vm4, %v9640_v38  ;;  %6235 = vmatpush1.bf16.msk.msra.mxu1 %vm9947_vm3, %v9640_v38  ;;  %v3600_v50 = vrot.slane %v3599_v5, 2  ;;  %vm9991_vm3 = vnez %v9513_v10 }
 0xd4b   : > { %6237 = vmatprep.subr.msk.bf16.mxu0 %vm9985_vm8, %v9640_v38  ;;  %6269 = vmatprep.subr.msk.bf16.mxu1 %vm9986_vm12, %v9640_v38  ;;  %v3613_v35 = vadd.f32 %v3612_v11, %v3611_v59  ;;  %vm9989_vm12 = vcmask 261120   ;;  %v3596_v59 = vrot.slane %v3595_v36, 1  ;;  %v10012_v11 = vld [vmem:[#allocation54_spill] sm:$0xff] }
 0xd4c   : > { %v3601_v60 = vadd.f32 %v3600_v50, %v3599_v5  ;;  %vm9990_vm8 = vmmov %vm9989_vm12  ;;  %v3607_v5 = vadd.f32 %v3606_v48, %v3605_v14 }
 0xd4d   : > { %v3614_v58 = vrot.slane %v3613_v35, 1 }
 0xd4e   : > { %v3602_v8 = vrot.slane %v3601_v60, 1  ;;  %v3608_v50 = vrot.slane %v3607_v5, 1 }
 0xd4f   : > { %v3615_v21 = vadd.f32 %v3614_v58, %v3613_v35  ;;  %v10014_v35 = vld [vmem:[#allocation56_spill] sm:$0xff] }
 0xd50   : > { %v3603_v61 = vadd.f32 %v3602_v8, %v3601_v60 }
 0xe18   : > { %v5570_v15 = vpop.f32.mrb[48].mxu0  ;;  %v5605_v44 = vpop.f32.mrb[48].mxu1 }
 0xe19   : > { %v5571_v3 = vpop.f32.mrb[49].mxu0  ;;  %v5606_v39 = vpop.f32.mrb[49].mxu1 }
 0xe1a   : > { %v5572_v29 = vadd.f32 %v5571_v3, %v5570_v15  ;;  %v5607_v46 = vadd.f32 %v5606_v39, %v5605_v44  ;;  %v10015_v15 = vld [vmem:[#allocation57_spill] sm:$0xff]  ;;  %v3597_v44 = vadd.f32 %v3596_v59, %v3595_v36  ;;  %v3609_v3 = vadd.f32 %v3608_v50, %v3607_v5  ;;  %v10017_v39 = vld [vmem:[#allocation58_spill] sm:$0xff] }
 0xe1c   : > { %v3400_v45 = vadd.f32 %v5607_v46, %v5572_v29  ;;  %v10019_v29 = vld [vmem:[#allocation59_spill] sm:$0xff] }
 0xe1e   : > { %5008 = vmatmul.mubr.msk.f32.vlgmr.msra.gmra.mrb[50].mxu0 %vm9989_vm12, %v3400_v45  ;;  %5017 = vmatmul.mubr.msk.f32.vlgmr.msra.gmra.mrb[50].mxu1 %vm9990_vm8, %v3400_v45  ;;  %vm9992_vm12 = vnez %v9544_v51  ;;  %vm9993_vm8 = vnez %v9537_v18 }
 0xe1f   : > { %6239 = vmatpush3.bf16.msk.msra.mxu0 %vm9991_vm3, %v9640_v38  ;;  %6271 = vmatpush3.bf16.msk.msra.mxu1 %vm9905_vm15, %v9640_v38  ;;  %vm9994_vm15 = vnez %v9553_v41  ;;  %vm9995_vm3 = vnez %v9546_v24 }
 0xe20   : > { %3680 = vmatprep.mubr.f32.mxu0 %v3603_v61  ;;  %3750 = vmatprep.mubr.f32.mxu1 %v3615_v21 }
 0xe21   : > { %6241 = vmatprep.subr.msk.bf16.mxu0 %vm9950_vm13, %v9640_v38  ;;  %6273 = vmatprep.subr.msk.bf16.mxu1 %vm9951_vm7, %v9640_v38  ;;  %vm9996_vm7 = vnez %v9564_v12 }
 0xe23   : > { %6243 = vmatpush3.bf16.msk.msra.mxu0 %vm9992_vm12, %v9640_v38  ;;  %6275 = vmatpush3.bf16.msk.msra.mxu1 %vm9993_vm8, %v9640_v38  ;;  %vm9999_vm8 = vnez %v9582_v32 }
 0xe24   : > { %6245 = vmatprep.subr.msk.bf16.mxu0 %vm9994_vm15, %v9640_v38  ;;  %6277 = vmatprep.subr.msk.bf16.mxu1 %vm9995_vm3, %v9640_v38  ;;  %vm10000_vm15 = vnez %v9585_v13  ;;  %vm10001_vm3 = vnez %v9588_v62 }
 0xe27   : > { %6247 = vmatpush3.bf16.msk.msra.mxu0 %vm9912_vm6, %v9640_v38  ;;  %6279 = vmatpush3.bf16.msk.msra.mxu1 %vm9996_vm7, %v9640_v38  ;;  %vm10002_vm6 = vnez %v9601_v30 }
 0xe28   : > { %6249 = vmatprep.subr.msk.bf16.mxu0 %vm9999_vm8, %v9640_v38  ;;  %6281 = vmatprep.subr.msk.bf16.mxu1 %vm10000_vm15, %v9640_v38  ;;  %vm10003_vm15 = vnez %v9611_v47 }
 0xe2b   : > { %6251 = vmatpush3.bf16.msk.msra.mxu0 %vm10001_vm3, %v9640_v38  ;;  %6283 = vmatpush3.bf16.msk.msra.mxu1 %vm10002_vm6, %v9640_v38  ;;  %vm10004_vm3 = vnez %v9615_v28  ;;  %vm10005_vm6 = vnez %v9621_v26 }
 0xe2c   : > { %6253 = vmatprep.subr.msk.bf16.mxu0 %vm9843_vm5, %v9640_v38  ;;  %6285 = vmatprep.subr.msk.bf16.mxu1 %vm9959_vm0, %v9640_v38  ;;  %vm10006_vm5 = vnez %v9627_v22 }
 0xe2f   : > { %6255 = vmatpush3.bf16.msk.msra.mxu0 %vm10003_vm15, %v9640_v38  ;;  %6287 = vmatpush3.bf16.msk.msra.mxu1 %vm10004_vm3, %v9640_v38  ;;  %vm10007_vm15 = vnez %v9921_v19  ;;  %vm10008_vm3 = vnez %v9923_v49 }
 0xe30   : > { %6257 = vmatprep.subr.msk.bf16.mxu0 %vm10005_vm6, %v9640_v38  ;;  %6289 = vmatprep.subr.msk.bf16.mxu1 %vm10006_vm5, %v9640_v38  ;;  %vm10009_vm6 = vnez %v9925_v43  ;;  %vm10010_vm5 = vnez %v9927_v27 }
 0xe33   : > { %6259 = vmatpush3.bf16.msk.msra.mxu0 %vm9805_vm1, %v9640_v38  ;;  %6291 = vmatpush3.bf16.msk.msra.mxu1 %vm10007_vm15, %v9640_v38  ;;  %vm10011_vm1 = vnez %v9929_v40 }
 0xe34   : > { %6261 = vmatprep.subr.msk.bf16.mxu0 %vm10008_vm3, %v9640_v38  ;;  %6293 = vmatprep.subr.msk.bf16.mxu1 %vm10009_vm6, %v9640_v38 }
 0xe37   : > { %6263 = vmatpush3.bf16.msk.msra.mxu0 %vm10010_vm5, %v9640_v38  ;;  %6295 = vmatpush3.bf16.msk.msra.mxu1 %vm10011_vm1, %v9640_v38  ;;  %vm10016_vm5 = vnez %v10015_v15  ;;  %vm10018_vm1 = vnez %v10017_v39 }
 0xe38   : > { %6265 = vmatprep.subr.msk.bf16.mxu0 %vm9734_vm10, %v9640_v38  ;;  %6297 = vmatprep.subr.msk.bf16.mxu1 %vm9968_vm9, %v9640_v38  ;;  %vm10020_vm10 = vnez %v10019_v29 }
 0xe3b   : > { %6267 = vmatpush3.bf16.msk.msra.mxu0 %vm9969_vm11, %v9640_v38  ;;  %6299 = vmatpush3.bf16.msk.msra.mxu1 %vm10016_vm5, %v9640_v38  ;;  %vm10021_vm11 = vnez %v9688_v23  ;;  %vm10022_vm5 = vnez %v9697_v52 }
 0xe3c   : > { %6301 = vmatprep.subr.msk.bf16.mxu0 %vm10018_vm1, %v9640_v38  ;;  %6309 = vmatprep.subr.msk.bf16.mxu1 %vm10020_vm10, %v9640_v38 }
 0xe3e   : > { %3681 = vmatmul.mubr.f32.vlgmr.msra.gmra.mrb[52].mxu0 %v3597_v44  ;;  %3751 = vmatmul.mubr.f32.vlgmr.msra.gmra.mrb[52].mxu1 %v3609_v3  ;;  %v10027_v3 = vld [vmem:[#allocation16_spill] sm:$0xff] }
 0xe3f   : > { %6303 = vmatpush1.bf16.msk.msra.mxu0 %vm9982_vm14, %v9640_v38  ;;  %6311 = vmatpush1.bf16.msk.msra.mxu1 %vm10021_vm11, %v9640_v38  ;;  %vm10023_vm14 = vnez %v9706_v53  ;;  %vm10024_vm11 = vnez %v9487_v56  ;;  %v10033_v53 = vld [vmem:[#allocation36_spill] sm:$0xff] }
 0xe40   : > { %6305 = vmatprep.subr.msk.bf16.mxu0 %vm10022_vm5, %v9640_v38  ;;  %6313 = vmatprep.subr.msk.bf16.mxu1 %vm9983_vm2, %v9640_v38  ;;  %vm10025_vm5 = vnez %v9480_v55  ;;  %v10026_v55 = vld [vmem:[#allocation6_spill] sm:$0xff]  ;;  %vm10043_vm2 = vnez %v9515_v63 }
 0xe41   : > { %3823 = vmatprep.mubr.f32.mxu0 %v9695_v20  ;;  %3894 = vmatprep.mubr.f32.mxu1 %v9695_v20 }
 0xe43   : > { %6307 = vmatpush1.bf16.msk.msra.mxu0 %vm9984_vm4, %v9640_v38  ;;  %6315 = vmatpush1.bf16.msk.msra.mxu1 %vm10023_vm14, %v9640_v38  ;;  %vm10041_vm14 = vnez %v9513_v10  ;;  %vm10042_vm4 = vnez %v9503_v34 }
 0xe44   : > { %6317 = vmatprep.subr.msk.bf16.mxu0 %vm10024_vm11, %v9640_v38  ;;  %6349 = vmatprep.subr.msk.bf16.mxu1 %vm10025_vm5, %v9640_v38  ;;  %vm10039_vm5 = vcmask 261120  }
 0xe45   : > { %vm10040_vm11 = vmmov %vm10039_vm5 }
 0xef1   : > { %v3472_v46 = vpop.f32.mrb[50].mxu0  ;;  %v3543_v8 = vpop.f32.mrb[50].mxu1 }
 0xef2   : > { %v3548_v58 = vmul.f32 0.0078125, %v3472_v46  ;;  %v3550_v45 = vmul.f32 0.0078125, %v3543_v8  ;;  %v3474_v61 = vpop.f32.mrb[51].mxu0  ;;  %v3545_v21 = vpop.f32.mrb[51].mxu1 }
 0xef3   : > { %v3549_v2 = vmul.f32 0.0078125, %v3474_v61  ;;  %v3551_v42 = vmul.f32 0.0078125, %v3545_v21  ;;  %v10029_v21 = vld [vmem:[#allocation34_spill] sm:$0xff] }
 0xef4   : > { %v3552_v1 = vadd.f32 1e-05, %v3548_v58  ;;  %v3554_v14 = vadd.f32 1e-05, %v3550_v45  ;;  %v10028_v58 = vld [vmem:[#allocation17_spill] sm:$0xff] }
 0xef5   : > { %v3553_v0 = vadd.f32 1e-05, %v3549_v2  ;;  %v3555_v48 = vadd.f32 1e-05, %v3551_v42  ;;  %v10030_v42 = vld [vmem:[#allocation18_spill] sm:$0xff] }
 0xef6   : > { %6520 = vrsqrt.f32 %v3552_v1 }
 0xef7   : > { %6522 = vrsqrt.f32 %v3554_v14  ;;  %v10031_v14 = vld [vmem:[#allocation35_spill] sm:$0xff] }
 0xef8   : > { %6524 = vrsqrt.f32 %v3553_v0 }
 0xef9   : > { %6526 = vrsqrt.f32 %v3555_v48  ;;  %v10032_v48 = vld [vmem:[#allocation20_spill] sm:$0xff] }
 0xf00   : > { %v6521_v56 = vpop.eup %6520 }
 0xf01   : > { %v6523_v36 = vpop.eup %6522  ;;  %v3563_v5 = vrot.slane %v6521_v56, %v10026_v55 }
 0xf02   : > { %v6525_v59 = vpop.eup %6524  ;;  %v3571_v50 = vrot.slane %v6523_v36, %v10026_v55  ;;  %v10034_v36 = vld [vmem:[#allocation39_spill] sm:$0xff] }
 0xf03   : > { %v6527_v44 = vpop.eup %6526  ;;  %v3576_v46 = vmul.f32 %v3563_v5, %v10027_v3  ;;  %v3567_v8 = vrot.slane %v6525_v59, %v10026_v55  ;;  %v10035_v5 = vld [vmem:[#allocation37_spill] sm:$0xff]  ;;  %v10036_v59 = vld [vmem:[#allocation40_spill] sm:$0xff] }
 0xf04   : > { %v3578_v45 = vmul.f32 %v3571_v50, %v10028_v58  ;;  %v3575_v61 = vrot.slane %v6527_v44, %v10026_v55  ;;  %v10037_v50 = vld [vmem:[#allocation41_spill] sm:$0xff] }
 0xf05   : > { %v3580_v2 = vmul.f32 %v3576_v46, %v10029_v21  ;;  %v3577_v1 = vmul.f32 %v3567_v8, %v10030_v42  ;;  %v10038_v46 = vld [vmem:[#allocation42_spill] sm:$0xff] }
 0xf06   : > { %v3582_v0 = vmul.f32 %v3578_v45, %v10031_v14  ;;  %v3579_v56 = vmul.f32 %v3575_v61, %v10032_v48 }
 0xf07   : > { %v3581_v6 = vmul.f32 %v3577_v1, %v10033_v53  ;;  %v8967_v20 = vadd.f32 %v3580_v2, %v10034_v36 }
 0xf08   : > { %v3583_v3 = vmul.f32 %v3579_v56, %v10035_v5  ;;  %v8971_v4 = vadd.f32 %v3582_v0, %v10036_v59  ;;  %v10067_v59 = vmov 0.0  }
 0xf09   : > { %v8974_v44 = vadd.f32 %v3581_v6, %v10037_v50  ;;  %v10068_v50 = vld [vmem:[#allocation67_spill] sm:$0xff] }
 0xf0a   : > { %v8977_v58 = vadd.f32 %v3583_v3, %v10038_v46  ;;  %v10065_v3 = vld [vmem:[#allocation66_spill] sm:$0xff] }
 0xf11   : > { %v5640_v8 = vpop.f32.mrb[52].mxu0  ;;  %v5675_v45 = vpop.f32.mrb[52].mxu1 }
 0xf12   : > { %v5641_v21 = vpop.f32.mrb[53].mxu0  ;;  %v5676_v61 = vpop.f32.mrb[53].mxu1 }
 0xf13   : > { %v5642_v42 = vadd.f32 %v5641_v21, %v5640_v8  ;;  %v5677_v53 = vadd.f32 %v5676_v61, %v5675_v45 }
 0xf15   : > { %v3753_v1 = vadd.f32 %v5677_v53, %v5642_v42 }
 0xf17   : > { %5090 = vmatmul.mubr.msk.f32.vlgmr.msra.gmra.mrb[54].mxu0 %vm10039_vm5, %v3753_v1  ;;  %5099 = vmatmul.mubr.msk.f32.vlgmr.msra.gmra.mrb[54].mxu1 %vm10040_vm11, %v3753_v1  ;;  %vm10044_vm5 = vnez %v9537_v18  ;;  %vm10050_vm11 = vnez %v9601_v30 }
 0xf18   : > { %6319 = vmatpush3.bf16.msk.msra.mxu0 %vm10041_vm14, %v9640_v38  ;;  %6351 = vmatpush3.bf16.msk.msra.mxu1 %vm10042_vm4, %v9640_v38  ;;  %vm10045_vm14 = vnez %v9553_v41  ;;  %vm10046_vm4 = vnez %v9546_v24 }
 0xf19   : > { %6321 = vmatprep.subr.msk.bf16.mxu0 %vm9950_vm13, %v9640_v38  ;;  %6353 = vmatprep.subr.msk.bf16.mxu1 %vm10043_vm2, %v9640_v38  ;;  %vm10047_vm13 = vnez %v9571_v57  ;;  %vm10048_vm2 = vnez %v9585_v13 }
 0xf1c   : > { %6323 = vmatpush3.bf16.msk.msra.mxu0 %vm9992_vm12, %v9640_v38  ;;  %6355 = vmatpush3.bf16.msk.msra.mxu1 %vm10044_vm5, %v9640_v38  ;;  %vm10049_vm12 = vnez %v9588_v62  ;;  %vm10051_vm5 = vnez %v9606_v7 }
 0xf1d   : > { %6325 = vmatprep.subr.msk.bf16.mxu0 %vm10045_vm14, %v9640_v38  ;;  %6357 = vmatprep.subr.msk.bf16.mxu1 %vm10046_vm4, %v9640_v38  ;;  %vm10054_vm14 = vnez %v9621_v26  ;;  %vm10055_vm4 = vnez %v9627_v22 }
 0xf20   : > { %6327 = vmatpush3.bf16.msk.msra.mxu0 %vm10047_vm13, %v9640_v38  ;;  %6359 = vmatpush3.bf16.msk.msra.mxu1 %vm9996_vm7, %v9640_v38  ;;  %vm10052_vm7 = vnez %v9611_v47  ;;  %vm10056_vm13 = vnez %v9804_v31 }
 0xf21   : > { %6329 = vmatprep.subr.msk.bf16.mxu0 %vm9999_vm8, %v9640_v38  ;;  %6361 = vmatprep.subr.msk.bf16.mxu1 %vm10048_vm2, %v9640_v38  ;;  %vm10053_vm8 = vnez %v9615_v28  ;;  %vm10058_vm2 = vnez %v9929_v40 }
 0xf24   : > { %6331 = vmatpush3.bf16.msk.msra.mxu0 %vm10049_vm12, %v9640_v38  ;;  %6363 = vmatpush3.bf16.msk.msra.mxu1 %vm10050_vm11, %v9640_v38  ;;  %vm10059_vm12 = vnez %v10012_v11  ;;  %vm10069_vm11 = vnez %v10068_v50 }
 0xf25   : > { %6333 = vmatprep.subr.msk.bf16.mxu0 %vm10051_vm5, %v9640_v38  ;;  %6365 = vmatprep.subr.msk.bf16.mxu1 %vm9959_vm0, %v9640_v38  ;;  %vm10057_vm0 = vnez %v9927_v27 }
 0xf28   : > { %6335 = vmatpush3.bf16.msk.msra.mxu0 %vm10052_vm7, %v9640_v38  ;;  %6367 = vmatpush3.bf16.msk.msra.mxu1 %vm10053_vm8, %v9640_v38  ;;  %vm10072_vm7 = vcmask 261120  }
 0xf29   : > { %6337 = vmatprep.subr.msk.bf16.mxu0 %vm10054_vm14, %v9640_v38  ;;  %6369 = vmatprep.subr.msk.bf16.mxu1 %vm10055_vm4, %v9640_v38  ;;  %vm10073_vm8 = vmmov %vm10072_vm7 }
 0xf2c   : > { %6339 = vmatpush3.bf16.msk.msra.mxu0 %vm10056_vm13, %v9640_v38  ;;  %6371 = vmatpush3.bf16.msk.msra.mxu1 %vm10007_vm15, %v9640_v38  ;;  %vm10061_vm15 = vnez %v10015_v15 }
 0xf2d   : > { %6341 = vmatprep.subr.msk.bf16.mxu0 %vm10008_vm3, %v9640_v38  ;;  %6373 = vmatprep.subr.msk.bf16.mxu1 %vm10009_vm6, %v9640_v38  ;;  %vm10060_vm3 = vnez %v10014_v35  ;;  %vm10066_vm6 = vnez %v10065_v3 }
 0xf30   : > { %6343 = vmatpush3.bf16.msk.msra.mxu0 %vm10057_vm0, %v9640_v38  ;;  %6375 = vmatpush3.bf16.msk.msra.mxu1 %vm10058_vm2, %v9640_v38 }
 0xf31   : > { %6345 = vmatprep.subr.msk.bf16.mxu0 %vm10059_vm12, %v9640_v38  ;;  %6377 = vmatprep.subr.msk.bf16.mxu1 %vm9968_vm9, %v9640_v38  ;;  %vm10063_vm9 = vnez %v9688_v23 }
 0xf34   : > { %6347 = vmatpush3.bf16.msk.msra.mxu0 %vm10060_vm3, %v9640_v38  ;;  %6379 = vmatpush3.bf16.msk.msra.mxu1 %vm10061_vm15, %v9640_v38 }
 0xf35   : > { %6381 = vmatprep.subr.msk.bf16.mxu0 %vm10018_vm1, %v9640_v38  ;;  %6389 = vmatprep.subr.msk.bf16.mxu1 %vm10020_vm10, %v9640_v38  ;;  %vm10062_vm10 = vnez %v9686_v54  ;;  %vm10064_vm1 = vnez %v9697_v52  ;;  %v10070_v54 = vld [vmem:[#allocation68_spill] sm:$0xff] }
 0xf36   : > { %vm10071_vm5 = vnez %v10070_v54 }
 0xfea   : > { %v3825_v34 = vpop.f32.mrb[54].mxu0  ;;  %v3896_v10 = vpop.f32.mrb[54].mxu1 }
 0xfeb   : > { %v3901_v63 = vmul.f32 0.0078125, %v3825_v34  ;;  %v3903_v25 = vmul.f32 0.0078125, %v3896_v10  ;;  %v3827_v18 = vpop.f32.mrb[55].mxu0  ;;  %v3898_v51 = vpop.f32.mrb[55].mxu1 }
 0xfec   : > { %v3902_v24 = vmul.f32 0.0078125, %v3827_v18  ;;  %v3904_v41 = vmul.f32 0.0078125, %v3898_v51 }
 0xfed   : > { %v3908_v12 = vrot.slane %v3901_v63, %v10026_v55  ;;  %v3916_v57 = vrot.slane %v3903_v25, %v10026_v55 }
 0xfee   : > { %v3912_v32 = vrot.slane %v3902_v24, %v10026_v55  ;;  %v3920_v13 = vrot.slane %v3904_v41, %v10026_v55 }
 0xfef   : > { %v9082_v62 = vsub.f32 %v9997_v37, %v3908_v12  ;;  %v9085_v30 = vsub.f32 %v9998_v16, %v3916_v57 }
 0xff0   : > { %v9088_v33 = vsub.f32 %v9987_v9, %v3912_v32  ;;  %v9091_v7 = vsub.f32 %v9988_v17, %v3920_v13 }
 0xff1   : > { %v3925_v47 = vmul.f32 %v9082_v62, %v9082_v62  ;;  %v3927_v28 = vmul.f32 %v9085_v30, %v9085_v30 }
 0xff2   : > { %v3926_v26 = vmul.f32 %v9088_v33, %v9088_v33  ;;  %v3928_v22 = vmul.f32 %v9091_v7, %v9091_v7 }
 0xff3   : > { %v3929_v6 = vrot.slane %v3925_v47, 4  ;;  %v3941_v31 = vrot.slane %v3927_v28, 4 }
 0xff4   : > { %v3935_v19 = vrot.slane %v3926_v26, 4  ;;  %v3947_v49 = vrot.slane %v3928_v22, 4 }
 0xff5   : > { %v3930_v43 = vadd.f32 %v3929_v6, %v3925_v47  ;;  %v3942_v27 = vadd.f32 %v3941_v31, %v3927_v28 }
 0xff6   : > { %v3936_v40 = vadd.f32 %v3935_v19, %v3926_v26  ;;  %v3948_v9 = vadd.f32 %v3947_v49, %v3928_v22  ;;  %v10074_v19 = vld [vmem:[#allocation44_spill] sm:$0xff] }
 0xff7   : > { %v3931_v17 = vrot.slane %v3930_v43, 2  ;;  %v3943_v37 = vrot.slane %v3942_v27, 2 }
 0xff8   : > { %v3937_v16 = vrot.slane %v3936_v40, 2  ;;  %v3949_v11 = vrot.slane %v3948_v9, 2 }
 0xff9   : > { %v3932_v60 = vadd.f32 %v3931_v17, %v3930_v43  ;;  %v3944_v35 = vadd.f32 %v3943_v37, %v3942_v27  ;;  %v10075_v27 = vld [vmem:[#allocation45_spill] sm:$0xff]  ;;  %v10076_v17 = vld [vmem:[#allocation47_spill] sm:$0xff] }
 0xffa   : > { %v3938_v15 = vadd.f32 %v3937_v16, %v3936_v40  ;;  %v3950_v39 = vadd.f32 %v3949_v11, %v3948_v9  ;;  %v10077_v16 = vld [vmem:[#allocation50_spill] sm:$0xff] }
 0xffb   : > { %v3933_v29 = vrot.slane %v3932_v60, 1  ;;  %v3945_v2 = vrot.slane %v3944_v35, 1 }
 0xffc   : > { %v3939_v14 = vrot.slane %v3938_v15, 1  ;;  %v3951_v0 = vrot.slane %v3950_v39, 1 }
 0xffd   : > { %v3934_v36 = vadd.f32 %v3933_v29, %v3932_v60  ;;  %v3946_v5 = vadd.f32 %v3945_v2, %v3944_v35  ;;  %v10079_v35 = vld [vmem:[#allocation51_spill] sm:$0xff] }
 0xffe   : > { %v3940_v48 = vadd.f32 %v3939_v14, %v3938_v15  ;;  %v3952_v56 = vadd.f32 %v3951_v0, %v3950_v39  ;;  %v10080_v39 = vld [vmem:[#allocation52_spill] sm:$0xff]  ;;  %v3591_v14 = vmax.f32 %v8977_v58, 0.0 }
0x1000   : > { %4017 = vmatprep.mubr.f32.mxu0 %v3940_v48  ;;  %4087 = vmatprep.mubr.f32.mxu1 %v3952_v56 }
0x1001   : > { %4018 = vmatmul.mubr.f32.vlgmr.msra.gmra.mrb[56].mxu0 %v3934_v36  ;;  %4088 = vmatmul.mubr.f32.vlgmr.msra.gmra.mrb[56].mxu1 %v3946_v5 }
0x1002   : > { %6383 = vmatpush1.bf16.msk.msra.mxu0 %vm10062_vm10, %v9640_v38  ;;  %6391 = vmatpush1.bf16.msk.msra.mxu1 %vm10063_vm9, %v9640_v38 }
0x1003   : > { %6385 = vmatprep.subr.msk.bf16.mxu0 %vm10064_vm1, %v9640_v38  ;;  %6393 = vmatprep.subr.msk.bf16.mxu1 %vm10066_vm6, %v9640_v38 }
0x1004   : > { %4160 = vmatprep.mubr.f32.mxu0 %v10067_v59  ;;  %4231 = vmatprep.mubr.f32.mxu1 %v10067_v59 }
0x1006   : > { %6387 = vmatpush1.bf16.msk.msra.mxu0 %vm10069_vm11, %v9640_v38  ;;  %6395 = vmatpush1.bf16.msk.msra.mxu1 %vm10071_vm5, %v9640_v38 }
0x10d4   : > { %v5710_v23 = vpop.f32.mrb[56].mxu0  ;;  %v5745_v46 = vpop.f32.mrb[56].mxu1 }
0x10d5   : > { %v5711_v52 = vpop.f32.mrb[57].mxu0  ;;  %v5746_v8 = vpop.f32.mrb[57].mxu1 }
0x10d6   : > { %v5712_v45 = vadd.f32 %v5711_v52, %v5710_v23  ;;  %v5747_v21 = vadd.f32 %v5746_v8, %v5745_v46 }
0x10d8   : > { %v4090_v61 = vadd.f32 %v5747_v21, %v5712_v45 }
0x10da   : > { %5172 = vmatmul.mubr.msk.f32.vlgmr.msra.gmra.mrb[58].mxu0 %vm10072_vm7, %v4090_v61  ;;  %5181 = vmatmul.mubr.msk.f32.vlgmr.msra.gmra.mrb[58].mxu1 %vm10073_vm8, %v4090_v61 }
0x11ad   : > { %v4162_v42 = vpop.f32.mrb[58].mxu0  ;;  %v4233_v53 = vpop.f32.mrb[58].mxu1 }
0x11ae   : > { %v4238_v1 = vmul.f32 0.0078125, %v4162_v42  ;;  %v4240_v34 = vmul.f32 0.0078125, %v4233_v53  ;;  %v4164_v10 = vpop.f32.mrb[59].mxu0  ;;  %v4235_v63 = vpop.f32.mrb[59].mxu1 }
0x11af   : > { %v4239_v25 = vmul.f32 0.0078125, %v4164_v10  ;;  %v4241_v38 = vmul.f32 0.0078125, %v4235_v63 }
0x11b0   : > { %v4242_v18 = vadd.f32 1e-05, %v4238_v1  ;;  %v4244_v51 = vadd.f32 1e-05, %v4240_v34 }
0x11b1   : > { %v4243_v24 = vadd.f32 1e-05, %v4239_v25  ;;  %v4245_v41 = vadd.f32 1e-05, %v4241_v38 }
0x11b2   : > { %6528 = vrsqrt.f32 %v4242_v18 }
0x11b3   : > { %6530 = vrsqrt.f32 %v4244_v51 }
0x11b4   : > { %6532 = vrsqrt.f32 %v4243_v24 }
0x11b5   : > { %6534 = vrsqrt.f32 %v4245_v41 }
0x11bc   : > { %v6529_v12 = vpop.eup %6528 }
0x11bd   : > { %v6531_v57 = vpop.eup %6530  ;;  %v4253_v32 = vrot.slane %v6529_v12, %v10026_v55 }
0x11be   : > { %v6533_v13 = vpop.eup %6532  ;;  %v4261_v47 = vrot.slane %v6531_v57, %v10026_v55 }
0x11bf   : > { %v6535_v28 = vpop.eup %6534  ;;  %v4266_v26 = vmul.f32 %v4253_v32, %v9082_v62  ;;  %v4257_v22 = vrot.slane %v6533_v13, %v10026_v55  ;;  %v3588_v62 = vmax.f32 %v8967_v20, 0.0 }
0x11c0   : > { %v4268_v6 = vmul.f32 %v4261_v47, %v9085_v30  ;;  %v4265_v31 = vrot.slane %v6535_v28, %v10026_v55  ;;  %v10078_v30 = vld [vmem:[#allocation48_spill] sm:$0xff]  ;;  %v3590_v55 = vmax.f32 %v8971_v4, 0.0 }
0x11c1   : > { %v4270_v49 = vmul.f32 %v4266_v26, %v10074_v19  ;;  %v4267_v43 = vmul.f32 %v4257_v22, %v9088_v33  ;;  %v3589_v33 = vmax.f32 %v8974_v44, 0.0 }
0x11c2   : > { %v4272_v40 = vmul.f32 %v4268_v6, %v10075_v27  ;;  %v4269_v9 = vmul.f32 %v4265_v31, %v9091_v7  ;;  %v10081_v7 = vld [vmem:[#allocation53_spill] sm:$0xff] }
0x11c3   : > { %v4271_v37 = vmul.f32 %v4267_v43, %v10076_v17  ;;  %v4274_v11 = vadd.f32 %v4270_v49, %v10077_v16 }
0x11c4   : > { %v4273_v60 = vmul.f32 %v4269_v9, %v10078_v30  ;;  %v4276_v15 = vadd.f32 %v4272_v40, %v10079_v35 }
0x11c5   : > { %v4275_v29 = vadd.f32 %v4271_v37, %v10080_v39  ;;  %v4278_v2 = vadd.f32 %v4274_v11, %v3588_v62 }
0x11c6   : > { %v4277_v0 = vadd.f32 %v4273_v60, %v10081_v7  ;;  %v4280_v48 = vadd.f32 %v4276_v15, %v3590_v55 }
0x11c7   : > { %v4279_v20 = vadd.f32 %v4275_v29, %v3589_v33  ;;  %v4282_v56 = vmax.f32 %v4278_v2, 0.0 }
0x11c8   : > { %v4281_v4 = vadd.f32 %v4277_v0, %v3591_v14  ;;  %v4284_v36 = vmax.f32 %v4280_v48, 0.0 }
0x11c9   : > { %v4283_v5 = vmax.f32 %v4279_v20, 0.0  ;;  %4286 = vst [vmem:[%s218_s30] sm:$0xff] %v4282_v56 }
0x11ca   : > { %v4285_v44 = vmax.f32 %v4281_v4, 0.0  ;;  %4288 = vst [vmem:[%s218_s30 + $0x10] sm:$0xff] %v4284_v36 }
0x11cb   : > { %4287 = vst [vmem:[%s218_s30 + $0x8] sm:$0xff] %v4283_v5 }
0x11cc   : > { %4289 = vst [vmem:[%s218_s30 + $0x18] sm:$0xff] %v4285_v44 }
0x11cd   : > { %6549 = shalt.err (!%p6546_p3)
}
0x11ce   : > { %s6550_s16 = scalar_lea.hbm %s9150_s9, 512  ;;  %s6554_s11 = scalar_lea.hbm %s9199_s5, 1024 }
0x11cf   : > { %p6551_p4 = scmp.ne.s32.totalorder %s9150_s9, %s6550_s16  ;;  %p6555_p9 = scmp.lt.u32.totalorder %s9150_s9, %s9199_s5 }
0x11d0   : > { %p6556_p10 = scmp.lt.u32.totalorder %s6554_s11, %s6550_s16  ;;  %p6558_p12 = scmp.lt.u32.totalorder %s6550_s16, %s9150_s9 }
0x11d1   : > { %p6552_p7 = pnand %p6551_p4, %p6677_p5 }
0x11d2   : > { %p6557_p11 = por %p6556_p10, %p6555_p9 }
0x11d3   : > { %p6553_p8 = pneg %p6552_p7 }
0x11d4   : > { %p6559_p13 = por %p6558_p12, %p6557_p11 }
0x11d6   : > { %p6560_p0 = pnand %p6559_p13, %p6553_p8 }
0x11d8   : > { %6563 = shalt.err (!%p6560_p0)
}
0x11d9   : > { %6396 = dma.vmem_to_hbm [thread:$0]  (%p6677_p5), %s9152_s6, 512, %s9150_s9, %s4291_s22  }
0x11da PF: > { %p6402_p1 = scmp.ge.s32.totalorder %s6598_s21, 2  ;;  %s4317_s26 = sand.u32 1, %s6586_s18  }
0x11db   : > { %s4318_s30 = scalar_lea.sflag [#allocation3], %s4317_s26 }
0x11dc   : > { %p6399_p2 = pnand %p6402_p1, %p6681_p6 }
0x11de   : > { %6581 = dma.done.wait (!%p6399_p2), %s4318_s30, 512  }
0x11df   : > { %6583 = vsyncadd (!%p6399_p2), %s4318_s30, 4294966784  ;;  %p15_p3 = scmp.ge.s32.totalorder %s6664_s24, 4   ;;  %s10082_s18 = smov %s6590_s19 }
0x11e0   : > { %s10083_s19 = smov %s6594_s20  ;;  %s10084_s20 = smov %s6675_s27 }
0x11e1   : > { %s10085_s21 = smov %s6664_s24  ;;  %17 = sbr.rel (!%p15_p3) target bundleno = 3 (0x3), region = 75 }
0x11e8   :  { %4323 = vsyncpa [#allocation3], 1 }
0x11e9   :  { %4325 = vsyncpa [#allocation3 + $0x1], 1 }

// kernel: tpu_custom_call.1
= control target key start
LH: loop header
LB: loop body
LE: loop exit
PB: predicated region body
PF: predicated region fallthrough
CT: control target
= control target key end

     0   :  { %10 = vsyncpa [#allocation3], 0  ;;  %s9194_s0 = inlined_call_operand.vmem [shape: f32[8,1024], index: 0, kind: input, shape index: {}]   ;;  %s9195_s1 = inlined_call_operand.vmem [shape: bf16[16,25], index: 1, kind: input, shape index: {}]   ;;  %s9196_s2 = inlined_call_operand.vmem [shape: bf16[8,25], index: 2, kind: input, shape index: {}]   ;;  %s9197_s3 = inlined_call_operand.vmem [shape: bf16[8,25], index: 3, kind: input, shape index: {}]   ;;  %s9198_s4 = inlined_call_operand.vmem [shape: f32[64,16], index: 4, kind: input, shape index: {}]   ;;  %s9199_s5 = inlined_call_operand.hbm [shape: f32[8,1024], index: 5, kind: output, shape index: {}]  }
   0x1   :  { %12 = vsyncpa [#allocation3 + $0x1], 0  ;;  %s6639_s18 = smov 0   ;;  %s6641_s19 = smov 0  }
   0x2   :  { %s6643_s20 = smov 0   ;;  %s6645_s21 = smov 0  }
   0x3 LB: > { %s6660_s22 = sadd.s32 4294967295, %s6598_s21   ;;  %s4364_s23 = sadd.s32 4294967294, %s6598_s21   ;;  %s6598_s21 = sphi %s6645_s21, %s10085_s21   ;;  %s6594_s20 = sphi %s6643_s20, %s10084_s20   ;;  %s6590_s19 = sphi %s6641_s19, %s10083_s19   ;;  %s6586_s18 = sphi %s6639_s18, %s10082_s18  }
   0x4   : > { %s6664_s24 = sadd.s32 1, %s6598_s21   ;;  %s135_s25 = sadd.s32 1, %s6594_s20 }
   0x5   : > { %s132_s26 = ssub.s32 %s6598_s21, %s6664_s24  ;;  %p145_p0 = scmp.ne.s32.totalorder %s6594_s20, %s6590_s19 }
   0x6   : > { %p133_p1 = scmp.eq.s32.totalorder %s132_s26, 0  ;;  %p146_p2 = scmp.eq.s32.totalorder %s6660_s22, 1 }
   0x7   : > { %p151_p3 = scmp.ne.s32.totalorder %s6590_s19, %s6586_s18  ;;  %p152_p4 = scmp.eq.s32.totalorder %s4364_s23, 1 }
   0x8   : > { %s6675_s27 = scalar_select %p133_p1, %s6594_s20, %s135_s25  }
   0x9   : > { %p6677_p5 = por %p146_p2, %p145_p0  ;;  %p6681_p6 = por %p152_p4, %p151_p3 }
   0xa   : > { %p4367_p7 = scmp.ge.s32.totalorder %s6598_s21, 1  ;;  %p191_p8 = scmp.lt.s32.totalorder %s6598_s21, 3 }
   0xc   : > { %p192_p9 = pnand %p4367_p7, %p191_p8 }
   0xe   : > { %195 = sbr.rel (%p192_p9) target bundleno = 4570 (0x11da), region = 40 }
  0x15   : > { %s4369_s30 = sshll.u32 %s6660_s22, 2  ;;  %v231_v0 = vlaneseq  ;;  %v9209_v1 = vmov 0.0   ;;  %s6601_s10 = smov 1   ;;  %v9241_v19 = vmov 1.0|1.0   ;;  %v815_v20 = vld [vmem:[%s9198_s4] sm:$0xff] }
  0x16   : > { %p220_p10 = scmp.lt.s32.totalorder %s4369_s30, 7  ;;  %912 = vmatprep.mubr.f32.mxu0 %v9209_v1  ;;  %1025 = vmatprep.mubr.f32.mxu1 %v9209_v1  ;;  %s6602_s11 = smov 127   ;;  %vm823_vm12 = vcmask 130048   ;;  %v816_v21 = vld [vmem:[%s9198_s4 + $0x8] sm:$0xff]  ;;  %v817_v22 = vld [vmem:[%s9198_s4 + $0x10] sm:$0xff]  ;;  %v818_v23 = vld [vmem:[%s9198_s4 + $0x18] sm:$0xff] }
  0x17   : > { %v6690_v2 = vand.u32 127, %v231_v0  ;;  %v6692_v3 = vshrl.u32 %v231_v0, 7  ;;  %v819_v24 = vld [vmem:[%s9198_s4 + $0x20] sm:$0xff]  ;;  %v820_v25 = vld [vmem:[%s9198_s4 + $0x28] sm:$0xff]  ;;  %v821_v26 = vld [vmem:[%s9198_s4 + $0x30] sm:$0xff]  ;;  %v9203_v28 = vmov 0  }
  0x18   : > { %s10087_s30 = smov (!%p220_p10, %s4369_s30), 7  ;;  %v822_v27 = vld [vmem:[%s9198_s4 + $0x38] sm:$0xff]  ;;  %vm1143_vm13 = vcmask 1043456   ;;  %vm1144_vm14 = vcmask 1044480   ;;  %v6605_v31 = vmov 65535   ;;  %v9405_v58 = vmov 0 }
  0x19   : > { %9396 = vst [vmem:[#allocation5_spill] sm:$0xff] %v6690_v2  ;;  %9397 = vst [vmem:[#allocation6_spill] sm:$0xff] %v6692_v3  ;;  %v6695_v4 = vadd.s32 128, %v6690_v2  ;;  %v6698_v5 = vadd.s32 8, %v6692_v3  ;;  %v6701_v6 = vadd.s32 384, %v6690_v2  ;;  %s4370_s6 = sshll.u32 %s10087_s30, 3 }
  0x1a   : > { %v6704_v7 = vand.u32 15, %v6690_v2  ;;  %v6707_v8 = vadd.s32 256, %v6690_v2  ;;  %s223_s9 = scalar_lea.vmem %s9194_s0, %s4370_s6  ;;  %v6820_v29 = vmul.u32 16, %v6690_v2  ;;  %v1145_v32 = vsel %vm1143_vm13, 4294967295, %v6605_v31  ;;  %s216_s23 = sand.u32 1, %s6590_s19  }
  0x1b   : > { %v6713_v9 = vand.u32 15, %v6695_v4  ;;  %v6716_v10 = vand.u32 15, %v6701_v6  ;;  %v6718_v11 = vld [vmem:[%s223_s9] sm:$0xff]  ;;  %v6720_v12 = vld [vmem:[%s223_s9 + $0x8] sm:$0xff]  ;;  %v6722_v13 = vld [vmem:[%s223_s9 + $0x10] sm:$0xff]  ;;  %v333_v33 = vadd.s32 128, %v6692_v3 }
  0x1c   : > { %vm791_vm0 = vcmp.eq.s32.totalorder %v6692_v3, %v6704_v7  ;;  %vm795_vm1 = vcmp.eq.s32.totalorder %v6698_v5, %v6704_v7  ;;  %v6729_v14 = vand.u32 15, %v6707_v8  ;;  %v6443_v15 = vpack.i.bf16 %v6720_v12, %v6718_v11  ;;  %v6733_v16 = vld [vmem:[%s223_s9 + $0x18] sm:$0xff]  ;;  %s4368_s25 = sshll.u32 %s216_s23, 5  ;;  %s5187_s26 = sshll.u32 %s6660_s22, 9 }
  0x1d   : > { %vm792_vm2 = vcmp.eq.s32.totalorder %v6692_v3, %v6713_v9  ;;  %vm796_vm3 = vcmp.eq.s32.totalorder %v6698_v5, %v6713_v9  ;;  %vm6739_vm4 = vmpackc.low %vm795_vm1, %vm791_vm0  ;;  %v6448_v18 = vpack.i.bf16 %v6733_v16, %v6722_v13  ;;  %vm794_vm6 = vcmp.eq.s32.totalorder %v6692_v3, %v6716_v10  ;;  %s218_s30 = scalar_lea.vmem [#allocation2], %s4368_s25  ;;  %s9150_s9 = scalar_lea.hbm %s9199_s5, %s5187_s26 }
  0x1e   : > { %vm5748_vm5 = vmpackc.low %vm796_vm3, %vm792_vm2  ;;  %vm798_vm7 = vcmp.eq.s32.totalorder %v6698_v5, %v6716_v10  ;;  %6444 = vrot.lane.b32.xlu0 %v6443_v15, %s6601_s10  ;;  %6454 = vrot.lane.b32.xlu1 %v6443_v15, %s6602_s11  ;;  %vm793_vm9 = vcmp.eq.s32.totalorder %v6692_v3, %v6729_v14  ;;  %vm797_vm10 = vcmp.eq.s32.totalorder %v6698_v5, %v6729_v14  ;;  %v285_v30 = vadd.s32 4294967295, %v6713_v9  ;;  %s4305_s6 = sshll.u32 %s218_s30, 4  ;;  %s4291_s22 = scalar_lea.sflag [#allocation3], %s216_s23  ;;  %s9152_s6 = int_to_ptr.vmem [resolvable:$true] %s4305_s6 }
  0x1f   : > { %vm5752_vm8 = vmpackc.low %vm798_vm7, %vm794_vm6  ;;  %5749 = vmatprep.subr.msk.bf16.mxu0 %vm5748_vm5, %v9241_v19  ;;  %v334_v34 = vadd.s32 136, %v6692_v3  ;;  %v6826_v35 = vadd.s32 1, %v6704_v7  ;;  %v6829_v36 = vadd.s32 16, %v6820_v29  ;;  %v365_v37 = vadd.s32 384, %v6692_v3  ;;  %s6536_s12 = scalar_lea.vmem %s9152_s6, 512  ;;  %s6608_s13 = smov [#allocation2]  }
  0x20   : > { %5753 = vmatprep.subr.msk.bf16.mxu1 %vm5752_vm8, %v9241_v19  ;;  %vm5754_vm11 = vmpackc.low %vm797_vm10, %vm793_vm9  ;;  %5751 = vmatpush1.bf16.msk.msra.mxu0 %vm6739_vm4, %v9241_v19  ;;  %v366_v38 = vadd.s32 392, %v6692_v3  ;;  %v6834_v39 = vadd.s32 1, %v6729_v14  ;;  %v6837_v40 = vadd.s32 4294967295, %v6704_v7  ;;  %v6840_v41 = vadd.s32 4294967295, %v6716_v10  ;;  %p6537_p11 = scmp.ne.s32.totalorder %s9152_s6, %s6536_s12  ;;  %s6540_s14 = sshll.u32 %s6608_s13, 4  ;;  %s6541_s14 = int_to_ptr.vmem [resolvable:$false] %s6540_s14 }
  0x21   : > { %5755 = vmatpush1.bf16.msk.msra.mxu1 %vm5754_vm11, %v9241_v19  ;;  %9400 = vst [vmem:[#allocation7_spill] sm:$0xff] %v6826_v35  ;;  %v6843_v42 = vadd.s32 4294967295, %v6729_v14  ;;  %vm289_vm15 = vcmp.ge.s32.totalorder %v285_v30, 0  ;;  %v6846_v43 = vadd.s32 1, %v6713_v9  ;;  %v6848_v44 = vsel %vm1144_vm14, %v1145_v32, 0  ;;  %s6542_s15 = scalar_lea.vmem %s6541_s14, 1024  ;;  %p6543_p0 = scmp.lt.s32.totalorder %s9152_s6, %s6541_s14 }
  0x22   : > { %6449 = vrot.lane.b32.xlu0 %v6448_v18, %s6601_s10  ;;  %6459 = vrot.lane.b32.xlu1 %v6448_v18, %s6602_s11  ;;  %9401 = vst [vmem:[#allocation8_spill] sm:$0xff] %v6834_v39  ;;  %9403 = vst [vmem:[#allocation10_spill] sm:$0xff] %v6848_v44  ;;  %v6851_v45 = vadd.s32 1, %v6716_v10  ;;  %vm398_vm0 = vcmp.ge.s32.totalorder %v333_v33, %v6820_v29  ;;  %vm399_vm1 = vcmp.ge.s32.totalorder %v334_v34, %v6820_v29  ;;  %v9423_v14 = vmov 0  ;;  %p6538_p12 = pnand %p6537_p11, %p6677_p5  ;;  %p6544_p1 = scmp.lt.s32.totalorder %s6542_s15, %s6536_s12 }
  0x23   : > { %4463 = vmatmul.mubr.msk.f32.vlgmr.msra.gmra.mrb[0].mxu0 %vm823_vm12, %v815_v20  ;;  %9402 = vst [vmem:[#allocation9_spill] sm:$0xff] %v6846_v43  ;;  %v349_v46 = vadd.s32 256, %v6692_v3  ;;  %v350_v47 = vadd.s32 264, %v6692_v3  ;;  %vm463_vm2 = vcmp.lt.s32.totalorder %v333_v33, %v6829_v36  ;;  %vm464_vm3 = vcmp.lt.s32.totalorder %v334_v34, %v6829_v36 }
  0x24   : > { %4475 = vmatmul.mubr.msk.f32.vlgmr.msra.gmra.mrb[0].mxu1 %vm823_vm12, %v815_v20  ;;  %918 = vmatprep.mubr.f32.mxu0 %v9209_v1  ;;  %9404 = vst [vmem:[#allocation11_spill] sm:$0xff] %v6851_v45  ;;  %vm430_vm4 = vcmp.ge.s32.totalorder %v365_v37, %v6820_v29  ;;  %vm495_vm8 = vcmp.lt.s32.totalorder %v365_v37, %v6829_v36  ;;  %v335_v48 = vadd.s32 144, %v6692_v3  ;;  %v336_v49 = vadd.s32 152, %v6692_v3  ;;  %vm6929_vm11 = vmand %vm398_vm0, %vm463_vm2  ;;  %p6539_p13 = pneg %p6538_p12  ;;  %p6545_p2 = por %p6544_p1, %p6543_p0 }
  0x25   : > { %1031 = vmatprep.mubr.f32.mxu1 %v9209_v1  ;;  %vm496_vm9 = vcmp.lt.s32.totalorder %v366_v38, %v6829_v36  ;;  %v6873_v50 = vadd.s32 400, %v6692_v3  ;;  %v6876_v51 = vadd.s32 408, %v6692_v3  ;;  %v6887_v52 = vadd.s32 16, %v6692_v3  ;;  %vm6937_vm5 = vmand %vm399_vm1, %vm464_vm3 }
  0x26   : > { %v6890_v53 = vadd.s32 24, %v6692_v3  ;;  %v6903_v54 = vadd.s32 272, %v6692_v3  ;;  %v6906_v55 = vadd.s32 280, %v6692_v3  ;;  %v6913_v56 = vadd.s32 160, %v6692_v3  ;;  %p6546_p3 = pnand %p6545_p2, %p6539_p13 }
  0x27   : > { %4464 = vmatmul.mubr.msk.f32.gmra.mrb[2].mxu0 %vm823_vm12, %v816_v21  ;;  %v6916_v57 = vadd.s32 168, %v6692_v3  ;;  %v6954_v62 = vadd.s32 416, %v6692_v3  ;;  %v6957_v63 = vadd.s32 424, %v6692_v3  ;;  %vm9414_vm1 = vcmp.ge.s32.totalorder %v366_v38, %v6820_v29 }
  0x28   : > { %4476 = vmatmul.mubr.msk.f32.gmra.mrb[2].mxu1 %vm823_vm12, %v816_v21  ;;  %924 = vmatprep.mubr.f32.mxu0 %v9209_v1  ;;  %vm6963_vm3 = vmand %vm9414_vm1, %vm496_vm9  ;;  %v6972_v7 = vadd.s32 32, %v6692_v3  ;;  %v6975_v9 = vadd.s32 40, %v6692_v3  ;;  %vm9417_vm2 = vcmp.lt.s32.totalorder %v349_v46, %v6829_v36  ;;  %vm9418_vm0 = vcmp.ge.s32.totalorder %v349_v46, %v6820_v29 }
  0x29   : > { %1037 = vmatprep.mubr.f32.mxu1 %v9209_v1  ;;  %vm6981_vm9 = vmand %vm9418_vm0, %vm9417_vm2  ;;  %vm9421_vm0 = vcmp.lt.s32.totalorder %v6692_v3, %v6829_v36  ;;  %vm9422_vm2 = vcmp.ge.s32.totalorder %v6692_v3, %v6820_v29  ;;  %vm9426_vm13 = vcmp.ge.s32.totalorder %v6698_v5, %v6820_v29  ;;  %v9427_v15 = vmov 0 }
  0x2a   : > { %vm7001_vm1 = vmand %vm9422_vm2, %vm9421_vm0  ;;  %vm9429_vm14 = vcmp.lt.s32.totalorder %v350_v47, %v6829_v36  ;;  %vm9430_vm6 = vcmp.ge.s32.totalorder %v350_v47, %v6820_v29  ;;  %v9431_v17 = vmov 0  ;;  %v7030_v18 = vadd.s32 288, %v6692_v3 }
  0x2b   : > { %4465 = vmatmul.mubr.msk.f32.gmra.mrb[4].mxu0 %vm823_vm12, %v817_v22  ;;  %v9424_v14 = vsel %vm7001_vm1, 4294967295, %v9423_v14  ;;  %vm7019_vm7 = vmand %vm9430_vm6, %vm9429_vm14  ;;  %v9434_v20 = vmov 0  ;;  %vm9437_vm6 = vcmp.ge.s32.totalorder %v6840_v41, 0  ;;  %v9438_v21 = vmov 0 }
  0x2c   : > { %4477 = vmatmul.mubr.msk.f32.gmra.mrb[4].mxu1 %vm823_vm12, %v817_v22  ;;  %930 = vmatprep.mubr.f32.mxu0 %v9209_v1  ;;  %v9432_v17 = vsel %vm7019_vm7, 4294967295, %v9431_v17  ;;  %vm9441_vm0 = vcmp.lt.s32.totalorder %v335_v48, %v6829_v36  ;;  %v9443_v22 = vmov 0  ;;  %vm9454_vm2 = vcmp.ge.s32.totalorder %v6873_v50, %v6820_v29 }
  0x2d   : > { %1043 = vmatprep.mubr.f32.mxu1 %v9209_v1  ;;  %v7134_v41 = vadd.s32 176, %v6692_v3  ;;  %v9512_v10 = vmov 0  ;;  %v375_v38 = vadd.s32 464, %v6692_v3 }
  0x2f   : > { %4466 = vmatmul.mubr.msk.f32.gmra.mrb[6].mxu0 %vm823_vm12, %v818_v23 }
  0x30   : > { %4478 = vmatmul.mubr.msk.f32.gmra.mrb[6].mxu1 %vm823_vm12, %v818_v23  ;;  %936 = vmatprep.mubr.f32.mxu0 %v9209_v1  ;;  %v9447_v23 = vmov 0 }
  0x31   : > { %1049 = vmatprep.mubr.f32.mxu1 %v9209_v1 }
  0x33   : > { %4467 = vmatmul.mubr.msk.f32.gmra.mrb[8].mxu0 %vm823_vm12, %v819_v24 }
  0x34   : > { %4479 = vmatmul.mubr.msk.f32.gmra.mrb[8].mxu1 %vm823_vm12, %v819_v24  ;;  %942 = vmatprep.mubr.f32.mxu0 %v9209_v1  ;;  %v7070_v24 = vadd.s32 296, %v6692_v3 }
  0x35   : > { %1055 = vmatprep.mubr.f32.mxu1 %v9209_v1 }
  0x37   : > { %4468 = vmatmul.mubr.msk.f32.gmra.mrb[10].mxu0 %vm823_vm12, %v820_v25 }
  0x38   : > { %4480 = vmatmul.mubr.msk.f32.gmra.mrb[10].mxu1 %vm823_vm12, %v820_v25  ;;  %948 = vmatprep.mubr.f32.mxu0 %v9209_v1 }
  0x39   : > { %1061 = vmatprep.mubr.f32.mxu1 %v9209_v1 }
  0x3b   : > { %4469 = vmatmul.mubr.msk.f32.gmra.mrb[12].mxu0 %vm823_vm12, %v821_v26 }
  0x3c   : > { %4481 = vmatmul.mubr.msk.f32.gmra.mrb[12].mxu1 %vm823_vm12, %v821_v26  ;;  %954 = vmatprep.mubr.f32.mxu0 %v9209_v1 }
  0x3d   : > { %1067 = vmatprep.mubr.f32.mxu1 %v9209_v1 }
  0x3f   : > { %4470 = vmatmul.mubr.msk.f32.gmra.mrb[14].mxu0 %vm823_vm12, %v822_v27 }
  0x40   : > { %4482 = vmatmul.mubr.msk.f32.gmra.mrb[14].mxu1 %vm823_vm12, %v822_v27  ;;  %1191 = vmatprep.mubr.bf16.mxu0 %v9203_v28  ;;  %vm6606_vm12 = vmmov 1   ;;  %v9450_v27 = vmov 0 }
  0x41   : > { %1234 = vmatprep.mubr.bf16.mxu1 %v9203_v28  ;;  %vm6921_vm10 = vmpackc.low %vm6606_vm12, %vm289_vm15  ;;  %v9614_v28 = vmov 0 }
  0x42   : > { %v9406_v58 = vsel %vm6921_vm10, 4294967295, %v9405_v58  ;;  %vm6945_vm15 = vmand %vm430_vm4, %vm495_vm8  ;;  %vm9425_vm8 = vcmp.lt.s32.totalorder %v6698_v5, %v6829_v36 }
  0x43   : > { %9407 = vst [vmem:[#allocation12_spill] sm:$0xff] %v9406_v58  ;;  %vm7011_vm4 = vmand %vm9426_vm13, %vm9425_vm8  ;;  %vm9433_vm8 = vcmp.ge.s32.totalorder %v6837_v40, 0  ;;  %vm9442_vm13 = vcmp.ge.s32.totalorder %v335_v48, %v6820_v29  ;;  %v9467_v40 = vmov 0 }
  0x44   : > { %v9428_v15 = vsel %vm7011_vm4, 4294967295, %v9427_v15  ;;  %vm7035_vm4 = vmpackc.low %vm6606_vm12, %vm9433_vm8  ;;  %vm9445_vm8 = vcmp.lt.s32.totalorder %v336_v49, %v6829_v36 }
  0x45   : > { %v9435_v20 = vsel %vm7035_vm4, 4294967295, %v9434_v20  ;;  %vm7042_vm14 = vmpackc.low %vm6606_vm12, %vm9437_vm6  ;;  %vm9446_vm4 = vcmp.ge.s32.totalorder %v336_v49, %v6820_v29 }
  0x46   : > { %9436 = vst [vmem:[#allocation13_spill] sm:$0xff] %v9435_v20  ;;  %v9439_v21 = vsel %vm7042_vm14, 4294967295, %v9438_v21  ;;  %vm7051_vm1 = vmand %vm9442_vm13, %vm9441_vm0  ;;  %vm9449_vm13 = vcmp.ge.s32.totalorder %v6843_v42, 0  ;;  %vm9485_vm14 = vcmp.lt.s32.totalorder %v6826_v35, 16 }
  0x47   : > { %9440 = vst [vmem:[#allocation14_spill] sm:$0xff] %v9439_v21  ;;  %v9444_v22 = vsel %vm7051_vm1, 4294967295, %v9443_v22  ;;  %vm7059_vm7 = vmand %vm9446_vm4, %vm9445_vm8  ;;  %vm9453_vm8 = vcmp.lt.s32.totalorder %v6873_v50, %v6829_v36  ;;  %vm9466_vm1 = vcmp.ge.s32.totalorder %v6890_v53, %v6820_v29 }
  0x48   : > { %v9448_v23 = vsel %vm7059_vm7, 4294967295, %v9447_v23  ;;  %vm7075_vm4 = vmpackc.low %vm6606_vm12, %vm9449_vm13  ;;  %vm9461_vm12 = vcmp.lt.s32.totalorder %v6887_v52, %v6829_v36  ;;  %vm9462_vm13 = vcmp.ge.s32.totalorder %v6887_v52, %v6820_v29 }
  0x49   : > { %v9451_v27 = vsel %vm7075_vm4, 4294967295, %v9450_v27  ;;  %vm7085_vm6 = vmand %vm9454_vm2, %vm9453_vm8  ;;  %vm9457_vm2 = vcmp.lt.s32.totalorder %v6876_v51, %v6829_v36  ;;  %vm9458_vm8 = vcmp.ge.s32.totalorder %v6876_v51, %v6820_v29  ;;  %vm9465_vm4 = vcmp.lt.s32.totalorder %v6890_v53, %v6829_v36 }
  0x4a   : > { %9452 = vst [vmem:[#allocation15_spill] sm:$0xff] %v9451_v27  ;;  %vm7103_vm0 = vmand %vm9458_vm8, %vm9457_vm2  ;;  %vm9472_vm8 = vcmp.ge.s32.totalorder %v6903_v54, %v6820_v29  ;;  %v9543_v51 = vmov 0 }
  0x4b   : > { %vm7113_vm7 = vmand %vm9462_vm13, %vm9461_vm12  ;;  %vm9469_vm13 = vcmp.lt.s32.totalorder %v6690_v2, 1  ;;  %vm9482_vm12 = vcmp.ge.s32.totalorder %v6913_v56, %v6820_v29 }
  0x4c   : > { %vm7123_vm2 = vmand %vm9466_vm1, %vm9465_vm4  ;;  %vm9470_vm1 = vcmp.lt.s32.totalorder %v6690_v2, 127  ;;  %vm9471_vm4 = vcmp.lt.s32.totalorder %v6903_v54, %v6829_v36  ;;  %v7168_v54 = vadd.s32 184, %v6692_v3 }
  0x4d   : > { %v9468_v40 = vsel %vm7123_vm2, 4294967295, %v9467_v40  ;;  %vm7146_vm2 = vmand %vm9472_vm8, %vm9471_vm4 }
  0x90   : > { %v6445_v25 = vpop.permute.xlu0 %6444  ;;  %v6455_v26 = vpop.permute.xlu1 %6454 }
  0x91   : > { %v6447_v31 = vunpack.i.h.bf16 %v6445_v25  ;;  %v6446_v32 = vunpack.i.l.bf16 %v6445_v25  ;;  %v6457_v33 = vunpack.i.h.bf16 %v6455_v26  ;;  %v6456_v34 = vunpack.i.l.bf16 %v6455_v26 }
  0x93   : > { %v1085_v42 = vsel %vm9469_vm13, %v6446_v32, %v6447_v31  ;;  %v1110_v46 = vsel %vm9470_vm1, %v6456_v34, %v6457_v33  ;;  %vm9475_vm13 = vcmp.lt.s32.totalorder %v6906_v55, %v6829_v36  ;;  %vm9476_vm1 = vcmp.ge.s32.totalorder %v6906_v55, %v6820_v29 }
  0x94   : > { %v4485_v48 = vpack.c.bf16 %v6720_v12, %v1085_v42  ;;  %v6450_v49 = vpop.permute.xlu0 %6449  ;;  %v6460_v50 = vpop.permute.xlu1 %6459  ;;  %vm7161_vm8 = vmand %vm9476_vm1, %vm9475_vm13  ;;  %v7171_v12 = vadd.s32 432, %v6692_v3  ;;  %v9479_v55 = vmov 0  ;;  %vm9481_vm1 = vcmp.lt.s32.totalorder %v6913_v56, %v6829_v36 }
  0x95   : > { %v6452_v25 = vunpack.i.h.bf16 %v6450_v49  ;;  %v6451_v26 = vunpack.i.l.bf16 %v6450_v49  ;;  %v6462_v42 = vunpack.i.h.bf16 %v6460_v50  ;;  %vm7177_vm13 = vmpackc.low %vm6963_vm3, %vm6945_vm15  ;;  %v7192_v49 = vadd.s32 440, %v6692_v3 }
  0x96   : > { %v9480_v55 = vsel %vm7177_vm13, 4294967295, %v9479_v55  ;;  %vm7187_vm4 = vmand %vm9482_vm12, %vm9481_vm1  ;;  %v1120_v61 = vsel %vm9485_vm14, %v1110_v46, 0.0  ;;  %v6461_v0 = vunpack.i.l.bf16 %v6460_v50  ;;  %4486 = vmatprep.subr.msk.bf16.mxu0 %vm6921_vm10, %v4485_v48  ;;  %v9486_v56 = vmov 0 }
  0x97   : > { %vm7202_vm15 = vmpackc.low %vm6937_vm5, %vm6929_vm11  ;;  %vm9488_vm3 = vcmp.lt.s32.totalorder %v6916_v57, %v6829_v36  ;;  %vm9489_vm12 = vcmp.ge.s32.totalorder %v6916_v57, %v6820_v29  ;;  %v9490_v46 = vmov 0  ;;  %vm9492_vm5 = vcmp.lt.s32.totalorder %v6690_v2, 1 }
  0x98   : > { %v9487_v56 = vsel %vm7202_vm15, 4294967295, %v9486_v56  ;;  %vm7212_vm1 = vmand %vm9489_vm12, %vm9488_vm3  ;;  %v1083_v59 = vsel %vm9492_vm5, %v6451_v26, %v6452_v25  ;;  %vm9495_vm3 = vcmp.lt.s32.totalorder %v6690_v2, 127  ;;  %vm9496_vm12 = vcmp.lt.s32.totalorder %v6954_v62, %v6829_v36 }
  0x99   : > { %v9491_v46 = vsel %vm7212_vm1, 4294967295, %v9490_v46  ;;  %vm9493_vm11 = vmmov %vm9492_vm5  ;;  %v1111_v57 = vsel %vm9495_vm3, %v6462_v42, %v6456_v34  ;;  %vm9497_vm14 = vcmp.ge.s32.totalorder %v6954_v62, %v6820_v29  ;;  %v9502_v34 = vmov 0 }
  0x9a   : > { %v1084_v60 = vsel %vm9493_vm11, %v6447_v31, %v6451_v26  ;;  %vm9494_vm15 = vmmov %vm9492_vm5  ;;  %v4492_v31 = vpack.c.bf16 %v6733_v16, %v1083_v59  ;;  %vm9501_vm5 = vnez %v9432_v17  ;;  %vm9508_vm10 = vcmp.lt.s32.totalorder %v6834_v39, 16  ;;  %v6503_v59 = vld [vmem:[%s9195_s1] sm:$0xff]  }
  0x9b   : > { %v1086_v48 = vsel %vm9494_vm15, %v6452_v25, %v6446_v32  ;;  %vm7234_vm13 = vmand %vm9497_vm14, %vm9496_vm12  ;;  %v4495_v26 = vpack.c.bf16 %v6722_v13, %v1084_v60  ;;  %vm9504_vm14 = vcmp.lt.s32.totalorder %v6957_v63, %v6829_v36  ;;  %v9239_v17 = vmov 1.0  }
  0x9c   : > { %v4488_v1 = vpack.c.bf16 %v6718_v11, %v1086_v48  ;;  %vm9500_vm15 = vmmov %vm9495_vm3  ;;  %vm9505_vm3 = vcmp.ge.s32.totalorder %v6957_v63, %v6820_v29  ;;  %v9514_v63 = vmov 0  ;;  %v1128_v30 = vpack.c.bf16 %v9239_v17, %v1120_v61 }
  0x9d   : > { %v1108_v32 = vsel %vm9500_vm15, %v6461_v0, %v6462_v42  ;;  %vm7247_vm11 = vmpackc.low %vm9501_vm5, %vm6981_vm9  ;;  %v1109_v13 = vsel %vm9500_vm15, %v6457_v33, %v6461_v0  ;;  %vm9509_vm9 = vcmp.lt.s32.totalorder %v6851_v45, 16  ;;  %vm9510_vm5 = vnez %v9424_v14 }
  0x9e   : > { %v9503_v34 = vsel %vm7247_vm11, 4294967295, %v9502_v34  ;;  %vm7257_vm12 = vmand %vm9505_vm3, %vm9504_vm14  ;;  %v1122_v16 = vsel %vm9508_vm10, %v1108_v32, 0.0  ;;  %v1123_v62 = vsel %vm9509_vm9, %v1111_v57, 0.0  ;;  %vm9511_vm11 = vnez %v9428_v15 }
  0x9f   : > { %vm7271_vm1 = vmpackc.low %vm9511_vm11, %vm9510_vm5  ;;  %vm9516_vm10 = vcmp.lt.s32.totalorder %v6972_v7, %v6829_v36  ;;  %vm9517_vm3 = vcmp.ge.s32.totalorder %v6972_v7, %v6820_v29  ;;  %v323_v15 = vadd.s32 48, %v6692_v3  ;;  %v1130_v33 = vpack.c.bf16 %v9239_v17, %v1122_v16 }
  0xa0   : > { %v9513_v10 = vsel %vm7271_vm1, 4294967295, %v9512_v10  ;;  %vm7279_vm14 = vmpackc.low %vm7103_vm0, %vm7085_vm6  ;;  %vm9520_vm6 = vnez %v9435_v20  ;;  %vm9521_vm0 = vnez %v9439_v21  ;;  %vm9522_vm11 = vcmp.lt.s32.totalorder %v6846_v43, 16 }
  0xa1   : > { %v9515_v63 = vsel %vm7279_vm14, 4294967295, %v9514_v63  ;;  %vm7289_vm15 = vmand %vm9517_vm3, %vm9516_vm10  ;;  %4489 = vmatpush1.bf16.msk.msra.mxu0 %vm9520_vm6, %v4488_v1  ;;  %4493 = vmatprep.subr.msk.bf16.mxu1 %vm9521_vm0, %v4492_v31  ;;  %v1121_v7 = vsel %vm9522_vm11, %v1109_v13, 0.0  ;;  %v1131_v37 = vpack.c.bf16 %v9239_v17, %v1123_v62  ;;  %vm9523_vm9 = vnez %v9444_v22 }
  0xa2   : > { %vm9524_vm5 = vnez %v9448_v23  ;;  %v9525_v25 = vmov 0  ;;  %vm9527_vm3 = vcmp.lt.s32.totalorder %v6975_v9, %v6829_v36  ;;  %vm9528_vm6 = vcmp.ge.s32.totalorder %v6975_v9, %v6820_v29 }
  0xa3   : > { %vm7307_vm10 = vmpackc.low %vm9524_vm5, %vm9523_vm9  ;;  %vm9531_vm11 = vnez %v9451_v27  ;;  %v1129_v22 = vpack.c.bf16 %v9239_v17, %v1121_v7  ;;  %vm9532_vm9 = vcmp.lt.s32.totalorder %v7030_v18, %v6829_v36  ;;  %vm9533_vm5 = vcmp.ge.s32.totalorder %v7030_v18, %v6820_v29 }
  0xa4   : > { %v9526_v25 = vsel %vm7307_vm10, 4294967295, %v9525_v25  ;;  %vm7317_vm0 = vmand %vm9528_vm6, %vm9527_vm3  ;;  %4496 = vmatpush1.bf16.msk.msra.mxu1 %vm9531_vm11, %v4495_v26  ;;  %v324_v9 = vadd.s32 56, %v6692_v3  ;;  %v1157_v42 = vand.u32 %v6848_v44, %v1131_v37  ;;  %v1154_v61 = vand.u32 %v6848_v44, %v1130_v33 }
  0xa5   : > { %vm7330_vm10 = vmand %vm9533_vm5, %vm9532_vm9  ;;  %v9536_v18 = vmov 0  ;;  %vm9538_vm5 = vcmp.lt.s32.totalorder %v7070_v24, %v6829_v36  ;;  %vm9539_vm6 = vcmp.ge.s32.totalorder %v7070_v24, %v6820_v29  ;;  %v1151_v47 = vand.u32 %v6848_v44, %v1129_v22 }
  0xa6   : > { %vm7345_vm9 = vmpackc.low %vm7161_vm8, %vm7146_vm2  ;;  %vm9542_vm2 = vnez %v9468_v40  ;;  %v9545_v24 = vmov 0  ;;  %vm9548_vm11 = vcmp.ge.s32.totalorder %v7134_v41, %v6820_v29  ;;  %1204 = vmatprep.subr.bf16.mxu1 %v1157_v42  ;;  %v1148_v40 = vand.u32 %v6848_v44, %v1128_v30 }
  0xa7   : > { %v9537_v18 = vsel %vm7345_vm9, 4294967295, %v9536_v18  ;;  %vm7355_vm3 = vmand %vm9539_vm6, %vm9538_vm5  ;;  %vm9547_vm5 = vcmp.lt.s32.totalorder %v7134_v41, %v6829_v36  ;;  %v9552_v41 = vmov 0  ;;  %1161 = vmatprep.subr.bf16.mxu0 %v1151_v47  ;;  %v356_v48 = vadd.s32 312, %v6692_v3 }
  0xa8   : > { %vm7368_vm8 = vmpackc.low %vm9542_vm2, %vm7113_vm7  ;;  %1205 = vmatpush1.bf16.msra.mxu1 %v1154_v61  ;;  %1162 = vmatpush1.bf16.msra.mxu0 %v1148_v40  ;;  %v9570_v57 = vmov 0  ;;  %v341_v50 = vadd.s32 192, %v6692_v3  ;;  %v373_v26 = vadd.s32 448, %v6692_v3  ;;  %v9581_v32 = vmov 0 }
  0xa9   : > { %v9544_v51 = vsel %vm7368_vm8, 4294967295, %v9543_v51  ;;  %vm7376_vm6 = vmpackc.low %vm7257_vm12, %vm7234_vm13  ;;  %vm9551_vm13 = vnez %v9491_v46  ;;  %v374_v11 = vadd.s32 456, %v6692_v3  ;;  %v9584_v13 = vmov 0 }
  0xaa   : > { %v9546_v24 = vsel %vm7376_vm6, 4294967295, %v9545_v24  ;;  %vm7386_vm14 = vmand %vm9548_vm11, %vm9547_vm5  ;;  %vm9554_vm11 = vcmp.lt.s32.totalorder %v7168_v54, %v6829_v36  ;;  %vm9555_vm5 = vcmp.ge.s32.totalorder %v7168_v54, %v6820_v29  ;;  %v355_v54 = vadd.s32 304, %v6692_v3 }
  0xab   : > { %vm7402_vm12 = vmpackc.low %vm9551_vm13, %vm7187_vm4  ;;  %vm9558_vm13 = vcmp.lt.s32.totalorder %v7171_v12, %v6829_v36  ;;  %vm9562_vm4 = vnez %v9480_v55  ;;  %v342_v16 = vadd.s32 200, %v6692_v3  ;;  %v9587_v62 = vmov 0 }
  0xac   : > { %v9553_v41 = vsel %vm7402_vm12, 4294967295, %v9552_v41  ;;  %vm7412_vm7 = vmand %vm9555_vm5, %vm9554_vm11  ;;  %vm9559_vm12 = vcmp.ge.s32.totalorder %v7171_v12, %v6820_v29  ;;  %vm389_vm11 = vcmp.ge.s32.totalorder %v324_v9, %v6820_v29  ;;  %vm454_vm5 = vcmp.lt.s32.totalorder %v324_v9, %v6829_v36  ;;  %5789 = vmatprep.subr.msk.bf16.mxu1 %vm9562_vm4, %v9241_v19 }
  0xad   : > { %vm7424_vm8 = vmand %vm9559_vm12, %vm9558_vm13  ;;  %v9563_v12 = vmov 0  ;;  %vm9565_vm12 = vcmp.lt.s32.totalorder %v7192_v49, %v6829_v36  ;;  %vm9566_vm13 = vcmp.ge.s32.totalorder %v7192_v49, %v6820_v29  ;;  %vm9569_vm4 = vnez %v9487_v56 }
  0xae   : > { %vm7438_vm2 = vmpackc.low %vm7355_vm3, %vm7330_vm10  ;;  %5757 = vmatprep.subr.msk.bf16.mxu0 %vm9569_vm4, %v9241_v19  ;;  %vm9572_vm3 = vcmp.lt.s32.totalorder %v323_v15, %v6829_v36  ;;  %v9589_v14 = vmov 0  ;;  %v9600_v30 = vmov 0  ;;  %v9603_v33 = vmov 0 }
  0xaf   : > { %v9564_v12 = vsel %vm7438_vm2, 4294967295, %v9563_v12  ;;  %vm7448_vm6 = vmand %vm9566_vm13, %vm9565_vm12  ;;  %vm9573_vm12 = vcmp.ge.s32.totalorder %v323_v15, %v6820_v29  ;;  %vm9576_vm2 = vcmask 203776   ;;  %v9591_v15 = vmov 0 }
  0xb0   : > { %vm7460_vm10 = vmpackc.low %vm7317_vm0, %vm7289_vm15  ;;  %4497 = vmatmul.mubr.msk.bf16.vlgmr.msra.gmra.mrb[16].mxu1 %vm9576_vm2, %v6503_v59  ;;  %vm9580_vm0 = vnez %v9503_v34  ;;  %v9605_v7 = vmov 0  ;;  %v325_v37 = vadd.s32 64, %v6692_v3  ;;  %v326_v1 = vadd.s32 72, %v6692_v3 }
  0xb1   : > { %v9571_v57 = vsel %vm7460_vm10, 4294967295, %v9570_v57  ;;  %vm7468_vm13 = vmand %vm9573_vm12, %vm9572_vm3  ;;  %5791 = vmatpush3.bf16.msk.msra.mxu1 %vm9580_vm0, %v9241_v19  ;;  %vm486_vm12 = vcmp.lt.s32.totalorder %v356_v48, %v6829_v36  ;;  %v357_v22 = vadd.s32 320, %v6692_v3  ;;  %v358_v23 = vadd.s32 328, %v6692_v3 }
  0xb2   : > { %vm7474_vm4 = vmand %vm389_vm11, %vm454_vm5  ;;  %vm485_vm11 = vcmp.lt.s32.totalorder %v355_v54, %v6829_v36  ;;  %vm9583_vm5 = vnez %v9515_v63  ;;  %v343_v9 = vadd.s32 208, %v6692_v3  ;;  %v344_v42 = vadd.s32 216, %v6692_v3 }
  0xb3   : > { %vm9579_vm15 = vmmov %vm9576_vm2  ;;  %vm420_vm2 = vcmp.ge.s32.totalorder %v355_v54, %v6820_v29  ;;  %5793 = vmatprep.subr.msk.bf16.mxu1 %vm9583_vm5, %v9241_v19  ;;  %v9610_v47 = vmov 0  ;;  %v376_v60 = vadd.s32 472, %v6692_v3  ;;  %v327_v54 = vadd.s32 80, %v6692_v3 }
  0xb4   : > { %4490 = vmatmul.mubr.msk.bf16.vlgmr.msra.gmra.mrb[16].mxu0 %vm9579_vm15, %v6503_v59  ;;  %vm7487_vm3 = vmpackc.low %vm7412_vm7, %vm7386_vm14  ;;  %vm421_vm7 = vcmp.ge.s32.totalorder %v356_v48, %v6820_v29  ;;  %vm9586_vm15 = vnez %v9526_v25  ;;  %v328_v49 = vadd.s32 88, %v6692_v3  ;;  %v9635_v17 = vmov 0 }
  0xb5   : > { %v9582_v32 = vsel %vm7487_vm3, 4294967295, %v9581_v32  ;;  %5759 = vmatpush3.bf16.msk.msra.mxu0 %vm7271_vm1, %v9241_v19  ;;  %vm7504_vm14 = vmpackc.low %vm7448_vm6, %vm7424_vm8  ;;  %vm406_vm8 = vcmp.ge.s32.totalorder %v341_v50, %v6820_v29  ;;  %vm471_vm6 = vcmp.lt.s32.totalorder %v341_v50, %v6829_v36  ;;  %vm438_vm1 = vcmp.ge.s32.totalorder %v373_v26, %v6820_v29  ;;  %5795 = vmatpush3.bf16.msk.msra.mxu1 %vm7345_vm9, %v9241_v19 }
  0xb6   : > { %v9585_v13 = vsel %vm7504_vm14, 4294967295, %v9584_v13  ;;  %5761 = vmatprep.subr.msk.bf16.mxu0 %vm9586_vm15, %v9241_v19  ;;  %vm7518_vm5 = vmpackc.low %vm7474_vm4, %vm7468_vm13  ;;  %vm503_vm15 = vcmp.lt.s32.totalorder %v373_v26, %v6829_v36  ;;  %vm439_vm13 = vcmp.ge.s32.totalorder %v374_v11, %v6820_v29  ;;  %vm407_vm3 = vcmp.ge.s32.totalorder %v342_v16, %v6820_v29 }
  0xb7   : > { %v9588_v62 = vsel %vm7518_vm5, 4294967295, %v9587_v62  ;;  %vm7524_vm0 = vmand %vm420_vm2, %vm485_vm11  ;;  %vm504_vm5 = vcmp.lt.s32.totalorder %v374_v11, %v6829_v36  ;;  %vm9593_vm2 = vnez %v9544_v51  ;;  %vm9594_vm11 = vnez %v9546_v24 }
  0xb8   : > { %v9590_v14 = vsel %vm7524_vm0, 4294967295, %v9589_v14  ;;  %vm7533_vm4 = vmand %vm421_vm7, %vm486_vm12  ;;  %5797 = vmatprep.subr.msk.bf16.mxu1 %vm9594_vm11, %v9241_v19  ;;  %vm472_vm9 = vcmp.lt.s32.totalorder %v342_v16, %v6829_v36  ;;  %vm9595_vm12 = vnez %v9553_v41  ;;  %vm9596_vm14 = vnez %v9564_v12 }
  0xb9   : > { %v9592_v15 = vsel %vm7533_vm4, 4294967295, %v9591_v15  ;;  %5763 = vmatpush3.bf16.msk.msra.mxu0 %vm9593_vm2, %v9241_v19  ;;  %vm535_vm7 = vmand %vm406_vm8, %vm471_vm6  ;;  %5799 = vmatpush3.bf16.msk.msra.mxu1 %vm9596_vm14, %v9241_v19  ;;  %vm9597_vm11 = vnez %v9585_v13  ;;  %vm9598_vm8 = vnez %v9590_v14  ;;  %v9620_v26 = vmov 0 }
  0xba   : > { %5765 = vmatprep.subr.msk.bf16.mxu0 %vm9595_vm12, %v9241_v19  ;;  %vm567_vm4 = vmand %vm438_vm1, %vm503_vm15  ;;  %5801 = vmatprep.subr.msk.bf16.mxu1 %vm9597_vm11, %v9241_v19  ;;  %vm9599_vm6 = vnez %v9592_v15  ;;  %vm9602_vm1 = vnez %v9582_v32  ;;  %vm391_vm15 = vcmp.ge.s32.totalorder %v326_v1, %v6820_v29  ;;  %v359_v11 = vadd.s32 336, %v6692_v3 }
  0xbb   : > { %vm568_vm0 = vmand %vm439_vm13, %vm504_vm5  ;;  %vm9607_vm5 = vnez %v9588_v62  ;;  %vm456_vm13 = vcmp.lt.s32.totalorder %v326_v1, %v6829_v36  ;;  %v360_v16 = vadd.s32 344, %v6692_v3  ;;  %v363_v44 = vadd.s32 368, %v6692_v3 }
  0xbc   : > { %vm536_vm2 = vmand %vm407_vm3, %vm472_vm9 }
  0xbd   : > { %5767 = vmatpush3.bf16.msk.msra.mxu0 %vm7460_vm10, %v9241_v19  ;;  %vm7563_vm12 = vmpackc.low %vm9599_vm6, %vm9598_vm8  ;;  %vm487_vm8 = vcmp.lt.s32.totalorder %v357_v22, %v6829_v36 }
  0xbe   : > { %v9601_v30 = vsel %vm7563_vm12, 4294967295, %v9600_v30  ;;  %5769 = vmatprep.subr.msk.bf16.mxu0 %vm9602_vm1, %v9241_v19  ;;  %vm7570_vm9 = vmpackc.low %vm568_vm0, %vm567_vm4  ;;  %5803 = vmatpush3.bf16.msk.msra.mxu1 %vm7563_vm12, %v9241_v19  ;;  %vm390_vm0 = vcmp.ge.s32.totalorder %v325_v37, %v6820_v29  ;;  %vm455_vm4 = vcmp.lt.s32.totalorder %v325_v37, %v6829_v36 }
  0xbf   : > { %v9604_v33 = vsel %vm7570_vm9, 4294967295, %v9603_v33  ;;  %vm7574_vm3 = vmpackc.low %vm536_vm2, %vm535_vm7  ;;  %5805 = vmatprep.subr.msk.bf16.mxu1 %vm7570_vm9, %v9241_v19  ;;  %vm422_vm7 = vcmp.ge.s32.totalorder %v357_v22, %v6820_v29  ;;  %vm423_vm9 = vcmp.ge.s32.totalorder %v358_v23, %v6820_v29  ;;  %v9626_v22 = vmov 0 }
  0xc0   : > { %v9606_v7 = vsel %vm7574_vm3, 4294967295, %v9605_v7  ;;  %vm519_vm2 = vmand %vm390_vm0, %vm455_vm4  ;;  %vm473_vm4 = vcmp.lt.s32.totalorder %v343_v9, %v6829_v36 }
  0xc1   : > { %5771 = vmatpush3.bf16.msk.msra.mxu0 %vm9607_vm5, %v9241_v19  ;;  %vm520_vm6 = vmand %vm391_vm15, %vm456_vm13  ;;  %vm408_vm15 = vcmp.ge.s32.totalorder %v343_v9, %v6820_v29  ;;  %v346_v9 = vadd.s32 232, %v6692_v3 }
  0xc2   : > { %5773 = vmatprep.subr.msk.bf16.mxu0 %vm7574_vm3, %v9241_v19  ;;  %vm488_vm3 = vcmp.lt.s32.totalorder %v358_v23, %v6829_v36  ;;  %vm7608_vm12 = vmpackc.low %vm520_vm6, %vm519_vm2  ;;  %vm409_vm2 = vcmp.ge.s32.totalorder %v344_v42, %v6820_v29  ;;  %vm474_vm6 = vcmp.lt.s32.totalorder %v344_v42, %v6829_v36  ;;  %v345_v23 = vadd.s32 224, %v6692_v3 }
  0xc3   : > { %v9611_v47 = vsel %vm7608_vm12, 4294967295, %v9610_v47  ;;  %vm551_vm0 = vmand %vm422_vm7, %vm487_vm8 }
  0xc4   : > { %vm552_vm13 = vmand %vm423_vm9, %vm488_vm3  ;;  %vm440_vm9 = vcmp.ge.s32.totalorder %v375_v38, %v6820_v29  ;;  %vm505_vm3 = vcmp.lt.s32.totalorder %v375_v38, %v6829_v36 }
  0xc5   : > { %5775 = vmatpush3.bf16.msk.msra.mxu0 %vm7608_vm12, %v9241_v19  ;;  %vm7627_vm5 = vmpackc.low %vm552_vm13, %vm551_vm0  ;;  %vm441_vm0 = vcmp.ge.s32.totalorder %v376_v60, %v6820_v29  ;;  %vm506_vm13 = vcmp.lt.s32.totalorder %v376_v60, %v6829_v36  ;;  %v9630_v60 = vmov 0 }
  0xc6   : > { %v9615_v28 = vsel %vm7627_vm5, 4294967295, %v9614_v28  ;;  %5807 = vmatpush3.bf16.msk.msra.mxu1 %vm7627_vm5, %v9241_v19  ;;  %vm537_vm7 = vmand %vm408_vm15, %vm473_vm4  ;;  %vm392_vm4 = vcmp.ge.s32.totalorder %v327_v54, %v6820_v29  ;;  %vm457_vm5 = vcmp.lt.s32.totalorder %v327_v54, %v6829_v36  ;;  %v377_v54 = vadd.s32 480, %v6692_v3 }
  0xc7   : > { %vm538_vm8 = vmand %vm409_vm2, %vm474_vm6  ;;  %vm393_vm6 = vcmp.ge.s32.totalorder %v328_v49, %v6820_v29 }
  0xc8   : > { %vm7648_vm12 = vmpackc.low %vm538_vm8, %vm537_vm7  ;;  %vm458_vm7 = vcmp.lt.s32.totalorder %v328_v49, %v6829_v36  ;;  %vm424_vm8 = vcmp.ge.s32.totalorder %v359_v11, %v6820_v29 }
  0xc9   : > { %v9621_v26 = vsel %vm7648_vm12, 4294967295, %v9620_v26  ;;  %5777 = vmatprep.subr.msk.bf16.mxu0 %vm7648_vm12, %v9241_v19  ;;  %vm569_vm15 = vmand %vm440_vm9, %vm505_vm3  ;;  %vm425_vm12 = vcmp.ge.s32.totalorder %v360_v16, %v6820_v29 }
  0xca   : > { %vm570_vm2 = vmand %vm441_vm0, %vm506_vm13  ;;  %vm489_vm0 = vcmp.lt.s32.totalorder %v359_v11, %v6829_v36 }
  0xcb   : > { %vm7669_vm9 = vmpackc.low %vm570_vm2, %vm569_vm15  ;;  %vm490_vm15 = vcmp.lt.s32.totalorder %v360_v16, %v6829_v36  ;;  %v378_v16 = vadd.s32 488, %v6692_v3 }
  0xcc   : > { %v9627_v22 = vsel %vm7669_vm9, 4294967295, %v9626_v22  ;;  %5809 = vmatprep.subr.msk.bf16.mxu1 %vm7669_vm9, %v9241_v19  ;;  %vm521_vm3 = vmand %vm392_vm4, %vm457_vm5  ;;  %vm410_vm4 = vcmp.ge.s32.totalorder %v345_v23, %v6820_v29 }
  0xcd   : > { %vm522_vm13 = vmand %vm393_vm6, %vm458_vm7  ;;  %vm475_vm6 = vcmp.lt.s32.totalorder %v345_v23, %v6829_v36  ;;  %v330_v23 = vadd.s32 104, %v6692_v3 }
  0xce   : > { %vm7686_vm2 = vmpackc.low %vm522_vm13, %vm521_vm3  ;;  %vm411_vm3 = vcmp.ge.s32.totalorder %v346_v9, %v6820_v29  ;;  %vm476_vm13 = vcmp.lt.s32.totalorder %v346_v9, %v6829_v36 }
  0xcf   : > { %v9631_v60 = vsel %vm7686_vm2, 4294967295, %v9630_v60  ;;  %5779 = vmatpush3.bf16.msk.msra.mxu0 %vm7686_vm2, %v9241_v19  ;;  %vm553_vm5 = vmand %vm424_vm8, %vm489_vm0  ;;  %vm507_vm0 = vcmp.lt.s32.totalorder %v377_v54, %v6829_v36 }
  0xd0   : > { %9632 = vst [vmem:[#allocation30_spill] sm:$0xff] %v9631_v60  ;;  %vm554_vm7 = vmand %vm425_vm12, %vm490_vm15  ;;  %vm442_vm12 = vcmp.ge.s32.totalorder %v377_v54, %v6820_v29  ;;  %v362_v54 = vadd.s32 360, %v6692_v3 }
  0xd1   : > { %vm7703_vm9 = vmpackc.low %vm554_vm7, %vm553_vm5  ;;  %vm443_vm5 = vcmp.ge.s32.totalorder %v378_v16, %v6820_v29  ;;  %vm508_vm7 = vcmp.lt.s32.totalorder %v378_v16, %v6829_v36 }
  0xd2   : > { %v9636_v17 = vsel %vm7703_vm9, 4294967295, %v9635_v17  ;;  %vm539_vm8 = vmand %vm410_vm4, %vm475_vm6 }
  0xd3   : > { %9637 = vst [vmem:[#allocation33_spill] sm:$0xff] %v9636_v17  ;;  %vm540_vm15 = vmand %vm411_vm3, %vm476_vm13  ;;  %vm395_vm13 = vcmp.ge.s32.totalorder %v330_v23, %v6820_v29 }
  0xd4   : > { %vm7724_vm2 = vmpackc.low %vm540_vm15, %vm539_vm8  ;;  %vm460_vm8 = vcmp.lt.s32.totalorder %v330_v23, %v6829_v36  ;;  %v348_v23 = vadd.s32 248, %v6692_v3 }
  0xd5   : > { %vm571_vm4 = vmand %vm442_vm12, %vm507_vm0 }
  0xd6   : > { %vm572_vm3 = vmand %vm443_vm5, %vm508_vm7 }
  0xd7   : > { %vm7745_vm12 = vmpackc.low %vm572_vm3, %vm571_vm4  ;;  %vm492_vm4 = vcmp.lt.s32.totalorder %v362_v54, %v6829_v36 }
  0xd8   : > { %vm524_vm7 = vmand %vm395_vm13, %vm460_vm8 }
  0xf6   : > { %v7604_v61 = vpop.f32.mrb[0].mxu0 }
  0xf7   : > { %9608 = vst [vmem:[#allocation16_spill] sm:$0xff] %v7604_v61  ;;  %v7606_v0 = vpop.f32.mrb[0].mxu1  ;;  %v7613_v40 = vpop.f32.mrb[1].mxu0 }
  0xf8   : > { %9609 = vst [vmem:[#allocation17_spill] sm:$0xff] %v7606_v0  ;;  %9612 = vst [vmem:[#allocation18_spill] sm:$0xff] %v7613_v40  ;;  %v7615_v59 = vpop.f32.mrb[1].mxu1 }
  0xf9   : > { %9613 = vst [vmem:[#allocation19_spill] sm:$0xff] %v7615_v59 }
  0xfa   : > { %v7632_v46 = vpop.f32.mrb[2].mxu0 }
  0xfb   : > { %9616 = vst [vmem:[#allocation20_spill] sm:$0xff] %v7632_v46  ;;  %v7634_v48 = vpop.f32.mrb[2].mxu1  ;;  %v7642_v50 = vpop.f32.mrb[3].mxu0 }
  0xfc   : > { %9617 = vst [vmem:[#allocation21_spill] sm:$0xff] %v7634_v48  ;;  %9618 = vst [vmem:[#allocation22_spill] sm:$0xff] %v7642_v50  ;;  %v7644_v31 = vpop.f32.mrb[3].mxu1 }
  0xfd   : > { %9619 = vst [vmem:[#allocation23_spill] sm:$0xff] %v7644_v31 }
  0xfe   : > { %v7659_v14 = vpop.f32.mrb[4].mxu0 }
  0xff   : > { %9622 = vst [vmem:[#allocation24_spill] sm:$0xff] %v7659_v14  ;;  %v7661_v15 = vpop.f32.mrb[4].mxu1  ;;  %v7665_v37 = vpop.f32.mrb[5].mxu0 }
 0x100   : > { %9623 = vst [vmem:[#allocation25_spill] sm:$0xff] %v7661_v15  ;;  %9624 = vst [vmem:[#allocation26_spill] sm:$0xff] %v7665_v37  ;;  %v7667_v1 = vpop.f32.mrb[5].mxu1  ;;  %v9650_v37 = vmov 0 }
 0x101   : > { %9625 = vst [vmem:[#allocation27_spill] sm:$0xff] %v7667_v1  ;;  %v9651_v37 = vsel %vm7745_vm12, 4294967295, %v9650_v37 }
 0x102   : > { %v7682_v42 = vpop.f32.mrb[6].mxu0  ;;  %9652 = vst [vmem:[#allocation43_spill] sm:$0xff] %v9651_v37 }
 0x103   : > { %9628 = vst [vmem:[#allocation28_spill] sm:$0xff] %v7682_v42  ;;  %v7684_v38 = vpop.f32.mrb[6].mxu1  ;;  %v7691_v49 = vpop.f32.mrb[7].mxu0 }
 0x104   : > { %9629 = vst [vmem:[#allocation29_spill] sm:$0xff] %v7684_v38  ;;  %9633 = vst [vmem:[#allocation31_spill] sm:$0xff] %v7691_v49  ;;  %v7693_v11 = vpop.f32.mrb[7].mxu1  ;;  %v9640_v38 = vmov 1.0|1.0  }
 0x105   : > { %9634 = vst [vmem:[#allocation32_spill] sm:$0xff] %v7693_v11  ;;  %v329_v11 = vadd.s32 96, %v6692_v3  ;;  %5811 = vmatpush3.bf16.msk.msra.mxu1 %vm7703_vm9, %v9640_v38  ;;  %5781 = vmatprep.subr.msk.bf16.mxu0 %vm7724_vm2, %v9640_v38 }
 0x106   : > { %v7708_v49 = vpop.f32.mrb[8].mxu0  ;;  %5813 = vmatprep.subr.msk.bf16.mxu1 %vm7745_vm12, %v9640_v38 }
 0x107   : > { %9638 = vst [vmem:[#allocation34_spill] sm:$0xff] %v7708_v49  ;;  %v7710_v19 = vpop.f32.mrb[8].mxu1  ;;  %v7718_v9 = vpop.f32.mrb[9].mxu0  ;;  %v361_v49 = vadd.s32 352, %v6692_v3  ;;  %vm394_vm6 = vcmp.ge.s32.totalorder %v329_v11, %v6820_v29  ;;  %vm459_vm9 = vcmp.lt.s32.totalorder %v329_v11, %v6829_v36  ;;  %v347_v11 = vadd.s32 240, %v6692_v3 }
 0x108   : > { %9639 = vst [vmem:[#allocation35_spill] sm:$0xff] %v7710_v19  ;;  %9641 = vst [vmem:[#allocation36_spill] sm:$0xff] %v7718_v9  ;;  %v7720_v1 = vpop.f32.mrb[9].mxu1  ;;  %v9643_v19 = vmov 0 }
 0x109   : > { %9642 = vst [vmem:[#allocation37_spill] sm:$0xff] %v7720_v1  ;;  %v9644_v19 = vsel %vm7724_vm2, 4294967295, %v9643_v19  ;;  %vm523_vm0 = vmand %vm394_vm6, %vm459_vm9  ;;  %vm426_vm15 = vcmp.ge.s32.totalorder %v361_v49, %v6820_v29  ;;  %vm491_vm5 = vcmp.lt.s32.totalorder %v361_v49, %v6829_v36  ;;  %vm427_vm2 = vcmp.ge.s32.totalorder %v362_v54, %v6820_v29 }
 0x10a   : > { %9645 = vst [vmem:[#allocation38_spill] sm:$0xff] %v9644_v19  ;;  %v7735_v1 = vpop.f32.mrb[10].mxu0  ;;  %vm7762_vm3 = vmpackc.low %vm524_vm7, %vm523_vm0  ;;  %vm412_vm6 = vcmp.ge.s32.totalorder %v347_v11, %v6820_v29  ;;  %vm477_vm13 = vcmp.lt.s32.totalorder %v347_v11, %v6829_v36  ;;  %v380_v54 = vadd.s32 504, %v6692_v3  ;;  %vm413_vm0 = vcmp.ge.s32.totalorder %v348_v23, %v6820_v29 }
 0x10b   : > { %9646 = vst [vmem:[#allocation39_spill] sm:$0xff] %v7735_v1  ;;  %v7737_v16 = vpop.f32.mrb[10].mxu1  ;;  %v7741_v9 = vpop.f32.mrb[11].mxu0  ;;  %v379_v1 = vadd.s32 496, %v6692_v3  ;;  %5783 = vmatpush3.bf16.msk.msra.mxu0 %vm7762_vm3, %v9640_v38  ;;  %vm555_vm9 = vmand %vm426_vm15, %vm491_vm5  ;;  %vm478_vm7 = vcmp.lt.s32.totalorder %v348_v23, %v6829_v36  ;;  %v332_v11 = vadd.s32 120, %v6692_v3 }
 0x10c   : > { %9647 = vst [vmem:[#allocation40_spill] sm:$0xff] %v7737_v16  ;;  %9648 = vst [vmem:[#allocation41_spill] sm:$0xff] %v7741_v9  ;;  %v7743_v42 = vpop.f32.mrb[11].mxu1  ;;  %v9655_v16 = vmov 0 }
 0x10d   : > { %9649 = vst [vmem:[#allocation42_spill] sm:$0xff] %v7743_v42  ;;  %v9656_v16 = vsel %vm7762_vm3, 4294967295, %v9655_v16  ;;  %vm556_vm8 = vmand %vm427_vm2, %vm492_vm4  ;;  %vm444_vm2 = vcmp.ge.s32.totalorder %v379_v1, %v6820_v29  ;;  %vm509_vm5 = vcmp.lt.s32.totalorder %v379_v1, %v6829_v36  ;;  %v704_v1 = vmul.u32 16, %v6698_v5 }
 0x10e   : > { %v7758_v42 = vpop.f32.mrb[12].mxu0  ;;  %9657 = vst [vmem:[#allocation46_spill] sm:$0xff] %v9656_v16  ;;  %vm7779_vm12 = vmpackc.low %vm556_vm8, %vm555_vm9  ;;  %vm445_vm9 = vcmp.ge.s32.totalorder %v380_v54, %v6820_v29  ;;  %vm510_vm8 = vcmp.lt.s32.totalorder %v380_v54, %v6829_v36  ;;  %v364_v54 = vadd.s32 376, %v6692_v3 }
 0x10f   : > { %9653 = vst [vmem:[#allocation44_spill] sm:$0xff] %v7758_v42  ;;  %v7760_v9 = vpop.f32.mrb[12].mxu1  ;;  %v7767_v15 = vpop.f32.mrb[13].mxu0  ;;  %5815 = vmatpush3.bf16.msk.msra.mxu1 %vm7779_vm12, %v9640_v38  ;;  %vm541_vm15 = vmand %vm412_vm6, %vm477_vm13 }
 0x110   : > { %9654 = vst [vmem:[#allocation45_spill] sm:$0xff] %v7760_v9  ;;  %9658 = vst [vmem:[#allocation47_spill] sm:$0xff] %v7767_v15  ;;  %v7769_v49 = vpop.f32.mrb[13].mxu1  ;;  %v9660_v15 = vmov 0  ;;  %vm494_vm11 = vcmp.lt.s32.totalorder %v364_v54, %v6829_v36 }
 0x111   : > { %9659 = vst [vmem:[#allocation48_spill] sm:$0xff] %v7769_v49  ;;  %v9661_v15 = vsel %vm7779_vm12, 4294967295, %v9660_v15  ;;  %v331_v49 = vadd.s32 112, %v6692_v3  ;;  %vm542_vm4 = vmand %vm413_vm0, %vm478_vm7 }
 0x112   : > { %9662 = vst [vmem:[#allocation49_spill] sm:$0xff] %v9661_v15  ;;  %v7784_v9 = vpop.f32.mrb[14].mxu0  ;;  %vm7801_vm3 = vmpackc.low %vm542_vm4, %vm541_vm15  ;;  %vm397_vm15 = vcmp.ge.s32.totalorder %v332_v11, %v6820_v29  ;;  %vm462_vm4 = vcmp.lt.s32.totalorder %v332_v11, %v6829_v36  ;;  %v9673_v11 = vmov 0 }
 0x113   : > { %9663 = vst [vmem:[#allocation50_spill] sm:$0xff] %v7784_v9  ;;  %v7786_v42 = vpop.f32.mrb[14].mxu1  ;;  %v7794_v23 = vpop.f32.mrb[15].mxu0  ;;  %v9667_v9 = vmov 0  ;;  %5785 = vmatprep.subr.msk.bf16.mxu0 %vm7801_vm3, %v9640_v38  ;;  %vm573_vm6 = vmand %vm444_vm2, %vm509_vm5  ;;  %vm396_vm13 = vcmp.ge.s32.totalorder %v331_v49, %v6820_v29  ;;  %vm461_vm0 = vcmp.lt.s32.totalorder %v331_v49, %v6829_v36  ;;  %vm428_vm5 = vcmp.ge.s32.totalorder %v363_v44, %v6820_v29 }
 0x114   : > { %9664 = vst [vmem:[#allocation51_spill] sm:$0xff] %v7786_v42  ;;  %9665 = vst [vmem:[#allocation52_spill] sm:$0xff] %v7794_v23  ;;  %v7796_v14 = vpop.f32.mrb[15].mxu1  ;;  %v703_v42 = vmul.u32 16, %v6692_v3  ;;  %v9668_v9 = vsel %vm7801_vm3, 4294967295, %v9667_v9  ;;  %vm493_vm3 = vcmp.lt.s32.totalorder %v363_v44, %v6829_v36  ;;  %v724_v49 = vadd.s32 16, %v704_v1 }
 0x115   : > { %9666 = vst [vmem:[#allocation53_spill] sm:$0xff] %v7796_v14  ;;  %9669 = vst [vmem:[#allocation54_spill] sm:$0xff] %v9668_v9  ;;  %v9670_v14 = vmov 0  ;;  %v9679_v36 = vmov 0  ;;  %v9682_v44 = vmov 0  ;;  %v9687_v23 = vmov 0 }
 0x116   : > { %vm574_vm7 = vmand %vm445_vm9, %vm510_vm8  ;;  %v723_v5 = vadd.s32 16, %v703_v42  ;;  %vm429_vm8 = vcmp.ge.s32.totalorder %v364_v54, %v6820_v29  ;;  %v9676_v29 = vmov 0  ;;  %v9685_v54 = vmov 0 }
 0x117   : > { %vm7815_vm12 = vmpackc.low %vm574_vm7, %vm573_vm6 }
 0x118   : > { %v9671_v14 = vsel %vm7815_vm12, 4294967295, %v9670_v14  ;;  %5817 = vmatprep.subr.msk.bf16.mxu1 %vm7815_vm12, %v9640_v38  ;;  %vm525_vm2 = vmand %vm396_vm13, %vm461_vm0  ;;  %vm708_vm13 = vcmp.ge.s32.totalorder %v6695_v4, %v703_v42  ;;  %vm728_vm0 = vcmp.lt.s32.totalorder %v6695_v4, %v723_v5 }
 0x119   : > { %9672 = vst [vmem:[#allocation55_spill] sm:$0xff] %v9671_v14  ;;  %vm526_vm9 = vmand %vm397_vm15, %vm462_vm4  ;;  %vm712_vm15 = vcmp.ge.s32.totalorder %v6695_v4, %v704_v1  ;;  %vm732_vm4 = vcmp.lt.s32.totalorder %v6695_v4, %v724_v49 }
 0x11a   : > { %vm7826_vm6 = vmpackc.low %vm526_vm9, %vm525_vm2 }
 0x11b   : > { %v9674_v11 = vsel %vm7826_vm6, 4294967295, %v9673_v11  ;;  %5787 = vmatpush3.bf16.msk.msra.mxu0 %vm7826_vm6, %v9640_v38  ;;  %vm557_vm7 = vmand %vm428_vm5, %vm493_vm3  ;;  %vm710_vm3 = vcmp.ge.s32.totalorder %v6701_v6, %v703_v42  ;;  %vm730_vm5 = vcmp.lt.s32.totalorder %v6701_v6, %v723_v5 }
 0x11c   : > { %9675 = vst [vmem:[#allocation56_spill] sm:$0xff] %v9674_v11  ;;  %vm558_vm12 = vmand %vm429_vm8, %vm494_vm11  ;;  %vm714_vm11 = vcmp.ge.s32.totalorder %v6701_v6, %v704_v1  ;;  %vm734_vm8 = vcmp.lt.s32.totalorder %v6701_v6, %v724_v49 }
 0x11d   : > { %vm7837_vm1 = vmpackc.low %vm558_vm12, %vm557_vm7  ;;  %vm707_vm7 = vcmp.ge.s32.totalorder %v6690_v2, %v703_v42 }
 0x11e   : > { %v9677_v29 = vsel %vm7837_vm1, 4294967295, %v9676_v29  ;;  %5819 = vmatpush3.bf16.msk.msra.mxu1 %vm7837_vm1, %v9640_v38  ;;  %vm744_vm2 = vmand %vm708_vm13, %vm728_vm0  ;;  %vm727_vm13 = vcmp.lt.s32.totalorder %v6690_v2, %v723_v5 }
 0x11f   : > { %9678 = vst [vmem:[#allocation57_spill] sm:$0xff] %v9677_v29  ;;  %vm748_vm9 = vmand %vm712_vm15, %vm732_vm4  ;;  %vm711_vm15 = vcmp.ge.s32.totalorder %v6690_v2, %v704_v1  ;;  %vm731_vm4 = vcmp.lt.s32.totalorder %v6690_v2, %v724_v49 }
 0x120   : > { %vm7848_vm6 = vmpackc.low %vm748_vm9, %vm744_vm2 }
 0x121   : > { %v9680_v36 = vsel %vm7848_vm6, 4294967295, %v9679_v36  ;;  %5821 = vmatprep.subr.msk.bf16.mxu0 %vm7848_vm6, %v9640_v38  ;;  %vm746_vm12 = vmand %vm710_vm3, %vm730_vm5  ;;  %vm709_vm3 = vcmp.ge.s32.totalorder %v6707_v8, %v703_v42  ;;  %vm729_vm5 = vcmp.lt.s32.totalorder %v6707_v8, %v723_v5 }
 0x122   : > { %9681 = vst [vmem:[#allocation58_spill] sm:$0xff] %v9680_v36  ;;  %vm750_vm0 = vmand %vm714_vm11, %vm734_vm8  ;;  %vm713_vm11 = vcmp.ge.s32.totalorder %v6707_v8, %v704_v1  ;;  %vm733_vm8 = vcmp.lt.s32.totalorder %v6707_v8, %v724_v49 }
 0x123   : > { %vm7859_vm1 = vmpackc.low %vm750_vm0, %vm746_vm12 }
 0x124   : > { %v9683_v44 = vsel %vm7859_vm1, 4294967295, %v9682_v44  ;;  %5829 = vmatprep.subr.msk.bf16.mxu1 %vm7859_vm1, %v9640_v38  ;;  %vm743_vm2 = vmand %vm707_vm7, %vm727_vm13 }
 0x125   : > { %9684 = vst [vmem:[#allocation59_spill] sm:$0xff] %v9683_v44  ;;  %vm747_vm9 = vmand %vm711_vm15, %vm731_vm4 }
 0x126   : > { %vm7870_vm6 = vmpackc.low %vm747_vm9, %vm743_vm2 }
 0x127   : > { %v9686_v54 = vsel %vm7870_vm6, 4294967295, %v9685_v54  ;;  %vm745_vm12 = vmand %vm709_vm3, %vm729_vm5 }
 0x128   : > { %vm749_vm0 = vmand %vm713_vm11, %vm733_vm8 }
 0x129   : > { %vm7874_vm14 = vmpackc.low %vm749_vm0, %vm745_vm12 }
 0x12a   : > { %v9688_v23 = vsel %vm7874_vm14, 4294967295, %v9687_v23 }
 0x183   : > { %v7878_v45 = vpop.f32.mrb[16].mxu1 }
 0x184   : > { %9689 = vst [vmem:[#allocation60_spill] sm:$0xff] %v7878_v45  ;;  %v1257_v5 = vrot.slane %v7878_v45, 4  ;;  %v7883_v43 = vpop.f32.mrb[17].mxu1 }
 0x185   : > { %v1263_v35 = vrot.slane %v7883_v43, 4  ;;  %v7889_v39 = vpop.f32.mrb[18].mxu1 }
 0x186   : > { %9691 = vst [vmem:[#allocation62_spill] sm:$0xff] %v7889_v39  ;;  %v1258_v27 = vadd.f32 %v1257_v5, %v7878_v45  ;;  %v7895_v58 = vpop.f32.mrb[19].mxu1 }
 0x187   : > { %v7880_v42 = vpop.f32.mrb[16].mxu0  ;;  %9693 = vst [vmem:[#allocation64_spill] sm:$0xff] %v7895_v58  ;;  %v1264_v50 = vadd.f32 %v1263_v35, %v7883_v43 }
 0x188   : > { %9690 = vst [vmem:[#allocation61_spill] sm:$0xff] %v7880_v42  ;;  %v1245_v1 = vrot.slane %v7880_v42, 4  ;;  %v7886_v49 = vpop.f32.mrb[17].mxu0  ;;  %v1259_v59 = vrot.slane %v1258_v27, 2 }
 0x189   : > { %v1251_v20 = vrot.slane %v7886_v49, 4  ;;  %v7893_v21 = vpop.f32.mrb[18].mxu0  ;;  %v1265_v0 = vrot.slane %v1264_v50, 2 }
 0x18a   : > { %9692 = vst [vmem:[#allocation63_spill] sm:$0xff] %v7893_v21  ;;  %v1246_v31 = vadd.f32 %v1245_v1, %v7880_v42  ;;  %v7899_v48 = vpop.f32.mrb[19].mxu0  ;;  %v1260_v39 = vadd.f32 %v1259_v59, %v1258_v27 }
 0x18b   : > { %9694 = vst [vmem:[#allocation65_spill] sm:$0xff] %v7899_v48  ;;  %v1252_v46 = vadd.f32 %v1251_v20, %v7886_v49  ;;  %v1266_v45 = vadd.f32 %v1265_v0, %v1264_v50  ;;  %v9695_v20 = vmov 0.0   ;;  %v9739_v50 = vld [vmem:[#allocation58_spill] sm:$0xff] }
 0x18c   : > { %v1247_v40 = vrot.slane %v1246_v31, 2  ;;  %v1261_v3 = vrot.slane %v1260_v39, 1 }
 0x18d   : > { %v1253_v61 = vrot.slane %v1252_v46, 2  ;;  %v1267_v36 = vrot.slane %v1266_v45, 1 }
 0x18e   : > { %v1248_v5 = vadd.f32 %v1247_v40, %v1246_v31  ;;  %v1262_v42 = vadd.f32 %v1261_v3, %v1260_v39  ;;  %v706_v3 = vmul.u32 16, %v6890_v53  ;;  %v9705_v53 = vmov 0 }
 0x18f   : > { %v1254_v44 = vadd.f32 %v1253_v61, %v1252_v46  ;;  %v1268_v29 = vadd.f32 %v1267_v36, %v1266_v45  ;;  %v705_v45 = vmul.u32 16, %v6887_v52  ;;  %v9696_v52 = vmov 0  ;;  %v9737_v46 = vld [vmem:[#allocation57_spill] sm:$0xff] }
 0x190   : > { %v1249_v21 = vrot.slane %v1248_v5, 1  ;;  %vm720_vm13 = vcmp.ge.s32.totalorder %v6695_v4, %v706_v3  ;;  %vm722_vm11 = vcmp.ge.s32.totalorder %v6701_v6, %v706_v3 }
 0x191   : > { %v1255_v58 = vrot.slane %v1254_v44, 1  ;;  %1403 = vmatprep.mubr.f32.mxu1 %v1268_v29  ;;  %v725_v39 = vadd.s32 16, %v705_v45  ;;  %vm716_vm7 = vcmp.ge.s32.totalorder %v6695_v4, %v705_v45  ;;  %vm718_vm3 = vcmp.ge.s32.totalorder %v6701_v6, %v705_v45  ;;  %v9742_v29 = vld [vmem:[#allocation6_spill] sm:$0xff] }
 0x192   : > { %v1250_v35 = vadd.f32 %v1249_v21, %v1248_v5  ;;  %1404 = vmatmul.mubr.f32.vlgmr.msra.gmra.mrb[20].mxu1 %v1262_v42  ;;  %v8061_v36 = vsub.s32 0, %v9742_v29 }
 0x193   : > { %v1256_v1 = vadd.f32 %v1255_v58, %v1254_v44  ;;  %5831 = vmatpush1.bf16.msk.msra.mxu1 %vm7874_vm14, %v9640_v38  ;;  %1548 = vmatprep.mubr.f32.mxu1 %v9695_v20  ;;  %v726_v58 = vadd.s32 16, %v706_v3  ;;  %vm736_vm15 = vcmp.lt.s32.totalorder %v6695_v4, %v725_v39  ;;  %vm738_vm5 = vcmp.lt.s32.totalorder %v6701_v6, %v725_v39 }
 0x194   : > { %vm752_vm2 = vmand %vm716_vm7, %vm736_vm15  ;;  %vm715_vm7 = vcmp.ge.s32.totalorder %v6690_v2, %v705_v45  ;;  %vm735_vm15 = vcmp.lt.s32.totalorder %v6690_v2, %v725_v39  ;;  %9743 = vst [vmem:[#allocation6_spill] sm:$0xff] %v8061_v36 }
 0x195   : > { %1333 = vmatprep.mubr.f32.mxu0 %v1256_v1  ;;  %vm740_vm4 = vcmp.lt.s32.totalorder %v6695_v4, %v726_v58  ;;  %vm742_vm8 = vcmp.lt.s32.totalorder %v6701_v6, %v726_v58  ;;  %vm754_vm0 = vmand %vm718_vm3, %vm738_vm5  ;;  %v9698_v4 = vmov 0  ;;  %vm717_vm3 = vcmp.ge.s32.totalorder %v6707_v8, %v705_v45 }
 0x196   : > { %1334 = vmatmul.mubr.f32.vlgmr.msra.gmra.mrb[20].mxu0 %v1250_v35  ;;  %vm756_vm9 = vmand %vm720_vm13, %vm740_vm4  ;;  %vm719_vm13 = vcmp.ge.s32.totalorder %v6690_v2, %v706_v3  ;;  %vm739_vm4 = vcmp.lt.s32.totalorder %v6690_v2, %v726_v58  ;;  %vm737_vm5 = vcmp.lt.s32.totalorder %v6707_v8, %v725_v39  ;;  %v9701_v6 = vmov 0 }
 0x197   : > { %5823 = vmatpush1.bf16.msk.msra.mxu0 %vm7870_vm6, %v9640_v38  ;;  %1477 = vmatprep.mubr.f32.mxu0 %v9695_v20  ;;  %vm7920_vm12 = vmpackc.low %vm756_vm9, %vm752_vm2 }
 0x198   : > { %v9697_v52 = vsel %vm7920_vm12, 4294967295, %v9696_v52  ;;  %5825 = vmatprep.subr.msk.bf16.mxu0 %vm7920_vm12, %v9640_v38  ;;  %vm758_vm14 = vmand %vm722_vm11, %vm742_vm8  ;;  %vm721_vm11 = vcmp.ge.s32.totalorder %v6707_v8, %v706_v3  ;;  %vm741_vm8 = vcmp.lt.s32.totalorder %v6707_v8, %v726_v58 }
 0x199   : > { %vm7931_vm6 = vmpackc.low %vm758_vm14, %vm754_vm0 }
 0x19a   : > { %v9699_v4 = vsel %vm7931_vm6, 4294967295, %v9698_v4  ;;  %5833 = vmatprep.subr.msk.bf16.mxu1 %vm7931_vm6, %v9640_v38  ;;  %vm751_vm2 = vmand %vm715_vm7, %vm735_vm15  ;;  %vm9704_vm7 = vnez %v9487_v56 }
 0x19b   : > { %9700 = vst [vmem:[#allocation66_spill] sm:$0xff] %v9699_v4  ;;  %vm755_vm9 = vmand %vm719_vm13, %vm739_vm4  ;;  %vm9708_vm13 = vnez %v9480_v55  ;;  %vm9301_vm4 = vcmask 261120  }
 0x19c   : > { %vm7942_vm12 = vmpackc.low %vm755_vm9, %vm751_vm2  ;;  %vm9709_vm2 = vnez %v9513_v10  ;;  %vm9712_vm9 = vnez %v9515_v63 }
 0x19d   : > { %v9702_v6 = vsel %vm7942_vm12, 4294967295, %v9701_v6  ;;  %5827 = vmatpush1.bf16.msk.msra.mxu0 %vm7942_vm12, %v9640_v38  ;;  %vm753_vm14 = vmand %vm717_vm3, %vm737_vm5  ;;  %vm9710_vm3 = vnez %v9503_v34  ;;  %vm9711_vm5 = vnez %v9526_v25 }
 0x19e   : > { %9703 = vst [vmem:[#allocation67_spill] sm:$0xff] %v9702_v6  ;;  %vm757_vm0 = vmand %vm721_vm11, %vm741_vm8  ;;  %5837 = vmatprep.subr.msk.bf16.mxu0 %vm9704_vm7, %v9640_v38  ;;  %vm9713_vm11 = vnez %v9544_v51  ;;  %vm9714_vm8 = vnez %v9537_v18 }
 0x19f   : > { %vm7952_vm15 = vmpackc.low %vm757_vm0, %vm753_vm14  ;;  %vm9715_vm14 = vnez %v9553_v41  ;;  %vm9716_vm0 = vnez %v9546_v24 }
 0x1a0   : > { %v9706_v53 = vsel %vm7952_vm15, 4294967295, %v9705_v53  ;;  %5835 = vmatpush1.bf16.msk.msra.mxu1 %vm7952_vm15, %v9640_v38 }
 0x1a1   : > { %9707 = vst [vmem:[#allocation68_spill] sm:$0xff] %v9706_v53  ;;  %5869 = vmatprep.subr.msk.bf16.mxu1 %vm9708_vm13, %v9640_v38 }
 0x265   : > { %v5255_v8 = vpop.f32.mrb[20].mxu1 }
 0x266   : > { %v5256_v27 = vpop.f32.mrb[21].mxu1 }
 0x267   : > { %v5257_v0 = vadd.f32 %v5256_v27, %v5255_v8 }
 0x269   : > { %v5220_v21 = vpop.f32.mrb[20].mxu0 }
 0x26a   : > { %v5221_v61 = vpop.f32.mrb[21].mxu0 }
 0x26b   : > { %v5222_v40 = vadd.f32 %v5221_v61, %v5220_v21  ;;  %v9744_v61 = vld [vmem:[#allocation61_spill] sm:$0xff] }
 0x26d   : > { %v1406_v59 = vadd.f32 %v5257_v0, %v5222_v40  ;;  %v9745_v40 = vld [vmem:[#allocation60_spill] sm:$0xff] }
 0x26f   : > { %4570 = vmatmul.mubr.msk.f32.vlgmr.msra.gmra.mrb[22].mxu0 %vm9301_vm4, %v1406_v59  ;;  %4579 = vmatmul.mubr.msk.f32.vlgmr.msra.gmra.mrb[22].mxu1 %vm9301_vm4, %v1406_v59  ;;  %vm9717_vm4 = vnez %v9564_v12 }
 0x270   : > { %5839 = vmatpush3.bf16.msk.msra.mxu0 %vm9709_vm2, %v9640_v38  ;;  %5871 = vmatpush3.bf16.msk.msra.mxu1 %vm9710_vm3, %v9640_v38 }
 0x271   : > { %5841 = vmatprep.subr.msk.bf16.mxu0 %vm9711_vm5, %v9640_v38  ;;  %5873 = vmatprep.subr.msk.bf16.mxu1 %vm9712_vm9, %v9640_v38 }
 0x274   : > { %5843 = vmatpush3.bf16.msk.msra.mxu0 %vm9713_vm11, %v9640_v38  ;;  %5875 = vmatpush3.bf16.msk.msra.mxu1 %vm9714_vm8, %v9640_v38  ;;  %vm9718_vm11 = vnez %v9582_v32  ;;  %vm9719_vm8 = vnez %v9585_v13 }
 0x275   : > { %5845 = vmatprep.subr.msk.bf16.mxu0 %vm9715_vm14, %v9640_v38  ;;  %5877 = vmatprep.subr.msk.bf16.mxu1 %vm9716_vm0, %v9640_v38  ;;  %vm9720_vm14 = vnez %v9588_v62  ;;  %vm9721_vm0 = vnez %v9601_v30 }
 0x278   : > { %5847 = vmatpush3.bf16.msk.msra.mxu0 %vm7460_vm10, %v9640_v38  ;;  %5879 = vmatpush3.bf16.msk.msra.mxu1 %vm9717_vm4, %v9640_v38  ;;  %vm9722_vm10 = vnez %v9606_v7  ;;  %vm9723_vm4 = vnez %v9604_v33 }
 0x279   : > { %5849 = vmatprep.subr.msk.bf16.mxu0 %vm9718_vm11, %v9640_v38  ;;  %5881 = vmatprep.subr.msk.bf16.mxu1 %vm9719_vm8, %v9640_v38  ;;  %vm9724_vm11 = vnez %v9611_v47  ;;  %vm9725_vm8 = vnez %v9615_v28 }
 0x27c   : > { %5851 = vmatpush3.bf16.msk.msra.mxu0 %vm9720_vm14, %v9640_v38  ;;  %5883 = vmatpush3.bf16.msk.msra.mxu1 %vm9721_vm0, %v9640_v38  ;;  %vm9726_vm14 = vnez %v9621_v26  ;;  %vm9727_vm0 = vnez %v9627_v22 }
 0x27d   : > { %5853 = vmatprep.subr.msk.bf16.mxu0 %vm9722_vm10, %v9640_v38  ;;  %5885 = vmatprep.subr.msk.bf16.mxu1 %vm9723_vm4, %v9640_v38  ;;  %vm9728_vm10 = vnez %v9631_v60  ;;  %vm9729_vm4 = vnez %v9636_v17 }
 0x280   : > { %5855 = vmatpush3.bf16.msk.msra.mxu0 %vm9724_vm11, %v9640_v38  ;;  %5887 = vmatpush3.bf16.msk.msra.mxu1 %vm9725_vm8, %v9640_v38  ;;  %vm9730_vm11 = vnez %v9644_v19  ;;  %vm9731_vm8 = vnez %v9651_v37 }
 0x281   : > { %5857 = vmatprep.subr.msk.bf16.mxu0 %vm9726_vm14, %v9640_v38  ;;  %5889 = vmatprep.subr.msk.bf16.mxu1 %vm9727_vm0, %v9640_v38  ;;  %vm9732_vm14 = vnez %v9656_v16  ;;  %vm9733_vm0 = vnez %v9661_v15 }
 0x284   : > { %5859 = vmatpush3.bf16.msk.msra.mxu0 %vm9728_vm10, %v9640_v38  ;;  %5891 = vmatpush3.bf16.msk.msra.mxu1 %vm9729_vm4, %v9640_v38  ;;  %vm9734_vm10 = vnez %v9668_v9  ;;  %vm9735_vm4 = vnez %v9671_v14 }
 0x285   : > { %5861 = vmatprep.subr.msk.bf16.mxu0 %vm9730_vm11, %v9640_v38  ;;  %5893 = vmatprep.subr.msk.bf16.mxu1 %vm9731_vm8, %v9640_v38  ;;  %vm9736_vm11 = vnez %v9674_v11  ;;  %vm9738_vm8 = vnez %v9737_v46 }
 0x288   : > { %5863 = vmatpush3.bf16.msk.msra.mxu0 %vm9732_vm14, %v9640_v38  ;;  %5895 = vmatpush3.bf16.msk.msra.mxu1 %vm9733_vm0, %v9640_v38  ;;  %vm9740_vm14 = vnez %v9739_v50 }
 0x289   : > { %5865 = vmatprep.subr.msk.bf16.mxu0 %vm9734_vm10, %v9640_v38  ;;  %5897 = vmatprep.subr.msk.bf16.mxu1 %vm9735_vm4, %v9640_v38 }
 0x28c   : > { %5867 = vmatpush3.bf16.msk.msra.mxu0 %vm9736_vm11, %v9640_v38  ;;  %5899 = vmatpush3.bf16.msk.msra.mxu1 %vm9738_vm8, %v9640_v38  ;;  %vm9748_vm8 = vnez %v9697_v52 }
 0x28d   : > { %5901 = vmatprep.subr.msk.bf16.mxu0 %vm9740_vm14, %v9640_v38  ;;  %5909 = vmatprep.subr.msk.bf16.mxu1 %vm7859_vm1, %v9640_v38  ;;  %vm9746_vm1 = vnez %v9686_v54  ;;  %vm9747_vm14 = vnez %v9688_v23 }
 0x342   : > { %v1479_v44 = vpop.f32.mrb[22].mxu0  ;;  %v1550_v42 = vpop.f32.mrb[22].mxu1 }
 0x343   : > { %v1555_v5 = vmul.f32 0.0078125, %v1479_v44  ;;  %v1557_v1 = vmul.f32 0.0078125, %v1550_v42  ;;  %v1481_v35 = vpop.f32.mrb[23].mxu0  ;;  %v1552_v45 = vpop.f32.mrb[23].mxu1 }
 0x344   : > { %v1556_v3 = vmul.f32 0.0078125, %v1481_v35  ;;  %v1558_v39 = vmul.f32 0.0078125, %v1552_v45 }
 0x345   : > { %v1562_v58 = vrot.slane %v1555_v5, %v8061_v36  ;;  %v1570_v8 = vrot.slane %v1557_v1, %v8061_v36 }
 0x346   : > { %v1566_v21 = vrot.slane %v1556_v3, %v8061_v36  ;;  %v1574_v27 = vrot.slane %v1558_v39, %v8061_v36 }
 0x347   : > { %v8068_v0 = vsub.f32 %v9744_v61, %v1562_v58  ;;  %v8071_v59 = vsub.f32 %v9745_v40, %v1570_v8 }
 0x348   : > { %v8074_v29 = vsub.f32 %v7886_v49, %v1566_v21  ;;  %v8077_v44 = vsub.f32 %v7883_v43, %v1574_v27 }
 0x349   : > { %v1579_v42 = vmul.f32 %v8068_v0, %v8068_v0  ;;  %v1581_v5 = vmul.f32 %v8071_v59, %v8071_v59 }
 0x34a   : > { %v1580_v1 = vmul.f32 %v8074_v29, %v8074_v29  ;;  %v1582_v35 = vmul.f32 %v8077_v44, %v8077_v44 }
 0x34b   : > { %v1583_v45 = vrot.slane %v1579_v42, 4  ;;  %v1595_v3 = vrot.slane %v1581_v5, 4 }
 0x34c   : > { %v1589_v39 = vrot.slane %v1580_v1, 4  ;;  %v1601_v49 = vrot.slane %v1582_v35, 4 }
 0x34d   : > { %v1584_v58 = vadd.f32 %v1583_v45, %v1579_v42  ;;  %v1596_v8 = vadd.f32 %v1595_v3, %v1581_v5 }
 0x34e   : > { %v1590_v43 = vadd.f32 %v1589_v39, %v1580_v1  ;;  %v1602_v21 = vadd.f32 %v1601_v49, %v1582_v35 }
 0x34f   : > { %v1585_v27 = vrot.slane %v1584_v58, 2  ;;  %v1597_v61 = vrot.slane %v1596_v8, 2 }
 0x350   : > { %v1591_v40 = vrot.slane %v1590_v43, 2  ;;  %v1603_v48 = vrot.slane %v1602_v21, 2 }
 0x351   : > { %v1586_v31 = vadd.f32 %v1585_v27, %v1584_v58  ;;  %v1598_v50 = vadd.f32 %v1597_v61, %v1596_v8 }
 0x352   : > { %v1592_v46 = vadd.f32 %v1591_v40, %v1590_v43  ;;  %v1604_v11 = vadd.f32 %v1603_v48, %v1602_v21 }
 0x353   : > { %v1587_v14 = vrot.slane %v1586_v31, 1  ;;  %v1599_v9 = vrot.slane %v1598_v50, 1 }
 0x354   : > { %v1593_v15 = vrot.slane %v1592_v46, 1  ;;  %v1605_v16 = vrot.slane %v1604_v11, 1 }
 0x355   : > { %v1588_v17 = vadd.f32 %v1587_v14, %v1586_v31  ;;  %v1600_v60 = vadd.f32 %v1599_v9, %v1598_v50  ;;  %v9751_v9 = vmov 0  }
 0x356   : > { %v1594_v37 = vadd.f32 %v1593_v15, %v1592_v46  ;;  %v1606_v19 = vadd.f32 %v1605_v16, %v1604_v11 }
 0x358   : > { %1671 = vmatprep.mubr.f32.mxu0 %v1594_v37  ;;  %1741 = vmatprep.mubr.f32.mxu1 %v1606_v19 }
 0x359   : > { %1672 = vmatmul.mubr.f32.vlgmr.msra.gmra.mrb[24].mxu0 %v1588_v17  ;;  %1742 = vmatmul.mubr.f32.vlgmr.msra.gmra.mrb[24].mxu1 %v1600_v60 }
 0x35a   : > { %5903 = vmatpush1.bf16.msk.msra.mxu0 %vm9746_vm1, %v9640_v38  ;;  %5911 = vmatpush1.bf16.msk.msra.mxu1 %vm9747_vm14, %v9640_v38 }
 0x35b   : > { %5905 = vmatprep.subr.msk.bf16.mxu0 %vm9748_vm8, %v9640_v38  ;;  %5913 = vmatprep.subr.msk.bf16.mxu1 %vm7931_vm6, %v9640_v38  ;;  %vm9749_vm6 = vcmask 261120  }
 0x35c   : > { %1814 = vmatprep.mubr.f32.mxu0 %v9695_v20  ;;  %1885 = vmatprep.mubr.f32.mxu1 %v9695_v20  ;;  %vm9750_vm8 = vmmov %vm9749_vm6 }
 0x35e   : > { %5907 = vmatpush1.bf16.msk.msra.mxu0 %vm7942_vm12, %v9640_v38  ;;  %5915 = vmatpush1.bf16.msk.msra.mxu1 %vm7952_vm15, %v9640_v38 }
 0x42c   : > { %v5290_v19 = vpop.f32.mrb[24].mxu0  ;;  %v5325_v17 = vpop.f32.mrb[24].mxu1 }
 0x42d   : > { %v5291_v48 = vpop.f32.mrb[25].mxu0  ;;  %v5326_v14 = vpop.f32.mrb[25].mxu1 }
 0x42e   : > { %v5292_v15 = vadd.f32 %v5291_v48, %v5290_v19  ;;  %v5327_v37 = vadd.f32 %v5326_v14, %v5325_v17  ;;  %v9752_v14 = vld [vmem:[#allocation16_spill] sm:$0xff] }
 0x430   : > { %v1744_v60 = vadd.f32 %v5327_v37, %v5292_v15 }
 0x432   : > { %4652 = vmatmul.mubr.msk.f32.vlgmr.msra.gmra.mrb[26].mxu0 %vm9749_vm6, %v1744_v60  ;;  %4661 = vmatmul.mubr.msk.f32.vlgmr.msra.gmra.mrb[26].mxu1 %vm9750_vm8, %v1744_v60  ;;  %v9753_v60 = vld [vmem:[#allocation17_spill] sm:$0xff]  ;;  %vm9760_vm6 = vcmp.lt.s32.totalorder %v6690_v2, 1 }
 0x433   : > { %2024 = vmatprep.mubr.bf16.mxu0 %v9751_v9  ;;  %2065 = vmatprep.mubr.bf16.mxu1 %v9751_v9  ;;  %vm9761_vm8 = vmmov %vm9760_vm6 }
 0x434   : > { %vm9762_vm15 = vmmov %vm9760_vm6 }
 0x435   : > { %vm9763_vm12 = vmmov %vm9760_vm6 }
 0x505   : > { %v1816_v16 = vpop.f32.mrb[26].mxu0  ;;  %v1887_v11 = vpop.f32.mrb[26].mxu1 }
 0x506   : > { %v1892_v46 = vmul.f32 0.0078125, %v1816_v16  ;;  %v1894_v50 = vmul.f32 0.0078125, %v1887_v11  ;;  %v1818_v31 = vpop.f32.mrb[27].mxu0  ;;  %v1889_v42 = vpop.f32.mrb[27].mxu1  ;;  %v9754_v11 = vld [vmem:[#allocation18_spill] sm:$0xff] }
 0x507   : > { %v1893_v5 = vmul.f32 0.0078125, %v1818_v31  ;;  %v1895_v1 = vmul.f32 0.0078125, %v1889_v42  ;;  %v9756_v42 = vld [vmem:[#allocation19_spill] sm:$0xff] }
 0x508   : > { %v1896_v35 = vadd.f32 1e-05, %v1892_v46  ;;  %v1898_v45 = vadd.f32 1e-05, %v1894_v50  ;;  %v9755_v50 = vld [vmem:[#allocation20_spill] sm:$0xff] }
 0x509   : > { %v1897_v3 = vadd.f32 1e-05, %v1893_v5  ;;  %v1899_v39 = vadd.f32 1e-05, %v1895_v1  ;;  %v9757_v1 = vld [vmem:[#allocation21_spill] sm:$0xff] }
 0x50a   : > { %6504 = vrsqrt.f32 %v1896_v35  ;;  %v9758_v35 = vld [vmem:[#allocation22_spill] sm:$0xff] }
 0x50b   : > { %6506 = vrsqrt.f32 %v1898_v45 }
 0x50c   : > { %6508 = vrsqrt.f32 %v1897_v3 }
 0x50d   : > { %6510 = vrsqrt.f32 %v1899_v39 }
 0x514   : > { %v6505_v49 = vpop.eup %6504 }
 0x515   : > { %v6507_v58 = vpop.eup %6506  ;;  %v1907_v8 = vrot.slane %v6505_v49, %v8061_v36 }
 0x516   : > { %v6509_v43 = vpop.eup %6508  ;;  %v1915_v21 = vrot.slane %v6507_v58, %v8061_v36 }
 0x517   : > { %v6511_v27 = vpop.eup %6510  ;;  %v1911_v61 = vrot.slane %v6509_v43, %v8061_v36  ;;  %v1920_v40 = vmul.f32 %v1907_v8, %v8068_v0 }
 0x518   : > { %v1919_v19 = vrot.slane %v6511_v27, %v8061_v36  ;;  %v1922_v17 = vmul.f32 %v1915_v21, %v8071_v59  ;;  %v9759_v59 = vld [vmem:[#allocation23_spill] sm:$0xff] }
 0x519   : > { %v1921_v48 = vmul.f32 %v1911_v61, %v8074_v29  ;;  %v1924_v15 = vmul.f32 %v1920_v40, %v9752_v14 }
 0x51a   : > { %v1923_v37 = vmul.f32 %v1919_v19, %v8077_v44  ;;  %v1926_v16 = vmul.f32 %v1922_v17, %v9753_v60 }
 0x51b   : > { %v1925_v46 = vmul.f32 %v1921_v48, %v9754_v11  ;;  %v1928_v31 = vadd.f32 %v1924_v15, %v9755_v50 }
 0x51c   : > { %v1927_v5 = vmul.f32 %v1923_v37, %v9756_v42  ;;  %v1930_v0 = vadd.f32 %v1926_v16, %v9757_v1 }
 0x51d   : > { %v1929_v45 = vadd.f32 %v1925_v46, %v9758_v35  ;;  %v1932_v3 = vmax.f32 %v1928_v31, 0.0  ;;  %v9766_v35 = vld [vmem:[#allocation14_spill] sm:$0xff] }
 0x51e   : > { %v1931_v39 = vadd.f32 %v1927_v5, %v9759_v59  ;;  %v1934_v29 = vmax.f32 %v1930_v0, 0.0  ;;  %v9764_v0 = vld [vmem:[#allocation12_spill] sm:$0xff] }
 0x51f   : > { %v1933_v49 = vmax.f32 %v1929_v45, 0.0  ;;  %v9768_v45 = vld [vmem:[#allocation13_spill] sm:$0xff] }
 0x520   : > { %v1935_v58 = vmax.f32 %v1931_v39, 0.0 }
 0x521   : > { %v6463_v8 = vpack.i.bf16 %v1933_v49, %v1932_v3 }
 0x522   : > { %v6468_v44 = vpack.i.bf16 %v1935_v58, %v1934_v29 }
 0x523   : > { %6464 = vrot.lane.b32.xlu0 %v6463_v8, %s6601_s10 }
 0x524   : > { %6469 = vrot.lane.b32.xlu1 %v6468_v44, %s6601_s10 }
 0x527   : > { %6474 = vrot.lane.b32.xlu0 %v6463_v8, %s6602_s11 }
 0x528   : > { %6479 = vrot.lane.b32.xlu1 %v6468_v44, %s6602_s11  ;;  %v9778_v44 = vld [vmem:[#allocation7_spill] sm:$0xff] }
 0x595   : > { %v6465_v43 = vpop.permute.xlu0 %6464 }
 0x596   : > { %v6470_v21 = vpop.permute.xlu1 %6469  ;;  %v6467_v27 = vunpack.i.h.bf16 %v6465_v43  ;;  %v6466_v61 = vunpack.i.l.bf16 %v6465_v43 }
 0x597   : > { %v6472_v40 = vunpack.i.h.bf16 %v6470_v21  ;;  %v6471_v19 = vunpack.i.l.bf16 %v6470_v21  ;;  %v9780_v21 = vld [vmem:[#allocation9_spill] sm:$0xff] }
 0x598   : > { %v1946_v17 = vsel %vm9760_vm6, %v6466_v61, %v6467_v27  ;;  %vm9765_vm6 = vnez %v9764_v0 }
 0x599   : > { %v1944_v48 = vsel %vm9761_vm8, %v6471_v19, %v6472_v40  ;;  %v1945_v14 = vsel %vm9762_vm15, %v6467_v27, %v6471_v19  ;;  %v1947_v15 = vsel %vm9763_vm12, %v6472_v40, %v6466_v61  ;;  %v4663_v37 = vpack.c.bf16 %v1933_v49, %v1946_v17  ;;  %v6475_v60 = vpop.permute.xlu0 %6474  ;;  %v9774_v49 = vld [vmem:[#allocation15_spill] sm:$0xff] }
 0x59a   : > { %v4670_v16 = vpack.c.bf16 %v1935_v58, %v1944_v48  ;;  %v4673_v11 = vpack.c.bf16 %v1934_v29, %v1945_v14  ;;  %v4666_v46 = vpack.c.bf16 %v1932_v3, %v1947_v15  ;;  %v6480_v50 = vpop.permute.xlu1 %6479  ;;  %v6477_v31 = vunpack.i.h.bf16 %v6475_v60  ;;  %v9776_v58 = vld [vmem:[#allocation8_spill] sm:$0xff]  ;;  %v9782_v61 = vld [vmem:[#allocation11_spill] sm:$0xff] }
 0x59b   : > { %v6482_v42 = vunpack.i.h.bf16 %v6480_v50  ;;  %v6481_v5 = vunpack.i.l.bf16 %v6480_v50  ;;  %v6476_v1 = vunpack.i.l.bf16 %v6475_v60  ;;  %4664 = vmatprep.subr.msk.bf16.mxu0 %vm9765_vm6, %v4663_v37  ;;  %vm9767_vm8 = vnez %v9766_v35  ;;  %v9785_v37 = vld [vmem:[#allocation10_spill] sm:$0xff]  ;;  %v1976_v50 = vld [vmem:[%s9196_s2] sm:$0xf] }
 0x59c   : > { %4671 = vmatprep.subr.msk.bf16.mxu1 %vm9767_vm8, %v4670_v16  ;;  %vm9769_vm15 = vnez %v9768_v45  ;;  %vm9770_vm12 = vcmp.lt.s32.totalorder %v6690_v2, 127  ;;  %vm9775_vm6 = vnez %v9774_v49  ;;  %vm9777_vm8 = vcmp.lt.s32.totalorder %v9776_v58, 16 }
 0x59d   : > { %4667 = vmatpush1.bf16.msk.msra.mxu0 %vm9769_vm15, %v4666_v46  ;;  %v1960_v59 = vsel %vm9770_vm12, %v6481_v5, %v6482_v42  ;;  %vm9771_vm14 = vmmov %vm9770_vm12  ;;  %4674 = vmatpush1.bf16.msk.msra.mxu1 %vm9775_vm6, %v4673_v11  ;;  %vm9779_vm15 = vcmp.lt.s32.totalorder %v9778_v44, 16  ;;  %v9784_v19 = vmov 1.0   ;;  %vm9794_vm6 = vnez %v9582_v32 }
 0x59e   : > { %v1961_v3 = vsel %vm9771_vm14, %v6477_v31, %v6481_v5  ;;  %vm9772_vm1 = vmmov %vm9770_vm12  ;;  %v1966_v8 = vsel %vm9777_vm8, %v1960_v59, 0.0  ;;  %vm9781_vm12 = vcmp.lt.s32.totalorder %v9780_v21, 16  ;;  %vm9783_vm14 = vcmp.lt.s32.totalorder %v9782_v61, 16  ;;  %v9808_v5 = vld [vmem:[#allocation38_spill] sm:$0xff] }
 0x59f   : > { %v1962_v39 = vsel %vm9772_vm1, %v6476_v1, %v6477_v31  ;;  %vm9773_vm11 = vmmov %vm9772_vm1  ;;  %v1965_v27 = vsel %vm9781_vm12, %v1961_v3, 0.0  ;;  %v1974_v17 = vpack.c.bf16 %v9784_v19, %v1966_v8  ;;  %vm9786_vm1 = vcmask 203776   ;;  %v9804_v31 = vld [vmem:[#allocation30_spill] sm:$0xff]  ;;  %v9814_v3 = vld [vmem:[#allocation49_spill] sm:$0xff] }
 0x5a0   : > { %v1963_v29 = vsel %vm9773_vm11, %v6482_v42, %v6476_v1  ;;  %v1964_v43 = vsel %vm9779_vm15, %v1962_v39, 0.0  ;;  %v1973_v14 = vpack.c.bf16 %v9784_v19, %v1965_v27  ;;  %vm9787_vm11 = vmmov %vm9786_vm1  ;;  %vm9788_vm8 = vnez %v9544_v51  ;;  %v9806_v42 = vld [vmem:[#allocation33_spill] sm:$0xff]  ;;  %v9810_v1 = vld [vmem:[#allocation43_spill] sm:$0xff] }
 0x5a1   : > { %v1967_v40 = vsel %vm9783_vm14, %v1963_v29, 0.0  ;;  %v1972_v48 = vpack.c.bf16 %v9784_v19, %v1964_v43  ;;  %v1987_v46 = vand.u32 %v1974_v17, %v9785_v37  ;;  %vm9789_vm15 = vnez %v9537_v18  ;;  %v9812_v59 = vld [vmem:[#allocation46_spill] sm:$0xff]  ;;  %v9816_v29 = vld [vmem:[#allocation55_spill] sm:$0xff]  ;;  %v9817_v8 = vld [vmem:[#allocation56_spill] sm:$0xff] }
 0x5a2   : > { %v1975_v15 = vpack.c.bf16 %v9784_v19, %v1967_v40  ;;  %v1984_v60 = vand.u32 %v1973_v14, %v9785_v37  ;;  %vm9790_vm12 = vnez %v9553_v41  ;;  %vm9791_vm14 = vnez %v9546_v24  ;;  %v9819_v43 = vld [vmem:[#allocation57_spill] sm:$0xff]  ;;  %v9821_v27 = vld [vmem:[#allocation58_spill] sm:$0xff]  ;;  %v9823_v40 = vld [vmem:[#allocation59_spill] sm:$0xff] }
 0x5a3   : > { %v1981_v11 = vand.u32 %v1972_v48, %v9785_v37 }
 0x5a4   : > { %v1990_v16 = vand.u32 %v1975_v15, %v9785_v37  ;;  %1994 = vmatprep.subr.bf16.mxu0 %v1984_v60 }
 0x5a5   : > { %1995 = vmatpush1.bf16.msra.mxu0 %v1981_v11 }
 0x5a6   : > { %2035 = vmatprep.subr.bf16.mxu1 %v1990_v16  ;;  %5917 = vmatprep.subr.msk.bf16.mxu0 %vm9704_vm7, %v9640_v38 }
 0x5a7   : > { %2036 = vmatpush1.bf16.msra.mxu1 %v1987_v46 }
 0x5a8   : > { %5949 = vmatprep.subr.msk.bf16.mxu1 %vm9708_vm13, %v9640_v38  ;;  %4668 = vmatmul.mubr.msk.bf16.vlgmr.msra.gmra.mrb[28].mxu0 %vm9786_vm1, %v1976_v50  ;;  %vm9792_vm1 = vnez %v9571_v57 }
 0x5a9   : > { %5919 = vmatpush3.bf16.msk.msra.mxu0 %vm9709_vm2, %v9640_v38 }
 0x5aa   : > { %4675 = vmatmul.mubr.msk.bf16.vlgmr.msra.gmra.mrb[28].mxu1 %vm9787_vm11, %v1976_v50  ;;  %5921 = vmatprep.subr.msk.bf16.mxu0 %vm9711_vm5, %v9640_v38  ;;  %vm9793_vm11 = vnez %v9564_v12 }
 0x5ab   : > { %5951 = vmatpush3.bf16.msk.msra.mxu1 %vm9710_vm3, %v9640_v38 }
 0x5ac   : > { %5953 = vmatprep.subr.msk.bf16.mxu1 %vm9712_vm9, %v9640_v38 }
 0x5ad   : > { %5923 = vmatpush3.bf16.msk.msra.mxu0 %vm9788_vm8, %v9640_v38 }
 0x5ae   : > { %5925 = vmatprep.subr.msk.bf16.mxu0 %vm9790_vm12, %v9640_v38  ;;  %vm9796_vm12 = vnez %v9588_v62 }
 0x5af   : > { %5955 = vmatpush3.bf16.msk.msra.mxu1 %vm9789_vm15, %v9640_v38  ;;  %vm9795_vm15 = vnez %v9585_v13 }
 0x5b0   : > { %5957 = vmatprep.subr.msk.bf16.mxu1 %vm9791_vm14, %v9640_v38  ;;  %vm9797_vm14 = vnez %v9601_v30 }
 0x5b1   : > { %5927 = vmatpush3.bf16.msk.msra.mxu0 %vm9792_vm1, %v9640_v38  ;;  %vm9798_vm1 = vnez %v9606_v7 }
 0x5b2   : > { %5929 = vmatprep.subr.msk.bf16.mxu0 %vm9794_vm6, %v9640_v38  ;;  %vm9800_vm6 = vnez %v9611_v47 }
 0x5b3   : > { %5959 = vmatpush3.bf16.msk.msra.mxu1 %vm9793_vm11, %v9640_v38  ;;  %vm9799_vm11 = vnez %v9604_v33 }
 0x5b4   : > { %5961 = vmatprep.subr.msk.bf16.mxu1 %vm9795_vm15, %v9640_v38  ;;  %vm9801_vm15 = vnez %v9615_v28 }
 0x5b5   : > { %5931 = vmatpush3.bf16.msk.msra.mxu0 %vm9796_vm12, %v9640_v38  ;;  %vm9802_vm12 = vnez %v9621_v26 }
 0x5b6   : > { %5933 = vmatprep.subr.msk.bf16.mxu0 %vm9798_vm1, %v9640_v38  ;;  %vm9805_vm1 = vnez %v9804_v31 }
 0x5b7   : > { %5963 = vmatpush3.bf16.msk.msra.mxu1 %vm9797_vm14, %v9640_v38  ;;  %vm9803_vm14 = vnez %v9627_v22 }
 0x5b8   : > { %5965 = vmatprep.subr.msk.bf16.mxu1 %vm9799_vm11, %v9640_v38  ;;  %vm9807_vm11 = vnez %v9806_v42 }
 0x5b9   : > { %5935 = vmatpush3.bf16.msk.msra.mxu0 %vm9800_vm6, %v9640_v38  ;;  %vm9809_vm6 = vnez %v9808_v5 }
 0x5ba   : > { %5937 = vmatprep.subr.msk.bf16.mxu0 %vm9802_vm12, %v9640_v38  ;;  %vm9813_vm12 = vnez %v9812_v59 }
 0x5bb   : > { %5967 = vmatpush3.bf16.msk.msra.mxu1 %vm9801_vm15, %v9640_v38  ;;  %vm9811_vm15 = vnez %v9810_v1 }
 0x5bc   : > { %5969 = vmatprep.subr.msk.bf16.mxu1 %vm9803_vm14, %v9640_v38 }
 0x5bd   : > { %5939 = vmatpush3.bf16.msk.msra.mxu0 %vm9805_vm1, %v9640_v38 }
 0x5be   : > { %5941 = vmatprep.subr.msk.bf16.mxu0 %vm9809_vm6, %v9640_v38  ;;  %vm9818_vm6 = vnez %v9817_v8 }
 0x5bf   : > { %5971 = vmatpush3.bf16.msk.msra.mxu1 %vm9807_vm11, %v9640_v38 }
 0x5c0   : > { %5973 = vmatprep.subr.msk.bf16.mxu1 %vm9811_vm15, %v9640_v38  ;;  %vm9820_vm15 = vnez %v9819_v43 }
 0x5c1   : > { %5943 = vmatpush3.bf16.msk.msra.mxu0 %vm9813_vm12, %v9640_v38  ;;  %vm9822_vm12 = vnez %v9821_v27 }
 0x5c2   : > { %5945 = vmatprep.subr.msk.bf16.mxu0 %vm9734_vm10, %v9640_v38 }
 0x5c3   : > { %5975 = vmatpush3.bf16.msk.msra.mxu1 %vm9733_vm0, %v9640_v38  ;;  %vm9824_vm0 = vnez %v9823_v40 }
 0x5c4   : > { %5977 = vmatprep.subr.msk.bf16.mxu1 %vm9735_vm4, %v9640_v38  ;;  %vm9830_vm4 = vnez %v9702_v6 }
 0x5c5   : > { %5947 = vmatpush3.bf16.msk.msra.mxu0 %vm9818_vm6, %v9640_v38  ;;  %vm9829_vm6 = vnez %v9699_v4 }
 0x5c6   : > { %5981 = vmatprep.subr.msk.bf16.mxu0 %vm9822_vm12, %v9640_v38  ;;  %vm9827_vm12 = vnez %v9688_v23 }
 0x5c7   : > { %5979 = vmatpush3.bf16.msk.msra.mxu1 %vm9820_vm15, %v9640_v38  ;;  %vm9828_vm15 = vnez %v9697_v52 }
 0x5c8   : > { %5989 = vmatprep.subr.msk.bf16.mxu1 %vm9824_vm0, %v9640_v38  ;;  %vm9826_vm0 = vnez %v9686_v54 }
 0x67b   : > { %v8278_v17 = vpop.f32.mrb[28].mxu0 }
 0x67c   : > { %9825 = vst [vmem:[#allocation61_spill] sm:$0xff] %v8278_v17  ;;  %v2074_v14 = vrot.slane %v8278_v17, 4  ;;  %v8284_v60 = vpop.f32.mrb[29].mxu0 }
 0x67d   : > { %v8280_v48 = vpop.f32.mrb[28].mxu1  ;;  %v2080_v11 = vrot.slane %v8284_v60, 4  ;;  %v2030_v50 = vpop.f32.mrb[30].mxu0 }
 0x67e   : > { %v2086_v15 = vrot.slane %v8280_v48, 4  ;;  %v8286_v16 = vpop.f32.mrb[29].mxu1  ;;  %v2075_v19 = vadd.f32 %v2074_v14, %v8278_v17  ;;  %v2031_v44 = vpop.f32.mrb[31].mxu0 }
 0x67f   : > { %v2092_v46 = vrot.slane %v8286_v16, 4  ;;  %v2071_v37 = vpop.f32.mrb[30].mxu1  ;;  %v2081_v58 = vadd.f32 %v2080_v11, %v8284_v60 }
 0x680   : > { %v2087_v61 = vadd.f32 %v2086_v15, %v8280_v48  ;;  %v2072_v21 = vpop.f32.mrb[31].mxu1  ;;  %v2076_v45 = vrot.slane %v2075_v19, 2 }
 0x681   : > { %v2093_v49 = vadd.f32 %v2092_v46, %v8286_v16  ;;  %v2082_v0 = vrot.slane %v2081_v58, 2 }
 0x682   : > { %v2088_v35 = vrot.slane %v2087_v61, 2  ;;  %v2077_v9 = vadd.f32 %v2076_v45, %v2075_v19  ;;  %v9858_v19 = vld [vmem:[#allocation59_spill] sm:$0xff] }
 0x683   : > { %v2094_v2 = vrot.slane %v2093_v49, 2  ;;  %v2083_v40 = vadd.f32 %v2082_v0, %v2081_v58  ;;  %v9854_v58 = vld [vmem:[#allocation57_spill] sm:$0xff] }
 0x684   : > { %v2089_v36 = vadd.f32 %v2088_v35, %v2087_v61  ;;  %v2078_v50 = vrot.slane %v2077_v9, 1  ;;  %v9856_v61 = vld [vmem:[#allocation58_spill] sm:$0xff] }
 0x685   : > { %v2095_v27 = vadd.f32 %v2094_v2, %v2093_v49  ;;  %v2084_v43 = vrot.slane %v2083_v40, 1 }
 0x686   : > { %v2090_v37 = vrot.slane %v2089_v36, 1  ;;  %v2079_v44 = vadd.f32 %v2078_v50, %v2077_v9 }
 0x687   : > { %v2096_v14 = vrot.slane %v2095_v27, 1  ;;  %v2085_v17 = vadd.f32 %v2084_v43, %v2083_v40 }
 0x688   : > { %v2091_v21 = vadd.f32 %v2090_v37, %v2089_v36 }
 0x689   : > { %v2097_v15 = vadd.f32 %v2096_v14, %v2095_v27  ;;  %2162 = vmatprep.mubr.f32.mxu0 %v2085_v17  ;;  %v9860_v14 = vld [vmem:[#allocation6_spill] sm:$0xff] }
 0x68a   : > { %2163 = vmatmul.mubr.f32.vlgmr.msra.gmra.mrb[32].mxu0 %v2079_v44 }
 0x68b   : > { %2232 = vmatprep.mubr.f32.mxu1 %v2097_v15  ;;  %5983 = vmatpush1.bf16.msk.msra.mxu0 %vm9826_vm0, %v9640_v38  ;;  %vm9831_vm0 = vnez %v9706_v53 }
 0x68c   : > { %2233 = vmatmul.mubr.f32.vlgmr.msra.gmra.mrb[32].mxu1 %v2091_v21  ;;  %5985 = vmatprep.subr.msk.bf16.mxu0 %vm9828_vm15, %v9640_v38 }
 0x68d   : > { %5991 = vmatpush1.bf16.msk.msra.mxu1 %vm9827_vm12, %v9640_v38  ;;  %2305 = vmatprep.mubr.f32.mxu0 %v9695_v20 }
 0x68e   : > { %5993 = vmatprep.subr.msk.bf16.mxu1 %vm9829_vm6, %v9640_v38  ;;  %2376 = vmatprep.mubr.f32.mxu1 %v9695_v20 }
 0x68f   : > { %5987 = vmatpush1.bf16.msk.msra.mxu0 %vm9830_vm4, %v9640_v38  ;;  %vm9832_vm4 = vcmask 261120  }
 0x690   : > { %5997 = vmatprep.subr.msk.bf16.mxu0 %vm9704_vm7, %v9640_v38  ;;  %vm9833_vm6 = vmmov %vm9832_vm4 }
 0x691   : > { %5995 = vmatpush1.bf16.msk.msra.mxu1 %vm9831_vm0, %v9640_v38 }
 0x692   : > { %6029 = vmatprep.subr.msk.bf16.mxu1 %vm9708_vm13, %v9640_v38 }
 0x75d   : > { %v5360_v2 = vpop.f32.mrb[32].mxu0 }
 0x75e   : > { %v5361_v9 = vpop.f32.mrb[33].mxu0 }
 0x75f   : > { %v5395_v36 = vpop.f32.mrb[32].mxu1  ;;  %v5362_v35 = vadd.f32 %v5361_v9, %v5360_v2 }
 0x760   : > { %v5396_v0 = vpop.f32.mrb[33].mxu1 }
 0x761   : > { %v5397_v45 = vadd.f32 %v5396_v0, %v5395_v36  ;;  %v9861_v36 = vld [vmem:[#allocation61_spill] sm:$0xff] }
 0x763   : > { %v2235_v49 = vadd.f32 %v5397_v45, %v5362_v35 }
 0x765   : > { %4748 = vmatmul.mubr.msk.f32.vlgmr.msra.gmra.mrb[34].mxu0 %vm9832_vm4, %v2235_v49  ;;  %4757 = vmatmul.mubr.msk.f32.vlgmr.msra.gmra.mrb[34].mxu1 %vm9833_vm6, %v2235_v49  ;;  %vm9834_vm4 = vnez %v9537_v18  ;;  %vm9835_vm6 = vnez %v9553_v41 }
 0x766   : > { %5999 = vmatpush3.bf16.msk.msra.mxu0 %vm9709_vm2, %v9640_v38  ;;  %6031 = vmatpush3.bf16.msk.msra.mxu1 %vm9710_vm3, %v9640_v38  ;;  %vm9836_vm3 = vnez %v9546_v24 }
 0x767   : > { %6001 = vmatprep.subr.msk.bf16.mxu0 %vm9711_vm5, %v9640_v38  ;;  %6033 = vmatprep.subr.msk.bf16.mxu1 %vm9712_vm9, %v9640_v38  ;;  %vm9837_vm5 = vnez %v9571_v57  ;;  %vm9838_vm9 = vnez %v9564_v12 }
 0x76a   : > { %6003 = vmatpush3.bf16.msk.msra.mxu0 %vm9788_vm8, %v9640_v38  ;;  %6035 = vmatpush3.bf16.msk.msra.mxu1 %vm9834_vm4, %v9640_v38  ;;  %vm9839_vm8 = vnez %v9582_v32  ;;  %vm9840_vm4 = vnez %v9585_v13 }
 0x76b   : > { %6005 = vmatprep.subr.msk.bf16.mxu0 %vm9835_vm6, %v9640_v38  ;;  %6037 = vmatprep.subr.msk.bf16.mxu1 %vm9836_vm3, %v9640_v38  ;;  %vm9841_vm6 = vnez %v9588_v62  ;;  %vm9842_vm3 = vnez %v9601_v30 }
 0x76e   : > { %6007 = vmatpush3.bf16.msk.msra.mxu0 %vm9837_vm5, %v9640_v38  ;;  %6039 = vmatpush3.bf16.msk.msra.mxu1 %vm9838_vm9, %v9640_v38  ;;  %vm9843_vm5 = vnez %v9606_v7  ;;  %vm9844_vm9 = vnez %v9604_v33 }
 0x76f   : > { %6009 = vmatprep.subr.msk.bf16.mxu0 %vm9839_vm8, %v9640_v38  ;;  %6041 = vmatprep.subr.msk.bf16.mxu1 %vm9840_vm4, %v9640_v38  ;;  %vm9845_vm8 = vnez %v9611_v47  ;;  %vm9846_vm4 = vnez %v9615_v28 }
 0x772   : > { %6011 = vmatpush3.bf16.msk.msra.mxu0 %vm9841_vm6, %v9640_v38  ;;  %6043 = vmatpush3.bf16.msk.msra.mxu1 %vm9842_vm3, %v9640_v38  ;;  %vm9847_vm6 = vnez %v9621_v26 }
 0x773   : > { %6013 = vmatprep.subr.msk.bf16.mxu0 %vm9843_vm5, %v9640_v38  ;;  %6045 = vmatprep.subr.msk.bf16.mxu1 %vm9844_vm9, %v9640_v38 }
 0x776   : > { %6015 = vmatpush3.bf16.msk.msra.mxu0 %vm9845_vm8, %v9640_v38  ;;  %6047 = vmatpush3.bf16.msk.msra.mxu1 %vm9846_vm4, %v9640_v38  ;;  %vm9848_vm8 = vnez %v9808_v5  ;;  %vm9849_vm4 = vnez %v9810_v1 }
 0x777   : > { %6017 = vmatprep.subr.msk.bf16.mxu0 %vm9847_vm6, %v9640_v38  ;;  %6049 = vmatprep.subr.msk.bf16.mxu1 %vm9803_vm14, %v9640_v38  ;;  %vm9850_vm6 = vnez %v9812_v59  ;;  %vm9851_vm14 = vnez %v9814_v3 }
 0x77a   : > { %6019 = vmatpush3.bf16.msk.msra.mxu0 %vm9805_vm1, %v9640_v38  ;;  %6051 = vmatpush3.bf16.msk.msra.mxu1 %vm9807_vm11, %v9640_v38  ;;  %vm9852_vm11 = vnez %v9816_v29 }
 0x77b   : > { %6021 = vmatprep.subr.msk.bf16.mxu0 %vm9848_vm8, %v9640_v38  ;;  %6053 = vmatprep.subr.msk.bf16.mxu1 %vm9849_vm4, %v9640_v38  ;;  %vm9853_vm8 = vnez %v9817_v8  ;;  %vm9855_vm4 = vnez %v9854_v58 }
 0x77e   : > { %6023 = vmatpush3.bf16.msk.msra.mxu0 %vm9850_vm6, %v9640_v38  ;;  %6055 = vmatpush3.bf16.msk.msra.mxu1 %vm9851_vm14, %v9640_v38  ;;  %vm9857_vm6 = vnez %v9856_v61  ;;  %vm9859_vm14 = vnez %v9858_v19 }
 0x77f   : > { %6025 = vmatprep.subr.msk.bf16.mxu0 %vm9734_vm10, %v9640_v38  ;;  %6057 = vmatprep.subr.msk.bf16.mxu1 %vm9852_vm11, %v9640_v38 }
 0x782   : > { %6027 = vmatpush3.bf16.msk.msra.mxu0 %vm9853_vm8, %v9640_v38  ;;  %6059 = vmatpush3.bf16.msk.msra.mxu1 %vm9855_vm4, %v9640_v38  ;;  %vm9864_vm4 = vnez %v9702_v6 }
 0x783   : > { %6061 = vmatprep.subr.msk.bf16.mxu0 %vm9857_vm6, %v9640_v38  ;;  %6069 = vmatprep.subr.msk.bf16.mxu1 %vm9859_vm14, %v9640_v38  ;;  %vm9862_vm14 = vnez %v9686_v54  ;;  %vm9863_vm6 = vnez %v9699_v4 }
 0x838   : > { %v2307_v43 = vpop.f32.mrb[34].mxu0  ;;  %v2378_v27 = vpop.f32.mrb[34].mxu1 }
 0x839   : > { %v2383_v40 = vmul.f32 0.0078125, %v2307_v43  ;;  %v2385_v17 = vmul.f32 0.0078125, %v2378_v27  ;;  %v2309_v11 = vpop.f32.mrb[35].mxu0  ;;  %v2380_v46 = vpop.f32.mrb[35].mxu1 }
 0x83a   : > { %v2384_v50 = vmul.f32 0.0078125, %v2309_v11  ;;  %v2386_v37 = vmul.f32 0.0078125, %v2380_v46 }
 0x83b   : > { %v2390_v15 = vrot.slane %v2383_v40, %v9860_v14  ;;  %v2398_v44 = vrot.slane %v2385_v17, %v9860_v14 }
 0x83c   : > { %v2394_v21 = vrot.slane %v2384_v50, %v9860_v14  ;;  %v2402_v2 = vrot.slane %v2386_v37, %v9860_v14 }
 0x83d   : > { %v8423_v9 = vsub.f32 %v9861_v36, %v2390_v15  ;;  %v8426_v0 = vsub.f32 %v8280_v48, %v2398_v44 }
 0x83e   : > { %v8429_v35 = vsub.f32 %v8284_v60, %v2394_v21  ;;  %v8432_v45 = vsub.f32 %v8286_v16, %v2402_v2 }
 0x83f   : > { %v2407_v49 = vmul.f32 %v8423_v9, %v8423_v9  ;;  %v2409_v43 = vmul.f32 %v8426_v0, %v8426_v0 }
 0x840   : > { %v2408_v27 = vmul.f32 %v8429_v35, %v8429_v35  ;;  %v2410_v40 = vmul.f32 %v8432_v45, %v8432_v45 }
 0x841   : > { %v2411_v48 = vrot.slane %v2407_v49, 4  ;;  %v2423_v17 = vrot.slane %v2409_v43, 4 }
 0x842   : > { %v2417_v11 = vrot.slane %v2408_v27, 4  ;;  %v2429_v60 = vrot.slane %v2410_v40, 4 }
 0x843   : > { %v2412_v46 = vadd.f32 %v2411_v48, %v2407_v49  ;;  %v2424_v50 = vadd.f32 %v2423_v17, %v2409_v43 }
 0x844   : > { %v2418_v16 = vadd.f32 %v2417_v11, %v2408_v27  ;;  %v2430_v37 = vadd.f32 %v2429_v60, %v2410_v40 }
 0x845   : > { %v2413_v15 = vrot.slane %v2412_v46, 2  ;;  %v2425_v44 = vrot.slane %v2424_v50, 2 }
 0x846   : > { %v2419_v21 = vrot.slane %v2418_v16, 2  ;;  %v2431_v2 = vrot.slane %v2430_v37, 2 }
 0x847   : > { %v2414_v36 = vadd.f32 %v2413_v15, %v2412_v46  ;;  %v2426_v19 = vadd.f32 %v2425_v44, %v2424_v50 }
 0x848   : > { %v2420_v61 = vadd.f32 %v2419_v21, %v2418_v16  ;;  %v2432_v58 = vadd.f32 %v2431_v2, %v2430_v37 }
 0x849   : > { %v2415_v8 = vrot.slane %v2414_v36, 1  ;;  %v2427_v29 = vrot.slane %v2426_v19, 1 }
 0x84a   : > { %v2421_v39 = vrot.slane %v2420_v61, 1  ;;  %v2433_v3 = vrot.slane %v2432_v58, 1 }
 0x84b   : > { %v2416_v5 = vadd.f32 %v2415_v8, %v2414_v36  ;;  %v2428_v42 = vadd.f32 %v2427_v29, %v2426_v19  ;;  %v9867_v8 = vmov 0  }
 0x84c   : > { %v2422_v59 = vadd.f32 %v2421_v39, %v2420_v61  ;;  %v2434_v1 = vadd.f32 %v2433_v3, %v2432_v58 }
 0x84e   : > { %2499 = vmatprep.mubr.f32.mxu0 %v2422_v59  ;;  %2569 = vmatprep.mubr.f32.mxu1 %v2434_v1 }
 0x84f   : > { %2500 = vmatmul.mubr.f32.vlgmr.msra.gmra.mrb[36].mxu0 %v2416_v5  ;;  %2570 = vmatmul.mubr.f32.vlgmr.msra.gmra.mrb[36].mxu1 %v2428_v42 }
 0x850   : > { %6063 = vmatpush1.bf16.msk.msra.mxu0 %vm9862_vm14, %v9640_v38  ;;  %6071 = vmatpush1.bf16.msk.msra.mxu1 %vm9827_vm12, %v9640_v38 }
 0x851   : > { %6065 = vmatprep.subr.msk.bf16.mxu0 %vm9828_vm15, %v9640_v38  ;;  %6073 = vmatprep.subr.msk.bf16.mxu1 %vm9863_vm6, %v9640_v38  ;;  %vm9865_vm6 = vcmask 261120  }
 0x852   : > { %2642 = vmatprep.mubr.f32.mxu0 %v9695_v20  ;;  %2713 = vmatprep.mubr.f32.mxu1 %v9695_v20  ;;  %vm9866_vm15 = vmmov %vm9865_vm6 }
 0x854   : > { %6067 = vmatpush1.bf16.msk.msra.mxu0 %vm9864_vm4, %v9640_v38  ;;  %6075 = vmatpush1.bf16.msk.msra.mxu1 %vm9831_vm0, %v9640_v38 }
 0x922   : > { %v5430_v42 = vpop.f32.mrb[36].mxu0  ;;  %v5465_v5 = vpop.f32.mrb[36].mxu1 }
 0x923   : > { %v5431_v1 = vpop.f32.mrb[37].mxu0  ;;  %v5466_v59 = vpop.f32.mrb[37].mxu1 }
 0x924   : > { %v5432_v3 = vadd.f32 %v5431_v1, %v5430_v42  ;;  %v5467_v39 = vadd.f32 %v5466_v59, %v5465_v5  ;;  %v9868_v59 = vld [vmem:[#allocation24_spill] sm:$0xff] }
 0x926   : > { %v2572_v29 = vadd.f32 %v5467_v39, %v5432_v3 }
 0x928   : > { %4830 = vmatmul.mubr.msk.f32.vlgmr.msra.gmra.mrb[38].mxu0 %vm9865_vm6, %v2572_v29  ;;  %4839 = vmatmul.mubr.msk.f32.vlgmr.msra.gmra.mrb[38].mxu1 %vm9866_vm15, %v2572_v29  ;;  %v9869_v29 = vld [vmem:[#allocation25_spill] sm:$0xff] }
 0x929   : > { %2852 = vmatprep.mubr.bf16.mxu0 %v9867_v8  ;;  %2893 = vmatprep.mubr.bf16.mxu1 %v9867_v8 }
 0x9fb   : > { %v2644_v58 = vpop.f32.mrb[38].mxu0  ;;  %v2715_v61 = vpop.f32.mrb[38].mxu1 }
 0x9fc   : > { %v2720_v19 = vmul.f32 0.0078125, %v2644_v58  ;;  %v2722_v49 = vmul.f32 0.0078125, %v2715_v61  ;;  %v2646_v43 = vpop.f32.mrb[39].mxu0  ;;  %v2717_v27 = vpop.f32.mrb[39].mxu1  ;;  %v9870_v58 = vld [vmem:[#allocation26_spill] sm:$0xff] }
 0x9fd   : > { %v2721_v40 = vmul.f32 0.0078125, %v2646_v43  ;;  %v2723_v48 = vmul.f32 0.0078125, %v2717_v27  ;;  %v9872_v43 = vld [vmem:[#allocation27_spill] sm:$0xff] }
 0x9fe   : > { %v2724_v17 = vadd.f32 1e-05, %v2720_v19  ;;  %v2726_v11 = vadd.f32 1e-05, %v2722_v49  ;;  %v9871_v19 = vld [vmem:[#allocation28_spill] sm:$0xff] }
 0x9ff   : > { %v2725_v60 = vadd.f32 1e-05, %v2721_v40  ;;  %v2727_v46 = vadd.f32 1e-05, %v2723_v48  ;;  %v9873_v40 = vld [vmem:[#allocation29_spill] sm:$0xff]  ;;  %v9874_v48 = vld [vmem:[#allocation31_spill] sm:$0xff] }
 0xa00   : > { %6512 = vrsqrt.f32 %v2724_v17 }
 0xa01   : > { %6514 = vrsqrt.f32 %v2726_v11 }
 0xa02   : > { %6516 = vrsqrt.f32 %v2725_v60 }
 0xa03   : > { %6518 = vrsqrt.f32 %v2727_v46 }
 0xa0a   : > { %v6513_v50 = vpop.eup %6512 }
 0xa0b   : > { %v6515_v16 = vpop.eup %6514  ;;  %v2735_v37 = vrot.slane %v6513_v50, %v9860_v14 }
 0xa0c   : > { %v6517_v15 = vpop.eup %6516  ;;  %v2743_v44 = vrot.slane %v6515_v16, %v9860_v14 }
 0xa0d   : > { %v6519_v21 = vpop.eup %6518  ;;  %v2739_v2 = vrot.slane %v6517_v15, %v9860_v14  ;;  %v2748_v36 = vmul.f32 %v2735_v37, %v8423_v9 }
 0xa0e   : > { %v2747_v42 = vrot.slane %v6519_v21, %v9860_v14  ;;  %v2750_v5 = vmul.f32 %v2743_v44, %v8426_v0  ;;  %v9875_v0 = vld [vmem:[#allocation32_spill] sm:$0xff] }
 0xa0f   : > { %v2749_v1 = vmul.f32 %v2739_v2, %v8429_v35  ;;  %v2752_v3 = vmul.f32 %v2748_v36, %v9868_v59 }
 0xa10   : > { %v2751_v39 = vmul.f32 %v2747_v42, %v8432_v45  ;;  %v2754_v8 = vmul.f32 %v2750_v5, %v9869_v29  ;;  %v9876_v42 = vld [vmem:[#allocation5_spill] sm:$0xff] }
 0xa11   : > { %v2753_v61 = vmul.f32 %v2749_v1, %v9870_v58  ;;  %v2756_v49 = vadd.f32 %v2752_v3, %v9871_v19  ;;  %vm9877_vm15 = vcmp.lt.s32.totalorder %v9876_v42, 1 }
 0xa12   : > { %v2755_v27 = vmul.f32 %v2751_v39, %v9872_v43  ;;  %v2758_v9 = vadd.f32 %v2754_v8, %v9873_v40  ;;  %vm9878_vm6 = vmmov %vm9877_vm15 }
 0xa13   : > { %v2757_v17 = vadd.f32 %v2753_v61, %v9874_v48  ;;  %v2760_v11 = vmax.f32 %v2756_v49, 0.0  ;;  %vm9879_vm0 = vmmov %vm9878_vm6  ;;  %v9883_v48 = vld [vmem:[#allocation14_spill] sm:$0xff] }
 0xa14   : > { %v2759_v60 = vadd.f32 %v2755_v27, %v9875_v0  ;;  %v2762_v35 = vmax.f32 %v2758_v9, 0.0  ;;  %vm9880_vm4 = vmmov %vm9879_vm0  ;;  %v9881_v9 = vld [vmem:[#allocation12_spill] sm:$0xff] }
 0xa15   : > { %v2761_v46 = vmax.f32 %v2757_v17, 0.0  ;;  %v9885_v17 = vld [vmem:[#allocation13_spill] sm:$0xff] }
 0xa16   : > { %v2763_v50 = vmax.f32 %v2759_v60, 0.0 }
 0xa17   : > { %v6483_v16 = vpack.i.bf16 %v2761_v46, %v2760_v11 }
 0xa18   : > { %v6488_v45 = vpack.i.bf16 %v2763_v50, %v2762_v35 }
 0xa19   : > { %6484 = vrot.lane.b32.xlu0 %v6483_v16, %s6601_s10 }
 0xa1a   : > { %6489 = vrot.lane.b32.xlu1 %v6488_v45, %s6601_s10 }
 0xa1d   : > { %6494 = vrot.lane.b32.xlu0 %v6483_v16, %s6602_s11 }
 0xa1e   : > { %6499 = vrot.lane.b32.xlu1 %v6488_v45, %s6602_s11  ;;  %v9895_v45 = vld [vmem:[#allocation9_spill] sm:$0xff] }
 0xa8b   : > { %v6485_v37 = vpop.permute.xlu0 %6484 }
 0xa8c   : > { %v6490_v15 = vpop.permute.xlu1 %6489  ;;  %v6487_v44 = vunpack.i.h.bf16 %v6485_v37  ;;  %v6486_v21 = vunpack.i.l.bf16 %v6485_v37 }
 0xa8d   : > { %v6492_v2 = vunpack.i.h.bf16 %v6490_v15  ;;  %v6491_v36 = vunpack.i.l.bf16 %v6490_v15  ;;  %v9897_v15 = vld [vmem:[#allocation7_spill] sm:$0xff] }
 0xa8e   : > { %v2774_v5 = vsel %vm9877_vm15, %v6486_v21, %v6487_v44  ;;  %vm9882_vm15 = vnez %v9881_v9 }
 0xa8f   : > { %v2772_v1 = vsel %vm9878_vm6, %v6491_v36, %v6492_v2  ;;  %v2773_v59 = vsel %vm9879_vm0, %v6487_v44, %v6491_v36  ;;  %v2775_v3 = vsel %vm9880_vm4, %v6492_v2, %v6486_v21  ;;  %v4841_v39 = vpack.c.bf16 %v2761_v46, %v2774_v5  ;;  %v6495_v29 = vpop.permute.xlu0 %6494  ;;  %v9891_v46 = vld [vmem:[#allocation15_spill] sm:$0xff] }
 0xa90   : > { %v4848_v8 = vpack.c.bf16 %v2763_v50, %v2772_v1  ;;  %v4851_v58 = vpack.c.bf16 %v2762_v35, %v2773_v59  ;;  %v4844_v61 = vpack.c.bf16 %v2760_v11, %v2775_v3  ;;  %v6500_v19 = vpop.permute.xlu1 %6499  ;;  %v6497_v49 = vunpack.i.h.bf16 %v6495_v29  ;;  %v9893_v50 = vld [vmem:[#allocation8_spill] sm:$0xff]  ;;  %v9899_v21 = vld [vmem:[#allocation11_spill] sm:$0xff]  ;;  %v9902_v3 = vld [vmem:[#allocation10_spill] sm:$0xff] }
 0xa91   : > { %v6502_v43 = vunpack.i.h.bf16 %v6500_v19  ;;  %v6501_v27 = vunpack.i.l.bf16 %v6500_v19  ;;  %v6496_v40 = vunpack.i.l.bf16 %v6495_v29  ;;  %4842 = vmatprep.subr.msk.bf16.mxu0 %vm9882_vm15, %v4841_v39  ;;  %vm9884_vm6 = vnez %v9883_v48  ;;  %v9921_v19 = vld [vmem:[#allocation33_spill] sm:$0xff]  ;;  %v9932_v48 = vld [vmem:[#allocation55_spill] sm:$0xff] }
 0xa92   : > { %4849 = vmatprep.subr.msk.bf16.mxu1 %vm9884_vm6, %v4848_v8  ;;  %vm9886_vm0 = vnez %v9885_v17  ;;  %vm9887_vm4 = vcmp.lt.s32.totalorder %v9876_v42, 127  ;;  %vm9892_vm15 = vnez %v9891_v46  ;;  %vm9894_vm6 = vcmp.lt.s32.totalorder %v9893_v50, 16  ;;  %v9933_v17 = vld [vmem:[#allocation56_spill] sm:$0xff] }
 0xa93   : > { %4845 = vmatpush1.bf16.msk.msra.mxu0 %vm9886_vm0, %v4844_v61  ;;  %v2788_v0 = vsel %vm9887_vm4, %v6501_v27, %v6502_v43  ;;  %vm9888_vm12 = vmmov %vm9887_vm4  ;;  %4852 = vmatpush1.bf16.msk.msra.mxu1 %vm9892_vm15, %v4851_v58  ;;  %vm9896_vm0 = vcmp.lt.s32.totalorder %v9895_v45, 16  ;;  %v9901_v36 = vmov 1.0   ;;  %v2804_v61 = vld [vmem:[%s9197_s3] sm:$0xf]  ;;  %vm9905_vm15 = vnez %v9503_v34 }
 0xa94   : > { %v2789_v11 = vsel %vm9888_vm12, %v6497_v49, %v6501_v27  ;;  %vm9889_vm14 = vmmov %vm9887_vm4  ;;  %v2794_v16 = vsel %vm9894_vm6, %v2788_v0, 0.0  ;;  %vm9900_vm12 = vcmp.lt.s32.totalorder %v9899_v21, 16  ;;  %vm9906_vm6 = vnez %v9526_v25  ;;  %v9927_v27 = vld [vmem:[#allocation46_spill] sm:$0xff]  ;;  %v9935_v0 = vld [vmem:[#allocation57_spill] sm:$0xff] }
 0xa95   : > { %v2790_v60 = vsel %vm9889_vm14, %v6496_v40, %v6497_v49  ;;  %vm9890_vm8 = vmmov %vm9887_vm4  ;;  %v2793_v37 = vsel %vm9896_vm0, %v2789_v11, 0.0  ;;  %vm9898_vm4 = vcmp.lt.s32.totalorder %v9897_v15, 16  ;;  %v2802_v5 = vpack.c.bf16 %v9901_v36, %v2794_v16  ;;  %v9923_v49 = vld [vmem:[#allocation38_spill] sm:$0xff] }
 0xa96   : > { %v2791_v35 = vsel %vm9890_vm8, %v6502_v43, %v6496_v40  ;;  %v2792_v44 = vsel %vm9898_vm4, %v2790_v60, 0.0  ;;  %v2801_v1 = vpack.c.bf16 %v9901_v36, %v2793_v37  ;;  %vm9903_vm8 = vcmask 203776   ;;  %v9925_v43 = vld [vmem:[#allocation43_spill] sm:$0xff]  ;;  %v9929_v40 = vld [vmem:[#allocation49_spill] sm:$0xff]  ;;  %v9937_v11 = vld [vmem:[#allocation58_spill] sm:$0xff] }
 0xa97   : > { %v2795_v2 = vsel %vm9900_vm12, %v2791_v35, 0.0  ;;  %v2800_v42 = vpack.c.bf16 %v9901_v36, %v2792_v44  ;;  %v2815_v58 = vand.u32 %v2802_v5, %v9902_v3  ;;  %vm9904_vm14 = vmmov %vm9903_vm8  ;;  %vm9907_vm0 = vnez %v9515_v63  ;;  %v9939_v60 = vld [vmem:[#allocation59_spill] sm:$0xff] }
 0xa98   : > { %v2803_v59 = vpack.c.bf16 %v9901_v36, %v2795_v2  ;;  %v2812_v39 = vand.u32 %v2801_v1, %v9902_v3  ;;  %vm9908_vm4 = vnez %v9544_v51  ;;  %vm9909_vm12 = vnez %v9537_v18 }
 0xa99   : > { %v2809_v8 = vand.u32 %v2800_v42, %v9902_v3 }
 0xa9a   : > { %v2818_v29 = vand.u32 %v2803_v59, %v9902_v3  ;;  %2822 = vmatprep.subr.bf16.mxu0 %v2812_v39 }
 0xa9b   : > { %2823 = vmatpush1.bf16.msra.mxu0 %v2809_v8 }
 0xa9c   : > { %2863 = vmatprep.subr.bf16.mxu1 %v2818_v29  ;;  %6077 = vmatprep.subr.msk.bf16.mxu0 %vm9704_vm7, %v9640_v38 }
 0xa9d   : > { %2864 = vmatpush1.bf16.msra.mxu1 %v2815_v58 }
 0xa9e   : > { %6109 = vmatprep.subr.msk.bf16.mxu1 %vm9708_vm13, %v9640_v38  ;;  %4846 = vmatmul.mubr.msk.bf16.vlgmr.msra.gmra.mrb[40].mxu0 %vm9903_vm8, %v2804_v61  ;;  %vm9910_vm8 = vnez %v9553_v41 }
 0xa9f   : > { %6079 = vmatpush3.bf16.msk.msra.mxu0 %vm9709_vm2, %v9640_v38 }
 0xaa0   : > { %4853 = vmatmul.mubr.msk.bf16.vlgmr.msra.gmra.mrb[40].mxu1 %vm9904_vm14, %v2804_v61  ;;  %6081 = vmatprep.subr.msk.bf16.mxu0 %vm9906_vm6, %v9640_v38  ;;  %vm9911_vm14 = vnez %v9546_v24  ;;  %vm9912_vm6 = vnez %v9571_v57 }
 0xaa1   : > { %6111 = vmatpush3.bf16.msk.msra.mxu1 %vm9905_vm15, %v9640_v38 }
 0xaa2   : > { %6113 = vmatprep.subr.msk.bf16.mxu1 %vm9907_vm0, %v9640_v38  ;;  %vm9913_vm0 = vnez %v9564_v12 }
 0xaa3   : > { %6083 = vmatpush3.bf16.msk.msra.mxu0 %vm9908_vm4, %v9640_v38  ;;  %vm9914_vm4 = vnez %v9582_v32 }
 0xaa4   : > { %6085 = vmatprep.subr.msk.bf16.mxu0 %vm9910_vm8, %v9640_v38  ;;  %vm9916_vm8 = vnez %v9588_v62 }
 0xaa5   : > { %6115 = vmatpush3.bf16.msk.msra.mxu1 %vm9909_vm12, %v9640_v38  ;;  %vm9915_vm12 = vnez %v9585_v13 }
 0xaa6   : > { %6117 = vmatprep.subr.msk.bf16.mxu1 %vm9911_vm14, %v9640_v38 }
 0xaa7   : > { %6087 = vmatpush3.bf16.msk.msra.mxu0 %vm9912_vm6, %v9640_v38 }
 0xaa8   : > { %6089 = vmatprep.subr.msk.bf16.mxu0 %vm9914_vm4, %v9640_v38  ;;  %vm9917_vm4 = vnez %v9611_v47 }
 0xaa9   : > { %6119 = vmatpush3.bf16.msk.msra.mxu1 %vm9913_vm0, %v9640_v38 }
 0xaaa   : > { %6121 = vmatprep.subr.msk.bf16.mxu1 %vm9915_vm12, %v9640_v38  ;;  %vm9918_vm12 = vnez %v9615_v28 }
 0xaab   : > { %6091 = vmatpush3.bf16.msk.msra.mxu0 %vm9916_vm8, %v9640_v38  ;;  %vm9919_vm8 = vnez %v9621_v26 }
 0xaac   : > { %6093 = vmatprep.subr.msk.bf16.mxu0 %vm9843_vm5, %v9640_v38 }
 0xaad   : > { %6123 = vmatpush3.bf16.msk.msra.mxu1 %vm9842_vm3, %v9640_v38  ;;  %vm9920_vm3 = vnez %v9627_v22 }
 0xaae   : > { %6125 = vmatprep.subr.msk.bf16.mxu1 %vm9844_vm9, %v9640_v38  ;;  %vm9922_vm9 = vnez %v9921_v19 }
 0xaaf   : > { %6095 = vmatpush3.bf16.msk.msra.mxu0 %vm9917_vm4, %v9640_v38  ;;  %vm9924_vm4 = vnez %v9923_v49 }
 0xab0   : > { %6097 = vmatprep.subr.msk.bf16.mxu0 %vm9919_vm8, %v9640_v38  ;;  %vm9928_vm8 = vnez %v9927_v27 }
 0xab1   : > { %6127 = vmatpush3.bf16.msk.msra.mxu1 %vm9918_vm12, %v9640_v38  ;;  %vm9926_vm12 = vnez %v9925_v43 }
 0xab2   : > { %6129 = vmatprep.subr.msk.bf16.mxu1 %vm9920_vm3, %v9640_v38  ;;  %vm9930_vm3 = vnez %v9929_v40 }
 0xab3   : > { %6099 = vmatpush3.bf16.msk.msra.mxu0 %vm9805_vm1, %v9640_v38 }
 0xab4   : > { %6101 = vmatprep.subr.msk.bf16.mxu0 %vm9924_vm4, %v9640_v38  ;;  %vm9934_vm4 = vnez %v9933_v17 }
 0xab5   : > { %6131 = vmatpush3.bf16.msk.msra.mxu1 %vm9922_vm9, %v9640_v38 }
 0xab6   : > { %6133 = vmatprep.subr.msk.bf16.mxu1 %vm9926_vm12, %v9640_v38  ;;  %vm9936_vm12 = vnez %v9935_v0 }
 0xab7   : > { %6103 = vmatpush3.bf16.msk.msra.mxu0 %vm9928_vm8, %v9640_v38  ;;  %vm9938_vm8 = vnez %v9937_v11 }
 0xab8   : > { %6105 = vmatprep.subr.msk.bf16.mxu0 %vm9734_vm10, %v9640_v38 }
 0xab9   : > { %6135 = vmatpush3.bf16.msk.msra.mxu1 %vm9930_vm3, %v9640_v38  ;;  %vm9940_vm3 = vnez %v9939_v60 }
 0xaba   : > { %6137 = vmatprep.subr.msk.bf16.mxu1 %vm9852_vm11, %v9640_v38  ;;  %vm9946_vm11 = vnez %v9702_v6 }
 0xabb   : > { %6107 = vmatpush3.bf16.msk.msra.mxu0 %vm9934_vm4, %v9640_v38  ;;  %vm9945_vm4 = vnez %v9699_v4 }
 0xabc   : > { %6141 = vmatprep.subr.msk.bf16.mxu0 %vm9938_vm8, %v9640_v38  ;;  %vm9943_vm8 = vnez %v9688_v23 }
 0xabd   : > { %6139 = vmatpush3.bf16.msk.msra.mxu1 %vm9936_vm12, %v9640_v38  ;;  %vm9944_vm12 = vnez %v9697_v52 }
 0xabe   : > { %6149 = vmatprep.subr.msk.bf16.mxu1 %vm9940_vm3, %v9640_v38  ;;  %vm9942_vm3 = vnez %v9686_v54 }
 0xb71   : > { %v8633_v35 = vpop.f32.mrb[40].mxu0 }
 0xb72   : > { %9941 = vst [vmem:[#allocation60_spill] sm:$0xff] %v8633_v35  ;;  %v2902_v50 = vrot.slane %v8633_v35, 4  ;;  %v8639_v45 = vpop.f32.mrb[41].mxu0 }
 0xb73   : > { %v8635_v46 = vpop.f32.mrb[40].mxu1  ;;  %v2908_v15 = vrot.slane %v8639_v45, 4  ;;  %v2858_v21 = vpop.f32.mrb[42].mxu0 }
 0xb74   : > { %v2914_v16 = vrot.slane %v8635_v46, 4  ;;  %v8641_v37 = vpop.f32.mrb[41].mxu1  ;;  %v2903_v36 = vadd.f32 %v2902_v50, %v8633_v35  ;;  %v2859_v42 = vpop.f32.mrb[43].mxu0 }
 0xb75   : > { %v2920_v44 = vrot.slane %v8641_v37, 4  ;;  %v2899_v2 = vpop.f32.mrb[42].mxu1  ;;  %v2909_v59 = vadd.f32 %v2908_v15, %v8639_v45 }
 0xb76   : > { %v2915_v5 = vadd.f32 %v2914_v16, %v8635_v46  ;;  %v2900_v1 = vpop.f32.mrb[43].mxu1  ;;  %v2904_v39 = vrot.slane %v2903_v36, 2 }
 0xb77   : > { %v2921_v3 = vadd.f32 %v2920_v44, %v8641_v37  ;;  %v2910_v8 = vrot.slane %v2909_v59, 2 }
 0xb78   : > { %v2916_v29 = vrot.slane %v2915_v5, 2  ;;  %v2905_v61 = vadd.f32 %v2904_v39, %v2903_v36  ;;  %v9970_v36 = vld [vmem:[#allocation57_spill] sm:$0xff] }
 0xb79   : > { %v2922_v58 = vrot.slane %v2921_v3, 2  ;;  %v2911_v60 = vadd.f32 %v2910_v8, %v2909_v59  ;;  %v9974_v59 = vld [vmem:[#allocation59_spill] sm:$0xff] }
 0xb7a   : > { %v2917_v14 = vadd.f32 %v2916_v29, %v2915_v5  ;;  %v2906_v21 = vrot.slane %v2905_v61, 1  ;;  %v9972_v5 = vld [vmem:[#allocation58_spill] sm:$0xff] }
 0xb7b   : > { %v2923_v11 = vadd.f32 %v2922_v58, %v2921_v3  ;;  %v2912_v0 = vrot.slane %v2911_v60, 1 }
 0xb7c   : > { %v2918_v2 = vrot.slane %v2917_v14, 1  ;;  %v2907_v42 = vadd.f32 %v2906_v21, %v2905_v61 }
 0xb7d   : > { %v2924_v50 = vrot.slane %v2923_v11, 1  ;;  %v2913_v35 = vadd.f32 %v2912_v0, %v2911_v60 }
 0xb7e   : > { %v2919_v1 = vadd.f32 %v2918_v2, %v2917_v14 }
 0xb7f   : > { %v2925_v16 = vadd.f32 %v2924_v50, %v2923_v11  ;;  %2990 = vmatprep.mubr.f32.mxu0 %v2913_v35  ;;  %v9976_v50 = vld [vmem:[#allocation6_spill] sm:$0xff] }
 0xb80   : > { %2991 = vmatmul.mubr.f32.vlgmr.msra.gmra.mrb[44].mxu0 %v2907_v42 }
 0xb81   : > { %3060 = vmatprep.mubr.f32.mxu1 %v2925_v16  ;;  %6143 = vmatpush1.bf16.msk.msra.mxu0 %vm9942_vm3, %v9640_v38  ;;  %vm9947_vm3 = vnez %v9706_v53 }
 0xb82   : > { %3061 = vmatmul.mubr.f32.vlgmr.msra.gmra.mrb[44].mxu1 %v2919_v1  ;;  %6145 = vmatprep.subr.msk.bf16.mxu0 %vm9944_vm12, %v9640_v38 }
 0xb83   : > { %6151 = vmatpush1.bf16.msk.msra.mxu1 %vm9943_vm8, %v9640_v38  ;;  %3133 = vmatprep.mubr.f32.mxu0 %v9695_v20 }
 0xb84   : > { %6153 = vmatprep.subr.msk.bf16.mxu1 %vm9945_vm4, %v9640_v38  ;;  %3204 = vmatprep.mubr.f32.mxu1 %v9695_v20 }
 0xb85   : > { %6147 = vmatpush1.bf16.msk.msra.mxu0 %vm9946_vm11, %v9640_v38  ;;  %vm9948_vm11 = vcmask 261120  }
 0xb86   : > { %6157 = vmatprep.subr.msk.bf16.mxu0 %vm9704_vm7, %v9640_v38  ;;  %vm9949_vm4 = vmmov %vm9948_vm11  ;;  %vm9951_vm7 = vnez %v9515_v63 }
 0xb87   : > { %6155 = vmatpush1.bf16.msk.msra.mxu1 %vm9947_vm3, %v9640_v38 }
 0xb88   : > { %6189 = vmatprep.subr.msk.bf16.mxu1 %vm9708_vm13, %v9640_v38  ;;  %vm9950_vm13 = vnez %v9526_v25 }
 0xc53   : > { %v5500_v14 = vpop.f32.mrb[44].mxu0 }
 0xc54   : > { %v5501_v11 = vpop.f32.mrb[45].mxu0 }
 0xc55   : > { %v5535_v0 = vpop.f32.mrb[44].mxu1  ;;  %v5502_v35 = vadd.f32 %v5501_v11, %v5500_v14 }
 0xc56   : > { %v5536_v60 = vpop.f32.mrb[45].mxu1 }
 0xc57   : > { %v5537_v15 = vadd.f32 %v5536_v60, %v5535_v0  ;;  %v9977_v0 = vld [vmem:[#allocation60_spill] sm:$0xff] }
 0xc59   : > { %v3063_v44 = vadd.f32 %v5537_v15, %v5502_v35 }
 0xc5b   : > { %4926 = vmatmul.mubr.msk.f32.vlgmr.msra.gmra.mrb[46].mxu0 %vm9948_vm11, %v3063_v44  ;;  %4935 = vmatmul.mubr.msk.f32.vlgmr.msra.gmra.mrb[46].mxu1 %vm9949_vm4, %v3063_v44  ;;  %vm9952_vm11 = vnez %v9544_v51  ;;  %vm9953_vm4 = vnez %v9537_v18 }
 0xc5c   : > { %6159 = vmatpush3.bf16.msk.msra.mxu0 %vm9709_vm2, %v9640_v38  ;;  %6191 = vmatpush3.bf16.msk.msra.mxu1 %vm9905_vm15, %v9640_v38  ;;  %vm9954_vm2 = vnez %v9553_v41 }
 0xc5d   : > { %6161 = vmatprep.subr.msk.bf16.mxu0 %vm9950_vm13, %v9640_v38  ;;  %6193 = vmatprep.subr.msk.bf16.mxu1 %vm9951_vm7, %v9640_v38 }
 0xc60   : > { %6163 = vmatpush3.bf16.msk.msra.mxu0 %vm9952_vm11, %v9640_v38  ;;  %6195 = vmatpush3.bf16.msk.msra.mxu1 %vm9953_vm4, %v9640_v38  ;;  %vm9955_vm11 = vnez %v9582_v32  ;;  %vm9956_vm4 = vnez %v9585_v13 }
 0xc61   : > { %6165 = vmatprep.subr.msk.bf16.mxu0 %vm9954_vm2, %v9640_v38  ;;  %6197 = vmatprep.subr.msk.bf16.mxu1 %vm9911_vm14, %v9640_v38  ;;  %vm9957_vm2 = vnez %v9588_v62  ;;  %vm9958_vm14 = vnez %v9601_v30 }
 0xc64   : > { %6167 = vmatpush3.bf16.msk.msra.mxu0 %vm9912_vm6, %v9640_v38  ;;  %6199 = vmatpush3.bf16.msk.msra.mxu1 %vm9913_vm0, %v9640_v38  ;;  %vm9959_vm0 = vnez %v9604_v33 }
 0xc65   : > { %6169 = vmatprep.subr.msk.bf16.mxu0 %vm9955_vm11, %v9640_v38  ;;  %6201 = vmatprep.subr.msk.bf16.mxu1 %vm9956_vm4, %v9640_v38  ;;  %vm9960_vm11 = vnez %v9611_v47  ;;  %vm9961_vm4 = vnez %v9615_v28 }
 0xc68   : > { %6171 = vmatpush3.bf16.msk.msra.mxu0 %vm9957_vm2, %v9640_v38  ;;  %6203 = vmatpush3.bf16.msk.msra.mxu1 %vm9958_vm14, %v9640_v38  ;;  %vm9962_vm2 = vnez %v9621_v26  ;;  %vm9963_vm14 = vnez %v9627_v22 }
 0xc69   : > { %6173 = vmatprep.subr.msk.bf16.mxu0 %vm9843_vm5, %v9640_v38  ;;  %6205 = vmatprep.subr.msk.bf16.mxu1 %vm9959_vm0, %v9640_v38 }
 0xc6c   : > { %6175 = vmatpush3.bf16.msk.msra.mxu0 %vm9960_vm11, %v9640_v38  ;;  %6207 = vmatpush3.bf16.msk.msra.mxu1 %vm9961_vm4, %v9640_v38  ;;  %vm9964_vm11 = vnez %v9923_v49  ;;  %vm9965_vm4 = vnez %v9925_v43 }
 0xc6d   : > { %6177 = vmatprep.subr.msk.bf16.mxu0 %vm9962_vm2, %v9640_v38  ;;  %6209 = vmatprep.subr.msk.bf16.mxu1 %vm9963_vm14, %v9640_v38  ;;  %vm9966_vm2 = vnez %v9927_v27  ;;  %vm9967_vm14 = vnez %v9929_v40 }
 0xc70   : > { %6179 = vmatpush3.bf16.msk.msra.mxu0 %vm9805_vm1, %v9640_v38  ;;  %6211 = vmatpush3.bf16.msk.msra.mxu1 %vm9922_vm9, %v9640_v38  ;;  %vm9968_vm9 = vnez %v9932_v48 }
 0xc71   : > { %6181 = vmatprep.subr.msk.bf16.mxu0 %vm9964_vm11, %v9640_v38  ;;  %6213 = vmatprep.subr.msk.bf16.mxu1 %vm9965_vm4, %v9640_v38  ;;  %vm9969_vm11 = vnez %v9933_v17  ;;  %vm9971_vm4 = vnez %v9970_v36 }
 0xc74   : > { %6183 = vmatpush3.bf16.msk.msra.mxu0 %vm9966_vm2, %v9640_v38  ;;  %6215 = vmatpush3.bf16.msk.msra.mxu1 %vm9967_vm14, %v9640_v38  ;;  %vm9973_vm2 = vnez %v9972_v5  ;;  %vm9975_vm14 = vnez %v9974_v59 }
 0xc75   : > { %6185 = vmatprep.subr.msk.bf16.mxu0 %vm9734_vm10, %v9640_v38  ;;  %6217 = vmatprep.subr.msk.bf16.mxu1 %vm9968_vm9, %v9640_v38 }
 0xc78   : > { %6187 = vmatpush3.bf16.msk.msra.mxu0 %vm9969_vm11, %v9640_v38  ;;  %6219 = vmatpush3.bf16.msk.msra.mxu1 %vm9971_vm4, %v9640_v38  ;;  %vm9984_vm4 = vnez %v9702_v6 }
 0xc79   : > { %6221 = vmatprep.subr.msk.bf16.mxu0 %vm9973_vm2, %v9640_v38  ;;  %6229 = vmatprep.subr.msk.bf16.mxu1 %vm9975_vm14, %v9640_v38  ;;  %vm9982_vm14 = vnez %v9686_v54  ;;  %vm9983_vm2 = vnez %v9699_v4 }
 0xd2e   : > { %v3135_v3 = vpop.f32.mrb[46].mxu0  ;;  %v3206_v39 = vpop.f32.mrb[46].mxu1 }
 0xd2f   : > { %v3211_v29 = vmul.f32 0.0078125, %v3135_v3  ;;  %v3213_v8 = vmul.f32 0.0078125, %v3206_v39  ;;  %v3137_v58 = vpop.f32.mrb[47].mxu0  ;;  %v3208_v61 = vpop.f32.mrb[47].mxu1 }
 0xd30   : > { %v3212_v21 = vmul.f32 0.0078125, %v3137_v58  ;;  %v3214_v2 = vmul.f32 0.0078125, %v3208_v61 }
 0xd31   : > { %v3218_v16 = vrot.slane %v3211_v29, %v9976_v50  ;;  %v3226_v42 = vrot.slane %v3213_v8, %v9976_v50 }
 0xd32   : > { %v3222_v1 = vrot.slane %v3212_v21, %v9976_v50  ;;  %v3230_v14 = vrot.slane %v3214_v2, %v9976_v50 }
 0xd33   : > { %v8778_v11 = vsub.f32 %v9977_v0, %v3218_v16  ;;  %v8781_v60 = vsub.f32 %v8635_v46, %v3226_v42 }
 0xd34   : > { %v8784_v35 = vsub.f32 %v8639_v45, %v3222_v1  ;;  %v8787_v15 = vsub.f32 %v8641_v37, %v3230_v14 }
 0xd35   : > { %9978 = vst [vmem:[#allocation16_spill] sm:$0xff] %v8778_v11  ;;  %9979 = vst [vmem:[#allocation17_spill] sm:$0xff] %v8781_v60  ;;  %v3235_v44 = vmul.f32 %v8778_v11, %v8778_v11  ;;  %v3237_v3 = vmul.f32 %v8781_v60, %v8781_v60 }
 0xd36   : > { %9980 = vst [vmem:[#allocation18_spill] sm:$0xff] %v8784_v35  ;;  %9981 = vst [vmem:[#allocation20_spill] sm:$0xff] %v8787_v15  ;;  %v3236_v39 = vmul.f32 %v8784_v35, %v8784_v35  ;;  %v3238_v29 = vmul.f32 %v8787_v15, %v8787_v15 }
 0xd37   : > { %v3239_v46 = vrot.slane %v3235_v44, 4  ;;  %v3251_v8 = vrot.slane %v3237_v3, 4 }
 0xd38   : > { %v3245_v58 = vrot.slane %v3236_v39, 4  ;;  %v3257_v45 = vrot.slane %v3238_v29, 4 }
 0xd39   : > { %v3240_v61 = vadd.f32 %v3239_v46, %v3235_v44  ;;  %v3252_v21 = vadd.f32 %v3251_v8, %v3237_v3 }
 0xd3a   : > { %v3246_v37 = vadd.f32 %v3245_v58, %v3236_v39  ;;  %v3258_v2 = vadd.f32 %v3257_v45, %v3238_v29 }
 0xd3b   : > { %v3241_v16 = vrot.slane %v3240_v61, 2  ;;  %v3253_v42 = vrot.slane %v3252_v21, 2 }
 0xd3c   : > { %v3247_v1 = vrot.slane %v3246_v37, 2  ;;  %v3259_v14 = vrot.slane %v3258_v2, 2 }
 0xd3d   : > { %v3242_v0 = vadd.f32 %v3241_v16, %v3240_v61  ;;  %v3254_v60 = vadd.f32 %v3253_v42, %v3252_v21  ;;  %v9998_v16 = vld [vmem:[#allocation62_spill] sm:$0xff] }
 0xd3e   : > { %v3248_v11 = vadd.f32 %v3247_v1, %v3246_v37  ;;  %v3260_v50 = vadd.f32 %v3259_v14, %v3258_v2  ;;  %v9997_v37 = vld [vmem:[#allocation63_spill] sm:$0xff]  ;;  %v3604_v42 = vrot.slane %v9998_v16, 4 }
 0xd3f   : > { %v3243_v35 = vrot.slane %v3242_v0, 1  ;;  %v3255_v59 = vrot.slane %v3254_v60, 1  ;;  %v3592_v2 = vrot.slane %v9997_v37, 4 }
 0xd40   : > { %v3249_v5 = vrot.slane %v3248_v11, 1  ;;  %v3261_v15 = vrot.slane %v3260_v50, 1  ;;  %v3605_v14 = vadd.f32 %v3604_v42, %v9998_v16 }
 0xd41   : > { %v3244_v48 = vadd.f32 %v3243_v35, %v3242_v0  ;;  %v3256_v9 = vadd.f32 %v3255_v59, %v3254_v60  ;;  %v3593_v1 = vadd.f32 %v3592_v2, %v9997_v37 }
 0xd42   : > { %v3250_v36 = vadd.f32 %v3249_v5, %v3248_v11  ;;  %v3262_v17 = vadd.f32 %v3261_v15, %v3260_v50 }
 0xd43   : > { %v3594_v0 = vrot.slane %v3593_v1, 2 }
 0xd44   : > { %3327 = vmatprep.mubr.f32.mxu0 %v3250_v36  ;;  %3397 = vmatprep.mubr.f32.mxu1 %v3262_v17  ;;  %v9988_v17 = vld [vmem:[#allocation64_spill] sm:$0xff] }
 0xd45   : > { %3328 = vmatmul.mubr.f32.vlgmr.msra.gmra.mrb[48].mxu0 %v3244_v48  ;;  %3398 = vmatmul.mubr.f32.vlgmr.msra.gmra.mrb[48].mxu1 %v3256_v9  ;;  %v9987_v9 = vld [vmem:[#allocation65_spill] sm:$0xff]  ;;  %v3610_v36 = vrot.slane %v9988_v17, 4 }
 0xd46   : > { %6223 = vmatpush1.bf16.msk.msra.mxu0 %vm9982_vm14, %v9640_v38  ;;  %6231 = vmatpush1.bf16.msk.msra.mxu1 %vm9943_vm8, %v9640_v38  ;;  %vm9985_vm8 = vnez %v9487_v56  ;;  %v3598_v48 = vrot.slane %v9987_v9, 4 }
 0xd47   : > { %6225 = vmatprep.subr.msk.bf16.mxu0 %vm9944_vm12, %v9640_v38  ;;  %6233 = vmatprep.subr.msk.bf16.mxu1 %vm9983_vm2, %v9640_v38  ;;  %vm9986_vm12 = vnez %v9480_v55  ;;  %v3611_v59 = vadd.f32 %v3610_v36, %v9988_v17  ;;  %v3595_v36 = vadd.f32 %v3594_v0, %v3593_v1 }
 0xd48   : > { %3470 = vmatprep.mubr.f32.mxu0 %v9695_v20  ;;  %3541 = vmatprep.mubr.f32.mxu1 %v9695_v20  ;;  %v3599_v5 = vadd.f32 %v3598_v48, %v9987_v9  ;;  %v3606_v48 = vrot.slane %v3605_v14, 2 }
 0xd49   : > { %v3612_v11 = vrot.slane %v3611_v59, 2 }
 0xd4a   : > { %6227 = vmatpush1.bf16.msk.msra.mxu0 %vm9984_vm4, %v9640_v38  ;;  %6235 = vmatpush1.bf16.msk.msra.mxu1 %vm9947_vm3, %v9640_v38  ;;  %v3600_v50 = vrot.slane %v3599_v5, 2  ;;  %vm9991_vm3 = vnez %v9513_v10 }
 0xd4b   : > { %6237 = vmatprep.subr.msk.bf16.mxu0 %vm9985_vm8, %v9640_v38  ;;  %6269 = vmatprep.subr.msk.bf16.mxu1 %vm9986_vm12, %v9640_v38  ;;  %v3613_v35 = vadd.f32 %v3612_v11, %v3611_v59  ;;  %vm9989_vm12 = vcmask 261120   ;;  %v3596_v59 = vrot.slane %v3595_v36, 1  ;;  %v10012_v11 = vld [vmem:[#allocation54_spill] sm:$0xff] }
 0xd4c   : > { %v3601_v60 = vadd.f32 %v3600_v50, %v3599_v5  ;;  %vm9990_vm8 = vmmov %vm9989_vm12  ;;  %v3607_v5 = vadd.f32 %v3606_v48, %v3605_v14 }
 0xd4d   : > { %v3614_v58 = vrot.slane %v3613_v35, 1 }
 0xd4e   : > { %v3602_v8 = vrot.slane %v3601_v60, 1  ;;  %v3608_v50 = vrot.slane %v3607_v5, 1 }
 0xd4f   : > { %v3615_v21 = vadd.f32 %v3614_v58, %v3613_v35  ;;  %v10014_v35 = vld [vmem:[#allocation56_spill] sm:$0xff] }
 0xd50   : > { %v3603_v61 = vadd.f32 %v3602_v8, %v3601_v60 }
 0xe18   : > { %v5570_v15 = vpop.f32.mrb[48].mxu0  ;;  %v5605_v44 = vpop.f32.mrb[48].mxu1 }
 0xe19   : > { %v5571_v3 = vpop.f32.mrb[49].mxu0  ;;  %v5606_v39 = vpop.f32.mrb[49].mxu1 }
 0xe1a   : > { %v5572_v29 = vadd.f32 %v5571_v3, %v5570_v15  ;;  %v5607_v46 = vadd.f32 %v5606_v39, %v5605_v44  ;;  %v10015_v15 = vld [vmem:[#allocation57_spill] sm:$0xff]  ;;  %v3597_v44 = vadd.f32 %v3596_v59, %v3595_v36  ;;  %v3609_v3 = vadd.f32 %v3608_v50, %v3607_v5  ;;  %v10017_v39 = vld [vmem:[#allocation58_spill] sm:$0xff] }
 0xe1c   : > { %v3400_v45 = vadd.f32 %v5607_v46, %v5572_v29  ;;  %v10019_v29 = vld [vmem:[#allocation59_spill] sm:$0xff] }
 0xe1e   : > { %5008 = vmatmul.mubr.msk.f32.vlgmr.msra.gmra.mrb[50].mxu0 %vm9989_vm12, %v3400_v45  ;;  %5017 = vmatmul.mubr.msk.f32.vlgmr.msra.gmra.mrb[50].mxu1 %vm9990_vm8, %v3400_v45  ;;  %vm9992_vm12 = vnez %v9544_v51  ;;  %vm9993_vm8 = vnez %v9537_v18 }
 0xe1f   : > { %6239 = vmatpush3.bf16.msk.msra.mxu0 %vm9991_vm3, %v9640_v38  ;;  %6271 = vmatpush3.bf16.msk.msra.mxu1 %vm9905_vm15, %v9640_v38  ;;  %vm9994_vm15 = vnez %v9553_v41  ;;  %vm9995_vm3 = vnez %v9546_v24 }
 0xe20   : > { %3680 = vmatprep.mubr.f32.mxu0 %v3603_v61  ;;  %3750 = vmatprep.mubr.f32.mxu1 %v3615_v21 }
 0xe21   : > { %6241 = vmatprep.subr.msk.bf16.mxu0 %vm9950_vm13, %v9640_v38  ;;  %6273 = vmatprep.subr.msk.bf16.mxu1 %vm9951_vm7, %v9640_v38  ;;  %vm9996_vm7 = vnez %v9564_v12 }
 0xe23   : > { %6243 = vmatpush3.bf16.msk.msra.mxu0 %vm9992_vm12, %v9640_v38  ;;  %6275 = vmatpush3.bf16.msk.msra.mxu1 %vm9993_vm8, %v9640_v38  ;;  %vm9999_vm8 = vnez %v9582_v32 }
 0xe24   : > { %6245 = vmatprep.subr.msk.bf16.mxu0 %vm9994_vm15, %v9640_v38  ;;  %6277 = vmatprep.subr.msk.bf16.mxu1 %vm9995_vm3, %v9640_v38  ;;  %vm10000_vm15 = vnez %v9585_v13  ;;  %vm10001_vm3 = vnez %v9588_v62 }
 0xe27   : > { %6247 = vmatpush3.bf16.msk.msra.mxu0 %vm9912_vm6, %v9640_v38  ;;  %6279 = vmatpush3.bf16.msk.msra.mxu1 %vm9996_vm7, %v9640_v38  ;;  %vm10002_vm6 = vnez %v9601_v30 }
 0xe28   : > { %6249 = vmatprep.subr.msk.bf16.mxu0 %vm9999_vm8, %v9640_v38  ;;  %6281 = vmatprep.subr.msk.bf16.mxu1 %vm10000_vm15, %v9640_v38  ;;  %vm10003_vm15 = vnez %v9611_v47 }
 0xe2b   : > { %6251 = vmatpush3.bf16.msk.msra.mxu0 %vm10001_vm3, %v9640_v38  ;;  %6283 = vmatpush3.bf16.msk.msra.mxu1 %vm10002_vm6, %v9640_v38  ;;  %vm10004_vm3 = vnez %v9615_v28  ;;  %vm10005_vm6 = vnez %v9621_v26 }
 0xe2c   : > { %6253 = vmatprep.subr.msk.bf16.mxu0 %vm9843_vm5, %v9640_v38  ;;  %6285 = vmatprep.subr.msk.bf16.mxu1 %vm9959_vm0, %v9640_v38  ;;  %vm10006_vm5 = vnez %v9627_v22 }
 0xe2f   : > { %6255 = vmatpush3.bf16.msk.msra.mxu0 %vm10003_vm15, %v9640_v38  ;;  %6287 = vmatpush3.bf16.msk.msra.mxu1 %vm10004_vm3, %v9640_v38  ;;  %vm10007_vm15 = vnez %v9921_v19  ;;  %vm10008_vm3 = vnez %v9923_v49 }
 0xe30   : > { %6257 = vmatprep.subr.msk.bf16.mxu0 %vm10005_vm6, %v9640_v38  ;;  %6289 = vmatprep.subr.msk.bf16.mxu1 %vm10006_vm5, %v9640_v38  ;;  %vm10009_vm6 = vnez %v9925_v43  ;;  %vm10010_vm5 = vnez %v9927_v27 }
 0xe33   : > { %6259 = vmatpush3.bf16.msk.msra.mxu0 %vm9805_vm1, %v9640_v38  ;;  %6291 = vmatpush3.bf16.msk.msra.mxu1 %vm10007_vm15, %v9640_v38  ;;  %vm10011_vm1 = vnez %v9929_v40 }
 0xe34   : > { %6261 = vmatprep.subr.msk.bf16.mxu0 %vm10008_vm3, %v9640_v38  ;;  %6293 = vmatprep.subr.msk.bf16.mxu1 %vm10009_vm6, %v9640_v38 }
 0xe37   : > { %6263 = vmatpush3.bf16.msk.msra.mxu0 %vm10010_vm5, %v9640_v38  ;;  %6295 = vmatpush3.bf16.msk.msra.mxu1 %vm10011_vm1, %v9640_v38  ;;  %vm10016_vm5 = vnez %v10015_v15  ;;  %vm10018_vm1 = vnez %v10017_v39 }
 0xe38   : > { %6265 = vmatprep.subr.msk.bf16.mxu0 %vm9734_vm10, %v9640_v38  ;;  %6297 = vmatprep.subr.msk.bf16.mxu1 %vm9968_vm9, %v9640_v38  ;;  %vm10020_vm10 = vnez %v10019_v29 }
 0xe3b   : > { %6267 = vmatpush3.bf16.msk.msra.mxu0 %vm9969_vm11, %v9640_v38  ;;  %6299 = vmatpush3.bf16.msk.msra.mxu1 %vm10016_vm5, %v9640_v38  ;;  %vm10021_vm11 = vnez %v9688_v23  ;;  %vm10022_vm5 = vnez %v9697_v52 }
 0xe3c   : > { %6301 = vmatprep.subr.msk.bf16.mxu0 %vm10018_vm1, %v9640_v38  ;;  %6309 = vmatprep.subr.msk.bf16.mxu1 %vm10020_vm10, %v9640_v38 }
 0xe3e   : > { %3681 = vmatmul.mubr.f32.vlgmr.msra.gmra.mrb[52].mxu0 %v3597_v44  ;;  %3751 = vmatmul.mubr.f32.vlgmr.msra.gmra.mrb[52].mxu1 %v3609_v3  ;;  %v10027_v3 = vld [vmem:[#allocation16_spill] sm:$0xff] }
 0xe3f   : > { %6303 = vmatpush1.bf16.msk.msra.mxu0 %vm9982_vm14, %v9640_v38  ;;  %6311 = vmatpush1.bf16.msk.msra.mxu1 %vm10021_vm11, %v9640_v38  ;;  %vm10023_vm14 = vnez %v9706_v53  ;;  %vm10024_vm11 = vnez %v9487_v56  ;;  %v10033_v53 = vld [vmem:[#allocation36_spill] sm:$0xff] }
 0xe40   : > { %6305 = vmatprep.subr.msk.bf16.mxu0 %vm10022_vm5, %v9640_v38  ;;  %6313 = vmatprep.subr.msk.bf16.mxu1 %vm9983_vm2, %v9640_v38  ;;  %vm10025_vm5 = vnez %v9480_v55  ;;  %v10026_v55 = vld [vmem:[#allocation6_spill] sm:$0xff]  ;;  %vm10043_vm2 = vnez %v9515_v63 }
 0xe41   : > { %3823 = vmatprep.mubr.f32.mxu0 %v9695_v20  ;;  %3894 = vmatprep.mubr.f32.mxu1 %v9695_v20 }
 0xe43   : > { %6307 = vmatpush1.bf16.msk.msra.mxu0 %vm9984_vm4, %v9640_v38  ;;  %6315 = vmatpush1.bf16.msk.msra.mxu1 %vm10023_vm14, %v9640_v38  ;;  %vm10041_vm14 = vnez %v9513_v10  ;;  %vm10042_vm4 = vnez %v9503_v34 }
 0xe44   : > { %6317 = vmatprep.subr.msk.bf16.mxu0 %vm10024_vm11, %v9640_v38  ;;  %6349 = vmatprep.subr.msk.bf16.mxu1 %vm10025_vm5, %v9640_v38  ;;  %vm10039_vm5 = vcmask 261120  }
 0xe45   : > { %vm10040_vm11 = vmmov %vm10039_vm5 }
 0xef1   : > { %v3472_v46 = vpop.f32.mrb[50].mxu0  ;;  %v3543_v8 = vpop.f32.mrb[50].mxu1 }
 0xef2   : > { %v3548_v58 = vmul.f32 0.0078125, %v3472_v46  ;;  %v3550_v45 = vmul.f32 0.0078125, %v3543_v8  ;;  %v3474_v61 = vpop.f32.mrb[51].mxu0  ;;  %v3545_v21 = vpop.f32.mrb[51].mxu1 }
 0xef3   : > { %v3549_v2 = vmul.f32 0.0078125, %v3474_v61  ;;  %v3551_v42 = vmul.f32 0.0078125, %v3545_v21  ;;  %v10029_v21 = vld [vmem:[#allocation34_spill] sm:$0xff] }
 0xef4   : > { %v3552_v1 = vadd.f32 1e-05, %v3548_v58  ;;  %v3554_v14 = vadd.f32 1e-05, %v3550_v45  ;;  %v10028_v58 = vld [vmem:[#allocation17_spill] sm:$0xff] }
 0xef5   : > { %v3553_v0 = vadd.f32 1e-05, %v3549_v2  ;;  %v3555_v48 = vadd.f32 1e-05, %v3551_v42  ;;  %v10030_v42 = vld [vmem:[#allocation18_spill] sm:$0xff] }
 0xef6   : > { %6520 = vrsqrt.f32 %v3552_v1 }
 0xef7   : > { %6522 = vrsqrt.f32 %v3554_v14  ;;  %v10031_v14 = vld [vmem:[#allocation35_spill] sm:$0xff] }
 0xef8   : > { %6524 = vrsqrt.f32 %v3553_v0 }
 0xef9   : > { %6526 = vrsqrt.f32 %v3555_v48  ;;  %v10032_v48 = vld [vmem:[#allocation20_spill] sm:$0xff] }
 0xf00   : > { %v6521_v56 = vpop.eup %6520 }
 0xf01   : > { %v6523_v36 = vpop.eup %6522  ;;  %v3563_v5 = vrot.slane %v6521_v56, %v10026_v55 }
 0xf02   : > { %v6525_v59 = vpop.eup %6524  ;;  %v3571_v50 = vrot.slane %v6523_v36, %v10026_v55  ;;  %v10034_v36 = vld [vmem:[#allocation39_spill] sm:$0xff] }
 0xf03   : > { %v6527_v44 = vpop.eup %6526  ;;  %v3576_v46 = vmul.f32 %v3563_v5, %v10027_v3  ;;  %v3567_v8 = vrot.slane %v6525_v59, %v10026_v55  ;;  %v10035_v5 = vld [vmem:[#allocation37_spill] sm:$0xff]  ;;  %v10036_v59 = vld [vmem:[#allocation40_spill] sm:$0xff] }
 0xf04   : > { %v3578_v45 = vmul.f32 %v3571_v50, %v10028_v58  ;;  %v3575_v61 = vrot.slane %v6527_v44, %v10026_v55  ;;  %v10037_v50 = vld [vmem:[#allocation41_spill] sm:$0xff] }
 0xf05   : > { %v3580_v2 = vmul.f32 %v3576_v46, %v10029_v21  ;;  %v3577_v1 = vmul.f32 %v3567_v8, %v10030_v42  ;;  %v10038_v46 = vld [vmem:[#allocation42_spill] sm:$0xff] }
 0xf06   : > { %v3582_v0 = vmul.f32 %v3578_v45, %v10031_v14  ;;  %v3579_v56 = vmul.f32 %v3575_v61, %v10032_v48 }
 0xf07   : > { %v3581_v6 = vmul.f32 %v3577_v1, %v10033_v53  ;;  %v8967_v20 = vadd.f32 %v3580_v2, %v10034_v36 }
 0xf08   : > { %v3583_v3 = vmul.f32 %v3579_v56, %v10035_v5  ;;  %v8971_v4 = vadd.f32 %v3582_v0, %v10036_v59  ;;  %v10067_v59 = vmov 0.0  }
 0xf09   : > { %v8974_v44 = vadd.f32 %v3581_v6, %v10037_v50  ;;  %v10068_v50 = vld [vmem:[#allocation67_spill] sm:$0xff] }
 0xf0a   : > { %v8977_v58 = vadd.f32 %v3583_v3, %v10038_v46  ;;  %v10065_v3 = vld [vmem:[#allocation66_spill] sm:$0xff] }
 0xf11   : > { %v5640_v8 = vpop.f32.mrb[52].mxu0  ;;  %v5675_v45 = vpop.f32.mrb[52].mxu1 }
 0xf12   : > { %v5641_v21 = vpop.f32.mrb[53].mxu0  ;;  %v5676_v61 = vpop.f32.mrb[53].mxu1 }
 0xf13   : > { %v5642_v42 = vadd.f32 %v5641_v21, %v5640_v8  ;;  %v5677_v53 = vadd.f32 %v5676_v61, %v5675_v45 }
 0xf15   : > { %v3753_v1 = vadd.f32 %v5677_v53, %v5642_v42 }
 0xf17   : > { %5090 = vmatmul.mubr.msk.f32.vlgmr.msra.gmra.mrb[54].mxu0 %vm10039_vm5, %v3753_v1  ;;  %5099 = vmatmul.mubr.msk.f32.vlgmr.msra.gmra.mrb[54].mxu1 %vm10040_vm11, %v3753_v1  ;;  %vm10044_vm5 = vnez %v9537_v18  ;;  %vm10050_vm11 = vnez %v9601_v30 }
 0xf18   : > { %6319 = vmatpush3.bf16.msk.msra.mxu0 %vm10041_vm14, %v9640_v38  ;;  %6351 = vmatpush3.bf16.msk.msra.mxu1 %vm10042_vm4, %v9640_v38  ;;  %vm10045_vm14 = vnez %v9553_v41  ;;  %vm10046_vm4 = vnez %v9546_v24 }
 0xf19   : > { %6321 = vmatprep.subr.msk.bf16.mxu0 %vm9950_vm13, %v9640_v38  ;;  %6353 = vmatprep.subr.msk.bf16.mxu1 %vm10043_vm2, %v9640_v38  ;;  %vm10047_vm13 = vnez %v9571_v57  ;;  %vm10048_vm2 = vnez %v9585_v13 }
 0xf1c   : > { %6323 = vmatpush3.bf16.msk.msra.mxu0 %vm9992_vm12, %v9640_v38  ;;  %6355 = vmatpush3.bf16.msk.msra.mxu1 %vm10044_vm5, %v9640_v38  ;;  %vm10049_vm12 = vnez %v9588_v62  ;;  %vm10051_vm5 = vnez %v9606_v7 }
 0xf1d   : > { %6325 = vmatprep.subr.msk.bf16.mxu0 %vm10045_vm14, %v9640_v38  ;;  %6357 = vmatprep.subr.msk.bf16.mxu1 %vm10046_vm4, %v9640_v38  ;;  %vm10054_vm14 = vnez %v9621_v26  ;;  %vm10055_vm4 = vnez %v9627_v22 }
 0xf20   : > { %6327 = vmatpush3.bf16.msk.msra.mxu0 %vm10047_vm13, %v9640_v38  ;;  %6359 = vmatpush3.bf16.msk.msra.mxu1 %vm9996_vm7, %v9640_v38  ;;  %vm10052_vm7 = vnez %v9611_v47  ;;  %vm10056_vm13 = vnez %v9804_v31 }
 0xf21   : > { %6329 = vmatprep.subr.msk.bf16.mxu0 %vm9999_vm8, %v9640_v38  ;;  %6361 = vmatprep.subr.msk.bf16.mxu1 %vm10048_vm2, %v9640_v38  ;;  %vm10053_vm8 = vnez %v9615_v28  ;;  %vm10058_vm2 = vnez %v9929_v40 }
 0xf24   : > { %6331 = vmatpush3.bf16.msk.msra.mxu0 %vm10049_vm12, %v9640_v38  ;;  %6363 = vmatpush3.bf16.msk.msra.mxu1 %vm10050_vm11, %v9640_v38  ;;  %vm10059_vm12 = vnez %v10012_v11  ;;  %vm10069_vm11 = vnez %v10068_v50 }
 0xf25   : > { %6333 = vmatprep.subr.msk.bf16.mxu0 %vm10051_vm5, %v9640_v38  ;;  %6365 = vmatprep.subr.msk.bf16.mxu1 %vm9959_vm0, %v9640_v38  ;;  %vm10057_vm0 = vnez %v9927_v27 }
 0xf28   : > { %6335 = vmatpush3.bf16.msk.msra.mxu0 %vm10052_vm7, %v9640_v38  ;;  %6367 = vmatpush3.bf16.msk.msra.mxu1 %vm10053_vm8, %v9640_v38  ;;  %vm10072_vm7 = vcmask 261120  }
 0xf29   : > { %6337 = vmatprep.subr.msk.bf16.mxu0 %vm10054_vm14, %v9640_v38  ;;  %6369 = vmatprep.subr.msk.bf16.mxu1 %vm10055_vm4, %v9640_v38  ;;  %vm10073_vm8 = vmmov %vm10072_vm7 }
 0xf2c   : > { %6339 = vmatpush3.bf16.msk.msra.mxu0 %vm10056_vm13, %v9640_v38  ;;  %6371 = vmatpush3.bf16.msk.msra.mxu1 %vm10007_vm15, %v9640_v38  ;;  %vm10061_vm15 = vnez %v10015_v15 }
 0xf2d   : > { %6341 = vmatprep.subr.msk.bf16.mxu0 %vm10008_vm3, %v9640_v38  ;;  %6373 = vmatprep.subr.msk.bf16.mxu1 %vm10009_vm6, %v9640_v38  ;;  %vm10060_vm3 = vnez %v10014_v35  ;;  %vm10066_vm6 = vnez %v10065_v3 }
 0xf30   : > { %6343 = vmatpush3.bf16.msk.msra.mxu0 %vm10057_vm0, %v9640_v38  ;;  %6375 = vmatpush3.bf16.msk.msra.mxu1 %vm10058_vm2, %v9640_v38 }
 0xf31   : > { %6345 = vmatprep.subr.msk.bf16.mxu0 %vm10059_vm12, %v9640_v38  ;;  %6377 = vmatprep.subr.msk.bf16.mxu1 %vm9968_vm9, %v9640_v38  ;;  %vm10063_vm9 = vnez %v9688_v23 }
 0xf34   : > { %6347 = vmatpush3.bf16.msk.msra.mxu0 %vm10060_vm3, %v9640_v38  ;;  %6379 = vmatpush3.bf16.msk.msra.mxu1 %vm10061_vm15, %v9640_v38 }
 0xf35   : > { %6381 = vmatprep.subr.msk.bf16.mxu0 %vm10018_vm1, %v9640_v38  ;;  %6389 = vmatprep.subr.msk.bf16.mxu1 %vm10020_vm10, %v9640_v38  ;;  %vm10062_vm10 = vnez %v9686_v54  ;;  %vm10064_vm1 = vnez %v9697_v52  ;;  %v10070_v54 = vld [vmem:[#allocation68_spill] sm:$0xff] }
 0xf36   : > { %vm10071_vm5 = vnez %v10070_v54 }
 0xfea   : > { %v3825_v34 = vpop.f32.mrb[54].mxu0  ;;  %v3896_v10 = vpop.f32.mrb[54].mxu1 }
 0xfeb   : > { %v3901_v63 = vmul.f32 0.0078125, %v3825_v34  ;;  %v3903_v25 = vmul.f32 0.0078125, %v3896_v10  ;;  %v3827_v18 = vpop.f32.mrb[55].mxu0  ;;  %v3898_v51 = vpop.f32.mrb[55].mxu1 }
 0xfec   : > { %v3902_v24 = vmul.f32 0.0078125, %v3827_v18  ;;  %v3904_v41 = vmul.f32 0.0078125, %v3898_v51 }
 0xfed   : > { %v3908_v12 = vrot.slane %v3901_v63, %v10026_v55  ;;  %v3916_v57 = vrot.slane %v3903_v25, %v10026_v55 }
 0xfee   : > { %v3912_v32 = vrot.slane %v3902_v24, %v10026_v55  ;;  %v3920_v13 = vrot.slane %v3904_v41, %v10026_v55 }
 0xfef   : > { %v9082_v62 = vsub.f32 %v9997_v37, %v3908_v12  ;;  %v9085_v30 = vsub.f32 %v9998_v16, %v3916_v57 }
 0xff0   : > { %v9088_v33 = vsub.f32 %v9987_v9, %v3912_v32  ;;  %v9091_v7 = vsub.f32 %v9988_v17, %v3920_v13 }
 0xff1   : > { %v3925_v47 = vmul.f32 %v9082_v62, %v9082_v62  ;;  %v3927_v28 = vmul.f32 %v9085_v30, %v9085_v30 }
 0xff2   : > { %v3926_v26 = vmul.f32 %v9088_v33, %v9088_v33  ;;  %v3928_v22 = vmul.f32 %v9091_v7, %v9091_v7 }
 0xff3   : > { %v3929_v6 = vrot.slane %v3925_v47, 4  ;;  %v3941_v31 = vrot.slane %v3927_v28, 4 }
 0xff4   : > { %v3935_v19 = vrot.slane %v3926_v26, 4  ;;  %v3947_v49 = vrot.slane %v3928_v22, 4 }
 0xff5   : > { %v3930_v43 = vadd.f32 %v3929_v6, %v3925_v47  ;;  %v3942_v27 = vadd.f32 %v3941_v31, %v3927_v28 }
 0xff6   : > { %v3936_v40 = vadd.f32 %v3935_v19, %v3926_v26  ;;  %v3948_v9 = vadd.f32 %v3947_v49, %v3928_v22  ;;  %v10074_v19 = vld [vmem:[#allocation44_spill] sm:$0xff] }
 0xff7   : > { %v3931_v17 = vrot.slane %v3930_v43, 2  ;;  %v3943_v37 = vrot.slane %v3942_v27, 2 }
 0xff8   : > { %v3937_v16 = vrot.slane %v3936_v40, 2  ;;  %v3949_v11 = vrot.slane %v3948_v9, 2 }
 0xff9   : > { %v3932_v60 = vadd.f32 %v3931_v17, %v3930_v43  ;;  %v3944_v35 = vadd.f32 %v3943_v37, %v3942_v27  ;;  %v10075_v27 = vld [vmem:[#allocation45_spill] sm:$0xff]  ;;  %v10076_v17 = vld [vmem:[#allocation47_spill] sm:$0xff] }
 0xffa   : > { %v3938_v15 = vadd.f32 %v3937_v16, %v3936_v40  ;;  %v3950_v39 = vadd.f32 %v3949_v11, %v3948_v9  ;;  %v10077_v16 = vld [vmem:[#allocation50_spill] sm:$0xff] }
 0xffb   : > { %v3933_v29 = vrot.slane %v3932_v60, 1  ;;  %v3945_v2 = vrot.slane %v3944_v35, 1 }
 0xffc   : > { %v3939_v14 = vrot.slane %v3938_v15, 1  ;;  %v3951_v0 = vrot.slane %v3950_v39, 1 }
 0xffd   : > { %v3934_v36 = vadd.f32 %v3933_v29, %v3932_v60  ;;  %v3946_v5 = vadd.f32 %v3945_v2, %v3944_v35  ;;  %v10079_v35 = vld [vmem:[#allocation51_spill] sm:$0xff] }
 0xffe   : > { %v3940_v48 = vadd.f32 %v3939_v14, %v3938_v15  ;;  %v3952_v56 = vadd.f32 %v3951_v0, %v3950_v39  ;;  %v10080_v39 = vld [vmem:[#allocation52_spill] sm:$0xff]  ;;  %v3591_v14 = vmax.f32 %v8977_v58, 0.0 }
0x1000   : > { %4017 = vmatprep.mubr.f32.mxu0 %v3940_v48  ;;  %4087 = vmatprep.mubr.f32.mxu1 %v3952_v56 }
0x1001   : > { %4018 = vmatmul.mubr.f32.vlgmr.msra.gmra.mrb[56].mxu0 %v3934_v36  ;;  %4088 = vmatmul.mubr.f32.vlgmr.msra.gmra.mrb[56].mxu1 %v3946_v5 }
0x1002   : > { %6383 = vmatpush1.bf16.msk.msra.mxu0 %vm10062_vm10, %v9640_v38  ;;  %6391 = vmatpush1.bf16.msk.msra.mxu1 %vm10063_vm9, %v9640_v38 }
0x1003   : > { %6385 = vmatprep.subr.msk.bf16.mxu0 %vm10064_vm1, %v9640_v38  ;;  %6393 = vmatprep.subr.msk.bf16.mxu1 %vm10066_vm6, %v9640_v38 }
0x1004   : > { %4160 = vmatprep.mubr.f32.mxu0 %v10067_v59  ;;  %4231 = vmatprep.mubr.f32.mxu1 %v10067_v59 }
0x1006   : > { %6387 = vmatpush1.bf16.msk.msra.mxu0 %vm10069_vm11, %v9640_v38  ;;  %6395 = vmatpush1.bf16.msk.msra.mxu1 %vm10071_vm5, %v9640_v38 }
0x10d4   : > { %v5710_v23 = vpop.f32.mrb[56].mxu0  ;;  %v5745_v46 = vpop.f32.mrb[56].mxu1 }
0x10d5   : > { %v5711_v52 = vpop.f32.mrb[57].mxu0  ;;  %v5746_v8 = vpop.f32.mrb[57].mxu1 }
0x10d6   : > { %v5712_v45 = vadd.f32 %v5711_v52, %v5710_v23  ;;  %v5747_v21 = vadd.f32 %v5746_v8, %v5745_v46 }
0x10d8   : > { %v4090_v61 = vadd.f32 %v5747_v21, %v5712_v45 }
0x10da   : > { %5172 = vmatmul.mubr.msk.f32.vlgmr.msra.gmra.mrb[58].mxu0 %vm10072_vm7, %v4090_v61  ;;  %5181 = vmatmul.mubr.msk.f32.vlgmr.msra.gmra.mrb[58].mxu1 %vm10073_vm8, %v4090_v61 }
0x11ad   : > { %v4162_v42 = vpop.f32.mrb[58].mxu0  ;;  %v4233_v53 = vpop.f32.mrb[58].mxu1 }
0x11ae   : > { %v4238_v1 = vmul.f32 0.0078125, %v4162_v42  ;;  %v4240_v34 = vmul.f32 0.0078125, %v4233_v53  ;;  %v4164_v10 = vpop.f32.mrb[59].mxu0  ;;  %v4235_v63 = vpop.f32.mrb[59].mxu1 }
0x11af   : > { %v4239_v25 = vmul.f32 0.0078125, %v4164_v10  ;;  %v4241_v38 = vmul.f32 0.0078125, %v4235_v63 }
0x11b0   : > { %v4242_v18 = vadd.f32 1e-05, %v4238_v1  ;;  %v4244_v51 = vadd.f32 1e-05, %v4240_v34 }
0x11b1   : > { %v4243_v24 = vadd.f32 1e-05, %v4239_v25  ;;  %v4245_v41 = vadd.f32 1e-05, %v4241_v38 }
0x11b2   : > { %6528 = vrsqrt.f32 %v4242_v18 }
0x11b3   : > { %6530 = vrsqrt.f32 %v4244_v51 }
0x11b4   : > { %6532 = vrsqrt.f32 %v4243_v24 }
0x11b5   : > { %6534 = vrsqrt.f32 %v4245_v41 }
0x11bc   : > { %v6529_v12 = vpop.eup %6528 }
0x11bd   : > { %v6531_v57 = vpop.eup %6530  ;;  %v4253_v32 = vrot.slane %v6529_v12, %v10026_v55 }
0x11be   : > { %v6533_v13 = vpop.eup %6532  ;;  %v4261_v47 = vrot.slane %v6531_v57, %v10026_v55 }
0x11bf   : > { %v6535_v28 = vpop.eup %6534  ;;  %v4266_v26 = vmul.f32 %v4253_v32, %v9082_v62  ;;  %v4257_v22 = vrot.slane %v6533_v13, %v10026_v55  ;;  %v3588_v62 = vmax.f32 %v8967_v20, 0.0 }
0x11c0   : > { %v4268_v6 = vmul.f32 %v4261_v47, %v9085_v30  ;;  %v4265_v31 = vrot.slane %v6535_v28, %v10026_v55  ;;  %v10078_v30 = vld [vmem:[#allocation48_spill] sm:$0xff]  ;;  %v3590_v55 = vmax.f32 %v8971_v4, 0.0 }
0x11c1   : > { %v4270_v49 = vmul.f32 %v4266_v26, %v10074_v19  ;;  %v4267_v43 = vmul.f32 %v4257_v22, %v9088_v33  ;;  %v3589_v33 = vmax.f32 %v8974_v44, 0.0 }
0x11c2   : > { %v4272_v40 = vmul.f32 %v4268_v6, %v10075_v27  ;;  %v4269_v9 = vmul.f32 %v4265_v31, %v9091_v7  ;;  %v10081_v7 = vld [vmem:[#allocation53_spill] sm:$0xff] }
0x11c3   : > { %v4271_v37 = vmul.f32 %v4267_v43, %v10076_v17  ;;  %v4274_v11 = vadd.f32 %v4270_v49, %v10077_v16 }
0x11c4   : > { %v4273_v60 = vmul.f32 %v4269_v9, %v10078_v30  ;;  %v4276_v15 = vadd.f32 %v4272_v40, %v10079_v35 }
0x11c5   : > { %v4275_v29 = vadd.f32 %v4271_v37, %v10080_v39  ;;  %v4278_v2 = vadd.f32 %v4274_v11, %v3588_v62 }
0x11c6   : > { %v4277_v0 = vadd.f32 %v4273_v60, %v10081_v7  ;;  %v4280_v48 = vadd.f32 %v4276_v15, %v3590_v55 }
0x11c7   : > { %v4279_v20 = vadd.f32 %v4275_v29, %v3589_v33  ;;  %v4282_v56 = vmax.f32 %v4278_v2, 0.0 }
0x11c8   : > { %v4281_v4 = vadd.f32 %v4277_v0, %v3591_v14  ;;  %v4284_v36 = vmax.f32 %v4280_v48, 0.0 }
0x11c9   : > { %v4283_v5 = vmax.f32 %v4279_v20, 0.0  ;;  %4286 = vst [vmem:[%s218_s30] sm:$0xff] %v4282_v56 }
0x11ca   : > { %v4285_v44 = vmax.f32 %v4281_v4, 0.0  ;;  %4288 = vst [vmem:[%s218_s30 + $0x10] sm:$0xff] %v4284_v36 }
0x11cb   : > { %4287 = vst [vmem:[%s218_s30 + $0x8] sm:$0xff] %v4283_v5 }
0x11cc   : > { %4289 = vst [vmem:[%s218_s30 + $0x18] sm:$0xff] %v4285_v44 }
0x11cd   : > { %6549 = shalt.err (!%p6546_p3)
}
0x11ce   : > { %s6550_s16 = scalar_lea.hbm %s9150_s9, 512  ;;  %s6554_s11 = scalar_lea.hbm %s9199_s5, 1024 }
0x11cf   : > { %p6551_p4 = scmp.ne.s32.totalorder %s9150_s9, %s6550_s16  ;;  %p6555_p9 = scmp.lt.u32.totalorder %s9150_s9, %s9199_s5 }
0x11d0   : > { %p6556_p10 = scmp.lt.u32.totalorder %s6554_s11, %s6550_s16  ;;  %p6558_p12 = scmp.lt.u32.totalorder %s6550_s16, %s9150_s9 }
0x11d1   : > { %p6552_p7 = pnand %p6551_p4, %p6677_p5 }
0x11d2   : > { %p6557_p11 = por %p6556_p10, %p6555_p9 }
0x11d3   : > { %p6553_p8 = pneg %p6552_p7 }
0x11d4   : > { %p6559_p13 = por %p6558_p12, %p6557_p11 }
0x11d6   : > { %p6560_p0 = pnand %p6559_p13, %p6553_p8 }
0x11d8   : > { %6563 = shalt.err (!%p6560_p0)
}
0x11d9   : > { %6396 = dma.vmem_to_hbm [thread:$0]  (%p6677_p5), %s9152_s6, 512, %s9150_s9, %s4291_s22  }
0x11da PF: > { %p6402_p1 = scmp.ge.s32.totalorder %s6598_s21, 2  ;;  %s4317_s26 = sand.u32 1, %s6586_s18  }
0x11db   : > { %s4318_s30 = scalar_lea.sflag [#allocation3], %s4317_s26 }
0x11dc   : > { %p6399_p2 = pnand %p6402_p1, %p6681_p6 }
0x11de   : > { %6581 = dma.done.wait (!%p6399_p2), %s4318_s30, 512  }
0x11df   : > { %6583 = vsyncadd (!%p6399_p2), %s4318_s30, 4294966784  ;;  %p15_p3 = scmp.ge.s32.totalorder %s6664_s24, 4   ;;  %s10082_s18 = smov %s6590_s19 }
0x11e0   : > { %s10083_s19 = smov %s6594_s20  ;;  %s10084_s20 = smov %s6675_s27 }
0x11e1   : > { %s10085_s21 = smov %s6664_s24  ;;  %17 = sbr.rel (!%p15_p3) target bundleno = 3 (0x3), region = 75 }
0x11e8   :  { %4323 = vsyncpa [#allocation3], 1 }
0x11e9   :  { %4325 = vsyncpa [#allocation3 + $0x1], 1 }

</bundles_post_ra>
